<compile_context>
chip_gen: v6e
topology: v6e:2x2x1
jax: 0.10.0
libtpu: 0.0.40
codegen_flags: <defaults>
</compile_context>

<pallas_src>
import functools

import jax
import jax.numpy as jnp
from jax.experimental import pallas as pl
from jax.experimental.pallas import tpu as pltpu


def _srcnn2_fused_kernel(p_ref, w1_ref, b1_ref, w2_ref, b2_ref, w3_ref, b3_ref,
                         o_ref, y2pad_ref, im3_ref, *, H, W, C2p, K3):
    """Fused forward for one batch element.

    p_ref   : (1, H*W, K1p)        conv1 patches (lane-dense, K zero-padded to 256)
    w1_ref  : (K1p, 128)           conv1 weights, channel-major flattened + zero-padded
    b1_ref  : (1, 128)
    w2_ref  : (128, C2p)           conv2 (1x1) weights, out channels zero-padded 64->128
    b2_ref  : (1, C2p)
    w3_ref  : (K3*K3*C2p, 128)     conv3 weights, flattened; Cin 64->128, Cout 2->128
    b3_ref  : (1, 128)
    o_ref   : (1, H*W, 128)        lane-dense output slab (only first 2 channels real)
    y2pad_ref: (H+4, W+4, C2p)     VMEM scratch: conv2 output with zero halo
    im3_ref : (H*W, K3*K3*C2p)     VMEM scratch: conv3 im2col operand
    """
    HW = H * W
    halo = K3 - 1
    pad = halo // 2

    # --- conv1 (9x9 via im2col) + ReLU: one MXU matmul (HW, 256) @ (256, 128) ---
    y1 = jnp.dot(p_ref[0], w1_ref[...], preferred_element_type=jnp.float32)
    y1 = jnp.maximum(y1 + b1_ref[...], 0.0)

    # --- conv2 (1x1) + ReLU: (HW, 128) @ (128, 128); padded out-channels stay 0 ---
    y2 = jnp.dot(y1, w2_ref[...], preferred_element_type=jnp.float32)
    y2 = jnp.maximum(y2 + b2_ref[...], 0.0)

    # --- stage conv2 output into the zero-haloed scratch ---
    # Zero only the four thin halo strips every step (interior fully overwritten).
    y2pad_ref[0:pad, :, :] = jnp.zeros((pad, W + halo, C2p), jnp.float32)
    y2pad_ref[pad + H:pad + H + pad, :, :] = jnp.zeros((pad, W + halo, C2p), jnp.float32)
    y2pad_ref[pad:pad + H, 0:pad, :] = jnp.zeros((H, pad, C2p), jnp.float32)
    y2pad_ref[pad:pad + H, pad + W:pad + W + pad, :] = jnp.zeros((H, pad, C2p), jnp.float32)
    y2pad_ref[pad:pad + H, pad:pad + W, :] = y2.reshape(H, W, C2p)

    # --- pack the 25 taps into the conv3 im2col scratch (lane-aligned column blocks) ---
    for dy in range(K3):
        for dx in range(K3):
            t = dy * K3 + dx
            im3_ref[:, t * C2p:(t + 1) * C2p] = (
                y2pad_ref[dy:dy + H, dx:dx + W, :].reshape(HW, C2p))

    # --- conv3 as ONE matmul (HW, 25*C2p) @ (25*C2p, 128); single output store ---
    y3 = jnp.dot(im3_ref[...], w3_ref[...], preferred_element_type=jnp.float32)
    o_ref[0] = (y3 + b3_ref[...]).astype(o_ref.dtype)


def _srcnn2_pallas(patches, w1f, b1, w2p, b2p, w3f, b3p, *, H, W, K3, C2p):
    N, HW, K1p = patches.shape
    C1 = w1f.shape[1]      # 128
    C3p = w3f.shape[-1]    # 128 (padded output channels)
    halo = K3 - 1

    kern = functools.partial(_srcnn2_fused_kernel, H=H, W=W, C2p=C2p, K3=K3)
    return pl.pallas_call(
        kern,
        out_shape=jax.ShapeDtypeStruct((N, HW, C3p), jnp.float32),
        grid_spec=pltpu.PrefetchScalarGridSpec(
            num_scalar_prefetch=0,
            grid=(N,),
            in_specs=[
                pl.BlockSpec((1, HW, K1p), lambda n: (n, 0, 0)),
                pl.BlockSpec((K1p, C1), lambda n: (0, 0)),
                pl.BlockSpec((1, C1), lambda n: (0, 0)),
                pl.BlockSpec((C1, C2p), lambda n: (0, 0)),
                pl.BlockSpec((1, C2p), lambda n: (0, 0)),
                pl.BlockSpec((K3 * K3 * C2p, C3p), lambda n: (0, 0)),
                pl.BlockSpec((1, C3p), lambda n: (0, 0)),
            ],
            out_specs=pl.BlockSpec((1, HW, C3p), lambda n: (n, 0, 0)),
            scratch_shapes=[
                pltpu.VMEM((H + halo, W + halo, C2p), jnp.float32),
                pltpu.VMEM((HW, K3 * K3 * C2p), jnp.float32),
            ]),
        compiler_params=pltpu.CompilerParams(
            dimension_semantics=("parallel",),
            vmem_limit_bytes=32 * 1024 * 1024),
    )(patches, w1f, b1, w2p, b2p, w3f, b3p)


def init_params(key):
    """Deterministic synthetic params. PyTorch Conv2d weight is (Cout, Cin, KH, KW);
    we store the equivalent HWIO = (KH, KW, Cin, Cout) directly."""
    ks = jax.random.split(key, 6)

    def w_init(k, kh, kw, cin, cout):
        std = 1.0 / jnp.sqrt(jnp.float32(kh * kw * cin))
        return std * jax.random.normal(k, (kh, kw, cin, cout), jnp.float32)

    def b_init(k, cout, fan_in):
        std = 1.0 / jnp.sqrt(jnp.float32(fan_in))
        return std * jax.random.normal(k, (cout,), jnp.float32)

    return {
        "w1": w_init(ks[0], 9, 9, 2, 128), "b1": b_init(ks[1], 128, 9 * 9 * 2),
        "w2": w_init(ks[2], 1, 1, 128, 64), "b2": b_init(ks[3], 64, 128),
        "w3": w_init(ks[4], 5, 5, 64, 2), "b3": b_init(ks[5], 2, 5 * 5 * 64),
    }


def srcnn2_forward(params, x_nchw):
    x = jnp.transpose(x_nchw, (0, 2, 3, 1)).astype(jnp.float32)   # NCHW -> NHWC
    N, H, W, C_in = x.shape

    kh1 = params["w1"].shape[0]        # 9
    C1 = params["w1"].shape[-1]        # 128
    C2 = params["w2"].shape[-1]        # 64
    C2p = 128                          # conv2 out / conv3 in channels, lane-dense
    K3 = params["w3"].shape[0]         # 5
    C3 = params["w3"].shape[-1]        # 2
    C3p = 128                          # conv3 out channels, lane-dense

    # conv1 patches via ONE fused XLA op. Output channel order is channel-major:
    # channel index = c * (kh*kw) + (ky*kw + kx).
    patches = jax.lax.conv_general_dilated_patches(
        x, filter_shape=(kh1, kh1), window_strides=(1, 1),
        padding=((kh1 // 2, kh1 // 2), (kh1 // 2, kh1 // 2)),
        dimension_numbers=("NHWC", "HWIO", "NHWC"))               # (N, H, W, C_in*81)
    K1 = C_in * kh1 * kh1
    K1p = -(-K1 // 128) * 128                                     # 256
    patches = jnp.pad(patches.reshape(N, H * W, K1),
                      ((0, 0), (0, 0), (0, K1p - K1)))

    # conv1 weights flattened to match the channel-major patch order.
    w1f = jnp.transpose(params["w1"], (2, 0, 1, 3)).reshape(K1, C1)
    w1f = jnp.pad(w1f, ((0, K1p - K1), (0, 0)))
    b1 = params["b1"].reshape(1, C1)

    # conv2 (1x1): plain matmul, output channels zero-padded 64 -> 128.
    w2p = jnp.pad(params["w2"].reshape(C1, C2), ((0, 0), (0, C2p - C2)))
    b2p = jnp.pad(params["b2"], (0, C2p - C2)).reshape(1, C2p)

    # conv3: pad Cin 64 -> 128 and Cout 2 -> 128 with zeros, flatten to (25*128, 128).
    w3p = jnp.pad(params["w3"], ((0, 0), (0, 0), (0, C2p - C2), (0, C3p - C3)))
    w3f = w3p.reshape(K3 * K3 * C2p, C3p)
    b3p = jnp.pad(params["b3"], (0, C3p - C3)).reshape(1, C3p)

    out = _srcnn2_pallas(patches, w1f, b1, w2p, b2p, w3f, b3p,
                         H=H, W=W, K3=K3, C2p=C2p)
    y = out[:, :, :C3].reshape(N, H, W, C3)
    return jnp.transpose(y, (0, 3, 1, 2))                          # NHWC -> NCHW


def srcnn2_reference(params, x_nchw):
    """Pure-JAX reference (lax.conv) for correctness check."""
    x = jnp.transpose(x_nchw, (0, 2, 3, 1))
    dn = ("NHWC", "HWIO", "NHWC")

    def conv(x, w, b, pad):
        y = jax.lax.conv_general_dilated(x, w, (1, 1),
                                         [(pad, pad), (pad, pad)],
                                         dimension_numbers=dn)
        return y + b

    x = jax.nn.relu(conv(x, params["w1"], params["b1"], 4))
    x = jax.nn.relu(conv(x, params["w2"], params["b2"], 0))
    x = conv(x, params["w3"], params["b3"], 2)
    return jnp.transpose(x, (0, 3, 1, 2))


if __name__ == "__main__":
    key = jax.random.PRNGKey(0)
    kx, kp = jax.random.split(key)
    params = init_params(kp)

    # conv1 expects 2 input channels: x is NCHW [2, 2, 16, 16]
    x = jax.random.normal(kx, (2, 2, 16, 16), jnp.float32)

    fwd = jax.jit(srcnn2_forward)
    ref_fn = jax.jit(srcnn2_reference)

    out = jax.block_until_ready(fwd(params, x))
    ref = jax.block_until_ready(ref_fn(params, x))

    assert out.shape == (2, 2, 16, 16), out.shape
    assert jnp.allclose(out, ref, atol=1e-3, rtol=1e-3), "mismatch vs reference"
    print("KERNEL_OK")
</pallas_src>

<mosaic_0001>
module attributes {stable_mosaic.version = 11 : i64} {
  func.func @_srcnn2_fused_kernel(%arg0: i32, %arg1: memref<1x256x256xf32, #tpu.memory_space<vmem>>, %arg2: memref<256x128xf32, #tpu.memory_space<vmem>>, %arg3: memref<1x128xf32, #tpu.memory_space<vmem>>, %arg4: memref<128x128xf32, #tpu.memory_space<vmem>>, %arg5: memref<1x128xf32, #tpu.memory_space<vmem>>, %arg6: memref<3200x128xf32, #tpu.memory_space<vmem>>, %arg7: memref<1x128xf32, #tpu.memory_space<vmem>>, %arg8: memref<1x256x128xf32, #tpu.memory_space<vmem>>, %arg9: memref<20x20x128xf32, #tpu.memory_space<vmem>>, %arg10: memref<256x3200xf32, #tpu.memory_space<vmem>>) attributes {dimension_semantics = [#tpu.dimension_semantics<parallel>], iteration_bounds = array<i64: 2>, scalar_prefetch = 0 : i64, scratch_operands = 2 : i64, tpu.core_type = #tpu.core_type<tc>, window_params = [{transform_indices = @transform_0, window_bounds = array<i64: 1, 256, 256>}, {pipeline_mode = #tpu.pipeline_mode<synchronous>, transform_indices = @transform_1, window_bounds = array<i64: 256, 128>}, {pipeline_mode = #tpu.pipeline_mode<synchronous>, transform_indices = @transform_2, window_bounds = array<i64: 1, 128>}, {pipeline_mode = #tpu.pipeline_mode<synchronous>, transform_indices = @transform_3, window_bounds = array<i64: 128, 128>}, {pipeline_mode = #tpu.pipeline_mode<synchronous>, transform_indices = @transform_4, window_bounds = array<i64: 1, 128>}, {pipeline_mode = #tpu.pipeline_mode<synchronous>, transform_indices = @transform_5, window_bounds = array<i64: 3200, 128>}, {pipeline_mode = #tpu.pipeline_mode<synchronous>, transform_indices = @transform_6, window_bounds = array<i64: 1, 128>}, {transform_indices = @transform_7, window_bounds = array<i64: 1, 256, 128>}]} {
    %c0 = arith.constant 0 : index
    %c0_0 = arith.constant 0 : index
    %c0_1 = arith.constant 0 : index
    %0 = vector.load %arg1[%c0, %c0_0, %c0_1] : memref<1x256x256xf32, #tpu.memory_space<vmem>>, vector<1x256x256xf32>
    %1 = vector.shape_cast %0 : vector<1x256x256xf32> to vector<256x256xf32>
    %c0_2 = arith.constant 0 : index
    %c0_3 = arith.constant 0 : index
    %2 = vector.load %arg2[%c0_2, %c0_3] : memref<256x128xf32, #tpu.memory_space<vmem>>, vector<256x128xf32>
    %cst = arith.constant dense<0.000000e+00> : vector<256x128xf32>
    %3 = tpu.matmul %1, %2, %cst {dimension_numbers = #tpu.dot_dimension_numbers<[1], [0], [0], [1], [0, 0, 1, 1], [], []>} : vector<256x256xf32>, vector<256x128xf32>, vector<256x128xf32> -> vector<256x128xf32>
    %c0_4 = arith.constant 0 : index
    %c0_5 = arith.constant 0 : index
    %4 = vector.load %arg3[%c0_4, %c0_5] : memref<1x128xf32, #tpu.memory_space<vmem>>, vector<1x128xf32>
    %5 = vector.broadcast %4 : vector<1x128xf32> to vector<256x128xf32>
    %6 = arith.addf %3, %5 : vector<256x128xf32>
    %cst_6 = arith.constant 0.000000e+00 : f32
    %7 = vector.broadcast %cst_6 : f32 to vector<256x128xf32>
    %8 = arith.maximumf %6, %7 : vector<256x128xf32>
    %c0_7 = arith.constant 0 : index
    %c0_8 = arith.constant 0 : index
    %9 = vector.load %arg4[%c0_7, %c0_8] : memref<128x128xf32, #tpu.memory_space<vmem>>, vector<128x128xf32>
    %cst_9 = arith.constant dense<0.000000e+00> : vector<256x128xf32>
    %10 = tpu.matmul %8, %9, %cst_9 {dimension_numbers = #tpu.dot_dimension_numbers<[1], [0], [0], [1], [0, 0, 1, 1], [], []>} : vector<256x128xf32>, vector<128x128xf32>, vector<256x128xf32> -> vector<256x128xf32>
    %c0_10 = arith.constant 0 : index
    %c0_11 = arith.constant 0 : index
    %11 = vector.load %arg5[%c0_10, %c0_11] : memref<1x128xf32, #tpu.memory_space<vmem>>, vector<1x128xf32>
    %12 = vector.broadcast %11 : vector<1x128xf32> to vector<256x128xf32>
    %13 = arith.addf %10, %12 : vector<256x128xf32>
    %cst_12 = arith.constant 0.000000e+00 : f32
    %14 = vector.broadcast %cst_12 : f32 to vector<256x128xf32>
    %15 = arith.maximumf %13, %14 : vector<256x128xf32>
    %cst_13 = arith.constant 0.000000e+00 : f32
    %16 = vector.broadcast %cst_13 : f32 to vector<2x20x128xf32>
    %c0_14 = arith.constant 0 : index
    %c0_15 = arith.constant 0 : index
    %c0_16 = arith.constant 0 : index
    %17 = vector.load %arg9[%c0_14, %c0_15, %c0_16] : memref<20x20x128xf32, #tpu.memory_space<vmem>>, vector<2x20x128xf32>
    tpu.vector_store %arg9[%c0_14, %c0_15, %c0_16], %16 {strides = array<i32>} : memref<20x20x128xf32, #tpu.memory_space<vmem>>, vector<2x20x128xf32>,
    %cst_17 = arith.constant 0.000000e+00 : f32
    %18 = vector.broadcast %cst_17 : f32 to vector<2x20x128xf32>
    %c18 = arith.constant 18 : index
    %c0_18 = arith.constant 0 : index
    %c0_19 = arith.constant 0 : index
    %19 = vector.load %arg9[%c18, %c0_18, %c0_19] : memref<20x20x128xf32, #tpu.memory_space<vmem>>, vector<2x20x128xf32>
    tpu.vector_store %arg9[%c18, %c0_18, %c0_19], %18 {strides = array<i32>} : memref<20x20x128xf32, #tpu.memory_space<vmem>>, vector<2x20x128xf32>,
    %cst_20 = arith.constant 0.000000e+00 : f32
    %20 = vector.broadcast %cst_20 : f32 to vector<16x2x128xf32>
    %c2 = arith.constant 2 : index
    %c0_21 = arith.constant 0 : index
    %c0_22 = arith.constant 0 : index
    %21 = vector.load %arg9[%c2, %c0_21, %c0_22] : memref<20x20x128xf32, #tpu.memory_space<vmem>>, vector<16x2x128xf32>
    tpu.vector_store %arg9[%c2, %c0_21, %c0_22], %20 {strides = array<i32>} : memref<20x20x128xf32, #tpu.memory_space<vmem>>, vector<16x2x128xf32>,
    %cst_23 = arith.constant 0.000000e+00 : f32
    %22 = vector.broadcast %cst_23 : f32 to vector<16x2x128xf32>
    %c2_24 = arith.constant 2 : index
    %c18_25 = arith.constant 18 : index
    %c0_26 = arith.constant 0 : index
    %23 = vector.load %arg9[%c2_24, %c18_25, %c0_26] : memref<20x20x128xf32, #tpu.memory_space<vmem>>, vector<16x2x128xf32>
    tpu.vector_store %arg9[%c2_24, %c18_25, %c0_26], %22 {strides = array<i32>} : memref<20x20x128xf32, #tpu.memory_space<vmem>>, vector<16x2x128xf32>,
    %24 = vector.shape_cast %15 : vector<256x128xf32> to vector<16x16x128xf32>
    %c2_27 = arith.constant 2 : index
    %c2_28 = arith.constant 2 : index
    %c0_29 = arith.constant 0 : index
    %25 = vector.load %arg9[%c2_27, %c2_28, %c0_29] : memref<20x20x128xf32, #tpu.memory_space<vmem>>, vector<16x16x128xf32>
    tpu.vector_store %arg9[%c2_27, %c2_28, %c0_29], %24 {strides = array<i32>} : memref<20x20x128xf32, #tpu.memory_space<vmem>>, vector<16x16x128xf32>,
    %c0_30 = arith.constant 0 : index
    %c0_31 = arith.constant 0 : index
    %c0_32 = arith.constant 0 : index
    %26 = vector.load %arg9[%c0_30, %c0_31, %c0_32] : memref<20x20x128xf32, #tpu.memory_space<vmem>>, vector<16x16x128xf32>
    %27 = vector.shape_cast %26 : vector<16x16x128xf32> to vector<256x128xf32>
    %c0_33 = arith.constant 0 : index
    %c0_34 = arith.constant 0 : index
    %28 = vector.load %arg10[%c0_33, %c0_34] : memref<256x3200xf32, #tpu.memory_space<vmem>>, vector<256x128xf32>
    tpu.vector_store %arg10[%c0_33, %c0_34], %27 {strides = array<i32>} : memref<256x3200xf32, #tpu.memory_space<vmem>>, vector<256x128xf32>,
    %c0_35 = arith.constant 0 : index
    %c1 = arith.constant 1 : index
    %c0_36 = arith.constant 0 : index
    %29 = vector.load %arg9[%c0_35, %c1, %c0_36] : memref<20x20x128xf32, #tpu.memory_space<vmem>>, vector<16x16x128xf32>
    %30 = vector.shape_cast %29 : vector<16x16x128xf32> to vector<256x128xf32>
    %c0_37 = arith.constant 0 : index
    %c128 = arith.constant 128 : index
    %31 = vector.load %arg10[%c0_37, %c128] : memref<256x3200xf32, #tpu.memory_space<vmem>>, vector<256x128xf32>
    tpu.vector_store %arg10[%c0_37, %c128], %30 {strides = array<i32>} : memref<256x3200xf32, #tpu.memory_space<vmem>>, vector<256x128xf32>,
    %c0_38 = arith.constant 0 : index
    %c2_39 = arith.constant 2 : index
    %c0_40 = arith.constant 0 : index
    %32 = vector.load %arg9[%c0_38, %c2_39, %c0_40] : memref<20x20x128xf32, #tpu.memory_space<vmem>>, vector<16x16x128xf32>
    %33 = vector.shape_cast %32 : vector<16x16x128xf32> to vector<256x128xf32>
    %c0_41 = arith.constant 0 : index
    %c256 = arith.constant 256 : index
    %34 = vector.load %arg10[%c0_41, %c256] : memref<256x3200xf32, #tpu.memory_space<vmem>>, vector<256x128xf32>
    tpu.vector_store %arg10[%c0_41, %c256], %33 {strides = array<i32>} : memref<256x3200xf32, #tpu.memory_space<vmem>>, vector<256x128xf32>,
    %c0_42 = arith.constant 0 : index
    %c3 = arith.constant 3 : index
    %c0_43 = arith.constant 0 : index
    %35 = vector.load %arg9[%c0_42, %c3, %c0_43] : memref<20x20x128xf32, #tpu.memory_space<vmem>>, vector<16x16x128xf32>
    %36 = vector.shape_cast %35 : vector<16x16x128xf32> to vector<256x128xf32>
    %c0_44 = arith.constant 0 : index
    %c384 = arith.constant 384 : index
    %37 = vector.load %arg10[%c0_44, %c384] : memref<256x3200xf32, #tpu.memory_space<vmem>>, vector<256x128xf32>
    tpu.vector_store %arg10[%c0_44, %c384], %36 {strides = array<i32>} : memref<256x3200xf32, #tpu.memory_space<vmem>>, vector<256x128xf32>,
    %c0_45 = arith.constant 0 : index
    %c4 = arith.constant 4 : index
    %c0_46 = arith.constant 0 : index
    %38 = vector.load %arg9[%c0_45, %c4, %c0_46] : memref<20x20x128xf32, #tpu.memory_space<vmem>>, vector<16x16x128xf32>
    %39 = vector.shape_cast %38 : vector<16x16x128xf32> to vector<256x128xf32>
    %c0_47 = arith.constant 0 : index
    %c512 = arith.constant 512 : index
    %40 = vector.load %arg10[%c0_47, %c512] : memref<256x3200xf32, #tpu.memory_space<vmem>>, vector<256x128xf32>
    tpu.vector_store %arg10[%c0_47, %c512], %39 {strides = array<i32>} : memref<256x3200xf32, #tpu.memory_space<vmem>>, vector<256x128xf32>,
    %c1_48 = arith.constant 1 : index
    %c0_49 = arith.constant 0 : index
    %c0_50 = arith.constant 0 : index
    %41 = vector.load %arg9[%c1_48, %c0_49, %c0_50] : memref<20x20x128xf32, #tpu.memory_space<vmem>>, vector<16x16x128xf32>
    %42 = vector.shape_cast %41 : vector<16x16x128xf32> to vector<256x128xf32>
    %c0_51 = arith.constant 0 : index
    %c640 = arith.constant 640 : index
    %43 = vector.load %arg10[%c0_51, %c640] : memref<256x3200xf32, #tpu.memory_space<vmem>>, vector<256x128xf32>
    tpu.vector_store %arg10[%c0_51, %c640], %42 {strides = array<i32>} : memref<256x3200xf32, #tpu.memory_space<vmem>>, vector<256x128xf32>,
    %c1_52 = arith.constant 1 : index
    %c1_53 = arith.constant 1 : index
    %c0_54 = arith.constant 0 : index
    %44 = vector.load %arg9[%c1_52, %c1_53, %c0_54] : memref<20x20x128xf32, #tpu.memory_space<vmem>>, vector<16x16x128xf32>
    %45 = vector.shape_cast %44 : vector<16x16x128xf32> to vector<256x128xf32>
    %c0_55 = arith.constant 0 : index
    %c768 = arith.constant 768 : index
    %46 = vector.load %arg10[%c0_55, %c768] : memref<256x3200xf32, #tpu.memory_space<vmem>>, vector<256x128xf32>
    tpu.vector_store %arg10[%c0_55, %c768], %45 {strides = array<i32>} : memref<256x3200xf32, #tpu.memory_space<vmem>>, vector<256x128xf32>,
    %c1_56 = arith.constant 1 : index
    %c2_57 = arith.constant 2 : index
    %c0_58 = arith.constant 0 : index
    %47 = vector.load %arg9[%c1_56, %c2_57, %c0_58] : memref<20x20x128xf32, #tpu.memory_space<vmem>>, vector<16x16x128xf32>
    %48 = vector.shape_cast %47 : vector<16x16x128xf32> to vector<256x128xf32>
    %c0_59 = arith.constant 0 : index
    %c896 = arith.constant 896 : index
    %49 = vector.load %arg10[%c0_59, %c896] : memref<256x3200xf32, #tpu.memory_space<vmem>>, vector<256x128xf32>
    tpu.vector_store %arg10[%c0_59, %c896], %48 {strides = array<i32>} : memref<256x3200xf32, #tpu.memory_space<vmem>>, vector<256x128xf32>,
    %c1_60 = arith.constant 1 : index
    %c3_61 = arith.constant 3 : index
    %c0_62 = arith.constant 0 : index
    %50 = vector.load %arg9[%c1_60, %c3_61, %c0_62] : memref<20x20x128xf32, #tpu.memory_space<vmem>>, vector<16x16x128xf32>
    %51 = vector.shape_cast %50 : vector<16x16x128xf32> to vector<256x128xf32>
    %c0_63 = arith.constant 0 : index
    %c1024 = arith.constant 1024 : index
    %52 = vector.load %arg10[%c0_63, %c1024] : memref<256x3200xf32, #tpu.memory_space<vmem>>, vector<256x128xf32>
    tpu.vector_store %arg10[%c0_63, %c1024], %51 {strides = array<i32>} : memref<256x3200xf32, #tpu.memory_space<vmem>>, vector<256x128xf32>,
    %c1_64 = arith.constant 1 : index
    %c4_65 = arith.constant 4 : index
    %c0_66 = arith.constant 0 : index
    %53 = vector.load %arg9[%c1_64, %c4_65, %c0_66] : memref<20x20x128xf32, #tpu.memory_space<vmem>>, vector<16x16x128xf32>
    %54 = vector.shape_cast %53 : vector<16x16x128xf32> to vector<256x128xf32>
    %c0_67 = arith.constant 0 : index
    %c1152 = arith.constant 1152 : index
    %55 = vector.load %arg10[%c0_67, %c1152] : memref<256x3200xf32, #tpu.memory_space<vmem>>, vector<256x128xf32>
    tpu.vector_store %arg10[%c0_67, %c1152], %54 {strides = array<i32>} : memref<256x3200xf32, #tpu.memory_space<vmem>>, vector<256x128xf32>,
    %c2_68 = arith.constant 2 : index
    %c0_69 = arith.constant 0 : index
    %c0_70 = arith.constant 0 : index
    %56 = vector.load %arg9[%c2_68, %c0_69, %c0_70] : memref<20x20x128xf32, #tpu.memory_space<vmem>>, vector<16x16x128xf32>
    %57 = vector.shape_cast %56 : vector<16x16x128xf32> to vector<256x128xf32>
    %c0_71 = arith.constant 0 : index
    %c1280 = arith.constant 1280 : index
    %58 = vector.load %arg10[%c0_71, %c1280] : memref<256x3200xf32, #tpu.memory_space<vmem>>, vector<256x128xf32>
    tpu.vector_store %arg10[%c0_71, %c1280], %57 {strides = array<i32>} : memref<256x3200xf32, #tpu.memory_space<vmem>>, vector<256x128xf32>,
    %c2_72 = arith.constant 2 : index
    %c1_73 = arith.constant 1 : index
    %c0_74 = arith.constant 0 : index
    %59 = vector.load %arg9[%c2_72, %c1_73, %c0_74] : memref<20x20x128xf32, #tpu.memory_space<vmem>>, vector<16x16x128xf32>
    %60 = vector.shape_cast %59 : vector<16x16x128xf32> to vector<256x128xf32>
    %c0_75 = arith.constant 0 : index
    %c1408 = arith.constant 1408 : index
    %61 = vector.load %arg10[%c0_75, %c1408] : memref<256x3200xf32, #tpu.memory_space<vmem>>, vector<256x128xf32>
    tpu.vector_store %arg10[%c0_75, %c1408], %60 {strides = array<i32>} : memref<256x3200xf32, #tpu.memory_space<vmem>>, vector<256x128xf32>,
    %c2_76 = arith.constant 2 : index
    %c2_77 = arith.constant 2 : index
    %c0_78 = arith.constant 0 : index
    %62 = vector.load %arg9[%c2_76, %c2_77, %c0_78] : memref<20x20x128xf32, #tpu.memory_space<vmem>>, vector<16x16x128xf32>
    %63 = vector.shape_cast %62 : vector<16x16x128xf32> to vector<256x128xf32>
    %c0_79 = arith.constant 0 : index
    %c1536 = arith.constant 1536 : index
    %64 = vector.load %arg10[%c0_79, %c1536] : memref<256x3200xf32, #tpu.memory_space<vmem>>, vector<256x128xf32>
    tpu.vector_store %arg10[%c0_79, %c1536], %63 {strides = array<i32>} : memref<256x3200xf32, #tpu.memory_space<vmem>>, vector<256x128xf32>,
    %c2_80 = arith.constant 2 : index
    %c3_81 = arith.constant 3 : index
    %c0_82 = arith.constant 0 : index
    %65 = vector.load %arg9[%c2_80, %c3_81, %c0_82] : memref<20x20x128xf32, #tpu.memory_space<vmem>>, vector<16x16x128xf32>
    %66 = vector.shape_cast %65 : vector<16x16x128xf32> to vector<256x128xf32>
    %c0_83 = arith.constant 0 : index
    %c1664 = arith.constant 1664 : index
    %67 = vector.load %arg10[%c0_83, %c1664] : memref<256x3200xf32, #tpu.memory_space<vmem>>, vector<256x128xf32>
    tpu.vector_store %arg10[%c0_83, %c1664], %66 {strides = array<i32>} : memref<256x3200xf32, #tpu.memory_space<vmem>>, vector<256x128xf32>,
    %c2_84 = arith.constant 2 : index
    %c4_85 = arith.constant 4 : index
    %c0_86 = arith.constant 0 : index
    %68 = vector.load %arg9[%c2_84, %c4_85, %c0_86] : memref<20x20x128xf32, #tpu.memory_space<vmem>>, vector<16x16x128xf32>
    %69 = vector.shape_cast %68 : vector<16x16x128xf32> to vector<256x128xf32>
    %c0_87 = arith.constant 0 : index
    %c1792 = arith.constant 1792 : index
    %70 = vector.load %arg10[%c0_87, %c1792] : memref<256x3200xf32, #tpu.memory_space<vmem>>, vector<256x128xf32>
    tpu.vector_store %arg10[%c0_87, %c1792], %69 {strides = array<i32>} : memref<256x3200xf32, #tpu.memory_space<vmem>>, vector<256x128xf32>,
    %c3_88 = arith.constant 3 : index
    %c0_89 = arith.constant 0 : index
    %c0_90 = arith.constant 0 : index
    %71 = vector.load %arg9[%c3_88, %c0_89, %c0_90] : memref<20x20x128xf32, #tpu.memory_space<vmem>>, vector<16x16x128xf32>
    %72 = vector.shape_cast %71 : vector<16x16x128xf32> to vector<256x128xf32>
    %c0_91 = arith.constant 0 : index
    %c1920 = arith.constant 1920 : index
    %73 = vector.load %arg10[%c0_91, %c1920] : memref<256x3200xf32, #tpu.memory_space<vmem>>, vector<256x128xf32>
    tpu.vector_store %arg10[%c0_91, %c1920], %72 {strides = array<i32>} : memref<256x3200xf32, #tpu.memory_space<vmem>>, vector<256x128xf32>,
    %c3_92 = arith.constant 3 : index
    %c1_93 = arith.constant 1 : index
    %c0_94 = arith.constant 0 : index
    %74 = vector.load %arg9[%c3_92, %c1_93, %c0_94] : memref<20x20x128xf32, #tpu.memory_space<vmem>>, vector<16x16x128xf32>
    %75 = vector.shape_cast %74 : vector<16x16x128xf32> to vector<256x128xf32>
    %c0_95 = arith.constant 0 : index
    %c2048 = arith.constant 2048 : index
    %76 = vector.load %arg10[%c0_95, %c2048] : memref<256x3200xf32, #tpu.memory_space<vmem>>, vector<256x128xf32>
    tpu.vector_store %arg10[%c0_95, %c2048], %75 {strides = array<i32>} : memref<256x3200xf32, #tpu.memory_space<vmem>>, vector<256x128xf32>,
    %c3_96 = arith.constant 3 : index
    %c2_97 = arith.constant 2 : index
    %c0_98 = arith.constant 0 : index
    %77 = vector.load %arg9[%c3_96, %c2_97, %c0_98] : memref<20x20x128xf32, #tpu.memory_space<vmem>>, vector<16x16x128xf32>
    %78 = vector.shape_cast %77 : vector<16x16x128xf32> to vector<256x128xf32>
    %c0_99 = arith.constant 0 : index
    %c2176 = arith.constant 2176 : index
    %79 = vector.load %arg10[%c0_99, %c2176] : memref<256x3200xf32, #tpu.memory_space<vmem>>, vector<256x128xf32>
    tpu.vector_store %arg10[%c0_99, %c2176], %78 {strides = array<i32>} : memref<256x3200xf32, #tpu.memory_space<vmem>>, vector<256x128xf32>,
    %c3_100 = arith.constant 3 : index
    %c3_101 = arith.constant 3 : index
    %c0_102 = arith.constant 0 : index
    %80 = vector.load %arg9[%c3_100, %c3_101, %c0_102] : memref<20x20x128xf32, #tpu.memory_space<vmem>>, vector<16x16x128xf32>
    %81 = vector.shape_cast %80 : vector<16x16x128xf32> to vector<256x128xf32>
    %c0_103 = arith.constant 0 : index
    %c2304 = arith.constant 2304 : index
    %82 = vector.load %arg10[%c0_103, %c2304] : memref<256x3200xf32, #tpu.memory_space<vmem>>, vector<256x128xf32>
    tpu.vector_store %arg10[%c0_103, %c2304], %81 {strides = array<i32>} : memref<256x3200xf32, #tpu.memory_space<vmem>>, vector<256x128xf32>,
    %c3_104 = arith.constant 3 : index
    %c4_105 = arith.constant 4 : index
    %c0_106 = arith.constant 0 : index
    %83 = vector.load %arg9[%c3_104, %c4_105, %c0_106] : memref<20x20x128xf32, #tpu.memory_space<vmem>>, vector<16x16x128xf32>
    %84 = vector.shape_cast %83 : vector<16x16x128xf32> to vector<256x128xf32>
    %c0_107 = arith.constant 0 : index
    %c2432 = arith.constant 2432 : index
    %85 = vector.load %arg10[%c0_107, %c2432] : memref<256x3200xf32, #tpu.memory_space<vmem>>, vector<256x128xf32>
    tpu.vector_store %arg10[%c0_107, %c2432], %84 {strides = array<i32>} : memref<256x3200xf32, #tpu.memory_space<vmem>>, vector<256x128xf32>,
    %c4_108 = arith.constant 4 : index
    %c0_109 = arith.constant 0 : index
    %c0_110 = arith.constant 0 : index
    %86 = vector.load %arg9[%c4_108, %c0_109, %c0_110] : memref<20x20x128xf32, #tpu.memory_space<vmem>>, vector<16x16x128xf32>
    %87 = vector.shape_cast %86 : vector<16x16x128xf32> to vector<256x128xf32>
    %c0_111 = arith.constant 0 : index
    %c2560 = arith.constant 2560 : index
    %88 = vector.load %arg10[%c0_111, %c2560] : memref<256x3200xf32, #tpu.memory_space<vmem>>, vector<256x128xf32>
    tpu.vector_store %arg10[%c0_111, %c2560], %87 {strides = array<i32>} : memref<256x3200xf32, #tpu.memory_space<vmem>>, vector<256x128xf32>,
    %c4_112 = arith.constant 4 : index
    %c1_113 = arith.constant 1 : index
    %c0_114 = arith.constant 0 : index
    %89 = vector.load %arg9[%c4_112, %c1_113, %c0_114] : memref<20x20x128xf32, #tpu.memory_space<vmem>>, vector<16x16x128xf32>
    %90 = vector.shape_cast %89 : vector<16x16x128xf32> to vector<256x128xf32>
    %c0_115 = arith.constant 0 : index
    %c2688 = arith.constant 2688 : index
    %91 = vector.load %arg10[%c0_115, %c2688] : memref<256x3200xf32, #tpu.memory_space<vmem>>, vector<256x128xf32>
    tpu.vector_store %arg10[%c0_115, %c2688], %90 {strides = array<i32>} : memref<256x3200xf32, #tpu.memory_space<vmem>>, vector<256x128xf32>,
    %c4_116 = arith.constant 4 : index
    %c2_117 = arith.constant 2 : index
    %c0_118 = arith.constant 0 : index
    %92 = vector.load %arg9[%c4_116, %c2_117, %c0_118] : memref<20x20x128xf32, #tpu.memory_space<vmem>>, vector<16x16x128xf32>
    %93 = vector.shape_cast %92 : vector<16x16x128xf32> to vector<256x128xf32>
    %c0_119 = arith.constant 0 : index
    %c2816 = arith.constant 2816 : index
    %94 = vector.load %arg10[%c0_119, %c2816] : memref<256x3200xf32, #tpu.memory_space<vmem>>, vector<256x128xf32>
    tpu.vector_store %arg10[%c0_119, %c2816], %93 {strides = array<i32>} : memref<256x3200xf32, #tpu.memory_space<vmem>>, vector<256x128xf32>,
    %c4_120 = arith.constant 4 : index
    %c3_121 = arith.constant 3 : index
    %c0_122 = arith.constant 0 : index
    %95 = vector.load %arg9[%c4_120, %c3_121, %c0_122] : memref<20x20x128xf32, #tpu.memory_space<vmem>>, vector<16x16x128xf32>
    %96 = vector.shape_cast %95 : vector<16x16x128xf32> to vector<256x128xf32>
    %c0_123 = arith.constant 0 : index
    %c2944 = arith.constant 2944 : index
    %97 = vector.load %arg10[%c0_123, %c2944] : memref<256x3200xf32, #tpu.memory_space<vmem>>, vector<256x128xf32>
    tpu.vector_store %arg10[%c0_123, %c2944], %96 {strides = array<i32>} : memref<256x3200xf32, #tpu.memory_space<vmem>>, vector<256x128xf32>,
    %c4_124 = arith.constant 4 : index
    %c4_125 = arith.constant 4 : index
    %c0_126 = arith.constant 0 : index
    %98 = vector.load %arg9[%c4_124, %c4_125, %c0_126] : memref<20x20x128xf32, #tpu.memory_space<vmem>>, vector<16x16x128xf32>
    %99 = vector.shape_cast %98 : vector<16x16x128xf32> to vector<256x128xf32>
    %c0_127 = arith.constant 0 : index
    %c3072 = arith.constant 3072 : index
    %100 = vector.load %arg10[%c0_127, %c3072] : memref<256x3200xf32, #tpu.memory_space<vmem>>, vector<256x128xf32>
    tpu.vector_store %arg10[%c0_127, %c3072], %99 {strides = array<i32>} : memref<256x3200xf32, #tpu.memory_space<vmem>>, vector<256x128xf32>,
    %c0_128 = arith.constant 0 : index
    %c0_129 = arith.constant 0 : index
    %101 = vector.load %arg10[%c0_128, %c0_129] : memref<256x3200xf32, #tpu.memory_space<vmem>>, vector<256x3200xf32>
    %c0_130 = arith.constant 0 : index
    %c0_131 = arith.constant 0 : index
    %102 = vector.load %arg6[%c0_130, %c0_131] : memref<3200x128xf32, #tpu.memory_space<vmem>>, vector<3200x128xf32>
    %cst_132 = arith.constant dense<0.000000e+00> : vector<256x128xf32>
    %103 = tpu.matmul %101, %102, %cst_132 {dimension_numbers = #tpu.dot_dimension_numbers<[1], [0], [0], [1], [0, 0, 1, 1], [], []>} : vector<256x3200xf32>, vector<3200x128xf32>, vector<256x128xf32> -> vector<256x128xf32>
    %c0_133 = arith.constant 0 : index
    %c0_134 = arith.constant 0 : index
    %104 = vector.load %arg7[%c0_133, %c0_134] : memref<1x128xf32, #tpu.memory_space<vmem>>, vector<1x128xf32>
    %105 = vector.broadcast %104 : vector<1x128xf32> to vector<256x128xf32>
    %106 = arith.addf %103, %105 : vector<256x128xf32>
    %c0_135 = arith.constant 0 : index
    %c0_136 = arith.constant 0 : index
    %c0_137 = arith.constant 0 : index
    %107 = vector.load %arg8[%c0_135, %c0_136, %c0_137] : memref<1x256x128xf32, #tpu.memory_space<vmem>>, vector<1x256x128xf32>
    %108 = vector.shape_cast %107 : vector<1x256x128xf32> to vector<256x128xf32>
    %109 = vector.shape_cast %106 : vector<256x128xf32> to vector<1x256x128xf32>
    tpu.vector_store %arg8[%c0_135, %c0_136, %c0_137], %109 {strides = array<i32>} : memref<1x256x128xf32, #tpu.memory_space<vmem>>, vector<1x256x128xf32>,
    return
  }
  func.func @transform_0(%arg0: i32) -> (i32, i32, i32) {
    %c0_i32 = arith.constant 0 : i32
    %c0_i32_0 = arith.constant 0 : i32
    %c0_i32_1 = arith.constant 0 : i32
    return %arg0, %c0_i32, %c0_i32_0 : i32, i32, i32
  }
  func.func @transform_1(%arg0: i32) -> (i32, i32) {
    %c0_i32 = arith.constant 0 : i32
    %c0_i32_0 = arith.constant 0 : i32
    %c0_i32_1 = arith.constant 0 : i32
    return %c0_i32, %c0_i32_0 : i32, i32
  }
  func.func @transform_2(%arg0: i32) -> (i32, i32) {
    %c0_i32 = arith.constant 0 : i32
    %c0_i32_0 = arith.constant 0 : i32
    %c0_i32_1 = arith.constant 0 : i32
    return %c0_i32, %c0_i32_0 : i32, i32
  }
  func.func @transform_3(%arg0: i32) -> (i32, i32) {
    %c0_i32 = arith.constant 0 : i32
    %c0_i32_0 = arith.constant 0 : i32
    %c0_i32_1 = arith.constant 0 : i32
    return %c0_i32, %c0_i32_0 : i32, i32
  }
  func.func @transform_4(%arg0: i32) -> (i32, i32) {
    %c0_i32 = arith.constant 0 : i32
    %c0_i32_0 = arith.constant 0 : i32
    %c0_i32_1 = arith.constant 0 : i32
    return %c0_i32, %c0_i32_0 : i32, i32
  }
  func.func @transform_5(%arg0: i32) -> (i32, i32) {
    %c0_i32 = arith.constant 0 : i32
    %c0_i32_0 = arith.constant 0 : i32
    %c0_i32_1 = arith.constant 0 : i32
    return %c0_i32, %c0_i32_0 : i32, i32
  }
  func.func @transform_6(%arg0: i32) -> (i32, i32) {
    %c0_i32 = arith.constant 0 : i32
    %c0_i32_0 = arith.constant 0 : i32
    %c0_i32_1 = arith.constant 0 : i32
    return %c0_i32, %c0_i32_0 : i32, i32
  }
  func.func @transform_7(%arg0: i32) -> (i32, i32, i32) {
    %c0_i32 = arith.constant 0 : i32
    %c0_i32_0 = arith.constant 0 : i32
    %c0_i32_1 = arith.constant 0 : i32
    return %arg0, %c0_i32, %c0_i32_0 : i32, i32, i32
  }
}

</mosaic_0001>

<bundles_post_ra>
// kernel: srcnn2_forward.1
= control target key start
LH: loop header
LB: loop body
LE: loop exit
PB: predicated region body
PF: predicated region fallthrough
CT: control target
= control target key end

     0   :  { %s7157_s24 = smov 0   ;;  %s10089_s0 = inlined_call_operand.vmem [shape: f32[2,256,256], index: 0, kind: input, shape index: {}]   ;;  %s10090_s1 = inlined_call_operand.vmem [shape: f32[256,128], index: 1, kind: input, shape index: {}]   ;;  %s10091_s2 = inlined_call_operand.vmem [shape: f32[1,128], index: 2, kind: input, shape index: {}]   ;;  %s10092_s3 = inlined_call_operand.vmem [shape: f32[128,128], index: 3, kind: input, shape index: {}]   ;;  %s10093_s4 = inlined_call_operand.vmem [shape: f32[1,128], index: 4, kind: input, shape index: {}]   ;;  %s10094_s5 = inlined_call_operand.vmem [shape: f32[3200,128], index: 5, kind: input, shape index: {}]   ;;  %s10095_s6 = inlined_call_operand.vmem [shape: f32[1,128], index: 6, kind: input, shape index: {}]   ;;  %s10096_s7 = inlined_call_operand.vmem [shape: f32[2,256,128], index: 7, kind: output, shape index: {}]  }
   0x1 LB: > { %s6819_s25 = sadd.s32 4294967295, %s7114_s24   ;;  %p6823_p0 = scmp.ge.s32.totalorder %s7114_s24, 1  ;;  %s7114_s24 = sphi %s7157_s24, %s17_s24  }
   0x2   : > { %p237_p1 = scmp.lt.s32.totalorder %s7114_s24, 3 }
   0x4   : > { %p238_p2 = pnand %p6823_p0, %p237_p1 }
   0x6   : > { %241 = sbr.rel (%p238_p2) target bundleno = 1496 (0x5d8), region = 48 }
   0xb   : > { %v358_v0 = vld [vmem:[%s10090_s1 + $0x78] sm:$0xff]  ;;  %p7170_p3 = scmp.lt.s32.totalorder %s6819_s25, 1  ;;  %v7116_v1 = vmov 0.0   ;;  %v357_v2 = vld [vmem:[%s10090_s1 + $0x70] sm:$0xff]  ;;  %v356_v3 = vld [vmem:[%s10090_s1 + $0x68] sm:$0xff] }
   0xc   : > { %382 = vmatprep.subr.mxu0 %v7116_v1  ;;  %919 = vst [vmem:[#allocation2] sm:$0xff] %v7116_v1  ;;  %920 = vst [vmem:[#allocation2 + $0x8] sm:$0xff] %v7116_v1  ;;  %v355_v4 = vld [vmem:[%s10090_s1 + $0x60] sm:$0xff]  ;;  %v354_v5 = vld [vmem:[%s10090_s1 + $0x58] sm:$0xff] }
   0xd   : > { %921 = vst [vmem:[#allocation2 + $0x10] sm:$0xf] %v7116_v1  ;;  %922 = vst [vmem:[#allocation2 + $0x18] sm:$0xff] %v7116_v1  ;;  %383 = vmatpush1.msra.mxu0 %v358_v0  ;;  %s10114_s25 = smov (!%p7170_p3, %s6819_s25), 1  ;;  %v353_v6 = vld [vmem:[%s10090_s1 + $0x50] sm:$0xff]  ;;  %v352_v8 = vld [vmem:[%s10090_s1 + $0x48] sm:$0xff] }
   0xe   : > { %923 = vst [vmem:[#allocation2 + $0x20] sm:$0xff] %v7116_v1  ;;  %924 = vst [vmem:[#allocation2 + $0x28] sm:$0xf] %v7116_v1  ;;  %384 = vmatprep.subr.mxu0 %v7116_v1  ;;  %s6833_s10 = sshll.u32 %s10114_s25, 9  ;;  %v351_v9 = vld [vmem:[%s10090_s1 + $0x40] sm:$0xff]  ;;  %v350_v10 = vld [vmem:[%s10090_s1 + $0x38] sm:$0xff] }
   0xf   : > { %926 = vst [vmem:[#allocation2 + $0x1b0] sm:$0xff] %v7116_v1  ;;  %927 = vst [vmem:[#allocation2 + $0x1b8] sm:$0xff] %v7116_v1  ;;  %385 = vmatpush1.msra.mxu0 %v357_v2  ;;  %s7244_s17 = scalar_lea.vmem %s10089_s0, %s6833_s10  ;;  %v349_v11 = vld [vmem:[%s10090_s1 + $0x30] sm:$0xff]  ;;  %v348_v12 = vld [vmem:[%s10090_s1 + $0x28] sm:$0xff]  ;;  %s6834_s12 = sshll.u32 %s10114_s25, 8 }
  0x10   : > { %928 = vst [vmem:[#allocation2 + $0x1c0] sm:$0xf] %v7116_v1  ;;  %929 = vst [vmem:[#allocation2 + $0x1c8] sm:$0xff] %v7116_v1  ;;  %386 = vmatprep.subr.mxu0 %v7116_v1  ;;  %v280_v7 = vld [vmem:[%s7244_s17 + $0x8] sm:$0xff]  ;;  %v347_v13 = vld [vmem:[%s10090_s1 + $0x20] sm:$0xff]  ;;  %s10018_s15 = scalar_lea.vmem %s10096_s7, %s6834_s12 }
  0x11   : > { %930 = vst [vmem:[#allocation2 + $0x1d0] sm:$0xff] %v7116_v1  ;;  %931 = vst [vmem:[#allocation2 + $0x1d8] sm:$0xf] %v7116_v1  ;;  %387 = vmatpush1.msra.mxu0 %v356_v3  ;;  %446 = vmatprep.mubr.f32.mxu0 %v280_v7  ;;  %v346_v14 = vld [vmem:[%s10090_s1 + $0x18] sm:$0xff]  ;;  %v345_v15 = vld [vmem:[%s10090_s1 + $0x10] sm:$0xff] }
  0x12   : > { %933 = vst [vmem:[#allocation2 + $0x30] sm:$0x3] %v7116_v1  ;;  %934 = vst [vmem:[#allocation2 + $0x48] sm:$0x3] %v7116_v1  ;;  %388 = vmatprep.subr.mxu0 %v7116_v1  ;;  %v344_v16 = vld [vmem:[%s10090_s1 + $0x8] sm:$0xff]  ;;  %v343_v17 = vld [vmem:[%s10090_s1] sm:$0xff] }
  0x13   : > { %935 = vst [vmem:[#allocation2 + $0x60] sm:$0x3] %v7116_v1  ;;  %936 = vst [vmem:[#allocation2 + $0x78] sm:$0x3] %v7116_v1  ;;  %389 = vmatpush1.msra.mxu0 %v355_v4  ;;  %v374_v18 = vld [vmem:[%s10090_s1 + $0xf8] sm:$0xff]  ;;  %v373_v19 = vld [vmem:[%s10090_s1 + $0xf0] sm:$0xff] }
  0x14   : > { %937 = vst [vmem:[#allocation2 + $0x90] sm:$0x3] %v7116_v1  ;;  %938 = vst [vmem:[#allocation2 + $0xa8] sm:$0x3] %v7116_v1  ;;  %390 = vmatprep.subr.mxu0 %v7116_v1  ;;  %v372_v20 = vld [vmem:[%s10090_s1 + $0xe8] sm:$0xff]  ;;  %v371_v21 = vld [vmem:[%s10090_s1 + $0xe0] sm:$0xff] }
  0x15   : > { %939 = vst [vmem:[#allocation2 + $0xc0] sm:$0x3] %v7116_v1  ;;  %940 = vst [vmem:[#allocation2 + $0xd8] sm:$0x3] %v7116_v1  ;;  %391 = vmatpush1.msra.mxu0 %v354_v5  ;;  %v370_v22 = vld [vmem:[%s10090_s1 + $0xd8] sm:$0xff]  ;;  %v369_v23 = vld [vmem:[%s10090_s1 + $0xd0] sm:$0xff] }
  0x16   : > { %941 = vst [vmem:[#allocation2 + $0xf0] sm:$0x3] %v7116_v1  ;;  %942 = vst [vmem:[#allocation2 + $0x108] sm:$0x3] %v7116_v1  ;;  %392 = vmatprep.subr.mxu0 %v7116_v1  ;;  %v368_v24 = vld [vmem:[%s10090_s1 + $0xc8] sm:$0xff]  ;;  %v367_v25 = vld [vmem:[%s10090_s1 + $0xc0] sm:$0xff] }
  0x17   : > { %943 = vst [vmem:[#allocation2 + $0x120] sm:$0x3] %v7116_v1  ;;  %944 = vst [vmem:[#allocation2 + $0x138] sm:$0x3] %v7116_v1  ;;  %393 = vmatpush1.msra.mxu0 %v353_v6  ;;  %v654_v26 = vld [vmem:[%s10092_s3 + $0x78] sm:$0xff]  ;;  %v653_v27 = vld [vmem:[%s10092_s3 + $0x70] sm:$0xff] }
  0x18   : > { %945 = vst [vmem:[#allocation2 + $0x150] sm:$0x3] %v7116_v1  ;;  %946 = vst [vmem:[#allocation2 + $0x168] sm:$0x3] %v7116_v1  ;;  %394 = vmatprep.subr.mxu0 %v7116_v1  ;;  %6931 = vmatprep.subr.mxu1 %v654_v26  ;;  %v366_v28 = vld [vmem:[%s10090_s1 + $0xb8] sm:$0xff]  ;;  %v652_v29 = vld [vmem:[%s10092_s3 + $0x68] sm:$0xff] }
  0x19   : > { %947 = vst [vmem:[#allocation2 + $0x180] sm:$0x3] %v7116_v1  ;;  %948 = vst [vmem:[#allocation2 + $0x198] sm:$0x3] %v7116_v1  ;;  %395 = vmatpush1.msra.mxu0 %v352_v8  ;;  %6932 = vmatpush3.msra.mxu1 %v654_v26  ;;  %v365_v30 = vld [vmem:[%s10090_s1 + $0xb0] sm:$0xff]  ;;  %v651_v31 = vld [vmem:[%s10092_s3 + $0x60] sm:$0xff] }
  0x1a   : > { %949 = vst [vmem:[#allocation2 + $0x42] sm:$0x3] %v7116_v1  ;;  %950 = vst [vmem:[#allocation2 + $0x5a] sm:$0x3] %v7116_v1  ;;  %396 = vmatprep.subr.mxu0 %v7116_v1  ;;  %6933 = vmatprep.subr.mxu1 %v653_v27  ;;  %v364_v32 = vld [vmem:[%s10090_s1 + $0xa8] sm:$0xff]  ;;  %v650_v33 = vld [vmem:[%s10092_s3 + $0x58] sm:$0xff] }
  0x1b   : > { %951 = vst [vmem:[#allocation2 + $0x72] sm:$0x3] %v7116_v1  ;;  %952 = vst [vmem:[#allocation2 + $0x8a] sm:$0x3] %v7116_v1  ;;  %397 = vmatpush1.msra.mxu0 %v351_v9  ;;  %6934 = vmatpush3.msra.mxu1 %v653_v27  ;;  %v363_v34 = vld [vmem:[%s10090_s1 + $0xa0] sm:$0xff]  ;;  %v649_v35 = vld [vmem:[%s10092_s3 + $0x50] sm:$0xff] }
  0x1c   : > { %953 = vst [vmem:[#allocation2 + $0xa2] sm:$0x3] %v7116_v1  ;;  %954 = vst [vmem:[#allocation2 + $0xba] sm:$0x3] %v7116_v1  ;;  %398 = vmatprep.subr.mxu0 %v7116_v1  ;;  %6935 = vmatprep.subr.mxu1 %v652_v29  ;;  %v362_v36 = vld [vmem:[%s10090_s1 + $0x98] sm:$0xff]  ;;  %v648_v37 = vld [vmem:[%s10092_s3 + $0x48] sm:$0xff] }
  0x1d   : > { %955 = vst [vmem:[#allocation2 + $0xd2] sm:$0x3] %v7116_v1  ;;  %956 = vst [vmem:[#allocation2 + $0xea] sm:$0x3] %v7116_v1  ;;  %399 = vmatpush1.msra.mxu0 %v350_v10  ;;  %6936 = vmatpush3.msra.mxu1 %v652_v29  ;;  %v361_v38 = vld [vmem:[%s10090_s1 + $0x90] sm:$0xff]  ;;  %v647_v39 = vld [vmem:[%s10092_s3 + $0x40] sm:$0xff] }
  0x1e   : > { %957 = vst [vmem:[#allocation2 + $0x102] sm:$0x3] %v7116_v1  ;;  %958 = vst [vmem:[#allocation2 + $0x11a] sm:$0x3] %v7116_v1  ;;  %400 = vmatprep.subr.mxu0 %v7116_v1  ;;  %6937 = vmatprep.subr.mxu1 %v651_v31  ;;  %v360_v40 = vld [vmem:[%s10090_s1 + $0x88] sm:$0xff]  ;;  %v646_v41 = vld [vmem:[%s10092_s3 + $0x38] sm:$0xff] }
  0x1f   : > { %959 = vst [vmem:[#allocation2 + $0x132] sm:$0x3] %v7116_v1  ;;  %960 = vst [vmem:[#allocation2 + $0x14a] sm:$0x3] %v7116_v1  ;;  %401 = vmatpush1.msra.mxu0 %v349_v11  ;;  %6938 = vmatpush3.msra.mxu1 %v651_v31  ;;  %v359_v42 = vld [vmem:[%s10090_s1 + $0x80] sm:$0xff]  ;;  %v645_v43 = vld [vmem:[%s10092_s3 + $0x30] sm:$0xff] }
  0x20   : > { %961 = vst [vmem:[#allocation2 + $0x162] sm:$0x3] %v7116_v1  ;;  %962 = vst [vmem:[#allocation2 + $0x17a] sm:$0x3] %v7116_v1  ;;  %402 = vmatprep.subr.mxu0 %v7116_v1  ;;  %6939 = vmatprep.subr.mxu1 %v650_v33  ;;  %v279_v44 = vld [vmem:[%s7244_s17] sm:$0xff]  ;;  %v282_v45 = vld [vmem:[%s7244_s17 + $0x18] sm:$0xff] }
  0x21   : > { %963 = vst [vmem:[#allocation2 + $0x192] sm:$0x3] %v7116_v1  ;;  %964 = vst [vmem:[#allocation2 + $0x1aa] sm:$0x3] %v7116_v1  ;;  %403 = vmatpush1.msra.mxu0 %v348_v12  ;;  %6940 = vmatpush3.msra.mxu1 %v650_v33  ;;  %v644_v46 = vld [vmem:[%s10092_s3 + $0x28] sm:$0xff]  ;;  %v643_v47 = vld [vmem:[%s10092_s3 + $0x20] sm:$0xff] }
  0x22   : > { %404 = vmatprep.subr.mxu0 %v7116_v1  ;;  %6941 = vmatprep.subr.mxu1 %v649_v35  ;;  %v281_v48 = vld [vmem:[%s7244_s17 + $0x10] sm:$0xff]  ;;  %v284_v49 = vld [vmem:[%s7244_s17 + $0x28] sm:$0xff]  ;;  %v283_v50 = vld [vmem:[%s7244_s17 + $0x20] sm:$0xff] }
  0x23   : > { %405 = vmatpush1.msra.mxu0 %v347_v13  ;;  %6942 = vmatpush3.msra.mxu1 %v649_v35  ;;  %v286_v51 = vld [vmem:[%s7244_s17 + $0x38] sm:$0xff]  ;;  %v285_v52 = vld [vmem:[%s7244_s17 + $0x30] sm:$0xff]  ;;  %v288_v53 = vld [vmem:[%s7244_s17 + $0x48] sm:$0xff] }
  0x24   : > { %406 = vmatprep.subr.mxu0 %v7116_v1  ;;  %6943 = vmatprep.subr.mxu1 %v648_v37  ;;  %v287_v54 = vld [vmem:[%s7244_s17 + $0x40] sm:$0xff]  ;;  %v290_v55 = vld [vmem:[%s7244_s17 + $0x58] sm:$0xff]  ;;  %v289_v56 = vld [vmem:[%s7244_s17 + $0x50] sm:$0xff] }
  0x25   : > { %407 = vmatpush1.msra.mxu0 %v346_v14  ;;  %6944 = vmatpush3.msra.mxu1 %v648_v37  ;;  %v292_v57 = vld [vmem:[%s7244_s17 + $0x68] sm:$0xff]  ;;  %v291_v58 = vld [vmem:[%s7244_s17 + $0x60] sm:$0xff]  ;;  %v294_v59 = vld [vmem:[%s7244_s17 + $0x78] sm:$0xff] }
  0x26   : > { %408 = vmatprep.subr.mxu0 %v7116_v1  ;;  %6945 = vmatprep.subr.mxu1 %v647_v39  ;;  %v293_v60 = vld [vmem:[%s7244_s17 + $0x70] sm:$0xff]  ;;  %v296_v61 = vld [vmem:[%s7244_s17 + $0x88] sm:$0xff]  ;;  %v295_v62 = vld [vmem:[%s7244_s17 + $0x80] sm:$0xff] }
  0x27   : > { %409 = vmatpush1.msra.mxu0 %v345_v15  ;;  %6946 = vmatpush3.msra.mxu1 %v647_v39  ;;  %v298_v63 = vld [vmem:[%s7244_s17 + $0x98] sm:$0xff]  ;;  %v297_v0 = vld [vmem:[%s7244_s17 + $0x90] sm:$0xff]  ;;  %v300_v2 = vld [vmem:[%s7244_s17 + $0xa8] sm:$0xff] }
  0x28   : > { %410 = vmatprep.subr.mxu0 %v7116_v1  ;;  %6947 = vmatprep.subr.mxu1 %v646_v41  ;;  %v299_v3 = vld [vmem:[%s7244_s17 + $0xa0] sm:$0xff]  ;;  %v302_v4 = vld [vmem:[%s7244_s17 + $0xb8] sm:$0xff]  ;;  %v301_v5 = vld [vmem:[%s7244_s17 + $0xb0] sm:$0xff] }
  0x29   : > { %411 = vmatpush1.msra.mxu0 %v344_v16  ;;  %6948 = vmatpush3.msra.mxu1 %v646_v41  ;;  %v304_v6 = vld [vmem:[%s7244_s17 + $0xc8] sm:$0xff]  ;;  %v303_v7 = vld [vmem:[%s7244_s17 + $0xc0] sm:$0xff]  ;;  %v306_v8 = vld [vmem:[%s7244_s17 + $0xd8] sm:$0xff] }
  0x2a   : > { %412 = vmatprep.subr.mxu0 %v7116_v1  ;;  %6949 = vmatprep.subr.mxu1 %v645_v43  ;;  %v305_v9 = vld [vmem:[%s7244_s17 + $0xd0] sm:$0xff]  ;;  %v308_v10 = vld [vmem:[%s7244_s17 + $0xe8] sm:$0xff]  ;;  %v307_v11 = vld [vmem:[%s7244_s17 + $0xe0] sm:$0xff] }
  0x2b   : > { %413 = vmatpush1.msra.mxu0 %v343_v17  ;;  %6950 = vmatpush3.msra.mxu1 %v645_v43  ;;  %v310_v12 = vld [vmem:[%s7244_s17 + $0xf8] sm:$0xff]  ;;  %v309_v13 = vld [vmem:[%s7244_s17 + $0xf0] sm:$0xff]  ;;  %v312_v14 = vld [vmem:[%s7244_s17 + $0x108] sm:$0xff] }
  0x2c   : > { %414 = vmatprep.subr.mxu0 %v7116_v1  ;;  %6951 = vmatprep.subr.mxu1 %v644_v46  ;;  %v311_v15 = vld [vmem:[%s7244_s17 + $0x100] sm:$0xff]  ;;  %v314_v16 = vld [vmem:[%s7244_s17 + $0x118] sm:$0xff]  ;;  %v320_v26 = vld [vmem:[%s7244_s17 + $0x148] sm:$0xff] }
  0x2d   : > { %415 = vmatpush2.msra.mxu0 %v374_v18  ;;  %6952 = vmatpush3.msra.mxu1 %v644_v46  ;;  %v642_v17 = vld [vmem:[%s10092_s3 + $0x18] sm:$0xff]  ;;  %v313_v18 = vld [vmem:[%s7244_s17 + $0x110] sm:$0xff]  ;;  %v319_v27 = vld [vmem:[%s7244_s17 + $0x140] sm:$0xff] }
  0x2e   : > { %416 = vmatprep.subr.mxu0 %v7116_v1  ;;  %6953 = vmatprep.subr.mxu1 %v643_v47  ;;  %v321_v29 = vld [vmem:[%s7244_s17 + $0x150] sm:$0xff]  ;;  %v323_v31 = vld [vmem:[%s7244_s17 + $0x160] sm:$0xff]  ;;  %v340_v46 = vld [vmem:[%s7244_s17 + $0x1e8] sm:$0xff] }
  0x2f   : > { %417 = vmatpush2.msra.mxu0 %v373_v19  ;;  %6954 = vmatpush3.msra.mxu1 %v643_v47  ;;  %v316_v19 = vld [vmem:[%s7244_s17 + $0x128] sm:$0xff]  ;;  %v325_v33 = vld [vmem:[%s7244_s17 + $0x170] sm:$0xff]  ;;  %v327_v35 = vld [vmem:[%s7244_s17 + $0x180] sm:$0xff] }
  0x30   : > { %418 = vmatprep.subr.mxu0 %v7116_v1  ;;  %6955 = vmatprep.subr.mxu1 %v642_v17  ;;  %v329_v37 = vld [vmem:[%s7244_s17 + $0x190] sm:$0xff]  ;;  %v331_v39 = vld [vmem:[%s7244_s17 + $0x1a0] sm:$0xff] }
  0x31   : > { %419 = vmatpush2.msra.mxu0 %v372_v20  ;;  %6956 = vmatpush3.msra.mxu1 %v642_v17  ;;  %v641_v20 = vld [vmem:[%s10092_s3 + $0x10] sm:$0xff]  ;;  %v335_v43 = vld [vmem:[%s7244_s17 + $0x1c0] sm:$0xff]  ;;  %v3413_v17 = vld [vmem:[%s10094_s5 + $0x68] sm:$0xff] }
  0x32   : > { %420 = vmatprep.subr.mxu0 %v7116_v1  ;;  %6957 = vmatprep.subr.mxu1 %v641_v20  ;;  %v333_v41 = vld [vmem:[%s7244_s17 + $0x1b0] sm:$0xff]  ;;  %v339_v47 = vld [vmem:[%s7244_s17 + $0x1e0] sm:$0xff] }
  0x33   : > { %421 = vmatpush2.msra.mxu0 %v371_v21  ;;  %6958 = vmatpush3.msra.mxu1 %v641_v20  ;;  %v640_v21 = vld [vmem:[%s10092_s3 + $0x8] sm:$0xff] }
  0x34   : > { %422 = vmatprep.subr.mxu0 %v7116_v1  ;;  %6959 = vmatprep.subr.mxu1 %v640_v21 }
  0x35   : > { %423 = vmatpush2.msra.mxu0 %v370_v22  ;;  %v315_v22 = vld [vmem:[%s7244_s17 + $0x120] sm:$0xff]  ;;  %6960 = vmatpush3.msra.mxu1 %v640_v21 }
  0x36   : > { %424 = vmatprep.subr.mxu0 %v7116_v1  ;;  %v3412_v21 = vld [vmem:[%s10094_s5 + $0x60] sm:$0xff] }
  0x37   : > { %425 = vmatpush2.msra.mxu0 %v369_v23  ;;  %v318_v23 = vld [vmem:[%s7244_s17 + $0x138] sm:$0xff] }
  0x38   : > { %426 = vmatprep.subr.mxu0 %v7116_v1 }
  0x39   : > { %427 = vmatpush2.msra.mxu0 %v368_v24  ;;  %v639_v24 = vld [vmem:[%s10092_s3] sm:$0xff] }
  0x3a   : > { %428 = vmatprep.subr.mxu0 %v7116_v1  ;;  %6961 = vmatprep.subr.mxu1 %v639_v24 }
  0x3b   : > { %429 = vmatpush2.msra.mxu0 %v367_v25  ;;  %6962 = vmatpush3.msra.mxu1 %v639_v24  ;;  %v317_v25 = vld [vmem:[%s7244_s17 + $0x130] sm:$0xff]  ;;  %v3411_v24 = vld [vmem:[%s10094_s5 + $0x58] sm:$0xff] }
  0x3c   : > { %430 = vmatprep.subr.mxu0 %v7116_v1  ;;  %3807 = vmatprep.subr.mxu1 %v7116_v1 }
  0x3d   : > { %431 = vmatpush2.msra.mxu0 %v366_v28  ;;  %v322_v28 = vld [vmem:[%s7244_s17 + $0x158] sm:$0xff] }
  0x3e   : > { %432 = vmatprep.subr.mxu0 %v7116_v1 }
  0x3f   : > { %433 = vmatpush2.msra.mxu0 %v365_v30  ;;  %v324_v30 = vld [vmem:[%s7244_s17 + $0x168] sm:$0xff] }
  0x40   : > { %434 = vmatprep.subr.mxu0 %v7116_v1 }
  0x41   : > { %435 = vmatpush2.msra.mxu0 %v364_v32  ;;  %v326_v32 = vld [vmem:[%s7244_s17 + $0x178] sm:$0xff] }
  0x42   : > { %436 = vmatprep.subr.mxu0 %v7116_v1 }
  0x43   : > { %437 = vmatpush2.msra.mxu0 %v363_v34  ;;  %v328_v34 = vld [vmem:[%s7244_s17 + $0x188] sm:$0xff] }
  0x44   : > { %438 = vmatprep.subr.mxu0 %v7116_v1 }
  0x45   : > { %439 = vmatpush2.msra.mxu0 %v362_v36  ;;  %v330_v36 = vld [vmem:[%s7244_s17 + $0x198] sm:$0xff] }
  0x46   : > { %440 = vmatprep.subr.mxu0 %v7116_v1 }
  0x47   : > { %441 = vmatpush2.msra.mxu0 %v361_v38  ;;  %v332_v38 = vld [vmem:[%s7244_s17 + $0x1a8] sm:$0xff] }
  0x48   : > { %442 = vmatprep.subr.mxu0 %v7116_v1 }
  0x49   : > { %443 = vmatpush2.msra.mxu0 %v360_v40  ;;  %v334_v40 = vld [vmem:[%s7244_s17 + $0x1b8] sm:$0xff] }
  0x4a   : > { %444 = vmatprep.subr.mxu0 %v7116_v1 }
  0x4b   : > { %445 = vmatpush2.msra.mxu0 %v359_v42  ;;  %v336_v42 = vld [vmem:[%s7244_s17 + $0x1c8] sm:$0xff] }
  0x4c   : > { %447 = vmatmul.mubr.f32.vlgmr.msra.gmra.mxu0 %v279_v44  ;;  %4032 = vmatprep.subr.mxu0 %v7116_v1  ;;  %v338_v44 = vld [vmem:[%s7244_s17 + $0x1d8] sm:$0xff] }
  0x4d   : > { %451 = vmatprep.mubr.f32.mxu0 %v282_v45  ;;  %v337_v45 = vld [vmem:[%s7244_s17 + $0x1d0] sm:$0xff] }
  0x50   : > { %452 = vmatmul.mubr.f32.gmra.mxu0 %v281_v48  ;;  %v342_v48 = vld [vmem:[%s7244_s17 + $0x1f8] sm:$0xff] }
  0x51   : > { %456 = vmatprep.mubr.f32.mxu0 %v284_v49  ;;  %v341_v49 = vld [vmem:[%s7244_s17 + $0x1f0] sm:$0xff] }
  0x54   : > { %457 = vmatmul.mubr.f32.gmra.mxu0 %v283_v50  ;;  %v3447_v50 = vld [vmem:[%s10094_s5 + $0x178] sm:$0xff] }
  0x55   : > { %461 = vmatprep.mubr.f32.mxu0 %v286_v51  ;;  %4033 = vmatpush1.msra.mxu0 %v3447_v50  ;;  %v3446_v51 = vld [vmem:[%s10094_s5 + $0x170] sm:$0xff] }
  0x56   : > { %4034 = vmatprep.subr.mxu0 %v7116_v1 }
  0x57   : > { %4035 = vmatpush1.msra.mxu0 %v3446_v51  ;;  %v3404_v51 = vld [vmem:[%s10094_s5 + $0x20] sm:$0xff] }
  0x58   : > { %462 = vmatmul.mubr.f32.gmra.mxu0 %v285_v52  ;;  %v3445_v52 = vld [vmem:[%s10094_s5 + $0x168] sm:$0xff]  ;;  %4036 = vmatprep.subr.mxu0 %v7116_v1 }
  0x59   : > { %466 = vmatprep.mubr.f32.mxu0 %v288_v53  ;;  %v3444_v53 = vld [vmem:[%s10094_s5 + $0x160] sm:$0xff]  ;;  %4037 = vmatpush1.msra.mxu0 %v3445_v52 }
  0x5a   : > { %4038 = vmatprep.subr.mxu0 %v7116_v1 }
  0x5b   : > { %4039 = vmatpush1.msra.mxu0 %v3444_v53 }
  0x5c   : > { %467 = vmatmul.mubr.f32.gmra.mxu0 %v287_v54  ;;  %v3443_v54 = vld [vmem:[%s10094_s5 + $0x158] sm:$0xff]  ;;  %4040 = vmatprep.subr.mxu0 %v7116_v1 }
  0x5d   : > { %471 = vmatprep.mubr.f32.mxu0 %v290_v55  ;;  %v3442_v55 = vld [vmem:[%s10094_s5 + $0x150] sm:$0xff]  ;;  %4041 = vmatpush1.msra.mxu0 %v3443_v54  ;;  %v3403_v54 = vld [vmem:[%s10094_s5 + $0x18] sm:$0xff] }
  0x5e   : > { %4042 = vmatprep.subr.mxu0 %v7116_v1 }
  0x5f   : > { %4043 = vmatpush1.msra.mxu0 %v3442_v55  ;;  %v3458_v55 = vld [vmem:[%s10094_s5 + $0x1d0] sm:$0xff] }
  0x60   : > { %472 = vmatmul.mubr.f32.gmra.mxu0 %v289_v56  ;;  %v3441_v56 = vld [vmem:[%s10094_s5 + $0x148] sm:$0xff]  ;;  %4044 = vmatprep.subr.mxu0 %v7116_v1 }
  0x61   : > { %476 = vmatprep.mubr.f32.mxu0 %v292_v57  ;;  %v3440_v57 = vld [vmem:[%s10094_s5 + $0x140] sm:$0xff]  ;;  %4045 = vmatpush1.msra.mxu0 %v3441_v56 }
  0x62   : > { %4046 = vmatprep.subr.mxu0 %v7116_v1 }
  0x63   : > { %4047 = vmatpush1.msra.mxu0 %v3440_v57 }
  0x64   : > { %477 = vmatmul.mubr.f32.gmra.mxu0 %v291_v58  ;;  %v7502_v58 = vld [vmem:[%s10091_s2] ss:$0 sm:$0xff]  ;;  %4048 = vmatprep.subr.mxu0 %v7116_v1 }
  0x65   : > { %481 = vmatprep.mubr.f32.mxu0 %v294_v59  ;;  %v3439_v59 = vld [vmem:[%s10094_s5 + $0x138] sm:$0xff] }
  0x66   : > { %4049 = vmatpush1.msra.mxu0 %v3439_v59  ;;  %v3402_v59 = vld [vmem:[%s10094_s5 + $0x10] sm:$0xff] }
  0x67   : > { %4050 = vmatprep.subr.mxu0 %v7116_v1 }
  0x68   : > { %482 = vmatmul.mubr.f32.gmra.mxu0 %v293_v60 }
  0x69   : > { %486 = vmatprep.mubr.f32.mxu0 %v296_v61 }
  0x6c   : > { %487 = vmatmul.mubr.f32.gmra.mxu0 %v295_v62  ;;  %v3438_v62 = vld [vmem:[%s10094_s5 + $0x130] sm:$0xff] }
  0x6d   : > { %491 = vmatprep.mubr.f32.mxu0 %v298_v63  ;;  %4051 = vmatpush1.msra.mxu0 %v3438_v62 }
  0x6e   : > { %4052 = vmatprep.subr.mxu0 %v7116_v1 }
  0x70   : > { %492 = vmatmul.mubr.f32.gmra.mxu0 %v297_v0 }
  0x71   : > { %496 = vmatprep.mubr.f32.mxu0 %v300_v2  ;;  %v3437_v2 = vld [vmem:[%s10094_s5 + $0x128] sm:$0xff] }
  0x72   : > { %4053 = vmatpush1.msra.mxu0 %v3437_v2  ;;  %v3456_v2 = vld [vmem:[%s10094_s5 + $0x1c0] sm:$0xff] }
  0x73   : > { %4054 = vmatprep.subr.mxu0 %v7116_v1 }
  0x74   : > { %497 = vmatmul.mubr.f32.gmra.mxu0 %v299_v3 }
  0x75   : > { %501 = vmatprep.mubr.f32.mxu0 %v302_v4 }
  0x78   : > { %502 = vmatmul.mubr.f32.gmra.mxu0 %v301_v5  ;;  %v3436_v5 = vld [vmem:[%s10094_s5 + $0x120] sm:$0xff] }
  0x79   : > { %506 = vmatprep.mubr.f32.mxu0 %v304_v6  ;;  %4055 = vmatpush1.msra.mxu0 %v3436_v5 }
  0x7a   : > { %4056 = vmatprep.subr.mxu0 %v7116_v1 }
  0x7c   : > { %507 = vmatmul.mubr.f32.gmra.mxu0 %v303_v7  ;;  %v1189_v7 = vld [vmem:[#allocation2 + $0x3] sm:$0xff] }
  0x7d   : > { %511 = vmatprep.mubr.f32.mxu0 %v306_v8 }
  0x80   : > { %512 = vmatmul.mubr.f32.gmra.mxu0 %v305_v9  ;;  %v3415_v9 = vld [vmem:[%s10094_s5 + $0x78] sm:$0xff] }
  0x81   : > { %516 = vmatprep.mubr.f32.mxu0 %v308_v10  ;;  %v3435_v10 = vld [vmem:[%s10094_s5 + $0x118] sm:$0xff] }
  0x82   : > { %4057 = vmatpush1.msra.mxu0 %v3435_v10 }
  0x83   : > { %4058 = vmatprep.subr.mxu0 %v7116_v1 }
  0x84   : > { %517 = vmatmul.mubr.f32.gmra.mxu0 %v307_v11 }
  0x85   : > { %521 = vmatprep.mubr.f32.mxu0 %v310_v12 }
  0x88   : > { %522 = vmatmul.mubr.f32.gmra.mxu0 %v309_v13  ;;  %v3414_v13 = vld [vmem:[%s10094_s5 + $0x70] sm:$0xff] }
  0x89   : > { %526 = vmatprep.mubr.f32.mxu0 %v312_v14  ;;  %v3434_v14 = vld [vmem:[%s10094_s5 + $0x110] sm:$0xff] }
  0x8a   : > { %4059 = vmatpush1.msra.mxu0 %v3434_v14 }
  0x8b   : > { %4060 = vmatprep.subr.mxu0 %v7116_v1 }
  0x8c   : > { %527 = vmatmul.mubr.f32.gmra.mxu0 %v311_v15 }
  0x8d   : > { %531 = vmatprep.mubr.f32.mxu0 %v314_v16 }
  0x90   : > { %532 = vmatmul.mubr.f32.gmra.mxu0 %v313_v18 }
  0x91   : > { %536 = vmatprep.mubr.f32.mxu0 %v316_v19  ;;  %v3433_v19 = vld [vmem:[%s10094_s5 + $0x108] sm:$0xff] }
  0x92   : > { %4061 = vmatpush1.msra.mxu0 %v3433_v19  ;;  %v3428_v19 = vld [vmem:[%s10094_s5 + $0xe0] sm:$0xff] }
  0x93   : > { %4062 = vmatprep.subr.mxu0 %v7116_v1 }
  0x94   : > { %537 = vmatmul.mubr.f32.gmra.mxu0 %v315_v22 }
  0x95   : > { %541 = vmatprep.mubr.f32.mxu0 %v318_v23 }
  0x98   : > { %542 = vmatmul.mubr.f32.gmra.mxu0 %v317_v25  ;;  %v3432_v25 = vld [vmem:[%s10094_s5 + $0x100] sm:$0xff] }
  0x99   : > { %546 = vmatprep.mubr.f32.mxu0 %v320_v26  ;;  %4063 = vmatpush1.msra.mxu0 %v3432_v25 }
  0x9a   : > { %4064 = vmatprep.subr.mxu0 %v7116_v1 }
  0x9c   : > { %547 = vmatmul.mubr.f32.gmra.mxu0 %v319_v27 }
  0x9d   : > { %551 = vmatprep.mubr.f32.mxu0 %v322_v28  ;;  %v3410_v28 = vld [vmem:[%s10094_s5 + $0x50] sm:$0xff] }
  0xa0   : > { %552 = vmatmul.mubr.f32.gmra.mxu0 %v321_v29  ;;  %v3463_v29 = vld [vmem:[%s10094_s5 + $0x1f8] sm:$0xff] }
  0xa1   : > { %556 = vmatprep.mubr.f32.mxu0 %v324_v30  ;;  %4065 = vmatpush2.msra.mxu0 %v3463_v29 }
  0xa2   : > { %4066 = vmatprep.subr.mxu0 %v7116_v1 }
  0xa4   : > { %557 = vmatmul.mubr.f32.gmra.mxu0 %v323_v31 }
  0xa5   : > { %561 = vmatprep.mubr.f32.mxu0 %v326_v32  ;;  %v3409_v32 = vld [vmem:[%s10094_s5 + $0x48] sm:$0xff] }
  0xa8   : > { %562 = vmatmul.mubr.f32.gmra.mxu0 %v325_v33 }
  0xa9   : > { %566 = vmatprep.mubr.f32.mxu0 %v328_v34  ;;  %v3462_v34 = vld [vmem:[%s10094_s5 + $0x1f0] sm:$0xff] }
  0xaa   : > { %4067 = vmatpush2.msra.mxu0 %v3462_v34  ;;  %v3424_v34 = vld [vmem:[%s10094_s5 + $0xc0] sm:$0xff] }
  0xab   : > { %4068 = vmatprep.subr.mxu0 %v7116_v1 }
  0xac   : > { %567 = vmatmul.mubr.f32.gmra.mxu0 %v327_v35 }
  0xad   : > { %571 = vmatprep.mubr.f32.mxu0 %v330_v36  ;;  %v3408_v36 = vld [vmem:[%s10094_s5 + $0x40] sm:$0xff] }
  0xb0   : > { %572 = vmatmul.mubr.f32.gmra.mxu0 %v329_v37 }
  0xb1   : > { %576 = vmatprep.mubr.f32.mxu0 %v332_v38 }
  0xb4   : > { %577 = vmatmul.mubr.f32.gmra.mxu0 %v331_v39  ;;  %v3407_v39 = vld [vmem:[%s10094_s5 + $0x38] sm:$0xff] }
  0xb5   : > { %581 = vmatprep.mubr.f32.mxu0 %v334_v40  ;;  %v3461_v40 = vld [vmem:[%s10094_s5 + $0x1e8] sm:$0xff] }
  0xb6   : > { %4069 = vmatpush2.msra.mxu0 %v3461_v40 }
  0xb7   : > { %4070 = vmatprep.subr.mxu0 %v7116_v1 }
  0xb8   : > { %582 = vmatmul.mubr.f32.gmra.mxu0 %v333_v41 }
  0xb9   : > { %586 = vmatprep.mubr.f32.mxu0 %v336_v42 }
  0xbc   : > { %587 = vmatmul.mubr.f32.gmra.mxu0 %v335_v43  ;;  %v3406_v43 = vld [vmem:[%s10094_s5 + $0x30] sm:$0xff] }
  0xbd   : > { %591 = vmatprep.mubr.f32.mxu0 %v338_v44  ;;  %v3460_v44 = vld [vmem:[%s10094_s5 + $0x1e0] sm:$0xff] }
  0xbe   : > { %4071 = vmatpush2.msra.mxu0 %v3460_v44 }
  0xbf   : > { %4072 = vmatprep.subr.mxu0 %v7116_v1 }
  0xc0   : > { %592 = vmatmul.mubr.f32.gmra.mxu0 %v337_v45 }
  0xc1   : > { %596 = vmatprep.mubr.f32.mxu0 %v340_v46 }
  0xc4   : > { %597 = vmatmul.mubr.f32.gmra.mxu0 %v339_v47  ;;  %v3405_v47 = vld [vmem:[%s10094_s5 + $0x28] sm:$0xff] }
  0xc5   : > { %601 = vmatprep.mubr.f32.mxu0 %v342_v48 }
  0xc8   : > { %602 = vmatmul.mubr.f32.gmra.mxu0 %v341_v49  ;;  %v3459_v49 = vld [vmem:[%s10094_s5 + $0x1d8] sm:$0xff] }
  0xc9   : > { %4096 = vmatprep.mubr.f32.mxu0 %v1189_v7  ;;  %4073 = vmatpush2.msra.mxu0 %v3459_v49  ;;  %v3431_v7 = vld [vmem:[%s10094_s5 + $0xf8] sm:$0xff] }
  0xca   : > { %4074 = vmatprep.subr.mxu0 %v7116_v1 }
  0xcb   : > { %4075 = vmatpush2.msra.mxu0 %v3458_v55 }
  0xcc   : > { %4076 = vmatprep.subr.mxu0 %v7116_v1 }
 0x10c   : > { %v448_v60 = vpop.f32.mrf.mxu0 }
 0x10d   : > { %v449_v61 = vadd.f32 %v7502_v58, %v448_v60  ;;  %v3457_v60 = vld [vmem:[%s10094_s5 + $0x1c8] sm:$0xff] }
 0x10e   : > { %v450_v63 = vpop.f32.mrf.mxu0  ;;  %4077 = vmatpush2.msra.mxu0 %v3457_v60 }
 0x10f   : > { %v607_v0 = vmax.f32 %v449_v61, 0.0  ;;  %v3401_v63 = vld [vmem:[%s10094_s5 + $0x8] sm:$0xff]  ;;  %4078 = vmatprep.subr.mxu0 %v7116_v1 }
 0x110   : > { %v453_v3 = vpop.f32.mrf.mxu0  ;;  %4079 = vmatpush2.msra.mxu0 %v3456_v2  ;;  %v1125_v2 = vld [vmem:[#allocation2 + $0x2] sm:$0xff] }
 0x111   : > { %v454_v4 = vadd.f32 %v7502_v58, %v453_v3  ;;  %6963 = vmatprep.mubr.f32.mxu1 %v607_v0  ;;  %4080 = vmatprep.subr.mxu0 %v7116_v1 }
 0x112   : > { %v455_v6 = vpop.f32.mrf.mxu0 }
 0x113   : > { %v608_v8 = vmax.f32 %v454_v4, 0.0  ;;  %v3400_v4 = vld [vmem:[%s10094_s5] sm:$0xff] }
 0x114   : > { %v458_v11 = vpop.f32.mrf.mxu0 }
 0x115   : > { %v459_v12 = vadd.f32 %v7502_v58, %v458_v11  ;;  %6964 = vmatmul.mubr.f32.vlgmr.msra.gmra.mxu1 %v608_v8  ;;  %v3455_v8 = vld [vmem:[%s10094_s5 + $0x1b8] sm:$0xff]  ;;  %v3430_v11 = vld [vmem:[%s10094_s5 + $0xf0] sm:$0xff] }
 0x116   : > { %v460_v15 = vpop.f32.mrf.mxu0  ;;  %3808 = vmatpush1.msra.mxu1 %v3415_v9  ;;  %4081 = vmatpush2.msra.mxu0 %v3455_v8  ;;  %v1126_v8 = vld [vmem:[#allocation2 + $0xa] sm:$0xff] }
 0x117   : > { %v609_v16 = vmax.f32 %v459_v12, 0.0  ;;  %3809 = vmatprep.subr.mxu1 %v7116_v1  ;;  %v3454_v12 = vld [vmem:[%s10094_s5 + $0x1b0] sm:$0xff]  ;;  %v3429_v15 = vld [vmem:[%s10094_s5 + $0xe8] sm:$0xff]  ;;  %4082 = vmatprep.subr.mxu0 %v7116_v1 }
 0x118   : > { %v463_v18 = vpop.f32.mrf.mxu0  ;;  %3810 = vmatpush1.msra.mxu1 %v3414_v13  ;;  %4083 = vmatpush2.msra.mxu0 %v3454_v12  ;;  %v1191_v12 = vld [vmem:[#allocation2 + $0x1b] sm:$0xff] }
 0x119   : > { %v464_v20 = vadd.f32 %v7502_v58, %v463_v18  ;;  %6966 = vmatprep.mubr.f32.mxu1 %v609_v16  ;;  %3811 = vmatprep.subr.mxu1 %v7116_v1 }
 0x11a   : > { %v465_v22 = vpop.f32.mrf.mxu0  ;;  %3812 = vmatpush1.msra.mxu1 %v3413_v17  ;;  %v3453_v17 = vld [vmem:[%s10094_s5 + $0x1a8] sm:$0xff] }
 0x11b   : > { %v610_v23 = vmax.f32 %v464_v20, 0.0  ;;  %3813 = vmatprep.subr.mxu1 %v7116_v1 }
 0x11c   : > { %v468_v26 = vpop.f32.mrf.mxu0  ;;  %3814 = vmatpush1.msra.mxu1 %v3412_v21  ;;  %v7670_v21 = vld [vmem:[#allocation2] sm:$0xff] }
 0x11d   : > { %v469_v27 = vadd.f32 %v7502_v58, %v468_v26  ;;  %6967 = vmatmul.mubr.f32.gmra.mxu1 %v610_v23  ;;  %3815 = vmatprep.subr.mxu1 %v7116_v1  ;;  %v3427_v23 = vld [vmem:[%s10094_s5 + $0xd8] sm:$0xff]  ;;  %v3426_v26 = vld [vmem:[%s10094_s5 + $0xd0] sm:$0xff] }
 0x11e   : > { %v470_v30 = vpop.f32.mrf.mxu0  ;;  %3816 = vmatpush1.msra.mxu1 %v3411_v24  ;;  %4084 = vmatprep.subr.mxu0 %v7670_v21 }
 0x11f   : > { %v611_v31 = vmax.f32 %v469_v27, 0.0  ;;  %3817 = vmatprep.subr.mxu1 %v7116_v1  ;;  %4085 = vmatpush2.msra.mxu0 %v3453_v17  ;;  %v3451_v27 = vld [vmem:[%s10094_s5 + $0x198] sm:$0xff]  ;;  %v3425_v30 = vld [vmem:[%s10094_s5 + $0xc8] sm:$0xff] }
 0x120   : > { %v473_v33 = vpop.f32.mrf.mxu0  ;;  %3818 = vmatpush1.msra.mxu1 %v3410_v28  ;;  %4086 = vmatprep.subr.mxu0 %v7670_v21 }
 0x121   : > { %v474_v35 = vadd.f32 %v7502_v58, %v473_v33  ;;  %6969 = vmatprep.mubr.f32.mxu1 %v611_v31  ;;  %3819 = vmatprep.subr.mxu1 %v7116_v1 }
 0x122   : > { %v475_v37 = vpop.f32.mrf.mxu0  ;;  %3820 = vmatpush1.msra.mxu1 %v3409_v32  ;;  %v3450_v32 = vld [vmem:[%s10094_s5 + $0x190] sm:$0xff] }
 0x123   : > { %v612_v38 = vmax.f32 %v474_v35, 0.0  ;;  %3821 = vmatprep.subr.mxu1 %v7116_v1  ;;  %v3423_v37 = vld [vmem:[%s10094_s5 + $0xb8] sm:$0xff] }
 0x124   : > { %v478_v41 = vpop.f32.mrf.mxu0  ;;  %3822 = vmatpush1.msra.mxu1 %v3408_v36 }
 0x125   : > { %v479_v42 = vadd.f32 %v7502_v58, %v478_v41  ;;  %6970 = vmatmul.mubr.f32.gmra.mxu1 %v612_v38  ;;  %3823 = vmatprep.subr.mxu1 %v7116_v1  ;;  %v3449_v38 = vld [vmem:[%s10094_s5 + $0x188] sm:$0xff]  ;;  %v3422_v41 = vld [vmem:[%s10094_s5 + $0xb0] sm:$0xff] }
 0x126   : > { %v480_v45 = vpop.f32.mrf.mxu0  ;;  %3824 = vmatpush1.msra.mxu1 %v3407_v39 }
 0x127   : > { %v613_v46 = vmax.f32 %v479_v42, 0.0  ;;  %3825 = vmatprep.subr.mxu1 %v7116_v1  ;;  %v3448_v42 = vld [vmem:[%s10094_s5 + $0x180] sm:$0xff]  ;;  %v3421_v45 = vld [vmem:[%s10094_s5 + $0xa8] sm:$0xff] }
 0x128   : > { %v483_v48 = vpop.f32.mrf.mxu0  ;;  %3826 = vmatpush1.msra.mxu1 %v3406_v43 }
 0x129   : > { %v484_v50 = vadd.f32 %v7502_v58, %v483_v48  ;;  %6972 = vmatprep.mubr.f32.mxu1 %v613_v46  ;;  %3827 = vmatprep.subr.mxu1 %v7116_v1  ;;  %v3420_v48 = vld [vmem:[%s10094_s5 + $0xa0] sm:$0xff] }
 0x12a   : > { %v485_v52 = vpop.f32.mrf.mxu0  ;;  %3828 = vmatpush1.msra.mxu1 %v3405_v47 }
 0x12b   : > { %v614_v53 = vmax.f32 %v484_v50, 0.0  ;;  %3829 = vmatprep.subr.mxu1 %v7116_v1 }
 0x12c   : > { %v488_v56 = vpop.f32.mrf.mxu0  ;;  %3830 = vmatpush1.msra.mxu1 %v3404_v51  ;;  %v3419_v51 = vld [vmem:[%s10094_s5 + $0x98] sm:$0xff] }
 0x12d   : > { %v489_v57 = vadd.f32 %v7502_v58, %v488_v56  ;;  %6973 = vmatmul.mubr.f32.gmra.mxu1 %v614_v53  ;;  %3831 = vmatprep.subr.mxu1 %v7116_v1 }
 0x12e   : > { %v490_v61 = vpop.f32.mrf.mxu0  ;;  %3832 = vmatpush1.msra.mxu1 %v3403_v54  ;;  %v3418_v54 = vld [vmem:[%s10094_s5 + $0x90] sm:$0xff] }
 0x12f   : > { %v615_v62 = vmax.f32 %v489_v57, 0.0  ;;  %3833 = vmatprep.subr.mxu1 %v7116_v1  ;;  %v3417_v57 = vld [vmem:[%s10094_s5 + $0x88] sm:$0xff]  ;;  %v3416_v61 = vld [vmem:[%s10094_s5 + $0x80] sm:$0xff] }
 0x130   : > { %v493_v0 = vpop.f32.mrf.mxu0  ;;  %3834 = vmatpush1.msra.mxu1 %v3402_v59 }
 0x131   : > { %v494_v3 = vadd.f32 %v7502_v58, %v493_v0  ;;  %6975 = vmatprep.mubr.f32.mxu1 %v615_v62  ;;  %3835 = vmatprep.subr.mxu1 %v7116_v1 }
 0x132   : > { %v495_v5 = vpop.f32.mrf.mxu0  ;;  %3836 = vmatpush1.msra.mxu1 %v3401_v63 }
 0x133   : > { %v616_v6 = vmax.f32 %v494_v3, 0.0  ;;  %3837 = vmatprep.subr.mxu1 %v7116_v1 }
 0x134   : > { %v498_v9 = vpop.f32.mrf.mxu0  ;;  %3838 = vmatpush1.msra.mxu1 %v3400_v4 }
 0x135   : > { %v499_v10 = vadd.f32 %v7502_v58, %v498_v9  ;;  %6976 = vmatmul.mubr.f32.gmra.mxu1 %v616_v6  ;;  %3839 = vmatprep.subr.mxu1 %v7116_v1  ;;  %v1190_v6 = vld [vmem:[#allocation2 + $0xb] sm:$0xff] }
 0x136   : > { %v500_v13 = vpop.f32.mrf.mxu0  ;;  %3840 = vmatpush2.msra.mxu1 %v3431_v7 }
 0x137   : > { %v617_v14 = vmax.f32 %v499_v10, 0.0  ;;  %3841 = vmatprep.subr.mxu1 %v7116_v1 }
 0x138   : > { %v503_v16 = vpop.f32.mrf.mxu0  ;;  %3842 = vmatpush2.msra.mxu1 %v3430_v11 }
 0x139   : > { %v504_v18 = vadd.f32 %v7502_v58, %v503_v16  ;;  %6978 = vmatprep.mubr.f32.mxu1 %v617_v14  ;;  %3843 = vmatprep.subr.mxu1 %v7116_v1  ;;  %v3452_v1 = vld [vmem:[%s10094_s5 + $0x1a0] sm:$0xff] }
 0x13a   : > { %v505_v20 = vpop.f32.mrf.mxu0  ;;  %3844 = vmatpush2.msra.mxu1 %v3429_v15  ;;  %4087 = vmatpush2.msra.mxu0 %v3452_v1  ;;  %v1127_v14 = vld [vmem:[#allocation2 + $0x1a] sm:$0xff] }
 0x13b   : > { %v618_v22 = vmax.f32 %v504_v18, 0.0  ;;  %3845 = vmatprep.subr.mxu1 %v7670_v21  ;;  %4088 = vmatprep.subr.mxu0 %v7670_v21  ;;  %v1192_v18 = vld [vmem:[#allocation2 + $0x23] sm:$0xff] }
 0x13c   : > { %v508_v24 = vpop.f32.mrf.mxu0  ;;  %3846 = vmatpush2.msra.mxu1 %v3428_v19  ;;  %4089 = vmatpush2.msra.mxu0 %v3451_v27  ;;  %v1128_v20 = vld [vmem:[#allocation2 + $0x22] sm:$0xff] }
 0x13d   : > { %v509_v25 = vadd.f32 %v7502_v58, %v508_v24  ;;  %6979 = vmatmul.mubr.f32.gmra.mxu1 %v618_v22  ;;  %3847 = vmatprep.subr.mxu1 %v7670_v21 }
 0x13e   : > { %v510_v28 = vpop.f32.mrf.mxu0  ;;  %3848 = vmatpush2.msra.mxu1 %v3427_v23  ;;  %4090 = vmatprep.subr.mxu0 %v7670_v21 }
 0x13f   : > { %v619_v29 = vmax.f32 %v509_v25, 0.0  ;;  %3849 = vmatprep.subr.mxu1 %v7670_v21  ;;  %4091 = vmatpush2.msra.mxu0 %v3450_v32 }
 0x140   : > { %v513_v31 = vpop.f32.mrf.mxu0  ;;  %3850 = vmatpush2.msra.mxu1 %v3426_v26  ;;  %4092 = vmatprep.subr.mxu0 %v7670_v21 }
 0x141   : > { %v514_v33 = vadd.f32 %v7502_v58, %v513_v31  ;;  %6981 = vmatprep.mubr.f32.mxu1 %v619_v29  ;;  %3851 = vmatprep.subr.mxu1 %v7670_v21 }
 0x142   : > { %v515_v35 = vpop.f32.mrf.mxu0  ;;  %3852 = vmatpush2.msra.mxu1 %v3425_v30  ;;  %4093 = vmatpush2.msra.mxu0 %v3449_v38 }
 0x143   : > { %v620_v36 = vmax.f32 %v514_v33, 0.0  ;;  %3853 = vmatprep.subr.mxu1 %v7670_v21  ;;  %4094 = vmatprep.subr.mxu0 %v7670_v21 }
 0x144   : > { %v518_v39 = vpop.f32.mrf.mxu0  ;;  %3854 = vmatpush2.msra.mxu1 %v3424_v34  ;;  %4095 = vmatpush2.msra.mxu0 %v3448_v42 }
 0x145   : > { %v519_v40 = vadd.f32 %v7502_v58, %v518_v39  ;;  %6982 = vmatmul.mubr.f32.gmra.mxu1 %v620_v36  ;;  %3855 = vmatprep.subr.mxu1 %v7670_v21 }
 0x146   : > { %v520_v43 = vpop.f32.mrf.mxu0  ;;  %3856 = vmatpush2.msra.mxu1 %v3423_v37  ;;  %4482 = vmatprep.subr.mxu0 %v7670_v21 }
 0x147   : > { %v621_v44 = vmax.f32 %v519_v40, 0.0  ;;  %3857 = vmatprep.subr.mxu1 %v7670_v21  ;;  %4097 = vmatmul.mubr.f32.vlgmr.msra.gmra.mxu0 %v1125_v2  ;;  %v1061_v2 = vld [vmem:[#allocation2 + $0x1] sm:$0xff] }
 0x148   : > { %v523_v46 = vpop.f32.mrf.mxu0  ;;  %3858 = vmatpush2.msra.mxu1 %v3422_v41  ;;  %4101 = vmatprep.mubr.f32.mxu0 %v1190_v6  ;;  %v3477_v6 = vld [vmem:[%s10094_s5 + $0x268] sm:$0xff] }
 0x149   : > { %v524_v47 = vadd.f32 %v7502_v58, %v523_v46  ;;  %6984 = vmatprep.mubr.f32.mxu1 %v621_v44  ;;  %3859 = vmatprep.subr.mxu1 %v7670_v21 }
 0x14a   : > { %v525_v49 = vpop.f32.mrf.mxu0  ;;  %3860 = vmatpush2.msra.mxu1 %v3421_v45 }
 0x14b   : > { %v622_v50 = vmax.f32 %v524_v47, 0.0  ;;  %3861 = vmatprep.subr.mxu1 %v7670_v21  ;;  %4102 = vmatmul.mubr.f32.gmra.mxu0 %v1126_v8  ;;  %v3511_v8 = vld [vmem:[%s10094_s5 + $0x378] sm:$0xff] }
 0x14c   : > { %v528_v52 = vpop.f32.mrf.mxu0  ;;  %3862 = vmatpush2.msra.mxu1 %v3420_v48  ;;  %4106 = vmatprep.mubr.f32.mxu0 %v1191_v12  ;;  %v3474_v12 = vld [vmem:[%s10094_s5 + $0x250] sm:$0xff] }
 0x14d   : > { %v529_v53 = vadd.f32 %v7502_v58, %v528_v52  ;;  %6985 = vmatmul.mubr.f32.gmra.mxu1 %v622_v50  ;;  %3863 = vmatprep.subr.mxu1 %v7670_v21 }
 0x14e   : > { %v530_v55 = vpop.f32.mrf.mxu0  ;;  %3864 = vmatpush2.msra.mxu1 %v3419_v51  ;;  %4483 = vmatpush1.msra.mxu0 %v3511_v8 }
 0x14f   : > { %v623_v56 = vmax.f32 %v529_v53, 0.0  ;;  %3865 = vmatprep.subr.mxu1 %v7670_v21  ;;  %4107 = vmatmul.mubr.f32.gmra.mxu0 %v1127_v14  ;;  %v3509_v14 = vld [vmem:[%s10094_s5 + $0x368] sm:$0xff] }
 0x150   : > { %v533_v59 = vpop.f32.mrf.mxu0  ;;  %3866 = vmatpush2.msra.mxu1 %v3418_v54  ;;  %4111 = vmatprep.mubr.f32.mxu0 %v1192_v18  ;;  %v3507_v18 = vld [vmem:[%s10094_s5 + $0x358] sm:$0xff] }
 0x151   : > { %v534_v60 = vadd.f32 %v7502_v58, %v533_v59  ;;  %6987 = vmatprep.mubr.f32.mxu1 %v623_v56  ;;  %3867 = vmatprep.subr.mxu1 %v7670_v21 }
 0x152   : > { %v535_v62 = vpop.f32.mrf.mxu0  ;;  %3868 = vmatpush2.msra.mxu1 %v3417_v57  ;;  %4484 = vmatprep.subr.mxu0 %v7670_v21 }
 0x153   : > { %v624_v63 = vmax.f32 %v534_v60, 0.0  ;;  %3869 = vmatprep.subr.mxu1 %v7670_v21  ;;  %4112 = vmatmul.mubr.f32.gmra.mxu0 %v1128_v20  ;;  %v3506_v20 = vld [vmem:[%s10094_s5 + $0x350] sm:$0xff] }
 0x154   : > { %v538_v0 = vpop.f32.mrf.mxu0  ;;  %3870 = vmatpush2.msra.mxu1 %v3416_v61 }
 0x155   : > { %v539_v3 = vadd.f32 %v7502_v58, %v538_v0  ;;  %6988 = vmatmul.mubr.f32.gmra.mxu1 %v624_v63  ;;  %4257 = vmatprep.subr.mxu1 %v7670_v21 }
 0x156   : > { %v540_v4 = vpop.f32.mrf.mxu0 }
 0x157   : > { %v625_v5 = vmax.f32 %v539_v3, 0.0  ;;  %v3479_v3 = vld [vmem:[%s10094_s5 + $0x278] sm:$0xff]  ;;  %v1062_v4 = vld [vmem:[#allocation2 + $0x9] sm:$0xff] }
 0x158   : > { %v543_v7 = vpop.f32.mrf.mxu0 }
 0x159   : > { %v544_v9 = vadd.f32 %v7502_v58, %v543_v7  ;;  %6990 = vmatprep.mubr.f32.mxu1 %v625_v5  ;;  %v3478_v5 = vld [vmem:[%s10094_s5 + $0x270] sm:$0xff]  ;;  %v3476_v7 = vld [vmem:[%s10094_s5 + $0x260] sm:$0xff] }
 0x15a   : > { %v545_v10 = vpop.f32.mrf.mxu0 }
 0x15b   : > { %v626_v11 = vmax.f32 %v544_v9, 0.0  ;;  %v1064_v9 = vld [vmem:[#allocation2 + $0x21] sm:$0xff]  ;;  %v3475_v10 = vld [vmem:[%s10094_s5 + $0x258] sm:$0xff] }
 0x15c   : > { %v548_v13 = vpop.f32.mrf.mxu0 }
 0x15d   : > { %v549_v15 = vadd.f32 %v7502_v58, %v548_v13  ;;  %6991 = vmatmul.mubr.f32.gmra.mxu1 %v626_v11  ;;  %v3510_v11 = vld [vmem:[%s10094_s5 + $0x370] sm:$0xff]  ;;  %v3473_v13 = vld [vmem:[%s10094_s5 + $0x248] sm:$0xff] }
 0x15e   : > { %v550_v16 = vpop.f32.mrf.mxu0  ;;  %4485 = vmatpush1.msra.mxu0 %v3510_v11 }
 0x15f   : > { %v627_v17 = vmax.f32 %v549_v15, 0.0  ;;  %4486 = vmatprep.subr.mxu0 %v7670_v21  ;;  %v3472_v15 = vld [vmem:[%s10094_s5 + $0x240] sm:$0xff] }
 0x160   : > { %v553_v19 = vpop.f32.mrf.mxu0  ;;  %v3508_v16 = vld [vmem:[%s10094_s5 + $0x360] sm:$0xff]  ;;  %4487 = vmatpush1.msra.mxu0 %v3509_v14 }
 0x161   : > { %v554_v22 = vadd.f32 %v7502_v58, %v553_v19  ;;  %6993 = vmatprep.mubr.f32.mxu1 %v627_v17  ;;  %v3471_v17 = vld [vmem:[%s10094_s5 + $0x238] sm:$0xff]  ;;  %4488 = vmatprep.subr.mxu0 %v7670_v21  ;;  %v3470_v19 = vld [vmem:[%s10094_s5 + $0x230] sm:$0xff] }
 0x162   : > { %v555_v23 = vpop.f32.mrf.mxu0  ;;  %4489 = vmatpush1.msra.mxu0 %v3508_v16 }
 0x163   : > { %v628_v1 = vmax.f32 %v554_v22, 0.0  ;;  %4490 = vmatprep.subr.mxu0 %v7670_v21  ;;  %v3469_v22 = vld [vmem:[%s10094_s5 + $0x228] sm:$0xff] }
 0x164   : > { %v558_v24 = vpop.f32.mrf.mxu0  ;;  %4491 = vmatpush1.msra.mxu0 %v3507_v18  ;;  %v3505_v23 = vld [vmem:[%s10094_s5 + $0x348] sm:$0xff] }
 0x165   : > { %v559_v25 = vadd.f32 %v7502_v58, %v558_v24  ;;  %6994 = vmatmul.mubr.f32.gmra.mxu1 %v628_v1  ;;  %4492 = vmatprep.subr.mxu0 %v7670_v21  ;;  %v3468_v1 = vld [vmem:[%s10094_s5 + $0x220] sm:$0xff] }
 0x166   : > { %v560_v26 = vpop.f32.mrf.mxu0  ;;  %4493 = vmatpush1.msra.mxu0 %v3506_v20  ;;  %v3504_v24 = vld [vmem:[%s10094_s5 + $0x340] sm:$0xff] }
 0x167   : > { %v629_v27 = vmax.f32 %v559_v25, 0.0  ;;  %4494 = vmatprep.subr.mxu0 %v7670_v21  ;;  %v3467_v25 = vld [vmem:[%s10094_s5 + $0x218] sm:$0xff] }
 0x168   : > { %v563_v28 = vpop.f32.mrf.mxu0  ;;  %4495 = vmatpush1.msra.mxu0 %v3505_v23  ;;  %v3503_v26 = vld [vmem:[%s10094_s5 + $0x338] sm:$0xff] }
 0x169   : > { %v564_v29 = vadd.f32 %v7502_v58, %v563_v28  ;;  %6996 = vmatprep.mubr.f32.mxu1 %v629_v27  ;;  %4496 = vmatprep.subr.mxu0 %v7670_v21  ;;  %v3466_v27 = vld [vmem:[%s10094_s5 + $0x210] sm:$0xff] }
 0x16a   : > { %v565_v30 = vpop.f32.mrf.mxu0  ;;  %4497 = vmatpush1.msra.mxu0 %v3504_v24  ;;  %v3502_v28 = vld [vmem:[%s10094_s5 + $0x330] sm:$0xff] }
 0x16b   : > { %v630_v31 = vmax.f32 %v564_v29, 0.0  ;;  %4498 = vmatprep.subr.mxu0 %v7670_v21  ;;  %v3465_v29 = vld [vmem:[%s10094_s5 + $0x208] sm:$0xff] }
 0x16c   : > { %v568_v32 = vpop.f32.mrf.mxu0  ;;  %4499 = vmatpush1.msra.mxu0 %v3503_v26  ;;  %v3501_v30 = vld [vmem:[%s10094_s5 + $0x328] sm:$0xff] }
 0x16d   : > { %v569_v33 = vadd.f32 %v7502_v58, %v568_v32  ;;  %6997 = vmatmul.mubr.f32.gmra.mxu1 %v630_v31  ;;  %4500 = vmatprep.subr.mxu0 %v7670_v21  ;;  %v3464_v31 = vld [vmem:[%s10094_s5 + $0x200] sm:$0xff] }
 0x16e   : > { %v570_v34 = vpop.f32.mrf.mxu0  ;;  %4501 = vmatpush1.msra.mxu0 %v3502_v28  ;;  %v3500_v32 = vld [vmem:[%s10094_s5 + $0x320] sm:$0xff] }
 0x16f   : > { %v631_v35 = vmax.f32 %v569_v33, 0.0  ;;  %4502 = vmatprep.subr.mxu0 %v7670_v21  ;;  %v3495_v33 = vld [vmem:[%s10094_s5 + $0x2f8] sm:$0xff] }
 0x170   : > { %v573_v36 = vpop.f32.mrf.mxu0  ;;  %4503 = vmatpush1.msra.mxu0 %v3501_v30  ;;  %v3499_v34 = vld [vmem:[%s10094_s5 + $0x318] sm:$0xff] }
 0x171   : > { %v574_v37 = vadd.f32 %v7502_v58, %v573_v36  ;;  %6999 = vmatprep.mubr.f32.mxu1 %v631_v35  ;;  %4504 = vmatprep.subr.mxu0 %v7670_v21  ;;  %v3494_v35 = vld [vmem:[%s10094_s5 + $0x2f0] sm:$0xff] }
 0x172   : > { %v575_v38 = vpop.f32.mrf.mxu0  ;;  %4505 = vmatpush1.msra.mxu0 %v3500_v32  ;;  %v3498_v36 = vld [vmem:[%s10094_s5 + $0x310] sm:$0xff] }
 0x173   : > { %v632_v39 = vmax.f32 %v574_v37, 0.0  ;;  %4506 = vmatprep.subr.mxu0 %v7670_v21  ;;  %v3493_v37 = vld [vmem:[%s10094_s5 + $0x2e8] sm:$0xff] }
 0x174   : > { %v578_v40 = vpop.f32.mrf.mxu0  ;;  %4507 = vmatpush1.msra.mxu0 %v3499_v34  ;;  %v3497_v38 = vld [vmem:[%s10094_s5 + $0x308] sm:$0xff] }
 0x175   : > { %v579_v41 = vadd.f32 %v7502_v58, %v578_v40  ;;  %7000 = vmatmul.mubr.f32.gmra.mxu1 %v632_v39  ;;  %4508 = vmatprep.subr.mxu0 %v7670_v21  ;;  %v3492_v39 = vld [vmem:[%s10094_s5 + $0x2e0] sm:$0xff] }
 0x176   : > { %v580_v42 = vpop.f32.mrf.mxu0  ;;  %4509 = vmatpush1.msra.mxu0 %v3498_v36  ;;  %v3496_v40 = vld [vmem:[%s10094_s5 + $0x300] sm:$0xff] }
 0x177   : > { %v633_v43 = vmax.f32 %v579_v41, 0.0  ;;  %4510 = vmatprep.subr.mxu0 %v7670_v21  ;;  %v3491_v41 = vld [vmem:[%s10094_s5 + $0x2d8] sm:$0xff] }
 0x178   : > { %v583_v44 = vpop.f32.mrf.mxu0  ;;  %4511 = vmatpush1.msra.mxu0 %v3497_v38  ;;  %v3527_v42 = vld [vmem:[%s10094_s5 + $0x3f8] sm:$0xff] }
 0x179   : > { %v584_v45 = vadd.f32 %v7502_v58, %v583_v44  ;;  %7002 = vmatprep.mubr.f32.mxu1 %v633_v43  ;;  %4512 = vmatprep.subr.mxu0 %v7670_v21  ;;  %v3490_v43 = vld [vmem:[%s10094_s5 + $0x2d0] sm:$0xff] }
 0x17a   : > { %v585_v46 = vpop.f32.mrf.mxu0  ;;  %4513 = vmatpush1.msra.mxu0 %v3496_v40  ;;  %v3526_v44 = vld [vmem:[%s10094_s5 + $0x3f0] sm:$0xff] }
 0x17b   : > { %v634_v47 = vmax.f32 %v584_v45, 0.0  ;;  %4514 = vmatprep.subr.mxu0 %v7670_v21  ;;  %v3489_v45 = vld [vmem:[%s10094_s5 + $0x2c8] sm:$0xff] }
 0x17c   : > { %v588_v48 = vpop.f32.mrf.mxu0  ;;  %4515 = vmatpush2.msra.mxu0 %v3527_v42  ;;  %v3525_v46 = vld [vmem:[%s10094_s5 + $0x3e8] sm:$0xff] }
 0x17d   : > { %7003 = vmatmul.mubr.f32.gmra.mxu1 %v634_v47  ;;  %v589_v49 = vadd.f32 %v7502_v58, %v588_v48  ;;  %4516 = vmatprep.subr.mxu0 %v7670_v21  ;;  %v3488_v47 = vld [vmem:[%s10094_s5 + $0x2c0] sm:$0xff] }
 0x17e   : > { %v590_v50 = vpop.f32.mrf.mxu0  ;;  %4517 = vmatpush2.msra.mxu0 %v3526_v44  ;;  %v3524_v48 = vld [vmem:[%s10094_s5 + $0x3e0] sm:$0xff] }
 0x17f   : > { %v635_v51 = vmax.f32 %v589_v49, 0.0  ;;  %4518 = vmatprep.subr.mxu0 %v7670_v21  ;;  %v3487_v49 = vld [vmem:[%s10094_s5 + $0x2b8] sm:$0xff] }
 0x180   : > { %v593_v52 = vpop.f32.mrf.mxu0  ;;  %4519 = vmatpush2.msra.mxu0 %v3525_v46  ;;  %v3523_v50 = vld [vmem:[%s10094_s5 + $0x3d8] sm:$0xff] }
 0x181   : > { %v594_v53 = vadd.f32 %v7502_v58, %v593_v52  ;;  %7005 = vmatprep.mubr.f32.mxu1 %v635_v51  ;;  %4520 = vmatprep.subr.mxu0 %v7670_v21  ;;  %v3486_v51 = vld [vmem:[%s10094_s5 + $0x2b0] sm:$0xff] }
 0x182   : > { %v595_v54 = vpop.f32.mrf.mxu0  ;;  %4521 = vmatpush2.msra.mxu0 %v3524_v48  ;;  %v3522_v52 = vld [vmem:[%s10094_s5 + $0x3d0] sm:$0xff] }
 0x183   : > { %v636_v55 = vmax.f32 %v594_v53, 0.0  ;;  %4522 = vmatprep.subr.mxu0 %v7670_v21  ;;  %v3485_v53 = vld [vmem:[%s10094_s5 + $0x2a8] sm:$0xff] }
 0x184   : > { %v598_v56 = vpop.f32.mrf.mxu0  ;;  %4523 = vmatpush2.msra.mxu0 %v3523_v50  ;;  %v3521_v54 = vld [vmem:[%s10094_s5 + $0x3c8] sm:$0xff] }
 0x185   : > { %v599_v57 = vadd.f32 %v7502_v58, %v598_v56  ;;  %7006 = vmatmul.mubr.f32.gmra.mxu1 %v636_v55  ;;  %4524 = vmatprep.subr.mxu0 %v7670_v21  ;;  %v3484_v55 = vld [vmem:[%s10094_s5 + $0x2a0] sm:$0xff] }
 0x186   : > { %v600_v59 = vpop.f32.mrf.mxu0  ;;  %4525 = vmatpush2.msra.mxu0 %v3522_v52  ;;  %v3520_v56 = vld [vmem:[%s10094_s5 + $0x3c0] sm:$0xff] }
 0x187   : > { %v637_v60 = vmax.f32 %v599_v57, 0.0  ;;  %4526 = vmatprep.subr.mxu0 %v7670_v21  ;;  %v3483_v57 = vld [vmem:[%s10094_s5 + $0x298] sm:$0xff] }
 0x188   : > { %v603_v61 = vpop.f32.mrf.mxu0  ;;  %4527 = vmatpush2.msra.mxu0 %v3521_v54  ;;  %v3519_v59 = vld [vmem:[%s10094_s5 + $0x3b8] sm:$0xff] }
 0x189   : > { %v604_v62 = vadd.f32 %v7502_v58, %v603_v61  ;;  %7008 = vmatprep.mubr.f32.mxu1 %v637_v60  ;;  %v1063_v58 = vld [vmem:[#allocation2 + $0x19] sm:$0xff]  ;;  %4528 = vmatprep.subr.mxu0 %v7670_v21  ;;  %v3518_v60 = vld [vmem:[%s10094_s5 + $0x3b0] sm:$0xff] }
 0x18a   : > { %v605_v63 = vpop.f32.mrf.mxu0  ;;  %4529 = vmatpush2.msra.mxu0 %v3520_v56  ;;  %v3482_v61 = vld [vmem:[%s10094_s5 + $0x290] sm:$0xff] }
 0x18b   : > { %v638_v0 = vmax.f32 %v604_v62, 0.0  ;;  %4530 = vmatprep.subr.mxu0 %v7670_v21  ;;  %v3517_v62 = vld [vmem:[%s10094_s5 + $0x3a8] sm:$0xff]  ;;  %v3516_v63 = vld [vmem:[%s10094_s5 + $0x3a0] sm:$0xff] }
 0x18c   : > { %4531 = vmatpush2.msra.mxu0 %v3519_v59 }
 0x18d   : > { %7009 = vmatmul.mubr.f32.gmra.mxu1 %v638_v0  ;;  %4532 = vmatprep.subr.mxu0 %v7670_v21  ;;  %v3481_v0 = vld [vmem:[%s10094_s5 + $0x288] sm:$0xff] }
 0x18e   : > { %3871 = vmatprep.mubr.f32.mxu1 %v1061_v2  ;;  %4533 = vmatpush2.msra.mxu0 %v3518_v60  ;;  %v3515_v2 = vld [vmem:[%s10094_s5 + $0x398] sm:$0xff] }
 0x18f   : > { %4534 = vmatprep.subr.mxu0 %v7670_v21 }
 0x190   : > { %4535 = vmatpush2.msra.mxu0 %v3517_v62 }
 0x191   : > { %3872 = vmatmul.mubr.f32.vlgmr.msra.gmra.mxu1 %v7670_v21  ;;  %4536 = vmatprep.subr.mxu0 %v7670_v21 }
 0x192   : > { %4258 = vmatpush1.msra.mxu1 %v3479_v3  ;;  %3876 = vmatprep.mubr.f32.mxu1 %v1062_v4  ;;  %v3514_v3 = vld [vmem:[%s10094_s5 + $0x390] sm:$0xff]  ;;  %v3480_v4 = vld [vmem:[%s10094_s5 + $0x280] sm:$0xff] }
 0x193   : > { %4259 = vmatprep.subr.mxu1 %v7670_v21  ;;  %4537 = vmatpush2.msra.mxu0 %v3516_v63 }
 0x194   : > { %4260 = vmatpush1.msra.mxu1 %v3478_v5  ;;  %4538 = vmatprep.subr.mxu0 %v7670_v21  ;;  %v8016_v5 = vld [vmem:[%s10093_s4] ss:$0 sm:$0xff] }
 0x195   : > { %3877 = vmatmul.mubr.f32.gmra.mxu1 %v7670_v21  ;;  %4261 = vmatprep.subr.mxu1 %v7670_v21 }
 0x196   : > { %3881 = vmatprep.mubr.f32.mxu1 %v1063_v58  ;;  %4262 = vmatpush1.msra.mxu1 %v3477_v6  ;;  %v3513_v58 = vld [vmem:[%s10094_s5 + $0x388] sm:$0xff] }
 0x197   : > { %4263 = vmatprep.subr.mxu1 %v7670_v21  ;;  %4539 = vmatpush2.msra.mxu0 %v3515_v2 }
 0x198   : > { %4264 = vmatpush1.msra.mxu1 %v3476_v7  ;;  %4540 = vmatprep.subr.mxu0 %v7670_v21  ;;  %v3512_v7 = vld [vmem:[%s10094_s5 + $0x380] sm:$0xff] }
 0x199   : > { %3882 = vmatmul.mubr.f32.gmra.mxu1 %v7670_v21  ;;  %4265 = vmatprep.subr.mxu1 %v7670_v21 }
 0x19a   : > { %3886 = vmatprep.mubr.f32.mxu1 %v1064_v9  ;;  %4266 = vmatpush1.msra.mxu1 %v3475_v10 }
 0x19b   : > { %4267 = vmatprep.subr.mxu1 %v7670_v21  ;;  %4541 = vmatpush2.msra.mxu0 %v3514_v3 }
 0x19c   : > { %4268 = vmatpush1.msra.mxu1 %v3474_v12  ;;  %4542 = vmatprep.subr.mxu0 %v7670_v21 }
 0x19d   : > { %3887 = vmatmul.mubr.f32.gmra.mxu1 %v7670_v21  ;;  %4269 = vmatprep.subr.mxu1 %v7670_v21 }
 0x19e   : > { %4270 = vmatpush1.msra.mxu1 %v3473_v13  ;;  %4543 = vmatpush2.msra.mxu0 %v3513_v58 }
 0x19f   : > { %4271 = vmatprep.subr.mxu1 %v7670_v21  ;;  %4544 = vmatprep.subr.mxu0 %v7670_v21 }
 0x1a0   : > { %4272 = vmatpush1.msra.mxu1 %v3472_v15  ;;  %4545 = vmatpush2.msra.mxu0 %v3512_v7 }
 0x1a1   : > { %4273 = vmatprep.subr.mxu1 %v7670_v21  ;;  %4932 = vmatprep.subr.mxu0 %v7670_v21 }
 0x1a2   : > { %4274 = vmatpush1.msra.mxu1 %v3471_v17 }
 0x1a3   : > { %4275 = vmatprep.subr.mxu1 %v7670_v21 }
 0x1a4   : > { %4276 = vmatpush1.msra.mxu1 %v3470_v19 }
 0x1a5   : > { %4277 = vmatprep.subr.mxu1 %v7670_v21 }
 0x1a6   : > { %4278 = vmatpush1.msra.mxu1 %v3469_v22 }
 0x1a7   : > { %4279 = vmatprep.subr.mxu1 %v7670_v21 }
 0x1a8   : > { %4280 = vmatpush1.msra.mxu1 %v3468_v1 }
 0x1a9   : > { %4281 = vmatprep.subr.mxu1 %v7670_v21 }
 0x1aa   : > { %4282 = vmatpush1.msra.mxu1 %v3467_v25 }
 0x1ab   : > { %4283 = vmatprep.subr.mxu1 %v7670_v21 }
 0x1ac   : > { %4284 = vmatpush1.msra.mxu1 %v3466_v27 }
 0x1ad   : > { %4285 = vmatprep.subr.mxu1 %v7670_v21 }
 0x1ae   : > { %4286 = vmatpush1.msra.mxu1 %v3465_v29 }
 0x1af   : > { %4287 = vmatprep.subr.mxu1 %v7670_v21 }
 0x1b0   : > { %4288 = vmatpush1.msra.mxu1 %v3464_v31 }
 0x1b1   : > { %4289 = vmatprep.subr.mxu1 %v7670_v21 }
 0x1b2   : > { %4290 = vmatpush2.msra.mxu1 %v3495_v33 }
 0x1b3   : > { %4291 = vmatprep.subr.mxu1 %v7670_v21 }
 0x1b4   : > { %4292 = vmatpush2.msra.mxu1 %v3494_v35 }
 0x1b5   : > { %4293 = vmatprep.subr.mxu1 %v7670_v21 }
 0x1b6   : > { %4294 = vmatpush2.msra.mxu1 %v3493_v37 }
 0x1b7   : > { %4295 = vmatprep.subr.mxu1 %v7670_v21 }
 0x1b8   : > { %4296 = vmatpush2.msra.mxu1 %v3492_v39 }
 0x1b9   : > { %4297 = vmatprep.subr.mxu1 %v7670_v21 }
 0x1ba   : > { %4298 = vmatpush2.msra.mxu1 %v3491_v41 }
 0x1bb   : > { %4299 = vmatprep.subr.mxu1 %v7670_v21 }
 0x1bc   : > { %4300 = vmatpush2.msra.mxu1 %v3490_v43 }
 0x1bd   : > { %4301 = vmatprep.subr.mxu1 %v7670_v21 }
 0x1be   : > { %4302 = vmatpush2.msra.mxu1 %v3489_v45 }
 0x1bf   : > { %4303 = vmatprep.subr.mxu1 %v7670_v21 }
 0x1c0   : > { %4304 = vmatpush2.msra.mxu1 %v3488_v47 }
 0x1c1   : > { %4305 = vmatprep.subr.mxu1 %v7670_v21 }
 0x1c2   : > { %4306 = vmatpush2.msra.mxu1 %v3487_v49 }
 0x1c3   : > { %4307 = vmatprep.subr.mxu1 %v7670_v21 }
 0x1c4   : > { %4308 = vmatpush2.msra.mxu1 %v3486_v51 }
 0x1c5   : > { %4309 = vmatprep.subr.mxu1 %v7670_v21 }
 0x1c6   : > { %4310 = vmatpush2.msra.mxu1 %v3485_v53 }
 0x1c7   : > { %4311 = vmatprep.subr.mxu1 %v7670_v21 }
 0x1c8   : > { %4312 = vmatpush2.msra.mxu1 %v3484_v55 }
 0x1c9   : > { %4313 = vmatprep.subr.mxu1 %v7670_v21 }
 0x1ca   : > { %4314 = vmatpush2.msra.mxu1 %v3483_v57 }
 0x1cb   : > { %4315 = vmatprep.subr.mxu1 %v7670_v21 }
 0x1cc   : > { %4316 = vmatpush2.msra.mxu1 %v3482_v61 }
 0x1cd   : > { %4317 = vmatprep.subr.mxu1 %v7670_v21 }
 0x1ce   : > { %4318 = vmatpush2.msra.mxu1 %v3481_v0 }
 0x1cf   : > { %4319 = vmatprep.subr.mxu1 %v7670_v21 }
 0x1d0   : > { %4320 = vmatpush2.msra.mxu1 %v3480_v4 }
 0x1d1   : > { %4707 = vmatprep.subr.mxu1 %v7670_v21 }
 0x1d5   : > { %v6965_v6 = vpop.f32.mrf.mxu1 }
 0x1d6   : > { %v734_v8 = vadd.f32 %v6965_v6, %v8016_v5 }
 0x1d7   : > { %v728_v9 = vpop.f32.mrf.mxu1 }
 0x1d8   : > { %v888_v10 = vmax.f32 %v734_v8, 0.0  ;;  %v729_v11 = vadd.f32 %v8016_v5, %v728_v9 }
 0x1da   : > { %966 = vst [vmem:[#allocation2 + $0x3a] sm:$0xff] %v888_v10  ;;  %v887_v12 = vmax.f32 %v729_v11, 0.0 }
 0x1dc   : > { %965 = vst [vmem:[#allocation2 + $0x32] sm:$0xff] %v887_v12 }
 0x1dd   : > { %v6968_v13 = vpop.f32.mrf.mxu1 }
 0x1de   : > { %v744_v14 = vadd.f32 %v6968_v13, %v8016_v5 }
 0x1df   : > { %v738_v15 = vpop.f32.mrf.mxu1 }
 0x1e0   : > { %v890_v16 = vmax.f32 %v744_v14, 0.0  ;;  %v739_v17 = vadd.f32 %v8016_v5, %v738_v15 }
 0x1e1   : > { %v1194_v1 = vld [vmem:[#allocation2 + $0x3b] sm:$0xff] }
 0x1e2   : > { %968 = vst [vmem:[#allocation2 + $0x52] sm:$0xff] %v890_v16  ;;  %v889_v18 = vmax.f32 %v739_v17, 0.0 }
 0x1e3   : > { %v1065_v19 = vld [vmem:[#allocation2 + $0x31] sm:$0xff]  ;;  %v1066_v21 = vld [vmem:[#allocation2 + $0x39] sm:$0xff] }
 0x1e4   : > { %v1193_v20 = vld [vmem:[#allocation2 + $0x33] sm:$0xff]  ;;  %967 = vst [vmem:[#allocation2 + $0x4a] sm:$0xff] %v889_v18  ;;  %3891 = vmatprep.mubr.f32.mxu1 %v1065_v19 }
 0x1e5   : > { %v1001_v22 = vld [vmem:[#allocation2 + $0x30] sm:$0xff]  ;;  %4116 = vmatprep.mubr.f32.mxu0 %v1193_v20  ;;  %v6971_v23 = vpop.f32.mrf.mxu1  ;;  %v8035_v28 = vld [vmem:[#allocation2 + $0x38] sm:$0xff] }
 0x1e6   : > { %3892 = vmatmul.mubr.f32.gmra.mxu1 %v1001_v22  ;;  %4117 = vmatmul.mubr.f32.gmra.mxu0 %v887_v12  ;;  %v754_v24 = vadd.f32 %v6971_v23, %v8016_v5 }
 0x1e7   : > { %3896 = vmatprep.mubr.f32.mxu1 %v1066_v21  ;;  %4121 = vmatprep.mubr.f32.mxu0 %v1194_v1  ;;  %v748_v25 = vpop.f32.mrf.mxu1 }
 0x1e8   : > { %v892_v26 = vmax.f32 %v754_v24, 0.0  ;;  %v749_v27 = vadd.f32 %v8016_v5, %v748_v25 }
 0x1e9   : > { %v1196_v35 = vld [vmem:[#allocation2 + $0x53] sm:$0xff] }
 0x1ea   : > { %3897 = vmatmul.mubr.f32.gmra.mxu1 %v8035_v28  ;;  %4122 = vmatmul.mubr.f32.gmra.mxu0 %v888_v10  ;;  %970 = vst [vmem:[#allocation2 + $0x6a] sm:$0xff] %v892_v26  ;;  %v891_v29 = vmax.f32 %v749_v27, 0.0 }
 0x1eb   : > { %v1067_v30 = vld [vmem:[#allocation2 + $0x49] sm:$0xff]  ;;  %v1068_v34 = vld [vmem:[#allocation2 + $0x51] sm:$0xff] }
 0x1ec   : > { %v1195_v31 = vld [vmem:[#allocation2 + $0x4b] sm:$0xff]  ;;  %969 = vst [vmem:[#allocation2 + $0x62] sm:$0xff] %v891_v29  ;;  %3901 = vmatprep.mubr.f32.mxu1 %v1067_v30 }
 0x1ed   : > { %v8038_v32 = vld [vmem:[#allocation2 + $0x48] sm:$0xff]  ;;  %4126 = vmatprep.mubr.f32.mxu0 %v1195_v31  ;;  %v6974_v33 = vpop.f32.mrf.mxu1  ;;  %v8043_v40 = vld [vmem:[#allocation2 + $0x50] sm:$0xff] }
 0x1ee   : > { %3902 = vmatmul.mubr.f32.gmra.mxu1 %v8038_v32  ;;  %4127 = vmatmul.mubr.f32.gmra.mxu0 %v889_v18  ;;  %v764_v36 = vadd.f32 %v6974_v33, %v8016_v5 }
 0x1ef   : > { %3906 = vmatprep.mubr.f32.mxu1 %v1068_v34  ;;  %4131 = vmatprep.mubr.f32.mxu0 %v1196_v35  ;;  %v758_v37 = vpop.f32.mrf.mxu1 }
 0x1f0   : > { %v894_v38 = vmax.f32 %v764_v36, 0.0  ;;  %v759_v39 = vadd.f32 %v8016_v5, %v758_v37 }
 0x1f1   : > { %v1198_v47 = vld [vmem:[#allocation2 + $0x6b] sm:$0xff] }
 0x1f2   : > { %3907 = vmatmul.mubr.f32.gmra.mxu1 %v8043_v40  ;;  %4132 = vmatmul.mubr.f32.gmra.mxu0 %v890_v16  ;;  %972 = vst [vmem:[#allocation2 + $0x82] sm:$0xff] %v894_v38  ;;  %v893_v41 = vmax.f32 %v759_v39, 0.0 }
 0x1f3   : > { %v1069_v42 = vld [vmem:[#allocation2 + $0x61] sm:$0xff]  ;;  %v8049_v46 = vld [vmem:[#allocation2 + $0x69] sm:$0xff] }
 0x1f4   : > { %v1197_v43 = vld [vmem:[#allocation2 + $0x63] sm:$0xff]  ;;  %971 = vst [vmem:[#allocation2 + $0x7a] sm:$0xff] %v893_v41  ;;  %3911 = vmatprep.mubr.f32.mxu1 %v1069_v42 }
 0x1f5   : > { %v8046_v44 = vld [vmem:[#allocation2 + $0x60] sm:$0xff]  ;;  %4136 = vmatprep.mubr.f32.mxu0 %v1197_v43  ;;  %v6977_v45 = vpop.f32.mrf.mxu1  ;;  %v8054_v52 = vld [vmem:[#allocation2 + $0x68] sm:$0xff] }
 0x1f6   : > { %3912 = vmatmul.mubr.f32.gmra.mxu1 %v8046_v44  ;;  %4137 = vmatmul.mubr.f32.gmra.mxu0 %v891_v29  ;;  %v774_v48 = vadd.f32 %v6977_v45, %v8016_v5 }
 0x1f7   : > { %3916 = vmatprep.mubr.f32.mxu1 %v8049_v46  ;;  %4141 = vmatprep.mubr.f32.mxu0 %v1198_v47  ;;  %v768_v49 = vpop.f32.mrf.mxu1 }
 0x1f8   : > { %v896_v50 = vmax.f32 %v774_v48, 0.0  ;;  %v769_v51 = vadd.f32 %v8016_v5, %v768_v49 }
 0x1f9   : > { %v1200_v60 = vld [vmem:[#allocation2 + $0x83] sm:$0xff] }
 0x1fa   : > { %3917 = vmatmul.mubr.f32.gmra.mxu1 %v8054_v52  ;;  %4142 = vmatmul.mubr.f32.gmra.mxu0 %v892_v26  ;;  %974 = vst [vmem:[#allocation2 + $0x9a] sm:$0xff] %v896_v50  ;;  %v895_v53 = vmax.f32 %v769_v51, 0.0 }
 0x1fb   : > { %v8057_v54 = vld [vmem:[#allocation2 + $0x79] sm:$0xff]  ;;  %v8063_v59 = vld [vmem:[#allocation2 + $0x81] sm:$0xff] }
 0x1fc   : > { %v1199_v55 = vld [vmem:[#allocation2 + $0x7b] sm:$0xff]  ;;  %973 = vst [vmem:[#allocation2 + $0x92] sm:$0xff] %v895_v53  ;;  %3921 = vmatprep.mubr.f32.mxu1 %v8057_v54 }
 0x1fd   : > { %v8059_v56 = vld [vmem:[#allocation2 + $0x78] sm:$0xff]  ;;  %4146 = vmatprep.mubr.f32.mxu0 %v1199_v55  ;;  %v6980_v57 = vpop.f32.mrf.mxu1  ;;  %v8068_v2 = vld [vmem:[#allocation2 + $0x80] sm:$0xff] }
 0x1fe   : > { %3922 = vmatmul.mubr.f32.gmra.mxu1 %v8059_v56  ;;  %4147 = vmatmul.mubr.f32.gmra.mxu0 %v893_v41  ;;  %v784_v61 = vadd.f32 %v6980_v57, %v8016_v5 }
 0x1ff   : > { %3926 = vmatprep.mubr.f32.mxu1 %v8063_v59  ;;  %4151 = vmatprep.mubr.f32.mxu0 %v1200_v60  ;;  %v778_v62 = vpop.f32.mrf.mxu1 }
 0x200   : > { %v898_v63 = vmax.f32 %v784_v61, 0.0  ;;  %v779_v0 = vadd.f32 %v8016_v5, %v778_v62 }
 0x201   : > { %v1202_v9 = vld [vmem:[#allocation2 + $0x9b] sm:$0xff] }
 0x202   : > { %3927 = vmatmul.mubr.f32.gmra.mxu1 %v8068_v2  ;;  %4152 = vmatmul.mubr.f32.gmra.mxu0 %v894_v38  ;;  %976 = vst [vmem:[#allocation2 + $0xb2] sm:$0xff] %v898_v63  ;;  %v897_v3 = vmax.f32 %v779_v0, 0.0 }
 0x203   : > { %v8071_v4 = vld [vmem:[#allocation2 + $0x91] sm:$0xff]  ;;  %v8077_v8 = vld [vmem:[#allocation2 + $0x99] sm:$0xff] }
 0x204   : > { %v1201_v58 = vld [vmem:[#allocation2 + $0x93] sm:$0xff]  ;;  %975 = vst [vmem:[#allocation2 + $0xaa] sm:$0xff] %v897_v3  ;;  %3931 = vmatprep.mubr.f32.mxu1 %v8071_v4 }
 0x205   : > { %v8073_v6 = vld [vmem:[#allocation2 + $0x90] sm:$0xff]  ;;  %4156 = vmatprep.mubr.f32.mxu0 %v1201_v58  ;;  %v6983_v7 = vpop.f32.mrf.mxu1  ;;  %v8082_v14 = vld [vmem:[#allocation2 + $0x98] sm:$0xff] }
 0x206   : > { %3932 = vmatmul.mubr.f32.gmra.mxu1 %v8073_v6  ;;  %4157 = vmatmul.mubr.f32.gmra.mxu0 %v895_v53  ;;  %v794_v10 = vadd.f32 %v6983_v7, %v8016_v5 }
 0x207   : > { %3936 = vmatprep.mubr.f32.mxu1 %v8077_v8  ;;  %4161 = vmatprep.mubr.f32.mxu0 %v1202_v9  ;;  %v788_v11 = vpop.f32.mrf.mxu1  ;;  %v8109_v36 = vpop.f32.mrf.mxu0 }
 0x208   : > { %v900_v12 = vmax.f32 %v794_v10, 0.0  ;;  %v789_v13 = vadd.f32 %v8016_v5, %v788_v11 }
 0x209   : > { %v1204_v22 = vld [vmem:[#allocation2 + $0xb3] sm:$0xff]  ;;  %v4100_v42 = vpop.f32.mrf.mxu0 }
 0x20a   : > { %3937 = vmatmul.mubr.f32.gmra.mxu1 %v8082_v14  ;;  %4162 = vmatmul.mubr.f32.gmra.mxu0 %v896_v50  ;;  %978 = vst [vmem:[#allocation2 + $0xca] sm:$0xff] %v900_v12  ;;  %v899_v15 = vmax.f32 %v789_v13, 0.0 }
 0x20b   : > { %v8085_v16 = vld [vmem:[#allocation2 + $0xa9] sm:$0xff]  ;;  %v8091_v20 = vld [vmem:[#allocation2 + $0xb1] sm:$0xff]  ;;  %v8115_v45 = vpop.f32.mrf.mxu0 }
 0x20c   : > { %v1203_v17 = vld [vmem:[#allocation2 + $0xab] sm:$0xff]  ;;  %977 = vst [vmem:[#allocation2 + $0xc2] sm:$0xff] %v899_v15  ;;  %3941 = vmatprep.mubr.f32.mxu1 %v8085_v16 }
 0x20d   : > { %v8087_v18 = vld [vmem:[#allocation2 + $0xa8] sm:$0xff]  ;;  %4166 = vmatprep.mubr.f32.mxu0 %v1203_v17  ;;  %v6986_v19 = vpop.f32.mrf.mxu1  ;;  %v8096_v25 = vld [vmem:[#allocation2 + $0xb0] sm:$0xff]  ;;  %v4105_v50 = vpop.f32.mrf.mxu0 }
 0x20e   : > { %3942 = vmatmul.mubr.f32.gmra.mxu1 %v8087_v18  ;;  %4167 = vmatmul.mubr.f32.gmra.mxu0 %v897_v3  ;;  %v804_v23 = vadd.f32 %v6986_v19, %v8016_v5 }
 0x20f   : > { %3946 = vmatprep.mubr.f32.mxu1 %v8091_v20  ;;  %4171 = vmatprep.mubr.f32.mxu0 %v1204_v22  ;;  %v798_v21 = vpop.f32.mrf.mxu1  ;;  %v8127_v60 = vpop.f32.mrf.mxu0 }
 0x210   : > { %v902_v1 = vmax.f32 %v804_v23, 0.0  ;;  %v799_v24 = vadd.f32 %v8016_v5, %v798_v21 }
 0x211   : > { %v1206_v34 = vld [vmem:[#allocation2 + $0xcb] sm:$0xff]  ;;  %v4110_v3 = vpop.f32.mrf.mxu0 }
 0x212   : > { %3947 = vmatmul.mubr.f32.gmra.mxu1 %v8096_v25  ;;  %4172 = vmatmul.mubr.f32.gmra.mxu0 %v898_v63  ;;  %980 = vst [vmem:[#allocation2 + $0xe2] sm:$0xff] %v902_v1  ;;  %v901_v26 = vmax.f32 %v799_v24, 0.0 }
 0x213   : > { %v8099_v27 = vld [vmem:[#allocation2 + $0xc1] sm:$0xff]  ;;  %v8105_v33 = vld [vmem:[#allocation2 + $0xc9] sm:$0xff]  ;;  %v8133_v7 = vpop.f32.mrf.mxu0 }
 0x214   : > { %v1205_v29 = vld [vmem:[#allocation2 + $0xc3] sm:$0xff]  ;;  %979 = vst [vmem:[#allocation2 + $0xda] sm:$0xff] %v901_v26  ;;  %3951 = vmatprep.mubr.f32.mxu1 %v8099_v27 }
 0x215   : > { %v8101_v30 = vld [vmem:[#allocation2 + $0xc0] sm:$0xff]  ;;  %4176 = vmatprep.mubr.f32.mxu0 %v1205_v29  ;;  %v6989_v31 = vpop.f32.mrf.mxu1  ;;  %v8112_v41 = vld [vmem:[#allocation2 + $0xc8] sm:$0xff] }
 0x216   : > { %3952 = vmatmul.mubr.f32.gmra.mxu1 %v8101_v30  ;;  %4177 = vmatmul.mubr.f32.gmra.mxu0 %v899_v15  ;;  %v814_v35 = vadd.f32 %v6989_v31, %v8016_v5 }
 0x217   : > { %3956 = vmatprep.mubr.f32.mxu1 %v8105_v33  ;;  %4181 = vmatprep.mubr.f32.mxu0 %v1206_v34  ;;  %v808_v37 = vpop.f32.mrf.mxu1 }
 0x218   : > { %v904_v38 = vmax.f32 %v814_v35, 0.0  ;;  %v809_v39 = vadd.f32 %v8016_v5, %v808_v37 }
 0x219   : > { %v1208_v55 = vld [vmem:[#allocation2 + $0xe3] sm:$0xff] }
 0x21a   : > { %3957 = vmatmul.mubr.f32.gmra.mxu1 %v8112_v41  ;;  %4182 = vmatmul.mubr.f32.gmra.mxu0 %v900_v12  ;;  %982 = vst [vmem:[#allocation2 + $0xfa] sm:$0xff] %v904_v38  ;;  %v903_v43 = vmax.f32 %v809_v39, 0.0  ;;  %v4115_v12 = vpop.f32.mrf.mxu0 }
 0x21b   : > { %v8117_v47 = vld [vmem:[#allocation2 + $0xd9] sm:$0xff]  ;;  %v8123_v53 = vld [vmem:[#allocation2 + $0xe1] sm:$0xff] }
 0x21c   : > { %v1207_v48 = vld [vmem:[#allocation2 + $0xdb] sm:$0xff]  ;;  %981 = vst [vmem:[#allocation2 + $0xf2] sm:$0xff] %v903_v43  ;;  %3961 = vmatprep.mubr.f32.mxu1 %v8117_v47 }
 0x21d   : > { %v8119_v49 = vld [vmem:[#allocation2 + $0xd8] sm:$0xff]  ;;  %4186 = vmatprep.mubr.f32.mxu0 %v1207_v48  ;;  %v6992_v51 = vpop.f32.mrf.mxu1  ;;  %v8130_v0 = vld [vmem:[#allocation2 + $0xe0] sm:$0xff] }
 0x21e   : > { %3962 = vmatmul.mubr.f32.gmra.mxu1 %v8119_v49  ;;  %4187 = vmatmul.mubr.f32.gmra.mxu0 %v901_v26  ;;  %v824_v57 = vadd.f32 %v6992_v51, %v8016_v5 }
 0x21f   : > { %3966 = vmatprep.mubr.f32.mxu1 %v8123_v53  ;;  %4191 = vmatprep.mubr.f32.mxu0 %v1208_v55  ;;  %v818_v61 = vpop.f32.mrf.mxu1 }
 0x220   : > { %v906_v62 = vmax.f32 %v824_v57, 0.0  ;;  %v819_v63 = vadd.f32 %v8016_v5, %v818_v61 }
 0x221   : > { %v1210_v17 = vld [vmem:[#allocation2 + $0xfb] sm:$0xff] }
 0x222   : > { %3967 = vmatmul.mubr.f32.gmra.mxu1 %v8130_v0  ;;  %4192 = vmatmul.mubr.f32.gmra.mxu0 %v902_v1  ;;  %984 = vst [vmem:[#allocation2 + $0x112] sm:$0xff] %v906_v62  ;;  %v905_v58 = vmax.f32 %v819_v63, 0.0 }
 0x223   : > { %v8135_v9 = vld [vmem:[#allocation2 + $0xf1] sm:$0xff]  ;;  %v8141_v15 = vld [vmem:[#allocation2 + $0xf9] sm:$0xff] }
 0x224   : > { %v1209_v10 = vld [vmem:[#allocation2 + $0xf3] sm:$0xff]  ;;  %983 = vst [vmem:[#allocation2 + $0x10a] sm:$0xff] %v905_v58  ;;  %3971 = vmatprep.mubr.f32.mxu1 %v8135_v9 }
 0x225   : > { %v8137_v11 = vld [vmem:[#allocation2 + $0xf0] sm:$0xff]  ;;  %4196 = vmatprep.mubr.f32.mxu0 %v1209_v10  ;;  %v6995_v13 = vpop.f32.mrf.mxu1  ;;  %v8146_v1 = vld [vmem:[#allocation2 + $0xf8] sm:$0xff] }
 0x226   : > { %3972 = vmatmul.mubr.f32.gmra.mxu1 %v8137_v11  ;;  %4197 = vmatmul.mubr.f32.gmra.mxu0 %v903_v43  ;;  %v834_v19 = vadd.f32 %v6995_v13, %v8016_v5 }
 0x227   : > { %3976 = vmatprep.mubr.f32.mxu1 %v8141_v15  ;;  %4201 = vmatprep.mubr.f32.mxu0 %v1210_v17  ;;  %v828_v22 = vpop.f32.mrf.mxu1 }
 0x228   : > { %v908_v23 = vmax.f32 %v834_v19, 0.0  ;;  %v829_v21 = vadd.f32 %v8016_v5, %v828_v22 }
 0x229   : > { %v1212_v37 = vld [vmem:[#allocation2 + $0x113] sm:$0xff] }
 0x22a   : > { %3977 = vmatmul.mubr.f32.gmra.mxu1 %v8146_v1  ;;  %4202 = vmatmul.mubr.f32.gmra.mxu0 %v904_v38  ;;  %986 = vst [vmem:[#allocation2 + $0x12a] sm:$0xff] %v908_v23  ;;  %v907_v24 = vmax.f32 %v829_v21, 0.0 }
 0x22b   : > { %v8149_v26 = vld [vmem:[#allocation2 + $0x109] sm:$0xff]  ;;  %v8155_v35 = vld [vmem:[#allocation2 + $0x111] sm:$0xff] }
 0x22c   : > { %v1211_v29 = vld [vmem:[#allocation2 + $0x10b] sm:$0xff]  ;;  %985 = vst [vmem:[#allocation2 + $0x122] sm:$0xff] %v907_v24  ;;  %3981 = vmatprep.mubr.f32.mxu1 %v8149_v26 }
 0x22d   : > { %v8151_v31 = vld [vmem:[#allocation2 + $0x108] sm:$0xff]  ;;  %4206 = vmatprep.mubr.f32.mxu0 %v1211_v29  ;;  %v6998_v34 = vpop.f32.mrf.mxu1  ;;  %v8160_v48 = vld [vmem:[#allocation2 + $0x110] sm:$0xff] }
 0x22e   : > { %3982 = vmatmul.mubr.f32.gmra.mxu1 %v8151_v31  ;;  %4207 = vmatmul.mubr.f32.gmra.mxu0 %v905_v58  ;;  %v844_v38 = vadd.f32 %v6998_v34, %v8016_v5 }
 0x22f   : > { %3986 = vmatprep.mubr.f32.mxu1 %v8155_v35  ;;  %4211 = vmatprep.mubr.f32.mxu0 %v1212_v37  ;;  %v838_v39 = vpop.f32.mrf.mxu1 }
 0x230   : > { %v910_v42 = vmax.f32 %v844_v38, 0.0  ;;  %v839_v43 = vadd.f32 %v8016_v5, %v838_v39 }
 0x231   : > { %v1214_v3 = vld [vmem:[#allocation2 + $0x12b] sm:$0xff] }
 0x232   : > { %3987 = vmatmul.mubr.f32.gmra.mxu1 %v8160_v48  ;;  %4212 = vmatmul.mubr.f32.gmra.mxu0 %v906_v62  ;;  %988 = vst [vmem:[#allocation2 + $0x142] sm:$0xff] %v910_v42  ;;  %v909_v50 = vmax.f32 %v839_v43, 0.0 }
 0x233   : > { %v8163_v51 = vld [vmem:[#allocation2 + $0x121] sm:$0xff]  ;;  %v8169_v63 = vld [vmem:[#allocation2 + $0x129] sm:$0xff] }
 0x234   : > { %v1213_v55 = vld [vmem:[#allocation2 + $0x123] sm:$0xff]  ;;  %987 = vst [vmem:[#allocation2 + $0x13a] sm:$0xff] %v909_v50  ;;  %3991 = vmatprep.mubr.f32.mxu1 %v8163_v51 }
 0x235   : > { %v8165_v57 = vld [vmem:[#allocation2 + $0x120] sm:$0xff]  ;;  %4216 = vmatprep.mubr.f32.mxu0 %v1213_v55  ;;  %v7001_v61 = vpop.f32.mrf.mxu1  ;;  %v8174_v13 = vld [vmem:[#allocation2 + $0x128] sm:$0xff] }
 0x236   : > { %3992 = vmatmul.mubr.f32.gmra.mxu1 %v8165_v57  ;;  %4217 = vmatmul.mubr.f32.gmra.mxu0 %v907_v24  ;;  %v854_v62 = vadd.f32 %v7001_v61, %v8016_v5 }
 0x237   : > { %3996 = vmatprep.mubr.f32.mxu1 %v8169_v63  ;;  %4221 = vmatprep.mubr.f32.mxu0 %v1214_v3  ;;  %v848_v58 = vpop.f32.mrf.mxu1 }
 0x238   : > { %v912_v10 = vmax.f32 %v854_v62, 0.0  ;;  %v849_v12 = vadd.f32 %v8016_v5, %v848_v58 }
 0x239   : > { %v1216_v34 = vld [vmem:[#allocation2 + $0x143] sm:$0xff] }
 0x23a   : > { %3997 = vmatmul.mubr.f32.gmra.mxu1 %v8174_v13  ;;  %4222 = vmatmul.mubr.f32.gmra.mxu0 %v908_v23  ;;  %990 = vst [vmem:[#allocation2 + $0x15a] sm:$0xff] %v912_v10  ;;  %v911_v17 = vmax.f32 %v849_v12, 0.0 }
 0x23b   : > { %v8177_v19 = vld [vmem:[#allocation2 + $0x139] sm:$0xff]  ;;  %v8183_v29 = vld [vmem:[#allocation2 + $0x141] sm:$0xff] }
 0x23c   : > { %v1215_v22 = vld [vmem:[#allocation2 + $0x13b] sm:$0xff]  ;;  %989 = vst [vmem:[#allocation2 + $0x152] sm:$0xff] %v911_v17  ;;  %4001 = vmatprep.mubr.f32.mxu1 %v8177_v19 }
 0x23d   : > { %v8179_v21 = vld [vmem:[#allocation2 + $0x138] sm:$0xff]  ;;  %4226 = vmatprep.mubr.f32.mxu0 %v1215_v22  ;;  %v7004_v24 = vpop.f32.mrf.mxu1  ;;  %v8188_v43 = vld [vmem:[#allocation2 + $0x140] sm:$0xff] }
 0x23e   : > { %4002 = vmatmul.mubr.f32.gmra.mxu1 %v8179_v21  ;;  %4227 = vmatmul.mubr.f32.gmra.mxu0 %v909_v50  ;;  %v864_v23 = vadd.f32 %v7004_v24, %v8016_v5 }
 0x23f   : > { %4006 = vmatprep.mubr.f32.mxu1 %v8183_v29  ;;  %4231 = vmatprep.mubr.f32.mxu0 %v1216_v34  ;;  %v858_v37 = vpop.f32.mrf.mxu1 }
 0x240   : > { %v914_v38 = vmax.f32 %v864_v23, 0.0  ;;  %v859_v39 = vadd.f32 %v8016_v5, %v858_v37 }
 0x241   : > { %v1218_v58 = vld [vmem:[#allocation2 + $0x15b] sm:$0xff] }
 0x242   : > { %4007 = vmatmul.mubr.f32.gmra.mxu1 %v8188_v43  ;;  %4232 = vmatmul.mubr.f32.gmra.mxu0 %v910_v42  ;;  %992 = vst [vmem:[#allocation2 + $0x172] sm:$0xff] %v914_v38  ;;  %v913_v55 = vmax.f32 %v859_v39, 0.0 }
 0x243   : > { %v8191_v50 = vld [vmem:[#allocation2 + $0x151] sm:$0xff]  ;;  %v1090_v62 = vld [vmem:[#allocation2 + $0x159] sm:$0xff] }
 0x244   : > { %v1217_v61 = vld [vmem:[#allocation2 + $0x153] sm:$0xff]  ;;  %991 = vst [vmem:[#allocation2 + $0x16a] sm:$0xff] %v913_v55  ;;  %4011 = vmatprep.mubr.f32.mxu1 %v8191_v50 }
 0x245   : > { %v8193_v3 = vld [vmem:[#allocation2 + $0x150] sm:$0xff]  ;;  %4236 = vmatprep.mubr.f32.mxu0 %v1217_v61  ;;  %v7007_v12 = vpop.f32.mrf.mxu1  ;;  %v8200_v24 = vld [vmem:[#allocation2 + $0x158] sm:$0xff] }
 0x246   : > { %4012 = vmatmul.mubr.f32.gmra.mxu1 %v8193_v3  ;;  %4237 = vmatmul.mubr.f32.gmra.mxu0 %v911_v17  ;;  %v8198_v42 = vadd.f32 %v7007_v12, %v8016_v5 }
 0x247   : > { %4016 = vmatprep.mubr.f32.mxu1 %v1090_v62  ;;  %4241 = vmatprep.mubr.f32.mxu0 %v1218_v58  ;;  %v868_v22 = vpop.f32.mrf.mxu1 }
 0x248   : > { %10103 = vst [vmem:[#allocation4_spill] sm:$0xff] %v8198_v42  ;;  %v10097_v34 = vmax.f32 %v8198_v42, 0.0  ;;  %v8204_v23 = vadd.f32 %v8016_v5, %v868_v22  ;;  %v1446_v22 = vld [vmem:[#allocation2 + $0x1a] sm:$0xff] }
 0x249   : > { %v1220_v58 = vld [vmem:[#allocation2 + $0x173] sm:$0xff] }
 0x24a   : > { %10104 = vst [vmem:[#allocation5_spill] sm:$0xff] %v8204_v23  ;;  %4017 = vmatmul.mubr.f32.gmra.mxu1 %v8200_v24  ;;  %4242 = vmatmul.mubr.f32.gmra.mxu0 %v912_v10  ;;  %994 = vst [vmem:[#allocation2 + $0x18a] sm:$0xff] %v10097_v34  ;;  %v10098_v17 = vmax.f32 %v8204_v23, 0.0 }
 0x24b   : > { %v1091_v37 = vld [vmem:[#allocation2 + $0x169] sm:$0xff]  ;;  %v1092_v62 = vld [vmem:[#allocation2 + $0x171] sm:$0xff] }
 0x24c   : > { %v1219_v39 = vld [vmem:[#allocation2 + $0x16b] sm:$0xff]  ;;  %4021 = vmatprep.mubr.f32.mxu1 %v1091_v37  ;;  %993 = vst [vmem:[#allocation2 + $0x182] sm:$0xff] %v10098_v17  ;;  %v8219_v37 = vld [vmem:[%s10095_s6] ss:$0 sm:$0xff] }
 0x24d   : > { %v8210_v61 = vld [vmem:[#allocation2 + $0x168] sm:$0xff]  ;;  %4246 = vmatprep.mubr.f32.mxu0 %v1219_v39  ;;  %v7010_v10 = vpop.f32.mrf.mxu1  ;;  %v8221_v39 = vld [vmem:[#allocation2 + $0x170] sm:$0xff] }
 0x24e   : > { %10105 = vst [vmem:[#allocation6_spill] sm:$0xff] %v8210_v61  ;;  %4022 = vmatmul.mubr.f32.gmra.mxu1 %v8210_v61  ;;  %4247 = vmatmul.mubr.f32.gmra.mxu0 %v913_v55  ;;  %v884_v12 = vadd.f32 %v7010_v10, %v8016_v5  ;;  %v1382_v10 = vld [vmem:[#allocation2 + $0x19] sm:$0xff] }
 0x24f   : > { %4026 = vmatprep.mubr.f32.mxu1 %v1092_v62  ;;  %4251 = vmatprep.mubr.f32.mxu0 %v1220_v58  ;;  %v878_v34 = vpop.f32.mrf.mxu1  ;;  %v8225_v62 = vld [vmem:[#allocation2] sm:$0xff] }
 0x250   : > { %v918_v17 = vmax.f32 %v884_v12, 0.0  ;;  %v879_v42 = vadd.f32 %v8016_v5, %v878_v34  ;;  %v1253_v58 = vld [vmem:[#allocation2 + $0x4] sm:$0xff]  ;;  %v3543_v12 = vld [vmem:[%s10094_s5 + $0x478] sm:$0xff] }
 0x251   : > { %v3873_v55 = vpop.f32.mrf.mxu1  ;;  %v1447_v34 = vld [vmem:[#allocation2 + $0x22] sm:$0xff] }
 0x252   : > { %4027 = vmatmul.mubr.f32.gmra.mxu1 %v8221_v39  ;;  %4252 = vmatmul.mubr.f32.gmra.mxu0 %v914_v38  ;;  %996 = vst [vmem:[#allocation2 + $0x1a2] sm:$0xff] %v918_v17  ;;  %v917_v23 = vmax.f32 %v879_v42, 0.0  ;;  %v3874_v61 = vadd.f32 %v8219_v37, %v3873_v55  ;;  %v3575_v42 = vld [vmem:[%s10094_s5 + $0x578] sm:$0xff]  ;;  %v1254_v55 = vld [vmem:[#allocation2 + $0xc] sm:$0xff] }
 0x253   : > { %4321 = vmatprep.mubr.f32.mxu1 %v8225_v62  ;;  %4546 = vmatprep.mubr.f32.mxu0 %v1446_v22  ;;  %v3875_v5 = vpop.f32.mrf.mxu1  ;;  %v3542_v22 = vld [vmem:[%s10094_s5 + $0x470] sm:$0xff] }
 0x254   : > { %995 = vst [vmem:[#allocation2 + $0x19a] sm:$0xff] %v917_v23  ;;  %v8233_v38 = vadd.f32 %v8109_v36, %v3874_v61  ;;  %v1383_v5 = vld [vmem:[#allocation2 + $0x21] sm:$0xff] }
 0x255   : > { %v3878_v17 = vpop.f32.mrf.mxu1  ;;  %v3541_v61 = vld [vmem:[%s10094_s5 + $0x468] sm:$0xff] }
 0x256   : > { %4322 = vmatmul.mubr.f32.vlgmr.msra.gmra.mxu1 %v1253_v58  ;;  %4547 = vmatmul.mubr.f32.vlgmr.msra.gmra.mxu0 %v1382_v10  ;;  %v3879_v23 = vadd.f32 %v8219_v37, %v3878_v17  ;;  %v1320_v10 = vld [vmem:[#allocation2 + $0x30] sm:$0xff] }
 0x257   : > { %4708 = vmatpush1.msra.mxu1 %v3543_v12  ;;  %4326 = vmatprep.mubr.f32.mxu1 %v8225_v62  ;;  %v3880_v36 = vpop.f32.mrf.mxu1  ;;  %v1448_v12 = vld [vmem:[#allocation2 + $0x32] sm:$0xff] }
 0x258   : > { %4551 = vmatprep.mubr.f32.mxu0 %v1447_v34  ;;  %4709 = vmatprep.subr.mxu1 %v8225_v62  ;;  %v8248_v58 = vadd.f32 %v8115_v45, %v3879_v23  ;;  %v3574_v34 = vld [vmem:[%s10094_s5 + $0x570] sm:$0xff]  ;;  %v3540_v23 = vld [vmem:[%s10094_s5 + $0x460] sm:$0xff] }
 0x259   : > { %4710 = vmatpush1.msra.mxu1 %v3542_v22  ;;  %4933 = vmatpush1.msra.mxu0 %v3575_v42  ;;  %v3883_v17 = vpop.f32.mrf.mxu1  ;;  %v1255_v22 = vld [vmem:[#allocation2 + $0x1c] sm:$0xff]  ;;  %v1384_v42 = vld [vmem:[#allocation2 + $0x31] sm:$0xff] }
 0x25a   : > { %4327 = vmatmul.mubr.f32.gmra.mxu1 %v1254_v55  ;;  %4552 = vmatmul.mubr.f32.gmra.mxu0 %v1383_v5  ;;  %v3884_v36 = vadd.f32 %v8219_v37, %v3883_v17  ;;  %v1449_v5 = vld [vmem:[#allocation2 + $0x3a] sm:$0xff] }
 0x25b   : > { %4331 = vmatprep.mubr.f32.mxu1 %v1320_v10  ;;  %4556 = vmatprep.mubr.f32.mxu0 %v1448_v12  ;;  %v3885_v45 = vpop.f32.mrf.mxu1  ;;  %v3573_v10 = vld [vmem:[%s10094_s5 + $0x568] sm:$0xff]  ;;  %v1385_v17 = vld [vmem:[#allocation2 + $0x39] sm:$0xff] }
 0x25c   : > { %4711 = vmatprep.subr.mxu1 %v8225_v62  ;;  %4934 = vmatprep.subr.mxu0 %v8225_v62  ;;  %v8257_v55 = vadd.f32 %v8127_v60, %v3884_v36  ;;  %v1450_v36 = vld [vmem:[#allocation2 + $0x4a] sm:$0xff]  ;;  %v3572_v45 = vld [vmem:[%s10094_s5 + $0x560] sm:$0xff] }
 0x25d   : > { %4712 = vmatpush1.msra.mxu1 %v3541_v61  ;;  %4935 = vmatpush1.msra.mxu0 %v3574_v34  ;;  %v3888_v12 = vpop.f32.mrf.mxu1  ;;  %v1256_v61 = vld [vmem:[#allocation2 + $0x24] sm:$0xff] }
 0x25e   : > { %4332 = vmatmul.mubr.f32.gmra.mxu1 %v1255_v22  ;;  %4557 = vmatmul.mubr.f32.gmra.mxu0 %v1384_v42  ;;  %v3889_v34 = vadd.f32 %v8219_v37, %v3888_v12  ;;  %v1386_v42 = vld [vmem:[#allocation2 + $0x49] sm:$0xff]  ;;  %v1387_v12 = vld [vmem:[#allocation2 + $0x51] sm:$0xff] }
 0x25f   : > { %4336 = vmatprep.mubr.f32.mxu1 %v8035_v28  ;;  %4561 = vmatprep.mubr.f32.mxu0 %v1449_v5  ;;  %v3890_v60 = vpop.f32.mrf.mxu1  ;;  %v3539_v28 = vld [vmem:[%s10094_s5 + $0x458] sm:$0xff] }
 0x260   : > { %4713 = vmatprep.subr.mxu1 %v8225_v62  ;;  %4936 = vmatprep.subr.mxu0 %v8225_v62  ;;  %v8270_v22 = vadd.f32 %v8133_v7, %v3889_v34  ;;  %v1257_v7 = vld [vmem:[#allocation2 + $0x34] sm:$0xff]  ;;  %v3537_v34 = vld [vmem:[%s10094_s5 + $0x448] sm:$0xff] }
 0x261   : > { %4714 = vmatpush1.msra.mxu1 %v3540_v23  ;;  %4937 = vmatpush1.msra.mxu0 %v3573_v10  ;;  %v1451_v5 = vld [vmem:[#allocation2 + $0x52] sm:$0xff]  ;;  %v1258_v10 = vld [vmem:[#allocation2 + $0x3c] sm:$0xff] }
 0x262   : > { %4337 = vmatmul.mubr.f32.gmra.mxu1 %v1256_v61  ;;  %4562 = vmatmul.mubr.f32.gmra.mxu0 %v1385_v17  ;;  %v3538_v23 = vld [vmem:[%s10094_s5 + $0x450] sm:$0xff]  ;;  %v1452_v61 = vld [vmem:[#allocation2 + $0x62] sm:$0xff] }
 0x263   : > { %4341 = vmatprep.mubr.f32.mxu1 %v8038_v32  ;;  %4566 = vmatprep.mubr.f32.mxu0 %v1450_v36  ;;  %v3571_v32 = vld [vmem:[%s10094_s5 + $0x558] sm:$0xff]  ;;  %v1259_v60 = vld [vmem:[#allocation2 + $0x4c] sm:$0xff]  ;;  %v1388_v17 = vld [vmem:[#allocation2 + $0x61] sm:$0xff] }
 0x264   : > { %4715 = vmatprep.subr.mxu1 %v8225_v62  ;;  %4938 = vmatprep.subr.mxu0 %v8225_v62  ;;  %v1453_v36 = vld [vmem:[#allocation2 + $0x6a] sm:$0xff] }
 0x265   : > { %4716 = vmatpush1.msra.mxu1 %v3539_v28  ;;  %4939 = vmatpush1.msra.mxu0 %v3572_v45  ;;  %v3536_v28 = vld [vmem:[%s10094_s5 + $0x440] sm:$0xff]  ;;  %v1260_v45 = vld [vmem:[#allocation2 + $0x54] sm:$0xff] }
 0x266   : > { %4342 = vmatmul.mubr.f32.gmra.mxu1 %v1257_v7  ;;  %4567 = vmatmul.mubr.f32.gmra.mxu0 %v1386_v42  ;;  %v1454_v7 = vld [vmem:[#allocation2 + $0x7a] sm:$0xff] }
 0x267   : > { %4346 = vmatprep.mubr.f32.mxu1 %v8043_v40  ;;  %4571 = vmatprep.mubr.f32.mxu0 %v1451_v5  ;;  %v3570_v40 = vld [vmem:[%s10094_s5 + $0x550] sm:$0xff]  ;;  %v3535_v42 = vld [vmem:[%s10094_s5 + $0x438] sm:$0xff]  ;;  %v1261_v5 = vld [vmem:[#allocation2 + $0x64] sm:$0xff] }
 0x268   : > { %4717 = vmatprep.subr.mxu1 %v8225_v62  ;;  %4940 = vmatprep.subr.mxu0 %v8225_v62 }
 0x269   : > { %4718 = vmatpush1.msra.mxu1 %v3538_v23  ;;  %4941 = vmatpush1.msra.mxu0 %v3571_v32  ;;  %v3534_v23 = vld [vmem:[%s10094_s5 + $0x430] sm:$0xff] }
 0x26a   : > { %4347 = vmatmul.mubr.f32.gmra.mxu1 %v1258_v10  ;;  %4572 = vmatmul.mubr.f32.gmra.mxu0 %v1387_v12  ;;  %v1262_v32 = vld [vmem:[#allocation2 + $0x6c] sm:$0xff]  ;;  %v1263_v12 = vld [vmem:[#allocation2 + $0x7c] sm:$0xff] }
 0x26b   : > { %4351 = vmatprep.mubr.f32.mxu1 %v8046_v44  ;;  %4576 = vmatprep.mubr.f32.mxu0 %v1452_v61  ;;  %v3569_v44 = vld [vmem:[%s10094_s5 + $0x548] sm:$0xff]  ;;  %v3532_v61 = vld [vmem:[%s10094_s5 + $0x420] sm:$0xff] }
 0x26c   : > { %4719 = vmatprep.subr.mxu1 %v8225_v62  ;;  %4942 = vmatprep.subr.mxu0 %v8225_v62  ;;  %v3533_v10 = vld [vmem:[%s10094_s5 + $0x428] sm:$0xff] }
 0x26d   : > { %4720 = vmatpush1.msra.mxu1 %v3537_v34  ;;  %4943 = vmatpush1.msra.mxu0 %v3570_v40  ;;  %v1264_v34 = vld [vmem:[#allocation2 + $0x84] sm:$0xff]  ;;  %v3531_v40 = vld [vmem:[%s10094_s5 + $0x418] sm:$0xff] }
 0x26e   : > { %4352 = vmatmul.mubr.f32.gmra.mxu1 %v1259_v60  ;;  %4577 = vmatmul.mubr.f32.gmra.mxu0 %v1388_v17  ;;  %v1265_v60 = vld [vmem:[#allocation2 + $0x94] sm:$0xff] }
 0x26f   : > { %4356 = vmatprep.mubr.f32.mxu1 %v8054_v52  ;;  %4581 = vmatprep.mubr.f32.mxu0 %v1453_v36  ;;  %v3568_v52 = vld [vmem:[%s10094_s5 + $0x540] sm:$0xff]  ;;  %v3530_v17 = vld [vmem:[%s10094_s5 + $0x410] sm:$0xff] }
 0x270   : > { %4721 = vmatprep.subr.mxu1 %v8225_v62  ;;  %4944 = vmatprep.subr.mxu0 %v8225_v62  ;;  %v1266_v36 = vld [vmem:[#allocation2 + $0x9c] sm:$0xff] }
 0x271   : > { %4722 = vmatpush1.msra.mxu1 %v3536_v28  ;;  %4945 = vmatpush1.msra.mxu0 %v3569_v44  ;;  %v3529_v28 = vld [vmem:[%s10094_s5 + $0x408] sm:$0xff] }
 0x272   : > { %4357 = vmatmul.mubr.f32.gmra.mxu1 %v1260_v45  ;;  %4582 = vmatmul.mubr.f32.gmra.mxu0 %v8049_v46  ;;  %v1455_v46 = vld [vmem:[#allocation2 + $0x82] sm:$0xff]  ;;  %v1267_v44 = vld [vmem:[#allocation2 + $0xac] sm:$0xff] }
 0x273   : > { %4361 = vmatprep.mubr.f32.mxu1 %v8059_v56  ;;  %4586 = vmatprep.mubr.f32.mxu0 %v1454_v7  ;;  %v3567_v56 = vld [vmem:[%s10094_s5 + $0x538] sm:$0xff]  ;;  %v3528_v45 = vld [vmem:[%s10094_s5 + $0x400] sm:$0xff] }
 0x274   : > { %4723 = vmatprep.subr.mxu1 %v8225_v62  ;;  %4946 = vmatprep.subr.mxu0 %v8225_v62  ;;  %v1268_v7 = vld [vmem:[#allocation2 + $0xb4] sm:$0xff] }
 0x275   : > { %4724 = vmatpush1.msra.mxu1 %v3535_v42  ;;  %4947 = vmatpush1.msra.mxu0 %v3568_v52  ;;  %v3559_v42 = vld [vmem:[%s10094_s5 + $0x4f8] sm:$0xff]  ;;  %v1269_v52 = vld [vmem:[#allocation2 + $0xc4] sm:$0xff] }
 0x276   : > { %4362 = vmatmul.mubr.f32.gmra.mxu1 %v1261_v5  ;;  %4587 = vmatmul.mubr.f32.gmra.mxu0 %v8057_v54  ;;  %v1456_v54 = vld [vmem:[#allocation2 + $0x92] sm:$0xff] }
 0x277   : > { %4366 = vmatprep.mubr.f32.mxu1 %v8068_v2  ;;  %4591 = vmatprep.mubr.f32.mxu0 %v1455_v46  ;;  %v3566_v2 = vld [vmem:[%s10094_s5 + $0x530] sm:$0xff] }
 0x278   : > { %4725 = vmatprep.subr.mxu1 %v8225_v62  ;;  %4948 = vmatprep.subr.mxu0 %v8225_v62  ;;  %v3558_v5 = vld [vmem:[%s10094_s5 + $0x4f0] sm:$0xff] }
 0x279   : > { %4726 = vmatpush1.msra.mxu1 %v3534_v23  ;;  %4949 = vmatpush1.msra.mxu0 %v3567_v56  ;;  %v1270_v46 = vld [vmem:[#allocation2 + $0xcc] sm:$0xff]  ;;  %v1271_v56 = vld [vmem:[#allocation2 + $0xdc] sm:$0xff] }
 0x27a   : > { %4367 = vmatmul.mubr.f32.gmra.mxu1 %v1262_v32  ;;  %4592 = vmatmul.mubr.f32.gmra.mxu0 %v8063_v59  ;;  %v1457_v59 = vld [vmem:[#allocation2 + $0x9a] sm:$0xff]  ;;  %v3557_v23 = vld [vmem:[%s10094_s5 + $0x4e8] sm:$0xff] }
 0x27b   : > { %4371 = vmatprep.mubr.f32.mxu1 %v8073_v6  ;;  %4596 = vmatprep.mubr.f32.mxu0 %v1456_v54  ;;  %v3565_v6 = vld [vmem:[%s10094_s5 + $0x528] sm:$0xff]  ;;  %v3556_v32 = vld [vmem:[%s10094_s5 + $0x4e0] sm:$0xff] }
 0x27c   : > { %4727 = vmatprep.subr.mxu1 %v8225_v62  ;;  %4950 = vmatprep.subr.mxu0 %v8225_v62  ;;  %v1272_v54 = vld [vmem:[#allocation2 + $0xe4] sm:$0xff] }
 0x27d   : > { %4728 = vmatpush1.msra.mxu1 %v3533_v10  ;;  %4951 = vmatpush1.msra.mxu0 %v3566_v2  ;;  %v3555_v10 = vld [vmem:[%s10094_s5 + $0x4d8] sm:$0xff] }
 0x27e   : > { %4372 = vmatmul.mubr.f32.gmra.mxu1 %v1263_v12  ;;  %4597 = vmatmul.mubr.f32.gmra.mxu0 %v8071_v4  ;;  %v1458_v4 = vld [vmem:[#allocation2 + $0xaa] sm:$0xff]  ;;  %v1273_v2 = vld [vmem:[#allocation2 + $0xf4] sm:$0xff] }
 0x27f   : > { %4376 = vmatprep.mubr.f32.mxu1 %v8082_v14  ;;  %4601 = vmatprep.mubr.f32.mxu0 %v1457_v59  ;;  %v3564_v14 = vld [vmem:[%s10094_s5 + $0x520] sm:$0xff]  ;;  %v1467_v59 = vld [vmem:[#allocation2 + $0x112] sm:$0xff] }
 0x280   : > { %4729 = vmatprep.subr.mxu1 %v8225_v62  ;;  %4952 = vmatprep.subr.mxu0 %v8225_v62 }
 0x281   : > { %4730 = vmatpush1.msra.mxu1 %v3532_v61  ;;  %4953 = vmatpush1.msra.mxu0 %v3565_v6  ;;  %v3554_v61 = vld [vmem:[%s10094_s5 + $0x4d0] sm:$0xff] }
 0x282   : > { %4377 = vmatmul.mubr.f32.gmra.mxu1 %v1264_v34  ;;  %4602 = vmatmul.mubr.f32.gmra.mxu0 %v8077_v8  ;;  %v1459_v8 = vld [vmem:[#allocation2 + $0xb2] sm:$0xff] }
 0x283   : > { %4381 = vmatprep.mubr.f32.mxu1 %v8087_v18  ;;  %4606 = vmatprep.mubr.f32.mxu0 %v1458_v4  ;;  %v3563_v18 = vld [vmem:[%s10094_s5 + $0x518] sm:$0xff] }
 0x284   : > { %4731 = vmatprep.subr.mxu1 %v8225_v62  ;;  %4954 = vmatprep.subr.mxu0 %v8225_v62 }
 0x285   : > { %4732 = vmatpush1.msra.mxu1 %v3531_v40  ;;  %4955 = vmatpush1.msra.mxu0 %v3564_v14  ;;  %v1274_v40 = vld [vmem:[#allocation2 + $0xfc] sm:$0xff] }
 0x286   : > { %4382 = vmatmul.mubr.f32.gmra.mxu1 %v1265_v60  ;;  %4607 = vmatmul.mubr.f32.gmra.mxu0 %v8085_v16  ;;  %v1460_v16 = vld [vmem:[#allocation2 + $0xc2] sm:$0xff] }
 0x287   : > { %4386 = vmatprep.mubr.f32.mxu1 %v8096_v25  ;;  %4611 = vmatprep.mubr.f32.mxu0 %v1459_v8  ;;  %v3562_v25 = vld [vmem:[%s10094_s5 + $0x510] sm:$0xff]  ;;  %v1468_v8 = vld [vmem:[#allocation2 + $0x122] sm:$0xff] }
 0x288   : > { %4733 = vmatprep.subr.mxu1 %v8225_v62  ;;  %4956 = vmatprep.subr.mxu0 %v8225_v62 }
 0x289   : > { %4734 = vmatpush1.msra.mxu1 %v3530_v17  ;;  %4957 = vmatpush1.msra.mxu0 %v3563_v18  ;;  %v3586_v17 = vld [vmem:[%s10094_s5 + $0x5d0] sm:$0xff] }
 0x28a   : > { %4387 = vmatmul.mubr.f32.gmra.mxu1 %v1266_v36  ;;  %4612 = vmatmul.mubr.f32.gmra.mxu0 %v8091_v20  ;;  %v1461_v20 = vld [vmem:[#allocation2 + $0xca] sm:$0xff] }
 0x28b   : > { %4391 = vmatprep.mubr.f32.mxu1 %v8101_v30  ;;  %4616 = vmatprep.mubr.f32.mxu0 %v1460_v16  ;;  %v3561_v30 = vld [vmem:[%s10094_s5 + $0x508] sm:$0xff] }
 0x28c   : > { %4735 = vmatprep.subr.mxu1 %v8225_v62  ;;  %4958 = vmatprep.subr.mxu0 %v8225_v62 }
 0x28d   : > { %4736 = vmatpush1.msra.mxu1 %v3529_v28  ;;  %4959 = vmatpush1.msra.mxu0 %v3562_v25  ;;  %v1275_v28 = vld [vmem:[#allocation2 + $0x10c] sm:$0xff] }
 0x28e   : > { %4392 = vmatmul.mubr.f32.gmra.mxu1 %v1267_v44  ;;  %4617 = vmatmul.mubr.f32.gmra.mxu0 %v8099_v27  ;;  %v1462_v27 = vld [vmem:[#allocation2 + $0xda] sm:$0xff] }
 0x28f   : > { %4396 = vmatprep.mubr.f32.mxu1 %v8112_v41  ;;  %4621 = vmatprep.mubr.f32.mxu0 %v1461_v20  ;;  %v3560_v41 = vld [vmem:[%s10094_s5 + $0x500] sm:$0xff]  ;;  %v1469_v20 = vld [vmem:[#allocation2 + $0x12a] sm:$0xff] }
 0x290   : > { %4737 = vmatprep.subr.mxu1 %v8225_v62  ;;  %4960 = vmatprep.subr.mxu0 %v8225_v62 }
 0x291   : > { %4738 = vmatpush1.msra.mxu1 %v3528_v45  ;;  %4961 = vmatpush1.msra.mxu0 %v3561_v30  ;;  %v3585_v45 = vld [vmem:[%s10094_s5 + $0x5c8] sm:$0xff] }
 0x292   : > { %4397 = vmatmul.mubr.f32.gmra.mxu1 %v1268_v7  ;;  %4622 = vmatmul.mubr.f32.gmra.mxu0 %v8105_v33  ;;  %v1463_v33 = vld [vmem:[#allocation2 + $0xe2] sm:$0xff] }
 0x293   : > { %4401 = vmatprep.mubr.f32.mxu1 %v8119_v49  ;;  %4626 = vmatprep.mubr.f32.mxu0 %v1462_v27  ;;  %v3591_v49 = vld [vmem:[%s10094_s5 + $0x5f8] sm:$0xff] }
 0x294   : > { %4739 = vmatprep.subr.mxu1 %v8225_v62  ;;  %4962 = vmatprep.subr.mxu0 %v8225_v62 }
 0x295   : > { %4740 = vmatpush2.msra.mxu1 %v3559_v42  ;;  %4963 = vmatpush1.msra.mxu0 %v3560_v41  ;;  %v1276_v42 = vld [vmem:[#allocation2 + $0x114] sm:$0xff] }
 0x296   : > { %4402 = vmatmul.mubr.f32.gmra.mxu1 %v1269_v52  ;;  %4627 = vmatmul.mubr.f32.gmra.mxu0 %v8117_v47  ;;  %v1464_v47 = vld [vmem:[#allocation2 + $0xf2] sm:$0xff] }
 0x297   : > { %4406 = vmatprep.mubr.f32.mxu1 %v8130_v0  ;;  %4631 = vmatprep.mubr.f32.mxu0 %v1463_v33  ;;  %v3590_v0 = vld [vmem:[%s10094_s5 + $0x5f0] sm:$0xff]  ;;  %v1470_v33 = vld [vmem:[#allocation2 + $0x13a] sm:$0xff] }
 0x298   : > { %4741 = vmatprep.subr.mxu1 %v8225_v62  ;;  %4964 = vmatprep.subr.mxu0 %v8225_v62 }
 0x299   : > { %4742 = vmatpush2.msra.mxu1 %v3558_v5  ;;  %4965 = vmatpush2.msra.mxu0 %v3591_v49  ;;  %v3584_v5 = vld [vmem:[%s10094_s5 + $0x5c0] sm:$0xff] }
 0x29a   : > { %4407 = vmatmul.mubr.f32.gmra.mxu1 %v1270_v46  ;;  %4632 = vmatmul.mubr.f32.gmra.mxu0 %v8123_v53  ;;  %v1465_v53 = vld [vmem:[#allocation2 + $0xfa] sm:$0xff] }
 0x29b   : > { %4411 = vmatprep.mubr.f32.mxu1 %v8137_v11  ;;  %4636 = vmatprep.mubr.f32.mxu0 %v1464_v47  ;;  %v3589_v11 = vld [vmem:[%s10094_s5 + $0x5e8] sm:$0xff] }
 0x29c   : > { %4743 = vmatprep.subr.mxu1 %v8225_v62  ;;  %4966 = vmatprep.subr.mxu0 %v8225_v62 }
 0x29d   : > { %4744 = vmatpush2.msra.mxu1 %v3557_v23  ;;  %4967 = vmatpush2.msra.mxu0 %v3590_v0  ;;  %v1277_v23 = vld [vmem:[#allocation2 + $0x124] sm:$0xff] }
 0x29e   : > { %4412 = vmatmul.mubr.f32.gmra.mxu1 %v1271_v56  ;;  %4637 = vmatmul.mubr.f32.gmra.mxu0 %v8135_v9  ;;  %v1466_v9 = vld [vmem:[#allocation2 + $0x10a] sm:$0xff] }
 0x29f   : > { %4416 = vmatprep.mubr.f32.mxu1 %v8146_v1  ;;  %4641 = vmatprep.mubr.f32.mxu0 %v1465_v53  ;;  %v3588_v1 = vld [vmem:[%s10094_s5 + $0x5e0] sm:$0xff] }
 0x2a0   : > { %4745 = vmatprep.subr.mxu1 %v8225_v62  ;;  %4968 = vmatprep.subr.mxu0 %v8225_v62  ;;  %v1471_v53 = vld [vmem:[#allocation2 + $0x142] sm:$0xff] }
 0x2a1   : > { %4746 = vmatpush2.msra.mxu1 %v3556_v32  ;;  %4969 = vmatpush2.msra.mxu0 %v3589_v11  ;;  %v3583_v32 = vld [vmem:[%s10094_s5 + $0x5b8] sm:$0xff] }
 0x2a2   : > { %4417 = vmatmul.mubr.f32.gmra.mxu1 %v1272_v54  ;;  %4642 = vmatmul.mubr.f32.gmra.mxu0 %v8141_v15 }
 0x2a3   : > { %4421 = vmatprep.mubr.f32.mxu1 %v8151_v31  ;;  %4646 = vmatprep.mubr.f32.mxu0 %v1466_v9  ;;  %v3587_v31 = vld [vmem:[%s10094_s5 + $0x5d8] sm:$0xff] }
 0x2a4   : > { %4747 = vmatprep.subr.mxu1 %v8225_v62  ;;  %4970 = vmatprep.subr.mxu0 %v8225_v62 }
 0x2a5   : > { %4748 = vmatpush2.msra.mxu1 %v3555_v10  ;;  %4971 = vmatpush2.msra.mxu0 %v3588_v1  ;;  %v1278_v10 = vld [vmem:[#allocation2 + $0x12c] sm:$0xff] }
 0x2a6   : > { %v3893_v15 = vpop.f32.mrf.mxu1  ;;  %v4118_v12 = vpop.f32.mrf.mxu0  ;;  %4422 = vmatmul.mubr.f32.gmra.mxu1 %v1273_v2  ;;  %4647 = vmatmul.mubr.f32.gmra.mxu0 %v8149_v26 }
 0x2a7   : > { %v3894_v6 = vadd.f32 %v8219_v37, %v3893_v15  ;;  %4426 = vmatprep.mubr.f32.mxu1 %v8160_v48  ;;  %4651 = vmatprep.mubr.f32.mxu0 %v1467_v59  ;;  %v3553_v48 = vld [vmem:[%s10094_s5 + $0x4c8] sm:$0xff]  ;;  %v1472_v15 = vld [vmem:[#allocation2 + $0x152] sm:$0xff] }
 0x2a8   : > { %v3895_v34 = vpop.f32.mrf.mxu1  ;;  %v4120_v4 = vpop.f32.mrf.mxu0  ;;  %4749 = vmatprep.subr.mxu1 %v8225_v62  ;;  %4972 = vmatprep.subr.mxu0 %v8225_v62 }
 0x2a9   : > { %v8449_v26 = vadd.f32 %v4118_v12, %v3894_v6  ;;  %4750 = vmatpush2.msra.mxu1 %v3554_v61  ;;  %4973 = vmatpush2.msra.mxu0 %v3587_v31  ;;  %v3582_v12 = vld [vmem:[%s10094_s5 + $0x5b0] sm:$0xff]  ;;  %v1279_v6 = vld [vmem:[#allocation2 + $0x13c] sm:$0xff] }
 0x2aa   : > { %v3898_v14 = vpop.f32.mrf.mxu1  ;;  %v4123_v60 = vpop.f32.mrf.mxu0  ;;  %4427 = vmatmul.mubr.f32.gmra.mxu1 %v1274_v40  ;;  %4652 = vmatmul.mubr.f32.gmra.mxu0 %v8155_v35  ;;  %v1473_v40 = vld [vmem:[#allocation2 + $0x15a] sm:$0xff] }
 0x2ab   : > { %v3899_v18 = vadd.f32 %v8219_v37, %v3898_v14  ;;  %4431 = vmatprep.mubr.f32.mxu1 %v8165_v57  ;;  %4656 = vmatprep.mubr.f32.mxu0 %v1468_v8  ;;  %v3552_v57 = vld [vmem:[%s10094_s5 + $0x4c0] sm:$0xff]  ;;  %v3581_v14 = vld [vmem:[%s10094_s5 + $0x5a8] sm:$0xff] }
 0x2ac   : > { %v3900_v36 = vpop.f32.mrf.mxu1  ;;  %v4125_v16 = vpop.f32.mrf.mxu0  ;;  %4751 = vmatprep.subr.mxu1 %v8225_v62  ;;  %4974 = vmatprep.subr.mxu0 %v8225_v62 }
 0x2ad   : > { %v8462_v35 = vadd.f32 %v4123_v60, %v3899_v18  ;;  %4752 = vmatpush2.msra.mxu1 %v3553_v48  ;;  %4975 = vmatpush2.msra.mxu0 %v3586_v17  ;;  %v1280_v17 = vld [vmem:[#allocation2 + $0x144] sm:$0xff]  ;;  %v1409_v18 = vld [vmem:[#allocation2 + $0x159] sm:$0xff] }
 0x2ae   : > { %v3903_v25 = vpop.f32.mrf.mxu1  ;;  %v4128_v44 = vpop.f32.mrf.mxu0  ;;  %4432 = vmatmul.mubr.f32.gmra.mxu1 %v1275_v28  ;;  %4657 = vmatmul.mubr.f32.gmra.mxu0 %v8163_v51  ;;  %v1474_v28 = vld [vmem:[#allocation2 + $0x16a] sm:$0xff] }
 0x2af   : > { %v3904_v30 = vadd.f32 %v8219_v37, %v3903_v25  ;;  %4436 = vmatprep.mubr.f32.mxu1 %v8174_v13  ;;  %4661 = vmatprep.mubr.f32.mxu0 %v1469_v20  ;;  %v3551_v13 = vld [vmem:[%s10094_s5 + $0x4b8] sm:$0xff]  ;;  %v3580_v25 = vld [vmem:[%s10094_s5 + $0x5a0] sm:$0xff]  ;;  %v10106_v20 = vld [vmem:[#allocation6_spill] sm:$0xff] }
 0x2b0   : > { %v3905_v7 = vpop.f32.mrf.mxu1  ;;  %v4130_v27 = vpop.f32.mrf.mxu0  ;;  %4753 = vmatprep.subr.mxu1 %v8225_v62  ;;  %4976 = vmatprep.subr.mxu0 %v8225_v62 }
 0x2b1   : > { %v8475_v51 = vadd.f32 %v4128_v44, %v3904_v30  ;;  %4754 = vmatpush2.msra.mxu1 %v3552_v57  ;;  %4977 = vmatpush2.msra.mxu0 %v3585_v45  ;;  %v1281_v7 = vld [vmem:[#allocation2 + $0x154] sm:$0xff]  ;;  %v1410_v27 = vld [vmem:[#allocation2 + $0x169] sm:$0xff] }
 0x2b2   : > { %v3908_v41 = vpop.f32.mrf.mxu1  ;;  %v4133_v52 = vpop.f32.mrf.mxu0  ;;  %4437 = vmatmul.mubr.f32.gmra.mxu1 %v1276_v42  ;;  %4662 = vmatmul.mubr.f32.gmra.mxu0 %v8169_v63 }
 0x2b3   : > { %v3909_v49 = vadd.f32 %v8219_v37, %v3908_v41  ;;  %4441 = vmatprep.mubr.f32.mxu1 %v8179_v21  ;;  %4666 = vmatprep.mubr.f32.mxu0 %v1470_v33  ;;  %v3550_v21 = vld [vmem:[%s10094_s5 + $0x4b0] sm:$0xff] }
 0x2b4   : > { %v3910_v46 = vpop.f32.mrf.mxu1  ;;  %v4135_v47 = vpop.f32.mrf.mxu0  ;;  %4755 = vmatprep.subr.mxu1 %v8225_v62  ;;  %4978 = vmatprep.subr.mxu0 %v8225_v62  ;;  %v3546_v33 = vld [vmem:[%s10094_s5 + $0x490] sm:$0xff] }
 0x2b5   : > { %v8488_v63 = vadd.f32 %v4133_v52, %v3909_v49  ;;  %4756 = vmatpush2.msra.mxu1 %v3551_v13  ;;  %4979 = vmatpush2.msra.mxu0 %v3584_v5  ;;  %v1475_v52 = vld [vmem:[#allocation2 + $0x172] sm:$0xff] }
 0x2b6   : > { %v3913_v0 = vpop.f32.mrf.mxu1  ;;  %v4138_v56 = vpop.f32.mrf.mxu0  ;;  %4442 = vmatmul.mubr.f32.gmra.mxu1 %v1277_v23  ;;  %4667 = vmatmul.mubr.f32.gmra.mxu0 %v8177_v19  ;;  %v3579_v13 = vld [vmem:[%s10094_s5 + $0x598] sm:$0xff] }
 0x2b7   : > { %v3914_v11 = vadd.f32 %v8219_v37, %v3913_v0  ;;  %4446 = vmatprep.mubr.f32.mxu1 %v8188_v43  ;;  %4671 = vmatprep.mubr.f32.mxu0 %v1471_v53  ;;  %v3549_v43 = vld [vmem:[%s10094_s5 + $0x4a8] sm:$0xff]  ;;  %v1282_v23 = vld [vmem:[#allocation2 + $0x15c] sm:$0xff]  ;;  %v1411_v0 = vld [vmem:[#allocation2 + $0x171] sm:$0xff] }
 0x2b8   : > { %v3915_v54 = vpop.f32.mrf.mxu1  ;;  %v4140_v9 = vpop.f32.mrf.mxu0  ;;  %4757 = vmatprep.subr.mxu1 %v8225_v62  ;;  %4980 = vmatprep.subr.mxu0 %v8225_v62 }
 0x2b9   : > { %v8501_v19 = vadd.f32 %v4138_v56, %v3914_v11  ;;  %4758 = vmatpush2.msra.mxu1 %v3550_v21  ;;  %4981 = vmatpush2.msra.mxu0 %v3583_v32  ;;  %v1348_v21 = vld [vmem:[#allocation2 + $0x180] sm:$0xff]  ;;  %v3578_v32 = vld [vmem:[%s10094_s5 + $0x590] sm:$0xff]  ;;  %v10107_v54 = vld [vmem:[#allocation5_spill] sm:$0xff] }
 0x2ba   : > { %v3918_v1 = vpop.f32.mrf.mxu1  ;;  %v4143_v2 = vpop.f32.mrf.mxu0  ;;  %4447 = vmatmul.mubr.f32.gmra.mxu1 %v1278_v10  ;;  %4672 = vmatmul.mubr.f32.gmra.mxu0 %v8183_v29  ;;  %v10108_v9 = vmax.f32 %v10107_v54, 0.0 }
 0x2bb   : > { %v3919_v59 = vadd.f32 %v8219_v37, %v3918_v1  ;;  %4451 = vmatprep.mubr.f32.mxu1 %v8193_v3  ;;  %4676 = vmatprep.mubr.f32.mxu0 %v1472_v15  ;;  %v3548_v3 = vld [vmem:[%s10094_s5 + $0x4a0] sm:$0xff]  ;;  %v1283_v15 = vld [vmem:[#allocation2 + $0x16c] sm:$0xff] }
 0x2bc   : > { %v3920_v61 = vpop.f32.mrf.mxu1  ;;  %v4145_v31 = vpop.f32.mrf.mxu0  ;;  %4759 = vmatprep.subr.mxu1 %v8225_v62  ;;  %4982 = vmatprep.subr.mxu0 %v8225_v62 }
 0x2bd   : > { %v8514_v29 = vadd.f32 %v4143_v2, %v3919_v59  ;;  %4760 = vmatpush2.msra.mxu1 %v3549_v43  ;;  %4983 = vmatpush2.msra.mxu0 %v3582_v12  ;;  %v1412_v43 = vld [vmem:[#allocation2 + $0x181] sm:$0xff] }
 0x2be   : > { %v3923_v34 = vpop.f32.mrf.mxu1  ;;  %v4148_v4 = vpop.f32.mrf.mxu0  ;;  %4452 = vmatmul.mubr.f32.gmra.mxu1 %v1279_v6  ;;  %4677 = vmatmul.mubr.f32.gmra.mxu0 %v8191_v50  ;;  %v1349_v61 = vld [vmem:[#allocation2 + $0x188] sm:$0xff]  ;;  %v3544_v31 = vld [vmem:[%s10094_s5 + $0x480] sm:$0xff] }
 0x2bf   : > { %v3924_v60 = vadd.f32 %v8219_v37, %v3923_v34  ;;  %4456 = vmatprep.mubr.f32.mxu1 %v8200_v24  ;;  %4681 = vmatprep.mubr.f32.mxu0 %v1473_v40  ;;  %v3547_v24 = vld [vmem:[%s10094_s5 + $0x498] sm:$0xff]  ;;  %v3577_v6 = vld [vmem:[%s10094_s5 + $0x588] sm:$0xff] }
 0x2c0   : > { %v3925_v8 = vpop.f32.mrf.mxu1  ;;  %v4150_v48 = vpop.f32.mrf.mxu0  ;;  %4761 = vmatprep.subr.mxu1 %v8225_v62  ;;  %4984 = vmatprep.subr.mxu0 %v8225_v62 }
 0x2c1   : > { %v8527_v50 = vadd.f32 %v4148_v4, %v3924_v60  ;;  %4762 = vmatpush2.msra.mxu1 %v3548_v3  ;;  %4985 = vmatpush2.msra.mxu0 %v3581_v14  ;;  %v10109_v4 = vld [vmem:[#allocation4_spill] sm:$0xff]  ;;  %v1284_v60 = vld [vmem:[#allocation2 + $0x174] sm:$0xff]  ;;  %v1413_v48 = vld [vmem:[#allocation2 + $0x189] sm:$0xff] }
 0x2c2   : > { %v3928_v36 = vpop.f32.mrf.mxu1  ;;  %v4153_v16 = vpop.f32.mrf.mxu0  ;;  %4457 = vmatmul.mubr.f32.gmra.mxu1 %v1280_v17  ;;  %4682 = vmatmul.mubr.f32.gmra.mxu0 %v1409_v18  ;;  %v10110_v40 = vmax.f32 %v10109_v4, 0.0  ;;  %v1574_v17 = vld [vmem:[#allocation2 + $0x1c] sm:$0xff]  ;;  %v3637_v4 = vld [vmem:[%s10094_s5 + $0x768] sm:$0xff] }
 0x2c3   : > { %v3929_v44 = vadd.f32 %v8219_v37, %v3928_v36  ;;  %4461 = vmatprep.mubr.f32.mxu1 %v10106_v20  ;;  %4686 = vmatprep.mubr.f32.mxu0 %v1474_v28  ;;  %v3576_v18 = vld [vmem:[%s10094_s5 + $0x580] sm:$0xff]  ;;  %v1702_v28 = vld [vmem:[#allocation2 + $0x31] sm:$0xff] }
 0x2c4   : > { %v3930_v57 = vpop.f32.mrf.mxu1  ;;  %v4155_v45 = vpop.f32.mrf.mxu0  ;;  %4763 = vmatprep.subr.mxu1 %v8225_v62  ;;  %4986 = vmatprep.subr.mxu0 %v8225_v62 }
 0x2c5   : > { %v8539_v30 = vadd.f32 %v4153_v16, %v3929_v44  ;;  %4764 = vmatpush2.msra.mxu1 %v3547_v24  ;;  %4987 = vmatpush2.msra.mxu0 %v3580_v25  ;;  %v1510_v25 = vld [vmem:[#allocation2 + $0x1b] sm:$0xff] }
 0x2c6   : > { %v3933_v42 = vpop.f32.mrf.mxu1  ;;  %v4158_v41 = vpop.f32.mrf.mxu0  ;;  %4462 = vmatmul.mubr.f32.gmra.mxu1 %v1281_v7  ;;  %4687 = vmatmul.mubr.f32.gmra.mxu0 %v1410_v27  ;;  %v3607_v57 = vld [vmem:[%s10094_s5 + $0x678] sm:$0xff]  ;;  %v1638_v7 = vld [vmem:[#allocation2 + $0x30] sm:$0xff]  ;;  %v1575_v27 = vld [vmem:[#allocation2 + $0x24] sm:$0xff] }
 0x2c7   : > { %v3934_v5 = vadd.f32 %v8219_v37, %v3933_v42  ;;  %4466 = vmatprep.mubr.f32.mxu1 %v8221_v39  ;;  %4691 = vmatprep.mubr.f32.mxu0 %v1475_v52  ;;  %v3545_v39 = vld [vmem:[%s10094_s5 + $0x488] sm:$0xff]  ;;  %v1703_v52 = vld [vmem:[#allocation2 + $0x39] sm:$0xff] }
 0x2c8   : > { %v3935_v49 = vpop.f32.mrf.mxu1  ;;  %v4160_v46 = vpop.f32.mrf.mxu0  ;;  %4765 = vmatprep.subr.mxu1 %v8225_v62  ;;  %4988 = vmatprep.subr.mxu0 %v8225_v62 }
 0x2c9   : > { %v8551_v47 = vadd.f32 %v4158_v41, %v3934_v5  ;;  %4766 = vmatpush2.msra.mxu1 %v3546_v33  ;;  %4989 = vmatpush2.msra.mxu0 %v3579_v13  ;;  %v3606_v33 = vld [vmem:[%s10094_s5 + $0x670] sm:$0xff]  ;;  %v3639_v13 = vld [vmem:[%s10094_s5 + $0x778] sm:$0xff]  ;;  %v1511_v49 = vld [vmem:[#allocation2 + $0x23] sm:$0xff] }
 0x2ca   : > { %v3938_v56 = vpop.f32.mrf.mxu1  ;;  %v4163_v53 = vpop.f32.mrf.mxu0  ;;  %4467 = vmatmul.mubr.f32.gmra.mxu1 %v1282_v23  ;;  %4692 = vmatmul.mubr.f32.gmra.mxu0 %v1411_v0 }
 0x2cb   : > { %v3939_v11 = vadd.f32 %v8219_v37, %v3938_v56  ;;  %4471 = vmatprep.mubr.f32.mxu1 %v1348_v21  ;;  %4696 = vmatprep.mubr.f32.mxu0 %v10108_v9  ;;  %v1639_v56 = vld [vmem:[#allocation2 + $0x38] sm:$0xff] }
 0x2cc   : > { %v3940_v10 = vpop.f32.mrf.mxu1  ;;  %v4165_v1 = vpop.f32.mrf.mxu0  ;;  %4767 = vmatprep.subr.mxu1 %v8225_v62  ;;  %4990 = vmatprep.subr.mxu0 %v8225_v62 }
 0x2cd   : > { %v8564_v2 = vadd.f32 %v4163_v53, %v3939_v11  ;;  %4768 = vmatpush2.msra.mxu1 %v3545_v39  ;;  %4991 = vmatpush2.msra.mxu0 %v3578_v32  ;;  %v1576_v53 = vld [vmem:[#allocation2 + $0x34] sm:$0xff]  ;;  %v1704_v32 = vld [vmem:[#allocation2 + $0x49] sm:$0xff]  ;;  %v8613_v1 = vld [vmem:[#allocation2] sm:$0xff] }
 0x2ce   : > { %v3943_v12 = vpop.f32.mrf.mxu1  ;;  %v4168_v59 = vpop.f32.mrf.mxu0  ;;  %4472 = vmatmul.mubr.f32.gmra.mxu1 %v1283_v15  ;;  %4697 = vmatmul.mubr.f32.gmra.mxu0 %v1412_v43  ;;  %v3638_v11 = vld [vmem:[%s10094_s5 + $0x770] sm:$0xff] }
 0x2cf   : > { %v3944_v34 = vadd.f32 %v8219_v37, %v3943_v12  ;;  %4476 = vmatprep.mubr.f32.mxu1 %v1349_v61  ;;  %4701 = vmatprep.mubr.f32.mxu0 %v10110_v40  ;;  %v1512_v43 = vld [vmem:[#allocation2 + $0x33] sm:$0xff]  ;;  %v1640_v12 = vld [vmem:[#allocation2 + $0x48] sm:$0xff] }
 0x2d0   : > { %v3945_v3 = vpop.f32.mrf.mxu1  ;;  %v4170_v14 = vpop.f32.mrf.mxu0  ;;  %4769 = vmatprep.subr.mxu1 %v8225_v62  ;;  %4992 = vmatprep.subr.mxu0 %v8225_v62 }
 0x2d1   : > { %v8577_v8 = vadd.f32 %v4168_v59, %v3944_v34  ;;  %4770 = vmatpush2.msra.mxu1 %v3544_v31  ;;  %4993 = vmatpush2.msra.mxu0 %v3577_v6  ;;  %v1577_v59 = vld [vmem:[#allocation2 + $0x3c] sm:$0xff]  ;;  %v1705_v6 = vld [vmem:[#allocation2 + $0x51] sm:$0xff] }
 0x2d2   : > { %v3948_v36 = vpop.f32.mrf.mxu1  ;;  %v4173_v16 = vpop.f32.mrf.mxu0  ;;  %4477 = vmatmul.mubr.f32.gmra.mxu1 %v1284_v60  ;;  %4702 = vmatmul.mubr.f32.gmra.mxu0 %v1413_v48  ;;  %v3604_v34 = vld [vmem:[%s10094_s5 + $0x660] sm:$0xff] }
 0x2d3   : > { %v3949_v24 = vadd.f32 %v8219_v37, %v3948_v36  ;;  %4996 = vmatprep.mubr.f32.mxu0 %v1702_v28  ;;  %4994 = vmatprep.subr.mxu0 %v8225_v62  ;;  %v1513_v48 = vld [vmem:[#allocation2 + $0x3b] sm:$0xff] }
 0x2d4   : > { %v3950_v44 = vpop.f32.mrf.mxu1  ;;  %v4175_v20 = vpop.f32.mrf.mxu0  ;;  %4771 = vmatprep.mubr.f32.mxu1 %v1574_v17  ;;  %4995 = vmatpush2.msra.mxu0 %v3576_v18  ;;  %v1641_v17 = vld [vmem:[#allocation2 + $0x50] sm:$0xff]  ;;  %v1706_v28 = vld [vmem:[#allocation2 + $0x61] sm:$0xff] }
 0x2d5   : > { %v8587_v45 = vadd.f32 %v4173_v16, %v3949_v24  ;;  %5157 = vmatprep.subr.mxu1 %v8225_v62  ;;  %5382 = vmatprep.subr.mxu0 %v8225_v62  ;;  %v1578_v18 = vld [vmem:[#allocation2 + $0x4c] sm:$0xff]  ;;  %v3603_v24 = vld [vmem:[%s10094_s5 + $0x658] sm:$0xff] }
 0x2d6   : > { %v3953_v42 = vpop.f32.mrf.mxu1  ;;  %v4178_v41 = vpop.f32.mrf.mxu0  ;;  %4772 = vmatmul.mubr.f32.vlgmr.msra.gmra.mxu1 %v1510_v25  ;;  %4997 = vmatmul.mubr.f32.vlgmr.msra.gmra.mxu0 %v1638_v7  ;;  %v3636_v25 = vld [vmem:[%s10094_s5 + $0x760] sm:$0xff] }
 0x2d7   : > { %v3954_v5 = vadd.f32 %v8219_v37, %v3953_v42  ;;  %5158 = vmatpush1.msra.mxu1 %v3607_v57  ;;  %5001 = vmatprep.mubr.f32.mxu0 %v1703_v52  ;;  %v3605_v37 = vld [vmem:[%s10094_s5 + $0x668] sm:$0xff]  ;;  %v1642_v42 = vld [vmem:[#allocation2 + $0x60] sm:$0xff] }
 0x2d8   : > { %v3955_v46 = vpop.f32.mrf.mxu1  ;;  %v4180_v23 = vpop.f32.mrf.mxu0  ;;  %4776 = vmatprep.mubr.f32.mxu1 %v1575_v27  ;;  %5159 = vmatprep.subr.mxu1 %v8225_v62  ;;  %v8610_v62 = vld [vmem:[%s10095_s6] ss:$0 sm:$0xff]  ;;  %v1514_v27 = vld [vmem:[#allocation2 + $0x4b] sm:$0xff] }
 0x2d9   : > { %v8599_v0 = vadd.f32 %v4178_v41, %v3954_v5  ;;  %5160 = vmatpush1.msra.mxu1 %v3606_v33  ;;  %5383 = vmatpush1.msra.mxu0 %v3639_v13  ;;  %v1579_v41 = vld [vmem:[#allocation2 + $0x54] sm:$0xff]  ;;  %v1707_v13 = vld [vmem:[#allocation2 + $0x69] sm:$0xff] }
 0x2da   : > { %v3958_v21 = vpop.f32.mrf.mxu1  ;;  %v4183_v39 = vpop.f32.mrf.mxu0  ;;  %4777 = vmatmul.mubr.f32.gmra.mxu1 %v1511_v49  ;;  %5002 = vmatmul.mubr.f32.gmra.mxu0 %v1639_v56  ;;  %v3602_v5 = vld [vmem:[%s10094_s5 + $0x650] sm:$0xff]  ;;  %v3635_v49 = vld [vmem:[%s10094_s5 + $0x758] sm:$0xff] }
 0x2db   : > { %v3959_v54 = vadd.f32 %v8610_v62, %v3958_v21  ;;  %4781 = vmatprep.mubr.f32.mxu1 %v1576_v53  ;;  %5006 = vmatprep.mubr.f32.mxu0 %v1704_v32  ;;  %v1515_v21 = vld [vmem:[#allocation2 + $0x53] sm:$0xff]  ;;  %v1580_v32 = vld [vmem:[#allocation2 + $0x64] sm:$0xff] }
 0x2dc   : > { %v3960_v9 = vpop.f32.mrf.mxu1  ;;  %v4185_v10 = vpop.f32.mrf.mxu0  ;;  %5161 = vmatprep.subr.mxu1 %v8613_v1  ;;  %5384 = vmatprep.subr.mxu0 %v8613_v1 }
 0x2dd   : > { %v8617_v15 = vadd.f32 %v4183_v39, %v3959_v54  ;;  %5162 = vmatpush1.msra.mxu1 %v3605_v37  ;;  %5385 = vmatpush1.msra.mxu0 %v3638_v11  ;;  %v1643_v39 = vld [vmem:[#allocation2 + $0x68] sm:$0xff]  ;;  %v1708_v54 = vld [vmem:[#allocation2 + $0x79] sm:$0xff]  ;;  %v3634_v10 = vld [vmem:[%s10094_s5 + $0x750] sm:$0xff] }
 0x2de   : > { %v3963_v61 = vpop.f32.mrf.mxu1  ;;  %v4188_v31 = vpop.f32.mrf.mxu0  ;;  %4782 = vmatmul.mubr.f32.gmra.mxu1 %v1512_v43  ;;  %5007 = vmatmul.mubr.f32.gmra.mxu0 %v1640_v12  ;;  %v3601_v9 = vld [vmem:[%s10094_s5 + $0x648] sm:$0xff] }
 0x2df   : > { %v3964_v40 = vadd.f32 %v8610_v62, %v3963_v61  ;;  %4786 = vmatprep.mubr.f32.mxu1 %v1577_v59  ;;  %5011 = vmatprep.mubr.f32.mxu0 %v1705_v6  ;;  %v1644_v6 = vld [vmem:[#allocation2 + $0x78] sm:$0xff] }
 0x2e0   : > { %v3965_v3 = vpop.f32.mrf.mxu1  ;;  %v4190_v14 = vpop.f32.mrf.mxu0  ;;  %5163 = vmatprep.subr.mxu1 %v8613_v1  ;;  %5386 = vmatprep.subr.mxu0 %v8613_v1 }
 0x2e1   : > { %v8628_v60 = vadd.f32 %v4188_v31, %v3964_v40  ;;  %5164 = vmatpush1.msra.mxu1 %v3604_v34  ;;  %5387 = vmatpush1.msra.mxu0 %v3637_v4  ;;  %v1516_v31 = vld [vmem:[#allocation2 + $0x63] sm:$0xff]  ;;  %v1581_v34 = vld [vmem:[#allocation2 + $0x6c] sm:$0xff] }
 0x2e2   : > { %v3968_v36 = vpop.f32.mrf.mxu1  ;;  %v4193_v16 = vpop.f32.mrf.mxu0  ;;  %4787 = vmatmul.mubr.f32.gmra.mxu1 %v1513_v48  ;;  %5012 = vmatmul.mubr.f32.gmra.mxu0 %v1641_v17  ;;  %v1709_v3 = vld [vmem:[#allocation2 + $0x81] sm:$0xff] }
 0x2e3   : > { %v3969_v44 = vadd.f32 %v8610_v62, %v3968_v36  ;;  %4791 = vmatprep.mubr.f32.mxu1 %v1578_v18  ;;  %5016 = vmatprep.mubr.f32.mxu0 %v1706_v28  ;;  %v3600_v14 = vld [vmem:[%s10094_s5 + $0x640] sm:$0xff]  ;;  %v3633_v48 = vld [vmem:[%s10094_s5 + $0x748] sm:$0xff] }
 0x2e4   : > { %v3970_v20 = vpop.f32.mrf.mxu1  ;;  %v4195_v57 = vpop.f32.mrf.mxu0  ;;  %5165 = vmatprep.subr.mxu1 %v8613_v1  ;;  %5388 = vmatprep.subr.mxu0 %v8613_v1  ;;  %v1517_v28 = vld [vmem:[#allocation2 + $0x6b] sm:$0xff] }
 0x2e5   : > { %v8639_v7 = vadd.f32 %v4193_v16, %v3969_v44  ;;  %5166 = vmatpush1.msra.mxu1 %v3603_v24  ;;  %5389 = vmatpush1.msra.mxu0 %v3636_v25  ;;  %v1645_v24 = vld [vmem:[#allocation2 + $0x80] sm:$0xff]  ;;  %v1710_v57 = vld [vmem:[#allocation2 + $0x91] sm:$0xff] }
 0x2e6   : > { %v3973_v52 = vpop.f32.mrf.mxu1  ;;  %v4198_v33 = vpop.f32.mrf.mxu0  ;;  %4792 = vmatmul.mubr.f32.gmra.mxu1 %v1514_v27  ;;  %5017 = vmatmul.mubr.f32.gmra.mxu0 %v1642_v42  ;;  %v1582_v25 = vld [vmem:[#allocation2 + $0x7c] sm:$0xff] }
 0x2e7   : > { %v3974_v46 = vadd.f32 %v8610_v62, %v3973_v52  ;;  %4796 = vmatprep.mubr.f32.mxu1 %v1579_v41  ;;  %5021 = vmatprep.mubr.f32.mxu0 %v1707_v13  ;;  %v3599_v27 = vld [vmem:[%s10094_s5 + $0x638] sm:$0xff]  ;;  %v3632_v42 = vld [vmem:[%s10094_s5 + $0x740] sm:$0xff] }
 0x2e8   : > { %v3975_v23 = vpop.f32.mrf.mxu1  ;;  %v4200_v56 = vpop.f32.mrf.mxu0  ;;  %5167 = vmatprep.subr.mxu1 %v8613_v1  ;;  %5390 = vmatprep.subr.mxu0 %v8613_v1 }
 0x2e9   : > { %v8650_v53 = vadd.f32 %v4198_v33, %v3974_v46  ;;  %5168 = vmatpush1.msra.mxu1 %v3602_v5  ;;  %5391 = vmatpush1.msra.mxu0 %v3635_v49  ;;  %v1518_v5 = vld [vmem:[#allocation2 + $0x7b] sm:$0xff]  ;;  %v1646_v49 = vld [vmem:[#allocation2 + $0x90] sm:$0xff]  ;;  %v1583_v46 = vld [vmem:[#allocation2 + $0x84] sm:$0xff] }
 0x2ea   : > { %v3978_v37 = vpop.f32.mrf.mxu1  ;;  %v4203_v11 = vpop.f32.mrf.mxu0  ;;  %4797 = vmatmul.mubr.f32.gmra.mxu1 %v1515_v21  ;;  %5022 = vmatmul.mubr.f32.gmra.mxu0 %v1643_v39  ;;  %v1711_v21 = vld [vmem:[#allocation2 + $0x99] sm:$0xff]  ;;  %v3598_v39 = vld [vmem:[%s10094_s5 + $0x630] sm:$0xff] }
 0x2eb   : > { %v3979_v43 = vadd.f32 %v8610_v62, %v3978_v37  ;;  %4801 = vmatprep.mubr.f32.mxu1 %v1580_v32  ;;  %5026 = vmatprep.mubr.f32.mxu0 %v1708_v54  ;;  %v3631_v32 = vld [vmem:[%s10094_s5 + $0x738] sm:$0xff] }
 0x2ec   : > { %v3980_v12 = vpop.f32.mrf.mxu1  ;;  %v4205_v59 = vpop.f32.mrf.mxu0  ;;  %5169 = vmatprep.subr.mxu1 %v8613_v1  ;;  %5392 = vmatprep.subr.mxu0 %v8613_v1 }
 0x2ed   : > { %v8661_v61 = vadd.f32 %v4203_v11, %v3979_v43  ;;  %5170 = vmatpush1.msra.mxu1 %v3601_v9  ;;  %5393 = vmatpush1.msra.mxu0 %v3634_v10  ;;  %v1519_v10 = vld [vmem:[#allocation2 + $0x83] sm:$0xff]  ;;  %v1647_v43 = vld [vmem:[#allocation2 + $0x98] sm:$0xff] }
 0x2ee   : > { %v3983_v4 = vpop.f32.mrf.mxu1  ;;  %v4208_v40 = vpop.f32.mrf.mxu0  ;;  %4802 = vmatmul.mubr.f32.gmra.mxu1 %v1516_v31  ;;  %5027 = vmatmul.mubr.f32.gmra.mxu0 %v1644_v6  ;;  %v1584_v12 = vld [vmem:[#allocation2 + $0x94] sm:$0xff]  ;;  %v1712_v6 = vld [vmem:[#allocation2 + $0xa9] sm:$0xff] }
 0x2ef   : > { %v3984_v17 = vadd.f32 %v8610_v62, %v3983_v4  ;;  %4806 = vmatprep.mubr.f32.mxu1 %v1581_v34  ;;  %5031 = vmatprep.mubr.f32.mxu0 %v1709_v3  ;;  %v3597_v34 = vld [vmem:[%s10094_s5 + $0x628] sm:$0xff]  ;;  %v3630_v4 = vld [vmem:[%s10094_s5 + $0x730] sm:$0xff] }
 0x2f0   : > { %v3985_v18 = vpop.f32.mrf.mxu1  ;;  %v4210_v36 = vpop.f32.mrf.mxu0  ;;  %5171 = vmatprep.subr.mxu1 %v8613_v1  ;;  %5394 = vmatprep.subr.mxu0 %v8613_v1 }
 0x2f1   : > { %v8672_v16 = vadd.f32 %v4208_v40, %v3984_v17  ;;  %5172 = vmatpush1.msra.mxu1 %v3600_v14  ;;  %5395 = vmatpush1.msra.mxu0 %v3633_v48  ;;  %v1520_v17 = vld [vmem:[#allocation2 + $0x93] sm:$0xff]  ;;  %v1648_v18 = vld [vmem:[#allocation2 + $0xa8] sm:$0xff]  ;;  %v1585_v36 = vld [vmem:[#allocation2 + $0x9c] sm:$0xff] }
 0x2f2   : > { %v3988_v44 = vpop.f32.mrf.mxu1  ;;  %v4213_v20 = vpop.f32.mrf.mxu0  ;;  %4807 = vmatmul.mubr.f32.gmra.mxu1 %v1517_v28  ;;  %5032 = vmatmul.mubr.f32.gmra.mxu0 %v1645_v24 }
 0x2f3   : > { %v3989_v41 = vadd.f32 %v8610_v62, %v3988_v44  ;;  %4811 = vmatprep.mubr.f32.mxu1 %v1582_v25  ;;  %5036 = vmatprep.mubr.f32.mxu0 %v1710_v57  ;;  %v1713_v25 = vld [vmem:[#allocation2 + $0xb1] sm:$0xff]  ;;  %v3596_v44 = vld [vmem:[%s10094_s5 + $0x620] sm:$0xff] }
 0x2f4   : > { %v3990_v52 = vpop.f32.mrf.mxu1  ;;  %v4215_v33 = vpop.f32.mrf.mxu0  ;;  %5173 = vmatprep.subr.mxu1 %v8613_v1  ;;  %5396 = vmatprep.subr.mxu0 %v8613_v1 }
 0x2f5   : > { %v8683_v13 = vadd.f32 %v4213_v20, %v3989_v41  ;;  %5174 = vmatpush1.msra.mxu1 %v3599_v27  ;;  %5397 = vmatpush1.msra.mxu0 %v3632_v42  ;;  %v3629_v20 = vld [vmem:[%s10094_s5 + $0x728] sm:$0xff]  ;;  %v1521_v52 = vld [vmem:[#allocation2 + $0x9b] sm:$0xff]  ;;  %v1649_v33 = vld [vmem:[#allocation2 + $0xb0] sm:$0xff] }
 0x2f6   : > { %v3993_v23 = vpop.f32.mrf.mxu1  ;;  %v4218_v56 = vpop.f32.mrf.mxu0  ;;  %4812 = vmatmul.mubr.f32.gmra.mxu1 %v1518_v5  ;;  %5037 = vmatmul.mubr.f32.gmra.mxu0 %v1646_v49  ;;  %v1586_v5 = vld [vmem:[#allocation2 + $0xac] sm:$0xff] }
 0x2f7   : > { %v3994_v37 = vadd.f32 %v8610_v62, %v3993_v23  ;;  %4816 = vmatprep.mubr.f32.mxu1 %v1583_v46  ;;  %5041 = vmatprep.mubr.f32.mxu0 %v1711_v21  ;;  %v1714_v23 = vld [vmem:[#allocation2 + $0xc1] sm:$0xff] }
 0x2f8   : > { %v3995_v11 = vpop.f32.mrf.mxu1  ;;  %v4220_v54 = vpop.f32.mrf.mxu0  ;;  %5175 = vmatprep.subr.mxu1 %v8613_v1  ;;  %5398 = vmatprep.subr.mxu0 %v8613_v1  ;;  %v3628_v21 = vld [vmem:[%s10094_s5 + $0x720] sm:$0xff] }
 0x2f9   : > { %v8694_v9 = vadd.f32 %v4218_v56, %v3994_v37  ;;  %5176 = vmatpush1.msra.mxu1 %v3598_v39  ;;  %5399 = vmatpush1.msra.mxu0 %v3631_v32  ;;  %v3595_v56 = vld [vmem:[%s10094_s5 + $0x618] sm:$0xff]  ;;  %v1522_v54 = vld [vmem:[#allocation2 + $0xab] sm:$0xff] }
 0x2fa   : > { %v3998_v59 = vpop.f32.mrf.mxu1  ;;  %v4223_v31 = vpop.f32.mrf.mxu0  ;;  %4817 = vmatmul.mubr.f32.gmra.mxu1 %v1519_v10  ;;  %5042 = vmatmul.mubr.f32.gmra.mxu0 %v1647_v43  ;;  %v1650_v10 = vld [vmem:[#allocation2 + $0xc0] sm:$0xff]  ;;  %v1587_v43 = vld [vmem:[#allocation2 + $0xb4] sm:$0xff] }
 0x2fb   : > { %v3999_v40 = vadd.f32 %v8610_v62, %v3998_v59  ;;  %4821 = vmatprep.mubr.f32.mxu1 %v1584_v12  ;;  %5046 = vmatprep.mubr.f32.mxu0 %v1712_v6  ;;  %v3594_v6 = vld [vmem:[%s10094_s5 + $0x610] sm:$0xff] }
 0x2fc   : > { %v4000_v3 = vpop.f32.mrf.mxu1  ;;  %v4225_v14 = vpop.f32.mrf.mxu0  ;;  %5177 = vmatprep.subr.mxu1 %v8613_v1  ;;  %5400 = vmatprep.subr.mxu0 %v8613_v1 }
 0x2fd   : > { %v8705_v48 = vadd.f32 %v4223_v31, %v3999_v40  ;;  %5178 = vmatpush1.msra.mxu1 %v3597_v34  ;;  %5401 = vmatpush1.msra.mxu0 %v3630_v4  ;;  %v1715_v31 = vld [vmem:[#allocation2 + $0xc9] sm:$0xff]  ;;  %v3627_v34 = vld [vmem:[%s10094_s5 + $0x718] sm:$0xff] }
 0x2fe   : > { %v4003_v28 = vpop.f32.mrf.mxu1  ;;  %v4228_v24 = vpop.f32.mrf.mxu0  ;;  %4822 = vmatmul.mubr.f32.gmra.mxu1 %v1520_v17  ;;  %5047 = vmatmul.mubr.f32.gmra.mxu0 %v1648_v18  ;;  %v1523_v17 = vld [vmem:[#allocation2 + $0xb3] sm:$0xff]  ;;  %v1651_v18 = vld [vmem:[#allocation2 + $0xc8] sm:$0xff] }
 0x2ff   : > { %v4004_v57 = vadd.f32 %v8610_v62, %v4003_v28  ;;  %4826 = vmatprep.mubr.f32.mxu1 %v1585_v36  ;;  %5051 = vmatprep.mubr.f32.mxu0 %v1713_v25  ;;  %v1588_v36 = vld [vmem:[#allocation2 + $0xc4] sm:$0xff]  ;;  %v1716_v25 = vld [vmem:[#allocation2 + $0xd9] sm:$0xff] }
 0x300   : > { %v4005_v27 = vpop.f32.mrf.mxu1  ;;  %v4230_v42 = vpop.f32.mrf.mxu0  ;;  %5179 = vmatprep.subr.mxu1 %v8613_v1  ;;  %5402 = vmatprep.subr.mxu0 %v8613_v1 }
 0x301   : > { %v8716_v41 = vadd.f32 %v4228_v24, %v4004_v57  ;;  %5180 = vmatpush1.msra.mxu1 %v3596_v44  ;;  %5403 = vmatpush1.msra.mxu0 %v3629_v20  ;;  %v3593_v44 = vld [vmem:[%s10094_s5 + $0x608] sm:$0xff]  ;;  %v3626_v20 = vld [vmem:[%s10094_s5 + $0x710] sm:$0xff] }
 0x302   : > { %v4008_v49 = vpop.f32.mrf.mxu1  ;;  %v4233_v46 = vpop.f32.mrf.mxu0  ;;  %4827 = vmatmul.mubr.f32.gmra.mxu1 %v1521_v52  ;;  %5052 = vmatmul.mubr.f32.gmra.mxu0 %v1649_v33  ;;  %v1524_v33 = vld [vmem:[#allocation2 + $0xc3] sm:$0xff] }
 0x303   : > { %v4009_v39 = vadd.f32 %v8610_v62, %v4008_v49  ;;  %4831 = vmatprep.mubr.f32.mxu1 %v1586_v5  ;;  %5056 = vmatprep.mubr.f32.mxu0 %v1714_v23  ;;  %v1652_v5 = vld [vmem:[#allocation2 + $0xd8] sm:$0xff]  ;;  %v1589_v49 = vld [vmem:[#allocation2 + $0xcc] sm:$0xff] }
 0x304   : > { %v4010_v32 = vpop.f32.mrf.mxu1  ;;  %v4235_v37 = vpop.f32.mrf.mxu0  ;;  %5181 = vmatprep.subr.mxu1 %v8613_v1  ;;  %5404 = vmatprep.subr.mxu0 %v8613_v1 }
 0x305   : > { %v8727_v11 = vadd.f32 %v4233_v46, %v4009_v39  ;;  %5182 = vmatpush1.msra.mxu1 %v3595_v56  ;;  %5405 = vmatpush1.msra.mxu0 %v3628_v21  ;;  %v1717_v56 = vld [vmem:[#allocation2 + $0xe1] sm:$0xff] }
 0x306   : > { %v4013_v12 = vpop.f32.mrf.mxu1  ;;  %v4238_v59 = vpop.f32.mrf.mxu0  ;;  %4832 = vmatmul.mubr.f32.gmra.mxu1 %v1522_v54  ;;  %5057 = vmatmul.mubr.f32.gmra.mxu0 %v1650_v10  ;;  %v3592_v21 = vld [vmem:[%s10094_s5 + $0x600] sm:$0xff]  ;;  %v3625_v39 = vld [vmem:[%s10094_s5 + $0x708] sm:$0xff] }
 0x307   : > { %v4014_v4 = vadd.f32 %v8610_v62, %v4013_v12  ;;  %4836 = vmatprep.mubr.f32.mxu1 %v1587_v43  ;;  %5061 = vmatprep.mubr.f32.mxu0 %v1715_v31  ;;  %v1525_v43 = vld [vmem:[#allocation2 + $0xcb] sm:$0xff]  ;;  %v1653_v12 = vld [vmem:[#allocation2 + $0xe0] sm:$0xff] }
 0x308   : > { %v4015_v40 = vpop.f32.mrf.mxu1  ;;  %v4240_v3 = vpop.f32.mrf.mxu0  ;;  %5183 = vmatprep.subr.mxu1 %v8613_v1  ;;  %5406 = vmatprep.subr.mxu0 %v8613_v1 }
 0x309   : > { %v8738_v14 = vadd.f32 %v4238_v59, %v4014_v4  ;;  %5184 = vmatpush1.msra.mxu1 %v3594_v6  ;;  %5407 = vmatpush1.msra.mxu0 %v3627_v34  ;;  %v1590_v59 = vld [vmem:[#allocation2 + $0xdc] sm:$0xff]  ;;  %v1718_v34 = vld [vmem:[#allocation2 + $0xf1] sm:$0xff] }
 0x30a   : > { %v4018_v28 = vpop.f32.mrf.mxu1  ;;  %v4243_v24 = vpop.f32.mrf.mxu0  ;;  %4837 = vmatmul.mubr.f32.gmra.mxu1 %v1523_v17  ;;  %5062 = vmatmul.mubr.f32.gmra.mxu0 %v1651_v18  ;;  %v3623_v4 = vld [vmem:[%s10094_s5 + $0x6f8] sm:$0xff]  ;;  %v3624_v40 = vld [vmem:[%s10094_s5 + $0x700] sm:$0xff] }
 0x30b   : > { %v4019_v57 = vadd.f32 %v8610_v62, %v4018_v28  ;;  %4841 = vmatprep.mubr.f32.mxu1 %v1588_v36  ;;  %5066 = vmatprep.mubr.f32.mxu0 %v1716_v25  ;;  %v1526_v28 = vld [vmem:[#allocation2 + $0xdb] sm:$0xff]  ;;  %v1591_v25 = vld [vmem:[#allocation2 + $0xe4] sm:$0xff] }
 0x30c   : > { %v4020_v27 = vpop.f32.mrf.mxu1  ;;  %v4245_v42 = vpop.f32.mrf.mxu0  ;;  %5185 = vmatprep.subr.mxu1 %v8613_v1  ;;  %5408 = vmatprep.subr.mxu0 %v8613_v1 }
 0x30d   : > { %v8749_v52 = vadd.f32 %v4243_v24, %v4019_v57  ;;  %5186 = vmatpush1.msra.mxu1 %v3593_v44  ;;  %5409 = vmatpush1.msra.mxu0 %v3626_v20  ;;  %v1654_v24 = vld [vmem:[#allocation2 + $0xf0] sm:$0xff]  ;;  %v3655_v27 = vld [vmem:[%s10094_s5 + $0x7f8] sm:$0xff] }
 0x30e   : > { %v4023_v46 = vpop.f32.mrf.mxu1  ;;  %v4248_v23 = vpop.f32.mrf.mxu0  ;;  %4842 = vmatmul.mubr.f32.gmra.mxu1 %v1524_v33  ;;  %5067 = vmatmul.mubr.f32.gmra.mxu0 %v1652_v5  ;;  %v3622_v57 = vld [vmem:[%s10094_s5 + $0x6f0] sm:$0xff] }
 0x30f   : > { %v4024_v32 = vadd.f32 %v8610_v62, %v4023_v46  ;;  %4846 = vmatprep.mubr.f32.mxu1 %v1589_v49  ;;  %5071 = vmatprep.mubr.f32.mxu0 %v1717_v56  ;;  %v1527_v46 = vld [vmem:[#allocation2 + $0xe3] sm:$0xff]  ;;  %v1592_v56 = vld [vmem:[#allocation2 + $0xf4] sm:$0xff] }
 0x310   : > { %v4025_v37 = vpop.f32.mrf.mxu1  ;;  %v4250_v54 = vpop.f32.mrf.mxu0  ;;  %5187 = vmatprep.subr.mxu1 %v8613_v1  ;;  %5410 = vmatprep.subr.mxu0 %v8613_v1 }
 0x311   : > { %v8760_v10 = vadd.f32 %v4248_v23, %v4024_v32  ;;  %5188 = vmatpush1.msra.mxu1 %v3592_v21  ;;  %5411 = vmatpush1.msra.mxu0 %v3625_v39  ;;  %v1655_v23 = vld [vmem:[#allocation2 + $0xf8] sm:$0xff]  ;;  %v3621_v32 = vld [vmem:[%s10094_s5 + $0x6e8] sm:$0xff]  ;;  %v3654_v37 = vld [vmem:[%s10094_s5 + $0x7f0] sm:$0xff] }
 0x312   : > { %v4028_v31 = vpop.f32.mrf.mxu1  ;;  %v4253_v6 = vpop.f32.mrf.mxu0  ;;  %4847 = vmatmul.mubr.f32.gmra.mxu1 %v1525_v43  ;;  %5072 = vmatmul.mubr.f32.gmra.mxu0 %v1653_v12 }
 0x313   : > { %v4029_v3 = vadd.f32 %v8610_v62, %v4028_v31  ;;  %4851 = vmatprep.mubr.f32.mxu1 %v1590_v59  ;;  %5076 = vmatprep.mubr.f32.mxu0 %v1718_v34  ;;  %v1719_v62 = vld [vmem:[#allocation2 + $0xf9] sm:$0xff] }
 0x314   : > { %v4030_v17 = vpop.f32.mrf.mxu1  ;;  %v4255_v18 = vpop.f32.mrf.mxu0  ;;  %5189 = vmatprep.subr.mxu1 %v8613_v1  ;;  %5412 = vmatprep.subr.mxu0 %v8613_v1  ;;  %v1528_v31 = vld [vmem:[#allocation2 + $0xf3] sm:$0xff]  ;;  %v1593_v34 = vld [vmem:[#allocation2 + $0xfc] sm:$0xff] }
 0x315   : > { %v8771_v36 = vadd.f32 %v4253_v6, %v4029_v3  ;;  %5190 = vmatpush2.msra.mxu1 %v3623_v4  ;;  %5413 = vmatpush1.msra.mxu0 %v3624_v40  ;;  %v1656_v6 = vld [vmem:[#allocation2 + $0x108] sm:$0xff]  ;;  %v3620_v3 = vld [vmem:[%s10094_s5 + $0x6e0] sm:$0xff] }
 0x316   : > { %v4323_v44 = vpop.f32.mrf.mxu1  ;;  %v4548_v20 = vpop.f32.mrf.mxu0  ;;  %4852 = vmatmul.mubr.f32.gmra.mxu1 %v1526_v28  ;;  %5077 = vmatmul.mubr.f32.gmra.mxu0 %v1654_v24  ;;  %v3653_v17 = vld [vmem:[%s10094_s5 + $0x7e8] sm:$0xff] }
 0x317   : > { %v4324_v42 = vadd.f32 %v4323_v44, %v8233_v38  ;;  %4856 = vmatprep.mubr.f32.mxu1 %v1591_v25  ;;  %5081 = vmatprep.mubr.f32.mxu0 %v1719_v62  ;;  %v1720_v38 = vld [vmem:[#allocation2 + $0x109] sm:$0xff]  ;;  %v1529_v44 = vld [vmem:[#allocation2 + $0xfb] sm:$0xff] }
 0x318   : > { %v4325_v33 = vpop.f32.mrf.mxu1  ;;  %v4550_v5 = vpop.f32.mrf.mxu0  ;;  %5191 = vmatprep.subr.mxu1 %v8613_v1  ;;  %5414 = vmatprep.subr.mxu0 %v8613_v1  ;;  %v1594_v62 = vld [vmem:[#allocation2 + $0x10c] sm:$0xff] }
 0x319   : > { %v8782_v49 = vadd.f32 %v4548_v20, %v4324_v42  ;;  %5192 = vmatpush2.msra.mxu1 %v3622_v57  ;;  %5415 = vmatpush2.msra.mxu0 %v3655_v27  ;;  %v1657_v20 = vld [vmem:[#allocation2 + $0x110] sm:$0xff]  ;;  %v3619_v42 = vld [vmem:[%s10094_s5 + $0x6d8] sm:$0xff]  ;;  %v3652_v33 = vld [vmem:[%s10094_s5 + $0x7e0] sm:$0xff] }
 0x31a   : > { %v4328_v21 = vpop.f32.mrf.mxu1  ;;  %v4553_v39 = vpop.f32.mrf.mxu0  ;;  %4857 = vmatmul.mubr.f32.gmra.mxu1 %v1527_v46  ;;  %5082 = vmatmul.mubr.f32.gmra.mxu0 %v1655_v23 }
 0x31b   : > { %v4329_v54 = vadd.f32 %v4328_v21, %v8248_v58  ;;  %4861 = vmatprep.mubr.f32.mxu1 %v1592_v56  ;;  %5086 = vmatprep.mubr.f32.mxu0 %v1720_v38  ;;  %v1721_v58 = vld [vmem:[#allocation2 + $0x111] sm:$0xff] }
 0x31c   : > { %v4330_v43 = vpop.f32.mrf.mxu1  ;;  %v4555_v12 = vpop.f32.mrf.mxu0  ;;  %5193 = vmatprep.subr.mxu1 %v8613_v1  ;;  %5416 = vmatprep.subr.mxu0 %v8613_v1  ;;  %v1530_v21 = vld [vmem:[#allocation2 + $0x10b] sm:$0xff]  ;;  %v1595_v38 = vld [vmem:[#allocation2 + $0x114] sm:$0xff] }
 0x31d   : > { %v8793_v59 = vadd.f32 %v4553_v39, %v4329_v54  ;;  %5194 = vmatpush2.msra.mxu1 %v3621_v32  ;;  %5417 = vmatpush2.msra.mxu0 %v3654_v37  ;;  %v1658_v39 = vld [vmem:[#allocation2 + $0x120] sm:$0xff]  ;;  %v3618_v54 = vld [vmem:[%s10094_s5 + $0x6d0] sm:$0xff]  ;;  %v3651_v43 = vld [vmem:[%s10094_s5 + $0x7d8] sm:$0xff] }
 0x31e   : > { %v4333_v4 = vpop.f32.mrf.mxu1  ;;  %v4558_v40 = vpop.f32.mrf.mxu0  ;;  %4862 = vmatmul.mubr.f32.gmra.mxu1 %v1528_v31  ;;  %5087 = vmatmul.mubr.f32.gmra.mxu0 %v1656_v6 }
 0x31f   : > { %v4334_v18 = vadd.f32 %v4333_v4, %v8257_v55  ;;  %4866 = vmatprep.mubr.f32.mxu1 %v1593_v34  ;;  %5091 = vmatprep.mubr.f32.mxu0 %v1721_v58  ;;  %v1722_v55 = vld [vmem:[#allocation2 + $0x121] sm:$0xff]  ;;  %v1531_v4 = vld [vmem:[#allocation2 + $0x113] sm:$0xff] }
 0x320   : > { %v4335_v28 = vpop.f32.mrf.mxu1  ;;  %v4560_v24 = vpop.f32.mrf.mxu0  ;;  %5195 = vmatprep.subr.mxu1 %v8613_v1  ;;  %5418 = vmatprep.subr.mxu0 %v8613_v1  ;;  %v1596_v58 = vld [vmem:[#allocation2 + $0x124] sm:$0xff] }
 0x321   : > { %v8804_v25 = vadd.f32 %v4558_v40, %v4334_v18  ;;  %5196 = vmatpush2.msra.mxu1 %v3620_v3  ;;  %5419 = vmatpush2.msra.mxu0 %v3653_v17  ;;  %v1659_v40 = vld [vmem:[#allocation2 + $0x128] sm:$0xff]  ;;  %v3650_v28 = vld [vmem:[%s10094_s5 + $0x7d0] sm:$0xff] }
 0x322   : > { %v4338_v57 = vpop.f32.mrf.mxu1  ;;  %v4563_v27 = vpop.f32.mrf.mxu0  ;;  %4867 = vmatmul.mubr.f32.gmra.mxu1 %v1529_v44  ;;  %5092 = vmatmul.mubr.f32.gmra.mxu0 %v1657_v20  ;;  %v3617_v18 = vld [vmem:[%s10094_s5 + $0x6c8] sm:$0xff] }
 0x323   : > { %v4339_v5 = vadd.f32 %v4338_v57, %v8270_v22  ;;  %4871 = vmatprep.mubr.f32.mxu1 %v1594_v62  ;;  %5096 = vmatprep.mubr.f32.mxu0 %v1722_v55  ;;  %v1723_v22 = vld [vmem:[#allocation2 + $0x129] sm:$0xff] }
 0x324   : > { %v4340_v46 = vpop.f32.mrf.mxu1  ;;  %v4565_v23 = vpop.f32.mrf.mxu0  ;;  %5197 = vmatprep.subr.mxu1 %v8613_v1  ;;  %5420 = vmatprep.subr.mxu0 %v8613_v1  ;;  %v1532_v57 = vld [vmem:[#allocation2 + $0x123] sm:$0xff]  ;;  %v1597_v55 = vld [vmem:[#allocation2 + $0x12c] sm:$0xff] }
 0x325   : > { %v8815_v56 = vadd.f32 %v4563_v27, %v4339_v5  ;;  %5198 = vmatpush2.msra.mxu1 %v3619_v42  ;;  %5421 = vmatpush2.msra.mxu0 %v3652_v33  ;;  %v1660_v27 = vld [vmem:[#allocation2 + $0x138] sm:$0xff]  ;;  %v3616_v5 = vld [vmem:[%s10094_s5 + $0x6c0] sm:$0xff]  ;;  %v3649_v46 = vld [vmem:[%s10094_s5 + $0x7c8] sm:$0xff] }
 0x326   : > { %v4343_v32 = vpop.f32.mrf.mxu1  ;;  %v4568_v37 = vpop.f32.mrf.mxu0  ;;  %4872 = vmatmul.mubr.f32.gmra.mxu1 %v1530_v21  ;;  %5097 = vmatmul.mubr.f32.gmra.mxu0 %v1658_v39 }
 0x327   : > { %v4344_v12 = vadd.f32 %v4343_v32, %v8449_v26  ;;  %4876 = vmatprep.mubr.f32.mxu1 %v1595_v38  ;;  %5101 = vmatprep.mubr.f32.mxu0 %v1723_v22  ;;  %v1724_v26 = vld [vmem:[#allocation2 + $0x139] sm:$0xff]  ;;  %v1533_v32 = vld [vmem:[#allocation2 + $0x12b] sm:$0xff] }
 0x328   : > { %v4345_v31 = vpop.f32.mrf.mxu1  ;;  %v4570_v6 = vpop.f32.mrf.mxu0  ;;  %5199 = vmatprep.subr.mxu1 %v8613_v1  ;;  %5422 = vmatprep.subr.mxu0 %v8613_v1  ;;  %v1598_v22 = vld [vmem:[#allocation2 + $0x13c] sm:$0xff] }
 0x329   : > { %v8826_v34 = vadd.f32 %v4568_v37, %v4344_v12  ;;  %5200 = vmatpush2.msra.mxu1 %v3618_v54  ;;  %5423 = vmatpush2.msra.mxu0 %v3651_v43  ;;  %v1661_v37 = vld [vmem:[#allocation2 + $0x140] sm:$0xff]  ;;  %v3615_v12 = vld [vmem:[%s10094_s5 + $0x6b8] sm:$0xff] }
 0x32a   : > { %v4348_v3 = vpop.f32.mrf.mxu1  ;;  %v4573_v17 = vpop.f32.mrf.mxu0  ;;  %4877 = vmatmul.mubr.f32.gmra.mxu1 %v1531_v4  ;;  %5102 = vmatmul.mubr.f32.gmra.mxu0 %v1659_v40  ;;  %v3648_v31 = vld [vmem:[%s10094_s5 + $0x7c0] sm:$0xff] }
 0x32b   : > { %v4349_v24 = vadd.f32 %v4348_v3, %v8462_v35  ;;  %4881 = vmatprep.mubr.f32.mxu1 %v1596_v58  ;;  %5106 = vmatprep.mubr.f32.mxu0 %v1724_v26  ;;  %v1725_v35 = vld [vmem:[#allocation2 + $0x141] sm:$0xff] }
 0x32c   : > { %v4350_v44 = vpop.f32.mrf.mxu1  ;;  %v4575_v20 = vpop.f32.mrf.mxu0  ;;  %5201 = vmatprep.subr.mxu1 %v8613_v1  ;;  %5424 = vmatprep.subr.mxu0 %v8613_v1  ;;  %v1534_v3 = vld [vmem:[#allocation2 + $0x13b] sm:$0xff]  ;;  %v1599_v26 = vld [vmem:[#allocation2 + $0x144] sm:$0xff] }
 0x32d   : > { %v8837_v62 = vadd.f32 %v4573_v17, %v4349_v24  ;;  %5202 = vmatpush2.msra.mxu1 %v3617_v18  ;;  %5425 = vmatpush2.msra.mxu0 %v3650_v28  ;;  %v1662_v17 = vld [vmem:[#allocation2 + $0x150] sm:$0xff]  ;;  %v3647_v44 = vld [vmem:[%s10094_s5 + $0x7b8] sm:$0xff] }
 0x32e   : > { %v4353_v42 = vpop.f32.mrf.mxu1  ;;  %v4578_v33 = vpop.f32.mrf.mxu0  ;;  %4882 = vmatmul.mubr.f32.gmra.mxu1 %v1532_v57  ;;  %5107 = vmatmul.mubr.f32.gmra.mxu0 %v1660_v27  ;;  %v3614_v24 = vld [vmem:[%s10094_s5 + $0x6b0] sm:$0xff] }
 0x32f   : > { %v4354_v23 = vadd.f32 %v4353_v42, %v8475_v51  ;;  %4886 = vmatprep.mubr.f32.mxu1 %v1597_v55  ;;  %5111 = vmatprep.mubr.f32.mxu0 %v1725_v35  ;;  %v1726_v51 = vld [vmem:[#allocation2 + $0x151] sm:$0xff]  ;;  %v1535_v42 = vld [vmem:[#allocation2 + $0x143] sm:$0xff] }
 0x330   : > { %v4355_v21 = vpop.f32.mrf.mxu1  ;;  %v4580_v39 = vpop.f32.mrf.mxu0  ;;  %5203 = vmatprep.subr.mxu1 %v8613_v1  ;;  %5426 = vmatprep.subr.mxu0 %v8613_v1  ;;  %v1600_v35 = vld [vmem:[#allocation2 + $0x154] sm:$0xff] }
 0x331   : > { %v8848_v38 = vadd.f32 %v4578_v33, %v4354_v23  ;;  %5204 = vmatpush2.msra.mxu1 %v3616_v5  ;;  %5427 = vmatpush2.msra.mxu0 %v3649_v46  ;;  %v1663_v33 = vld [vmem:[#allocation2 + $0x158] sm:$0xff]  ;;  %v3613_v23 = vld [vmem:[%s10094_s5 + $0x6a8] sm:$0xff]  ;;  %v3646_v21 = vld [vmem:[%s10094_s5 + $0x7b0] sm:$0xff] }
 0x332   : > { %v4358_v54 = vpop.f32.mrf.mxu1  ;;  %v4583_v43 = vpop.f32.mrf.mxu0  ;;  %4887 = vmatmul.mubr.f32.gmra.mxu1 %v1533_v32  ;;  %5112 = vmatmul.mubr.f32.gmra.mxu0 %v1661_v37 }
 0x333   : > { %v4359_v6 = vadd.f32 %v4358_v54, %v8488_v63  ;;  %4891 = vmatprep.mubr.f32.mxu1 %v1598_v22  ;;  %5116 = vmatprep.mubr.f32.mxu0 %v1726_v51  ;;  %v1727_v63 = vld [vmem:[#allocation2 + $0x159] sm:$0xff] }
 0x334   : > { %v4360_v4 = vpop.f32.mrf.mxu1  ;;  %v4585_v40 = vpop.f32.mrf.mxu0  ;;  %5205 = vmatprep.subr.mxu1 %v8613_v1  ;;  %5428 = vmatprep.subr.mxu0 %v8613_v1  ;;  %v1536_v54 = vld [vmem:[#allocation2 + $0x153] sm:$0xff]  ;;  %v1601_v51 = vld [vmem:[#allocation2 + $0x15c] sm:$0xff] }
 0x335   : > { %v8859_v58 = vadd.f32 %v4583_v43, %v4359_v6  ;;  %5206 = vmatpush2.msra.mxu1 %v3615_v12  ;;  %5429 = vmatpush2.msra.mxu0 %v3648_v31  ;;  %v1664_v43 = vld [vmem:[#allocation2 + $0x168] sm:$0xff]  ;;  %v3612_v6 = vld [vmem:[%s10094_s5 + $0x6a0] sm:$0xff] }
 0x336   : > { %v4363_v18 = vpop.f32.mrf.mxu1  ;;  %v4588_v28 = vpop.f32.mrf.mxu0  ;;  %4892 = vmatmul.mubr.f32.gmra.mxu1 %v1534_v3  ;;  %5117 = vmatmul.mubr.f32.gmra.mxu0 %v1662_v17  ;;  %v3645_v4 = vld [vmem:[%s10094_s5 + $0x7a8] sm:$0xff] }
 0x337   : > { %v4364_v20 = vadd.f32 %v4363_v18, %v8501_v19  ;;  %4896 = vmatprep.mubr.f32.mxu1 %v1599_v26  ;;  %5121 = vmatprep.mubr.f32.mxu0 %v1727_v63  ;;  %v1728_v19 = vld [vmem:[#allocation2 + $0x169] sm:$0xff]  ;;  %v1537_v18 = vld [vmem:[#allocation2 + $0x15b] sm:$0xff] }
 0x338   : > { %v4365_v57 = vpop.f32.mrf.mxu1  ;;  %v4590_v27 = vpop.f32.mrf.mxu0  ;;  %5207 = vmatprep.subr.mxu1 %v8613_v1  ;;  %5430 = vmatprep.subr.mxu0 %v8613_v1  ;;  %v1602_v63 = vld [vmem:[#allocation2 + $0x16c] sm:$0xff] }
 0x339   : > { %v8870_v55 = vadd.f32 %v4588_v28, %v4364_v20  ;;  %5208 = vmatpush2.msra.mxu1 %v3614_v24  ;;  %5431 = vmatpush2.msra.mxu0 %v3647_v44  ;;  %v1665_v28 = vld [vmem:[#allocation2 + $0x170] sm:$0xff]  ;;  %v3611_v20 = vld [vmem:[%s10094_s5 + $0x698] sm:$0xff] }
 0x33a   : > { %v4368_v5 = vpop.f32.mrf.mxu1  ;;  %v4593_v46 = vpop.f32.mrf.mxu0  ;;  %4897 = vmatmul.mubr.f32.gmra.mxu1 %v1535_v42  ;;  %5122 = vmatmul.mubr.f32.gmra.mxu0 %v1663_v33  ;;  %v8901_v33 = vld [vmem:[#allocation2] sm:$0xff] }
 0x33b   : > { %v4369_v39 = vadd.f32 %v4368_v5, %v8514_v29  ;;  %4901 = vmatprep.mubr.f32.mxu1 %v1600_v35  ;;  %5126 = vmatprep.mubr.f32.mxu0 %v1728_v19  ;;  %v1729_v29 = vld [vmem:[#allocation2 + $0x171] sm:$0xff] }
 0x33c   : > { %v4370_v32 = vpop.f32.mrf.mxu1  ;;  %v4595_v37 = vpop.f32.mrf.mxu0  ;;  %5209 = vmatprep.subr.mxu1 %v8613_v1  ;;  %5432 = vmatprep.subr.mxu0 %v8613_v1  ;;  %v1538_v5 = vld [vmem:[#allocation2 + $0x16b] sm:$0xff]  ;;  %v1603_v19 = vld [vmem:[#allocation2 + $0x174] sm:$0xff] }
 0x33d   : > { %v8881_v22 = vadd.f32 %v4593_v46, %v4369_v39  ;;  %5210 = vmatpush2.msra.mxu1 %v3613_v23  ;;  %5433 = vmatpush2.msra.mxu0 %v3646_v21  ;;  %v1666_v46 = vld [vmem:[#allocation2 + $0x180] sm:$0xff]  ;;  %v3610_v39 = vld [vmem:[%s10094_s5 + $0x690] sm:$0xff]  ;;  %v3643_v32 = vld [vmem:[%s10094_s5 + $0x798] sm:$0xff] }
 0x33e   : > { %v4373_v12 = vpop.f32.mrf.mxu1  ;;  %v4598_v31 = vpop.f32.mrf.mxu0  ;;  %4902 = vmatmul.mubr.f32.gmra.mxu1 %v1536_v54  ;;  %5127 = vmatmul.mubr.f32.gmra.mxu0 %v1664_v43 }
 0x33f   : > { %v4374_v40 = vadd.f32 %v4373_v12, %v8527_v50  ;;  %4906 = vmatprep.mubr.f32.mxu1 %v1601_v51  ;;  %5131 = vmatprep.mubr.f32.mxu0 %v1729_v29  ;;  %v1730_v50 = vld [vmem:[#allocation2 + $0x181] sm:$0xff]  ;;  %v1539_v12 = vld [vmem:[#allocation2 + $0x173] sm:$0xff] }
 0x340   : > { %v4375_v3 = vpop.f32.mrf.mxu1  ;;  %v4600_v17 = vpop.f32.mrf.mxu0  ;;  %5211 = vmatprep.subr.mxu1 %v8613_v1  ;;  %5434 = vmatprep.subr.mxu0 %v8613_v1  ;;  %v3644_v1 = vld [vmem:[%s10094_s5 + $0x7a0] sm:$0xff] }
 0x341   : > { %v8892_v26 = vadd.f32 %v4598_v31, %v4374_v40  ;;  %5212 = vmatpush2.msra.mxu1 %v3612_v6  ;;  %5435 = vmatpush2.msra.mxu0 %v3645_v4  ;;  %v1667_v31 = vld [vmem:[#allocation2 + $0x188] sm:$0xff]  ;;  %v3642_v3 = vld [vmem:[%s10094_s5 + $0x790] sm:$0xff] }
 0x342   : > { %v4378_v24 = vpop.f32.mrf.mxu1  ;;  %v4603_v44 = vpop.f32.mrf.mxu0  ;;  %4907 = vmatmul.mubr.f32.gmra.mxu1 %v1537_v18  ;;  %5132 = vmatmul.mubr.f32.gmra.mxu0 %v1665_v28  ;;  %v1604_v29 = vld [vmem:[#allocation2 + $0x184] sm:$0xff] }
 0x343   : > { %v4379_v57 = vadd.f32 %v4378_v24, %v8539_v30  ;;  %4911 = vmatprep.mubr.f32.mxu1 %v1602_v63  ;;  %5136 = vmatprep.mubr.f32.mxu0 %v1730_v50  ;;  %v1731_v30 = vld [vmem:[#allocation2 + $0x189] sm:$0xff] }
 0x344   : > { %v4380_v27 = vpop.f32.mrf.mxu1  ;;  %v4605_v42 = vpop.f32.mrf.mxu0  ;;  %5213 = vmatprep.subr.mxu1 %v8901_v33  ;;  %5436 = vmatprep.subr.mxu0 %v8901_v33  ;;  %v3609_v40 = vld [vmem:[%s10094_s5 + $0x688] sm:$0xff] }
 0x345   : > { %v8905_v35 = vadd.f32 %v4603_v44, %v4379_v57  ;;  %5214 = vmatpush2.msra.mxu1 %v3611_v20  ;;  %5437 = vmatpush2.msra.mxu0 %v3644_v1  ;;  %v1540_v24 = vld [vmem:[#allocation2 + $0x183] sm:$0xff]  ;;  %v1668_v44 = vld [vmem:[#allocation2 + $0x198] sm:$0xff]  ;;  %v1605_v50 = vld [vmem:[#allocation2 + $0x18c] sm:$0xff] }
 0x346   : > { %v4383_v23 = vpop.f32.mrf.mxu1  ;;  %v4608_v21 = vpop.f32.mrf.mxu0  ;;  %4912 = vmatmul.mubr.f32.gmra.mxu1 %v1538_v5  ;;  %5137 = vmatmul.mubr.f32.gmra.mxu0 %v1666_v46  ;;  %v3608_v57 = vld [vmem:[%s10094_s5 + $0x680] sm:$0xff]  ;;  %v3641_v27 = vld [vmem:[%s10094_s5 + $0x788] sm:$0xff] }
 0x347   : > { %v4384_v37 = vadd.f32 %v4383_v23, %v8551_v47  ;;  %4916 = vmatprep.mubr.f32.mxu1 %v1603_v19  ;;  %5141 = vmatprep.mubr.f32.mxu0 %v1731_v30  ;;  %v1732_v47 = vld [vmem:[#allocation2 + $0x199] sm:$0xff]  ;;  %v1541_v23 = vld [vmem:[#allocation2 + $0x18b] sm:$0xff] }
 0x348   : > { %v4385_v54 = vpop.f32.mrf.mxu1  ;;  %v4610_v43 = vpop.f32.mrf.mxu0  ;;  %5215 = vmatprep.subr.mxu1 %v8901_v33  ;;  %5438 = vmatprep.subr.mxu0 %v8901_v33 }
 0x349   : > { %v8916_v51 = vadd.f32 %v4608_v21, %v4384_v37  ;;  %5216 = vmatpush2.msra.mxu1 %v3610_v39  ;;  %5439 = vmatpush2.msra.mxu0 %v3643_v32  ;;  %v1669_v21 = vld [vmem:[#allocation2 + $0x1a0] sm:$0xff]  ;;  %v1830_v32 = vld [vmem:[#allocation2 + $0x33] sm:$0xff] }
 0x34a   : > { %v4388_v6 = vpop.f32.mrf.mxu1  ;;  %v4613_v4 = vpop.f32.mrf.mxu0  ;;  %4917 = vmatmul.mubr.f32.gmra.mxu1 %v1539_v12  ;;  %5142 = vmatmul.mubr.f32.gmra.mxu0 %v1667_v31  ;;  %v3640_v37 = vld [vmem:[%s10094_s5 + $0x780] sm:$0xff]  ;;  %v3671_v31 = vld [vmem:[%s10094_s5 + $0x878] sm:$0xff] }
 0x34b   : > { %v4389_v17 = vadd.f32 %v4388_v6, %v8564_v2  ;;  %4921 = vmatprep.mubr.f32.mxu1 %v1604_v29  ;;  %5146 = vmatprep.mubr.f32.mxu0 %v1732_v47  ;;  %v1733_v2 = vld [vmem:[#allocation2 + $0x1a1] sm:$0xff]  ;;  %v1766_v6 = vld [vmem:[#allocation2 + $0x32] sm:$0xff] }
 0x34c   : > { %v4390_v18 = vpop.f32.mrf.mxu1  ;;  %v4615_v28 = vpop.f32.mrf.mxu0  ;;  %5217 = vmatprep.subr.mxu1 %v8901_v33  ;;  %5440 = vmatprep.subr.mxu0 %v8901_v33 }
 0x34d   : > { %v8927_v63 = vadd.f32 %v4613_v4, %v4389_v17  ;;  %5218 = vmatpush2.msra.mxu1 %v3609_v40  ;;  %5441 = vmatpush2.msra.mxu0 %v3642_v3  ;;  %v1894_v4 = vld [vmem:[#allocation2 + $0x34] sm:$0xff] }
 0x34e   : > { %v4393_v20 = vpop.f32.mrf.mxu1  ;;  %v4618_v1 = vpop.f32.mrf.mxu0  ;;  %4922 = vmatmul.mubr.f32.gmra.mxu1 %v1540_v24  ;;  %5147 = vmatmul.mubr.f32.gmra.mxu0 %v1668_v44  ;;  %v3670_v3 = vld [vmem:[%s10094_s5 + $0x870] sm:$0xff] }
 0x34f   : > { %v4394_v42 = vadd.f32 %v4393_v20, %v8577_v8  ;;  %4926 = vmatprep.mubr.f32.mxu1 %v1605_v50  ;;  %5151 = vmatprep.mubr.f32.mxu0 %v1733_v2  ;;  %v1959_v8 = vld [vmem:[#allocation2 + $0x48] sm:$0xff]  ;;  %v1960_v18 = vld [vmem:[#allocation2 + $0x50] sm:$0xff]  ;;  %v1767_v50 = vld [vmem:[#allocation2 + $0x3a] sm:$0xff] }
 0x350   : > { %v4395_v5 = vpop.f32.mrf.mxu1  ;;  %v4620_v46 = vpop.f32.mrf.mxu0  ;;  %5219 = vmatprep.subr.mxu1 %v8901_v33  ;;  %5442 = vmatprep.subr.mxu0 %v8901_v33  ;;  %v1895_v20 = vld [vmem:[#allocation2 + $0x3c] sm:$0xff] }
 0x351   : > { %v8938_v19 = vadd.f32 %v4618_v1, %v4394_v42  ;;  %5220 = vmatpush2.msra.mxu1 %v3608_v57  ;;  %5443 = vmatpush2.msra.mxu0 %v3641_v27  ;;  %v3703_v1 = vld [vmem:[%s10094_s5 + $0x978] sm:$0xff]  ;;  %v1832_v57 = vld [vmem:[#allocation2 + $0x4b] sm:$0xff]  ;;  %v1961_v27 = vld [vmem:[#allocation2 + $0x60] sm:$0xff] }
 0x352   : > { %v4398_v30 = vpop.f32.mrf.mxu1  ;;  %v4623_v39 = vpop.f32.mrf.mxu0  ;;  %4927 = vmatmul.mubr.f32.gmra.mxu1 %v1541_v23  ;;  %5152 = vmatmul.mubr.f32.gmra.mxu0 %v1669_v21  ;;  %v3669_v42 = vld [vmem:[%s10094_s5 + $0x868] sm:$0xff] }
 0x353   : > { %v4399_v54 = vadd.f32 %v4398_v30, %v8587_v45  ;;  %5221 = vmatprep.mubr.f32.mxu1 %v1830_v32  ;;  %5446 = vmatprep.mubr.f32.mxu0 %v1959_v8  ;;  %v1831_v45 = vld [vmem:[#allocation2 + $0x3b] sm:$0xff]  ;;  %v1768_v30 = vld [vmem:[#allocation2 + $0x4a] sm:$0xff] }
 0x354   : > { %v4400_v43 = vpop.f32.mrf.mxu1  ;;  %v4625_v12 = vpop.f32.mrf.mxu0  ;;  %5444 = vmatprep.subr.mxu0 %v8901_v33  ;;  %5607 = vmatprep.subr.mxu1 %v8901_v33  ;;  %v3702_v32 = vld [vmem:[%s10094_s5 + $0x970] sm:$0xff] }
 0x355   : > { %v8949_v29 = vadd.f32 %v4623_v39, %v4399_v54  ;;  %5445 = vmatpush2.msra.mxu0 %v3640_v37  ;;  %v1896_v39 = vld [vmem:[#allocation2 + $0x4c] sm:$0xff]  ;;  %v3668_v43 = vld [vmem:[%s10094_s5 + $0x860] sm:$0xff] }
 0x356   : > { %v4403_v47 = vpop.f32.mrf.mxu1  ;;  %v4628_v40 = vpop.f32.mrf.mxu0  ;;  %5222 = vmatmul.mubr.f32.vlgmr.msra.gmra.mxu1 %v1766_v6  ;;  %5447 = vmatmul.mubr.f32.vlgmr.msra.gmra.mxu0 %v1894_v4  ;;  %v1833_v37 = vld [vmem:[#allocation2 + $0x53] sm:$0xff]  ;;  %v1962_v54 = vld [vmem:[#allocation2 + $0x68] sm:$0xff] }
 0x357   : > { %v4404_v17 = vadd.f32 %v4403_v47, %v8599_v0  ;;  %5608 = vmatpush1.msra.mxu1 %v3671_v31  ;;  %5226 = vmatprep.mubr.f32.mxu1 %v1831_v45  ;;  %v1769_v47 = vld [vmem:[#allocation2 + $0x52] sm:$0xff]  ;;  %v3701_v45 = vld [vmem:[%s10094_s5 + $0x968] sm:$0xff] }
 0x358   : > { %5451 = vmatprep.mubr.f32.mxu0 %v1960_v18  ;;  %v4405_v28 = vpop.f32.mrf.mxu1  ;;  %v4630_v24 = vpop.f32.mrf.mxu0  ;;  %5609 = vmatprep.subr.mxu1 %v8901_v33  ;;  %v1963_v18 = vld [vmem:[#allocation2 + $0x78] sm:$0xff] }
 0x359   : > { %v8956_v44 = vadd.f32 %v4628_v40, %v4404_v17  ;;  %5610 = vmatpush1.msra.mxu1 %v3670_v3  ;;  %5832 = vmatprep.subr.mxu0 %v8901_v33  ;;  %v1897_v40 = vld [vmem:[#allocation2 + $0x54] sm:$0xff]  ;;  %v1834_v17 = vld [vmem:[#allocation2 + $0x63] sm:$0xff] }
 0x35a   : > { %v4408_v0 = vpop.f32.mrf.mxu1  ;;  %v4633_v2 = vpop.f32.mrf.mxu0  ;;  %5227 = vmatmul.mubr.f32.gmra.mxu1 %v1767_v50  ;;  %5452 = vmatmul.mubr.f32.gmra.mxu0 %v1895_v20  ;;  %v3667_v28 = vld [vmem:[%s10094_s5 + $0x858] sm:$0xff] }
 0x35b   : > { %v4409_v5 = vadd.f32 %v4408_v0, %v8617_v15  ;;  %5231 = vmatprep.mubr.f32.mxu1 %v1832_v57  ;;  %5456 = vmatprep.mubr.f32.mxu0 %v1961_v27  ;;  %v1770_v0 = vld [vmem:[#allocation2 + $0x62] sm:$0xff] }
 0x35c   : > { %v4410_v46 = vpop.f32.mrf.mxu1  ;;  %v4635_v23 = vpop.f32.mrf.mxu0  ;;  %5611 = vmatprep.subr.mxu1 %v8901_v33  ;;  %5833 = vmatpush1.msra.mxu0 %v3703_v1  ;;  %v3700_v57 = vld [vmem:[%s10094_s5 + $0x960] sm:$0xff] }
 0x35d   : > { %v8967_v21 = vadd.f32 %v4633_v2, %v4409_v5  ;;  %5612 = vmatpush1.msra.mxu1 %v3669_v42  ;;  %5834 = vmatprep.subr.mxu0 %v8901_v33  ;;  %v1898_v2 = vld [vmem:[#allocation2 + $0x64] sm:$0xff]  ;;  %v3666_v46 = vld [vmem:[%s10094_s5 + $0x850] sm:$0xff] }
 0x35e   : > { %v4413_v8 = vpop.f32.mrf.mxu1  ;;  %v4638_v15 = vpop.f32.mrf.mxu0  ;;  %5232 = vmatmul.mubr.f32.gmra.mxu1 %v1768_v30  ;;  %5457 = vmatmul.mubr.f32.gmra.mxu0 %v1896_v39  ;;  %v1835_v42 = vld [vmem:[#allocation2 + $0x6b] sm:$0xff]  ;;  %v1964_v5 = vld [vmem:[#allocation2 + $0x80] sm:$0xff] }
 0x35f   : > { %v4414_v12 = vadd.f32 %v4413_v8, %v8628_v60  ;;  %5236 = vmatprep.mubr.f32.mxu1 %v1833_v37  ;;  %5461 = vmatprep.mubr.f32.mxu0 %v1962_v54  ;;  %v1771_v8 = vld [vmem:[#allocation2 + $0x6a] sm:$0xff]  ;;  %v3699_v37 = vld [vmem:[%s10094_s5 + $0x958] sm:$0xff] }
 0x360   : > { %v4415_v31 = vpop.f32.mrf.mxu1  ;;  %v4640_v6 = vpop.f32.mrf.mxu0  ;;  %5613 = vmatprep.subr.mxu1 %v8901_v33  ;;  %5835 = vmatpush1.msra.mxu0 %v3702_v32 }
 0x361   : > { %v8978_v4 = vadd.f32 %v4638_v15, %v4414_v12  ;;  %5614 = vmatpush1.msra.mxu1 %v3668_v43  ;;  %5836 = vmatprep.subr.mxu0 %v8901_v33  ;;  %v1899_v15 = vld [vmem:[#allocation2 + $0x6c] sm:$0xff]  ;;  %v1836_v43 = vld [vmem:[#allocation2 + $0x7b] sm:$0xff] }
 0x362   : > { %v4418_v3 = vpop.f32.mrf.mxu1  ;;  %v4643_v60 = vpop.f32.mrf.mxu0  ;;  %5237 = vmatmul.mubr.f32.gmra.mxu1 %v1769_v47  ;;  %5462 = vmatmul.mubr.f32.gmra.mxu0 %v1897_v40  ;;  %v1965_v12 = vld [vmem:[#allocation2 + $0x90] sm:$0xff]  ;;  %v3665_v31 = vld [vmem:[%s10094_s5 + $0x848] sm:$0xff] }
 0x363   : > { %v4419_v24 = vadd.f32 %v4418_v3, %v8639_v7  ;;  %5241 = vmatprep.mubr.f32.mxu1 %v1834_v17  ;;  %5466 = vmatprep.mubr.f32.mxu0 %v1963_v18  ;;  %v1772_v3 = vld [vmem:[#allocation2 + $0x7a] sm:$0xff]  ;;  %v3698_v17 = vld [vmem:[%s10094_s5 + $0x950] sm:$0xff] }
 0x364   : > { %v4420_v50 = vpop.f32.mrf.mxu1  ;;  %v4645_v20 = vpop.f32.mrf.mxu0  ;;  %5615 = vmatprep.subr.mxu1 %v8901_v33  ;;  %5837 = vmatpush1.msra.mxu0 %v3701_v45 }
 0x365   : > { %v8989_v1 = vadd.f32 %v4643_v60, %v4419_v24  ;;  %5616 = vmatpush1.msra.mxu1 %v3667_v28  ;;  %5838 = vmatprep.subr.mxu0 %v8901_v33  ;;  %v1900_v60 = vld [vmem:[#allocation2 + $0x7c] sm:$0xff] }
 0x366   : > { %v4423_v27 = vpop.f32.mrf.mxu1  ;;  %v4648_v7 = vpop.f32.mrf.mxu0  ;;  %5242 = vmatmul.mubr.f32.gmra.mxu1 %v1770_v0  ;;  %5467 = vmatmul.mubr.f32.gmra.mxu0 %v1898_v2  ;;  %v1837_v28 = vld [vmem:[#allocation2 + $0x83] sm:$0xff]  ;;  %v1966_v24 = vld [vmem:[#allocation2 + $0x98] sm:$0xff] }
 0x367   : > { %v4424_v23 = vadd.f32 %v4423_v27, %v8650_v53  ;;  %5246 = vmatprep.mubr.f32.mxu1 %v1835_v42  ;;  %5471 = vmatprep.mubr.f32.mxu0 %v1964_v5  ;;  %v3664_v50 = vld [vmem:[%s10094_s5 + $0x840] sm:$0xff]  ;;  %v3697_v42 = vld [vmem:[%s10094_s5 + $0x948] sm:$0xff] }
 0x368   : > { %v4425_v30 = vpop.f32.mrf.mxu1  ;;  %v4650_v39 = vpop.f32.mrf.mxu0  ;;  %5617 = vmatprep.subr.mxu1 %v8901_v33  ;;  %5839 = vmatpush1.msra.mxu0 %v3700_v57  ;;  %v1773_v27 = vld [vmem:[#allocation2 + $0x82] sm:$0xff] }
 0x369   : > { %v9000_v32 = vadd.f32 %v4648_v7, %v4424_v23  ;;  %5618 = vmatpush1.msra.mxu1 %v3666_v46  ;;  %5840 = vmatprep.subr.mxu0 %v8901_v33  ;;  %v1901_v7 = vld [vmem:[#allocation2 + $0x84] sm:$0xff]  ;;  %v1838_v46 = vld [vmem:[#allocation2 + $0x93] sm:$0xff] }
 0x36a   : > { %v4428_v54 = vpop.f32.mrf.mxu1  ;;  %v4653_v53 = vpop.f32.mrf.mxu0  ;;  %5247 = vmatmul.mubr.f32.gmra.mxu1 %v1771_v8  ;;  %5472 = vmatmul.mubr.f32.gmra.mxu0 %v1899_v15  ;;  %v1967_v23 = vld [vmem:[#allocation2 + $0xa8] sm:$0xff]  ;;  %v3663_v30 = vld [vmem:[%s10094_s5 + $0x838] sm:$0xff] }
 0x36b   : > { %v4429_v6 = vadd.f32 %v4428_v54, %v8661_v61  ;;  %5251 = vmatprep.mubr.f32.mxu1 %v1836_v43  ;;  %5476 = vmatprep.mubr.f32.mxu0 %v1965_v12  ;;  %v1774_v54 = vld [vmem:[#allocation2 + $0x92] sm:$0xff]  ;;  %v3696_v43 = vld [vmem:[%s10094_s5 + $0x940] sm:$0xff] }
 0x36c   : > { %v4430_v47 = vpop.f32.mrf.mxu1  ;;  %v4655_v40 = vpop.f32.mrf.mxu0  ;;  %5619 = vmatprep.subr.mxu1 %v8901_v33  ;;  %5841 = vmatpush1.msra.mxu0 %v3699_v37 }
 0x36d   : > { %v9011_v45 = vadd.f32 %v4653_v53, %v4429_v6  ;;  %5620 = vmatpush1.msra.mxu1 %v3665_v31  ;;  %5842 = vmatprep.subr.mxu0 %v8901_v33  ;;  %v1902_v53 = vld [vmem:[#allocation2 + $0x94] sm:$0xff] }
 0x36e   : > { %v4433_v18 = vpop.f32.mrf.mxu1  ;;  %v4658_v61 = vpop.f32.mrf.mxu0  ;;  %5252 = vmatmul.mubr.f32.gmra.mxu1 %v1772_v3  ;;  %5477 = vmatmul.mubr.f32.gmra.mxu0 %v1900_v60  ;;  %v1839_v31 = vld [vmem:[#allocation2 + $0x9b] sm:$0xff]  ;;  %v1968_v6 = vld [vmem:[#allocation2 + $0xb0] sm:$0xff] }
 0x36f   : > { %v4434_v20 = vadd.f32 %v4433_v18, %v8672_v16  ;;  %5256 = vmatprep.mubr.f32.mxu1 %v1837_v28  ;;  %5481 = vmatprep.mubr.f32.mxu0 %v1966_v24  ;;  %v3662_v47 = vld [vmem:[%s10094_s5 + $0x830] sm:$0xff]  ;;  %v1775_v18 = vld [vmem:[#allocation2 + $0x9a] sm:$0xff] }
 0x370   : > { %v4435_v0 = vpop.f32.mrf.mxu1  ;;  %v4660_v2 = vpop.f32.mrf.mxu0  ;;  %5621 = vmatprep.subr.mxu1 %v8901_v33  ;;  %5843 = vmatpush1.msra.mxu0 %v3698_v17  ;;  %v3695_v28 = vld [vmem:[%s10094_s5 + $0x938] sm:$0xff] }
 0x371   : > { %v9022_v57 = vadd.f32 %v4658_v61, %v4434_v20  ;;  %5622 = vmatpush1.msra.mxu1 %v3664_v50  ;;  %5844 = vmatprep.subr.mxu0 %v8901_v33  ;;  %v1903_v61 = vld [vmem:[#allocation2 + $0x9c] sm:$0xff]  ;;  %v1840_v50 = vld [vmem:[#allocation2 + $0xab] sm:$0xff] }
 0x372   : > { %v4438_v5 = vpop.f32.mrf.mxu1  ;;  %v4663_v16 = vpop.f32.mrf.mxu0  ;;  %5257 = vmatmul.mubr.f32.gmra.mxu1 %v1773_v27  ;;  %5482 = vmatmul.mubr.f32.gmra.mxu0 %v1901_v7  ;;  %v1969_v20 = vld [vmem:[#allocation2 + $0xc0] sm:$0xff]  ;;  %v3661_v0 = vld [vmem:[%s10094_s5 + $0x828] sm:$0xff] }
 0x373   : > { %v4439_v39 = vadd.f32 %v4438_v5, %v8683_v13  ;;  %5261 = vmatprep.mubr.f32.mxu1 %v1838_v46  ;;  %5486 = vmatprep.mubr.f32.mxu0 %v1967_v23  ;;  %v1776_v5 = vld [vmem:[#allocation2 + $0xaa] sm:$0xff] }
 0x374   : > { %v4440_v8 = vpop.f32.mrf.mxu1  ;;  %v4665_v15 = vpop.f32.mrf.mxu0  ;;  %5623 = vmatprep.subr.mxu1 %v8901_v33  ;;  %5845 = vmatpush1.msra.mxu0 %v3697_v42  ;;  %v3694_v46 = vld [vmem:[%s10094_s5 + $0x930] sm:$0xff] }
 0x375   : > { %v9033_v37 = vadd.f32 %v4663_v16, %v4439_v39  ;;  %5624 = vmatpush1.msra.mxu1 %v3663_v30  ;;  %5846 = vmatprep.subr.mxu0 %v8901_v33  ;;  %v1904_v16 = vld [vmem:[#allocation2 + $0xac] sm:$0xff]  ;;  %v3660_v8 = vld [vmem:[%s10094_s5 + $0x820] sm:$0xff] }
 0x376   : > { %v4443_v12 = vpop.f32.mrf.mxu1  ;;  %v4668_v13 = vpop.f32.mrf.mxu0  ;;  %5262 = vmatmul.mubr.f32.gmra.mxu1 %v1774_v54  ;;  %5487 = vmatmul.mubr.f32.gmra.mxu0 %v1902_v53  ;;  %v1841_v30 = vld [vmem:[#allocation2 + $0xb3] sm:$0xff]  ;;  %v1970_v39 = vld [vmem:[#allocation2 + $0xc8] sm:$0xff] }
 0x377   : > { %v4444_v40 = vadd.f32 %v4443_v12, %v8694_v9  ;;  %5266 = vmatprep.mubr.f32.mxu1 %v1839_v31  ;;  %5491 = vmatprep.mubr.f32.mxu0 %v1968_v6  ;;  %v1777_v12 = vld [vmem:[#allocation2 + $0xb2] sm:$0xff]  ;;  %v3693_v31 = vld [vmem:[%s10094_s5 + $0x928] sm:$0xff] }
 0x378   : > { %v4445_v3 = vpop.f32.mrf.mxu1  ;;  %v4670_v60 = vpop.f32.mrf.mxu0  ;;  %5625 = vmatprep.subr.mxu1 %v8901_v33  ;;  %5847 = vmatpush1.msra.mxu0 %v3696_v43 }
 0x379   : > { %v9044_v17 = vadd.f32 %v4668_v13, %v4444_v40  ;;  %5626 = vmatpush1.msra.mxu1 %v3662_v47  ;;  %5848 = vmatprep.subr.mxu0 %v8901_v33  ;;  %v1905_v13 = vld [vmem:[#allocation2 + $0xb4] sm:$0xff]  ;;  %v1842_v47 = vld [vmem:[#allocation2 + $0xc3] sm:$0xff] }
 0x37a   : > { %v4448_v24 = vpop.f32.mrf.mxu1  ;;  %v4673_v9 = vpop.f32.mrf.mxu0  ;;  %5267 = vmatmul.mubr.f32.gmra.mxu1 %v1775_v18  ;;  %5492 = vmatmul.mubr.f32.gmra.mxu0 %v1903_v61  ;;  %v1971_v40 = vld [vmem:[#allocation2 + $0xd8] sm:$0xff] }
 0x37b   : > { %v4449_v2 = vadd.f32 %v4448_v24, %v8705_v48  ;;  %5271 = vmatprep.mubr.f32.mxu1 %v1840_v50  ;;  %5496 = vmatprep.mubr.f32.mxu0 %v1969_v20  ;;  %v3659_v3 = vld [vmem:[%s10094_s5 + $0x818] sm:$0xff]  ;;  %v1778_v24 = vld [vmem:[#allocation2 + $0xc2] sm:$0xff] }
 0x37c   : > { %v4450_v27 = vpop.f32.mrf.mxu1  ;;  %v4675_v7 = vpop.f32.mrf.mxu0  ;;  %5627 = vmatprep.subr.mxu1 %v8901_v33  ;;  %5849 = vmatpush1.msra.mxu0 %v3695_v28  ;;  %v3692_v50 = vld [vmem:[%s10094_s5 + $0x920] sm:$0xff] }
 0x37d   : > { %v9055_v42 = vadd.f32 %v4673_v9, %v4449_v2  ;;  %5628 = vmatpush1.msra.mxu1 %v3661_v0  ;;  %5850 = vmatprep.subr.mxu0 %v8901_v33  ;;  %v1906_v9 = vld [vmem:[#allocation2 + $0xc4] sm:$0xff]  ;;  %v3658_v27 = vld [vmem:[%s10094_s5 + $0x810] sm:$0xff] }
 0x37e   : > { %v4453_v23 = vpop.f32.mrf.mxu1  ;;  %v4678_v48 = vpop.f32.mrf.mxu0  ;;  %5272 = vmatmul.mubr.f32.gmra.mxu1 %v1776_v5  ;;  %5497 = vmatmul.mubr.f32.gmra.mxu0 %v1904_v16  ;;  %v1843_v0 = vld [vmem:[#allocation2 + $0xcb] sm:$0xff]  ;;  %v1972_v2 = vld [vmem:[#allocation2 + $0xe0] sm:$0xff] }
 0x37f   : > { %v4454_v15 = vadd.f32 %v4453_v23, %v8716_v41  ;;  %5276 = vmatprep.mubr.f32.mxu1 %v1841_v30  ;;  %5501 = vmatprep.mubr.f32.mxu0 %v1970_v39  ;;  %v1779_v23 = vld [vmem:[#allocation2 + $0xca] sm:$0xff]  ;;  %v3691_v30 = vld [vmem:[%s10094_s5 + $0x918] sm:$0xff] }
 0x380   : > { %v4455_v54 = vpop.f32.mrf.mxu1  ;;  %v4680_v53 = vpop.f32.mrf.mxu0  ;;  %5629 = vmatprep.subr.mxu1 %v8901_v33  ;;  %5851 = vmatpush1.msra.mxu0 %v3694_v46 }
 0x381   : > { %v9066_v43 = vadd.f32 %v4678_v48, %v4454_v15  ;;  %5630 = vmatpush1.msra.mxu1 %v3660_v8  ;;  %5852 = vmatprep.subr.mxu0 %v8901_v33  ;;  %v1907_v48 = vld [vmem:[#allocation2 + $0xcc] sm:$0xff]  ;;  %v1844_v8 = vld [vmem:[#allocation2 + $0xdb] sm:$0xff] }
 0x382   : > { %v4458_v6 = vpop.f32.mrf.mxu1  ;;  %v4683_v41 = vpop.f32.mrf.mxu0  ;;  %5277 = vmatmul.mubr.f32.gmra.mxu1 %v1777_v12  ;;  %5502 = vmatmul.mubr.f32.gmra.mxu0 %v1905_v13  ;;  %v1973_v15 = vld [vmem:[#allocation2 + $0xf0] sm:$0xff]  ;;  %v3657_v54 = vld [vmem:[%s10094_s5 + $0x808] sm:$0xff] }
 0x383   : > { %v4459_v60 = vadd.f32 %v4458_v6, %v8727_v11  ;;  %5281 = vmatprep.mubr.f32.mxu1 %v1842_v47  ;;  %5506 = vmatprep.mubr.f32.mxu0 %v1971_v40  ;;  %v1780_v6 = vld [vmem:[#allocation2 + $0xda] sm:$0xff]  ;;  %v3690_v47 = vld [vmem:[%s10094_s5 + $0x910] sm:$0xff] }
 0x384   : > { %v4460_v18 = vpop.f32.mrf.mxu1  ;;  %v4685_v61 = vpop.f32.mrf.mxu0  ;;  %5631 = vmatprep.subr.mxu1 %v8901_v33  ;;  %5853 = vmatpush1.msra.mxu0 %v3693_v31 }
 0x385   : > { %v9077_v28 = vadd.f32 %v4683_v41, %v4459_v60  ;;  %5632 = vmatpush1.msra.mxu1 %v3659_v3  ;;  %5854 = vmatprep.subr.mxu0 %v8901_v33  ;;  %v1908_v41 = vld [vmem:[#allocation2 + $0xdc] sm:$0xff] }
 0x386   : > { %v4463_v20 = vpop.f32.mrf.mxu1  ;;  %v4688_v11 = vpop.f32.mrf.mxu0  ;;  %5282 = vmatmul.mubr.f32.gmra.mxu1 %v1778_v24  ;;  %5507 = vmatmul.mubr.f32.gmra.mxu0 %v1906_v9  ;;  %v1845_v3 = vld [vmem:[#allocation2 + $0xe3] sm:$0xff]  ;;  %v1974_v60 = vld [vmem:[#allocation2 + $0xf8] sm:$0xff] }
 0x387   : > { %v4464_v7 = vadd.f32 %v4463_v20, %v8738_v14  ;;  %5286 = vmatprep.mubr.f32.mxu1 %v1843_v0  ;;  %5511 = vmatprep.mubr.f32.mxu0 %v1972_v2  ;;  %v3656_v18 = vld [vmem:[%s10094_s5 + $0x800] sm:$0xff]  ;;  %v3689_v0 = vld [vmem:[%s10094_s5 + $0x908] sm:$0xff] }
 0x388   : > { %v4465_v5 = vpop.f32.mrf.mxu1  ;;  %v4690_v16 = vpop.f32.mrf.mxu0  ;;  %5633 = vmatprep.subr.mxu1 %v8901_v33  ;;  %5855 = vmatpush1.msra.mxu0 %v3692_v50  ;;  %v1781_v20 = vld [vmem:[#allocation2 + $0xe2] sm:$0xff] }
 0x389   : > { %v9088_v46 = vadd.f32 %v4688_v11, %v4464_v7  ;;  %5634 = vmatpush1.msra.mxu1 %v3658_v27  ;;  %5856 = vmatprep.subr.mxu0 %v8901_v33  ;;  %v1909_v11 = vld [vmem:[#allocation2 + $0xe4] sm:$0xff]  ;;  %v1846_v27 = vld [vmem:[#allocation2 + $0xf3] sm:$0xff] }
 0x38a   : > { %v4468_v39 = vpop.f32.mrf.mxu1  ;;  %v4693_v14 = vpop.f32.mrf.mxu0  ;;  %5287 = vmatmul.mubr.f32.gmra.mxu1 %v1779_v23  ;;  %5512 = vmatmul.mubr.f32.gmra.mxu0 %v1907_v48  ;;  %v1975_v7 = vld [vmem:[#allocation2 + $0x108] sm:$0xff]  ;;  %v3687_v5 = vld [vmem:[%s10094_s5 + $0x8f8] sm:$0xff] }
 0x38b   : > { %v4469_v53 = vadd.f32 %v4468_v39, %v8749_v52  ;;  %5291 = vmatprep.mubr.f32.mxu1 %v1844_v8  ;;  %5516 = vmatprep.mubr.f32.mxu0 %v1973_v15  ;;  %v1782_v39 = vld [vmem:[#allocation2 + $0xf2] sm:$0xff]  ;;  %v3688_v8 = vld [vmem:[%s10094_s5 + $0x900] sm:$0xff] }
 0x38c   : > { %v4470_v12 = vpop.f32.mrf.mxu1  ;;  %v4695_v13 = vpop.f32.mrf.mxu0  ;;  %5635 = vmatprep.subr.mxu1 %v8901_v33  ;;  %5857 = vmatpush1.msra.mxu0 %v3691_v30 }
 0x38d   : > { %v9099_v31 = vadd.f32 %v4693_v14, %v4469_v53  ;;  %5636 = vmatpush1.msra.mxu1 %v3657_v54  ;;  %5858 = vmatprep.subr.mxu0 %v8901_v33  ;;  %v1910_v14 = vld [vmem:[#allocation2 + $0xf4] sm:$0xff] }
 0x38e   : > { %v4473_v40 = vpop.f32.mrf.mxu1  ;;  %v4698_v52 = vpop.f32.mrf.mxu0  ;;  %5292 = vmatmul.mubr.f32.gmra.mxu1 %v1780_v6  ;;  %5517 = vmatmul.mubr.f32.gmra.mxu0 %v1908_v41  ;;  %v1847_v54 = vld [vmem:[#allocation2 + $0xfb] sm:$0xff]  ;;  %v1976_v53 = vld [vmem:[#allocation2 + $0x110] sm:$0xff] }
 0x38f   : > { %v4474_v61 = vadd.f32 %v4473_v40, %v8760_v10  ;;  %5296 = vmatprep.mubr.f32.mxu1 %v1845_v3  ;;  %5521 = vmatprep.mubr.f32.mxu0 %v1974_v60  ;;  %v3686_v12 = vld [vmem:[%s10094_s5 + $0x8f0] sm:$0xff]  ;;  %v1783_v40 = vld [vmem:[#allocation2 + $0xfa] sm:$0xff] }
 0x390   : > { %v4475_v24 = vpop.f32.mrf.mxu1  ;;  %v4700_v9 = vpop.f32.mrf.mxu0  ;;  %5637 = vmatprep.subr.mxu1 %v8901_v33  ;;  %5859 = vmatpush1.msra.mxu0 %v3690_v47  ;;  %v3719_v3 = vld [vmem:[%s10094_s5 + $0x9f8] sm:$0xff] }
 0x391   : > { %v9110_v50 = vadd.f32 %v4698_v52, %v4474_v61  ;;  %5638 = vmatpush1.msra.mxu1 %v3656_v18  ;;  %5860 = vmatprep.subr.mxu0 %v8901_v33  ;;  %v1911_v52 = vld [vmem:[#allocation2 + $0xfc] sm:$0xff]  ;;  %v1848_v18 = vld [vmem:[#allocation2 + $0x10b] sm:$0xff] }
 0x392   : > { %v4478_v2 = vpop.f32.mrf.mxu1  ;;  %v4703_v10 = vpop.f32.mrf.mxu0  ;;  %5297 = vmatmul.mubr.f32.gmra.mxu1 %v1781_v20  ;;  %5522 = vmatmul.mubr.f32.gmra.mxu0 %v1909_v11  ;;  %v1977_v61 = vld [vmem:[#allocation2 + $0x120] sm:$0xff]  ;;  %v3685_v24 = vld [vmem:[%s10094_s5 + $0x8e8] sm:$0xff] }
 0x393   : > { %v4479_v16 = vadd.f32 %v4478_v2, %v8771_v36  ;;  %5301 = vmatprep.mubr.f32.mxu1 %v1846_v27  ;;  %5526 = vmatprep.mubr.f32.mxu0 %v1975_v7  ;;  %v1784_v2 = vld [vmem:[#allocation2 + $0x10a] sm:$0xff] }
 0x394   : > { %v4480_v23 = vpop.f32.mrf.mxu1  ;;  %v4705_v48 = vpop.f32.mrf.mxu0  ;;  %5639 = vmatprep.subr.mxu1 %v8901_v33  ;;  %5861 = vmatpush1.msra.mxu0 %v3689_v0  ;;  %v3718_v27 = vld [vmem:[%s10094_s5 + $0x9f0] sm:$0xff] }
 0x395   : > { %v9121_v30 = vadd.f32 %v4703_v10, %v4479_v16  ;;  %5640 = vmatpush2.msra.mxu1 %v3687_v5  ;;  %5862 = vmatprep.subr.mxu0 %v8901_v33  ;;  %v1912_v10 = vld [vmem:[#allocation2 + $0x10c] sm:$0xff]  ;;  %v3684_v23 = vld [vmem:[%s10094_s5 + $0x8e0] sm:$0xff] }
 0x396   : > { %v4773_v15 = vpop.f32.mrf.mxu1  ;;  %v4998_v36 = vpop.f32.mrf.mxu0  ;;  %5302 = vmatmul.mubr.f32.gmra.mxu1 %v1782_v39  ;;  %5527 = vmatmul.mubr.f32.gmra.mxu0 %v1910_v14  ;;  %v1849_v5 = vld [vmem:[#allocation2 + $0x113] sm:$0xff]  ;;  %v1978_v16 = vld [vmem:[#allocation2 + $0x128] sm:$0xff] }
 0x397   : > { %v4774_v13 = vadd.f32 %v4773_v15, %v8782_v49  ;;  %5306 = vmatprep.mubr.f32.mxu1 %v1847_v54  ;;  %5531 = vmatprep.mubr.f32.mxu0 %v1976_v53  ;;  %v1785_v15 = vld [vmem:[#allocation2 + $0x112] sm:$0xff]  ;;  %v3717_v54 = vld [vmem:[%s10094_s5 + $0x9e8] sm:$0xff] }
 0x398   : > { %v4775_v6 = vpop.f32.mrf.mxu1  ;;  %v5000_v41 = vpop.f32.mrf.mxu0  ;;  %5641 = vmatprep.subr.mxu1 %v8901_v33  ;;  %5863 = vmatpush1.msra.mxu0 %v3688_v8 }
 0x399   : > { %v9132_v47 = vadd.f32 %v4998_v36, %v4774_v13  ;;  %5642 = vmatpush2.msra.mxu1 %v3686_v12  ;;  %5864 = vmatprep.subr.mxu0 %v8901_v33  ;;  %v1913_v36 = vld [vmem:[#allocation2 + $0x114] sm:$0xff]  ;;  %v1850_v12 = vld [vmem:[#allocation2 + $0x123] sm:$0xff] }
 0x39a   : > { %v4778_v60 = vpop.f32.mrf.mxu1  ;;  %v5003_v49 = vpop.f32.mrf.mxu0  ;;  %5307 = vmatmul.mubr.f32.gmra.mxu1 %v1783_v40  ;;  %5532 = vmatmul.mubr.f32.gmra.mxu0 %v1911_v52  ;;  %v1979_v13 = vld [vmem:[#allocation2 + $0x138] sm:$0xff] }
 0x39b   : > { %v4779_v9 = vadd.f32 %v4778_v60, %v8793_v59  ;;  %5311 = vmatprep.mubr.f32.mxu1 %v1848_v18  ;;  %5536 = vmatprep.mubr.f32.mxu0 %v1977_v61  ;;  %v3683_v6 = vld [vmem:[%s10094_s5 + $0x8d8] sm:$0xff]  ;;  %v1786_v60 = vld [vmem:[#allocation2 + $0x122] sm:$0xff] }
 0x39c   : > { %v4780_v20 = vpop.f32.mrf.mxu1  ;;  %v5005_v11 = vpop.f32.mrf.mxu0  ;;  %5643 = vmatprep.subr.mxu1 %v8901_v33  ;;  %5865 = vmatpush2.msra.mxu0 %v3719_v3  ;;  %v3716_v18 = vld [vmem:[%s10094_s5 + $0x9e0] sm:$0xff] }
 0x39d   : > { %v9143_v0 = vadd.f32 %v5003_v49, %v4779_v9  ;;  %5644 = vmatpush2.msra.mxu1 %v3685_v24  ;;  %5866 = vmatprep.subr.mxu0 %v8901_v33  ;;  %v1914_v49 = vld [vmem:[#allocation2 + $0x124] sm:$0xff]  ;;  %v3682_v20 = vld [vmem:[%s10094_s5 + $0x8d0] sm:$0xff] }
 0x39e   : > { %v4783_v7 = vpop.f32.mrf.mxu1  ;;  %v5008_v59 = vpop.f32.mrf.mxu0  ;;  %5312 = vmatmul.mubr.f32.gmra.mxu1 %v1784_v2  ;;  %5537 = vmatmul.mubr.f32.gmra.mxu0 %v1912_v10  ;;  %v1851_v24 = vld [vmem:[#allocation2 + $0x12b] sm:$0xff]  ;;  %v1980_v9 = vld [vmem:[#allocation2 + $0x140] sm:$0xff] }
 0x39f   : > { %v4784_v48 = vadd.f32 %v4783_v7, %v8804_v25  ;;  %5316 = vmatprep.mubr.f32.mxu1 %v1849_v5  ;;  %5541 = vmatprep.mubr.f32.mxu0 %v1978_v16  ;;  %v1787_v7 = vld [vmem:[#allocation2 + $0x12a] sm:$0xff]  ;;  %v3715_v5 = vld [vmem:[%s10094_s5 + $0x9d8] sm:$0xff] }
 0x3a0   : > { %v4785_v39 = vpop.f32.mrf.mxu1  ;;  %v5010_v14 = vpop.f32.mrf.mxu0  ;;  %5645 = vmatprep.subr.mxu1 %v8901_v33  ;;  %5867 = vmatpush2.msra.mxu0 %v3718_v27 }
 0x3a1   : > { %v9154_v8 = vadd.f32 %v5008_v59, %v4784_v48  ;;  %5646 = vmatpush2.msra.mxu1 %v3684_v23  ;;  %5868 = vmatprep.subr.mxu0 %v8901_v33  ;;  %v1915_v59 = vld [vmem:[#allocation2 + $0x12c] sm:$0xff]  ;;  %v1852_v23 = vld [vmem:[#allocation2 + $0x13b] sm:$0xff] }
 0x3a2   : > { %v4788_v53 = vpop.f32.mrf.mxu1  ;;  %v5013_v25 = vpop.f32.mrf.mxu0  ;;  %5317 = vmatmul.mubr.f32.gmra.mxu1 %v1785_v15  ;;  %5542 = vmatmul.mubr.f32.gmra.mxu0 %v1913_v36  ;;  %v1981_v48 = vld [vmem:[#allocation2 + $0x150] sm:$0xff]  ;;  %v3681_v39 = vld [vmem:[%s10094_s5 + $0x8c8] sm:$0xff]  ;;  %v9186_v36 = vld [vmem:[#allocation2] sm:$0xff] }
 0x3a3   : > { %v4789_v41 = vadd.f32 %v4788_v53, %v8815_v56  ;;  %5321 = vmatprep.mubr.f32.mxu1 %v1850_v12  ;;  %5546 = vmatprep.mubr.f32.mxu0 %v1979_v13  ;;  %v1788_v53 = vld [vmem:[#allocation2 + $0x13a] sm:$0xff] }
 0x3a4   : > { %v4790_v40 = vpop.f32.mrf.mxu1  ;;  %v5015_v52 = vpop.f32.mrf.mxu0  ;;  %5647 = vmatprep.subr.mxu1 %v8901_v33  ;;  %5869 = vmatpush2.msra.mxu0 %v3717_v54 }
 0x3a5   : > { %v9165_v3 = vadd.f32 %v5013_v25, %v4789_v41  ;;  %5648 = vmatpush2.msra.mxu1 %v3683_v6  ;;  %5870 = vmatprep.subr.mxu0 %v8901_v33  ;;  %v1916_v25 = vld [vmem:[#allocation2 + $0x13c] sm:$0xff] }
 0x3a6   : > { %v4793_v61 = vpop.f32.mrf.mxu1  ;;  %v5018_v56 = vpop.f32.mrf.mxu0  ;;  %5322 = vmatmul.mubr.f32.gmra.mxu1 %v1786_v60  ;;  %5547 = vmatmul.mubr.f32.gmra.mxu0 %v1914_v49  ;;  %v1853_v6 = vld [vmem:[#allocation2 + $0x143] sm:$0xff]  ;;  %v1982_v41 = vld [vmem:[#allocation2 + $0x158] sm:$0xff] }
 0x3a7   : > { %v4794_v11 = vadd.f32 %v4793_v61, %v8826_v34  ;;  %5326 = vmatprep.mubr.f32.mxu1 %v1851_v24  ;;  %5551 = vmatprep.mubr.f32.mxu0 %v1980_v9  ;;  %v3680_v40 = vld [vmem:[%s10094_s5 + $0x8c0] sm:$0xff]  ;;  %v3713_v24 = vld [vmem:[%s10094_s5 + $0x9c8] sm:$0xff] }
 0x3a8   : > { %v4795_v2 = vpop.f32.mrf.mxu1  ;;  %v5020_v10 = vpop.f32.mrf.mxu0  ;;  %5649 = vmatprep.subr.mxu1 %v8901_v33  ;;  %5871 = vmatpush2.msra.mxu0 %v3716_v18  ;;  %v1789_v61 = vld [vmem:[#allocation2 + $0x142] sm:$0xff] }
 0x3a9   : > { %v9176_v27 = vadd.f32 %v5018_v56, %v4794_v11  ;;  %5650 = vmatpush2.msra.mxu1 %v3682_v20  ;;  %5872 = vmatprep.subr.mxu0 %v8901_v33  ;;  %v1917_v56 = vld [vmem:[#allocation2 + $0x144] sm:$0xff]  ;;  %v1854_v20 = vld [vmem:[#allocation2 + $0x153] sm:$0xff] }
 0x3aa   : > { %v4798_v16 = vpop.f32.mrf.mxu1  ;;  %v5023_v34 = vpop.f32.mrf.mxu0  ;;  %5327 = vmatmul.mubr.f32.gmra.mxu1 %v1787_v7  ;;  %5552 = vmatmul.mubr.f32.gmra.mxu0 %v1915_v59  ;;  %v1983_v11 = vld [vmem:[#allocation2 + $0x168] sm:$0xff]  ;;  %v3679_v2 = vld [vmem:[%s10094_s5 + $0x8b8] sm:$0xff] }
 0x3ab   : > { %v4799_v14 = vadd.f32 %v4798_v16, %v8837_v62  ;;  %5331 = vmatprep.mubr.f32.mxu1 %v1852_v23  ;;  %5556 = vmatprep.mubr.f32.mxu0 %v1981_v48  ;;  %v3714_v62 = vld [vmem:[%s10094_s5 + $0x9d0] sm:$0xff]  ;;  %v3712_v23 = vld [vmem:[%s10094_s5 + $0x9c0] sm:$0xff] }
 0x3ac   : > { %v4800_v15 = vpop.f32.mrf.mxu1  ;;  %v5025_v33 = vpop.f32.mrf.mxu0  ;;  %5651 = vmatprep.subr.mxu1 %v9186_v36  ;;  %5873 = vmatpush2.msra.mxu0 %v3715_v5  ;;  %v1790_v16 = vld [vmem:[#allocation2 + $0x152] sm:$0xff] }
 0x3ad   : > { %v9189_v54 = vadd.f32 %v5023_v34, %v4799_v14  ;;  %5652 = vmatpush2.msra.mxu1 %v3681_v39  ;;  %5874 = vmatprep.subr.mxu0 %v9186_v36  ;;  %v1918_v34 = vld [vmem:[#allocation2 + $0x154] sm:$0xff] }
 0x3ae   : > { %v4803_v12 = vpop.f32.mrf.mxu1  ;;  %v5028_v13 = vpop.f32.mrf.mxu0  ;;  %5332 = vmatmul.mubr.f32.gmra.mxu1 %v1788_v53  ;;  %5557 = vmatmul.mubr.f32.gmra.mxu0 %v1916_v25  ;;  %v1855_v39 = vld [vmem:[#allocation2 + $0x15b] sm:$0xff]  ;;  %v1984_v14 = vld [vmem:[#allocation2 + $0x170] sm:$0xff] }
 0x3af   : > { %v4804_v52 = vadd.f32 %v4803_v12, %v8848_v38  ;;  %5336 = vmatprep.mubr.f32.mxu1 %v1853_v6  ;;  %5561 = vmatprep.mubr.f32.mxu0 %v1982_v41  ;;  %v3678_v15 = vld [vmem:[%s10094_s5 + $0x8b0] sm:$0xff]  ;;  %v1791_v12 = vld [vmem:[#allocation2 + $0x15a] sm:$0xff] }
 0x3b0   : > { %v4805_v60 = vpop.f32.mrf.mxu1  ;;  %v5030_v49 = vpop.f32.mrf.mxu0  ;;  %5653 = vmatprep.subr.mxu1 %v9186_v36  ;;  %5875 = vmatpush2.msra.mxu0 %v3714_v62  ;;  %v3711_v6 = vld [vmem:[%s10094_s5 + $0x9b8] sm:$0xff] }
 0x3b1   : > { %v9200_v18 = vadd.f32 %v5028_v13, %v4804_v52  ;;  %5654 = vmatpush2.msra.mxu1 %v3680_v40  ;;  %5876 = vmatprep.subr.mxu0 %v9186_v36  ;;  %v1919_v13 = vld [vmem:[#allocation2 + $0x15c] sm:$0xff]  ;;  %v1856_v40 = vld [vmem:[#allocation2 + $0x16b] sm:$0xff] }
 0x3b2   : > { %v4808_v9 = vpop.f32.mrf.mxu1  ;;  %v5033_v38 = vpop.f32.mrf.mxu0  ;;  %5337 = vmatmul.mubr.f32.gmra.mxu1 %v1789_v61  ;;  %5562 = vmatmul.mubr.f32.gmra.mxu0 %v1917_v56  ;;  %v1985_v52 = vld [vmem:[#allocation2 + $0x180] sm:$0xff]  ;;  %v3677_v60 = vld [vmem:[%s10094_s5 + $0x8a8] sm:$0xff] }
 0x3b3   : > { %v4809_v10 = vadd.f32 %v4808_v9, %v8859_v58  ;;  %5341 = vmatprep.mubr.f32.mxu1 %v1854_v20  ;;  %5566 = vmatprep.mubr.f32.mxu0 %v1983_v11  ;;  %v1792_v9 = vld [vmem:[#allocation2 + $0x16a] sm:$0xff] }
 0x3b4   : > { %v4810_v7 = vpop.f32.mrf.mxu1  ;;  %v5035_v59 = vpop.f32.mrf.mxu0  ;;  %5655 = vmatprep.subr.mxu1 %v9186_v36  ;;  %5877 = vmatpush2.msra.mxu0 %v3713_v24  ;;  %v3710_v20 = vld [vmem:[%s10094_s5 + $0x9b0] sm:$0xff] }
 0x3b5   : > { %v9211_v5 = vadd.f32 %v5033_v38, %v4809_v10  ;;  %5656 = vmatpush2.msra.mxu1 %v3679_v2  ;;  %5878 = vmatprep.subr.mxu0 %v9186_v36  ;;  %v1920_v38 = vld [vmem:[#allocation2 + $0x16c] sm:$0xff]  ;;  %v3676_v7 = vld [vmem:[%s10094_s5 + $0x8a0] sm:$0xff] }
 0x3b6   : > { %v4813_v48 = vpop.f32.mrf.mxu1  ;;  %v5038_v58 = vpop.f32.mrf.mxu0  ;;  %5342 = vmatmul.mubr.f32.gmra.mxu1 %v1790_v16  ;;  %5567 = vmatmul.mubr.f32.gmra.mxu0 %v1918_v34  ;;  %v1857_v2 = vld [vmem:[#allocation2 + $0x173] sm:$0xff]  ;;  %v1986_v10 = vld [vmem:[#allocation2 + $0x188] sm:$0xff] }
 0x3b7   : > { %v4814_v33 = vadd.f32 %v4813_v48, %v8870_v55  ;;  %5346 = vmatprep.mubr.f32.mxu1 %v1855_v39  ;;  %5571 = vmatprep.mubr.f32.mxu0 %v1984_v14  ;;  %v1793_v48 = vld [vmem:[#allocation2 + $0x172] sm:$0xff]  ;;  %v3709_v39 = vld [vmem:[%s10094_s5 + $0x9a8] sm:$0xff] }
 0x3b8   : > { %v4815_v53 = vpop.f32.mrf.mxu1  ;;  %v5040_v25 = vpop.f32.mrf.mxu0  ;;  %5657 = vmatprep.subr.mxu1 %v9186_v36  ;;  %5879 = vmatpush2.msra.mxu0 %v3712_v23 }
 0x3b9   : > { %v9222_v62 = vadd.f32 %v5038_v58, %v4814_v33  ;;  %5658 = vmatpush2.msra.mxu1 %v3678_v15  ;;  %5880 = vmatprep.subr.mxu0 %v9186_v36  ;;  %v1921_v58 = vld [vmem:[#allocation2 + $0x174] sm:$0xff]  ;;  %v1858_v15 = vld [vmem:[#allocation2 + $0x183] sm:$0xff] }
 0x3ba   : > { %v4818_v41 = vpop.f32.mrf.mxu1  ;;  %v5043_v55 = vpop.f32.mrf.mxu0  ;;  %5347 = vmatmul.mubr.f32.gmra.mxu1 %v1791_v12  ;;  %5572 = vmatmul.mubr.f32.gmra.mxu0 %v1919_v13  ;;  %v1987_v33 = vld [vmem:[#allocation2 + $0x198] sm:$0xff] }
 0x3bb   : > { %v4819_v49 = vadd.f32 %v4818_v41, %v8881_v22  ;;  %5351 = vmatprep.mubr.f32.mxu1 %v1856_v40  ;;  %5576 = vmatprep.mubr.f32.mxu0 %v1985_v52  ;;  %v3675_v53 = vld [vmem:[%s10094_s5 + $0x898] sm:$0xff]  ;;  %v1794_v41 = vld [vmem:[#allocation2 + $0x182] sm:$0xff] }
 0x3bc   : > { %v4820_v61 = vpop.f32.mrf.mxu1  ;;  %v5045_v56 = vpop.f32.mrf.mxu0  ;;  %5659 = vmatprep.subr.mxu1 %v9186_v36  ;;  %5881 = vmatpush2.msra.mxu0 %v3711_v6  ;;  %v3708_v40 = vld [vmem:[%s10094_s5 + $0x9a0] sm:$0xff] }
 0x3bd   : > { %v9233_v24 = vadd.f32 %v5043_v55, %v4819_v49  ;;  %5660 = vmatpush2.msra.mxu1 %v3677_v60  ;;  %5882 = vmatprep.subr.mxu0 %v9186_v36  ;;  %v1922_v55 = vld [vmem:[#allocation2 + $0x184] sm:$0xff]  ;;  %v3674_v61 = vld [vmem:[%s10094_s5 + $0x890] sm:$0xff] }
 0x3be   : > { %v4823_v11 = vpop.f32.mrf.mxu1  ;;  %v5048_v22 = vpop.f32.mrf.mxu0  ;;  %5352 = vmatmul.mubr.f32.gmra.mxu1 %v1792_v9  ;;  %5577 = vmatmul.mubr.f32.gmra.mxu0 %v1920_v38  ;;  %v1859_v60 = vld [vmem:[#allocation2 + $0x18b] sm:$0xff]  ;;  %v1988_v49 = vld [vmem:[#allocation2 + $0x1a0] sm:$0xff] }
 0x3bf   : > { %v4824_v59 = vadd.f32 %v4823_v11, %v8892_v26  ;;  %5356 = vmatprep.mubr.f32.mxu1 %v1857_v2  ;;  %5581 = vmatprep.mubr.f32.mxu0 %v1986_v10  ;;  %v1795_v11 = vld [vmem:[#allocation2 + $0x18a] sm:$0xff]  ;;  %v3707_v2 = vld [vmem:[%s10094_s5 + $0x998] sm:$0xff] }
 0x3c0   : > { %v4825_v16 = vpop.f32.mrf.mxu1  ;;  %v5050_v34 = vpop.f32.mrf.mxu0  ;;  %5661 = vmatprep.subr.mxu1 %v9186_v36  ;;  %5883 = vmatpush2.msra.mxu0 %v3710_v20 }
 0x3c1   : > { %v9244_v23 = vadd.f32 %v5048_v22, %v4824_v59  ;;  %5662 = vmatpush2.msra.mxu1 %v3676_v7  ;;  %5884 = vmatprep.subr.mxu0 %v9186_v36  ;;  %v1923_v22 = vld [vmem:[#allocation2 + $0x18c] sm:$0xff]  ;;  %v1860_v7 = vld [vmem:[#allocation2 + $0x19b] sm:$0xff] }
 0x3c2   : > { %v4828_v14 = vpop.f32.mrf.mxu1  ;;  %v5053_v26 = vpop.f32.mrf.mxu0  ;;  %5357 = vmatmul.mubr.f32.gmra.mxu1 %v1793_v48  ;;  %5582 = vmatmul.mubr.f32.gmra.mxu0 %v1921_v58  ;;  %v3673_v59 = vld [vmem:[%s10094_s5 + $0x888] sm:$0xff] }
 0x3c3   : > { %v4829_v25 = vadd.f32 %v4828_v14, %v8905_v35  ;;  %5361 = vmatprep.mubr.f32.mxu1 %v1858_v15  ;;  %5586 = vmatprep.mubr.f32.mxu0 %v1987_v33  ;;  %v1924_v14 = vld [vmem:[#allocation2 + $0x19c] sm:$0xff] }
 0x3c4   : > { %v4830_v12 = vpop.f32.mrf.mxu1  ;;  %v5055_v13 = vpop.f32.mrf.mxu0  ;;  %5663 = vmatprep.subr.mxu1 %v9186_v36  ;;  %5885 = vmatpush2.msra.mxu0 %v3709_v39  ;;  %v1796_v39 = vld [vmem:[#allocation2 + $0x19a] sm:$0xff]  ;;  %v1861_v33 = vld [vmem:[#allocation2 + $0x1a3] sm:$0xff] }
 0x3c5   : > { %v9255_v6 = vadd.f32 %v5053_v26, %v4829_v25  ;;  %5664 = vmatpush2.msra.mxu1 %v3675_v53  ;;  %5886 = vmatprep.subr.mxu0 %v9186_v36  ;;  %v3706_v26 = vld [vmem:[%s10094_s5 + $0x990] sm:$0xff]  ;;  %v3672_v53 = vld [vmem:[%s10094_s5 + $0x880] sm:$0xff] }
 0x3c6   : > { %v4833_v52 = vpop.f32.mrf.mxu1  ;;  %v5058_v35 = vpop.f32.mrf.mxu0  ;;  %5362 = vmatmul.mubr.f32.gmra.mxu1 %v1794_v41  ;;  %5587 = vmatmul.mubr.f32.gmra.mxu0 %v1922_v55  ;;  %v3705_v41 = vld [vmem:[%s10094_s5 + $0x988] sm:$0xff] }
 0x3c7   : > { %v4834_v56 = vadd.f32 %v4833_v52, %v8916_v51  ;;  %5366 = vmatprep.mubr.f32.mxu1 %v1859_v60  ;;  %5591 = vmatprep.mubr.f32.mxu0 %v1988_v49  ;;  %v1925_v52 = vld [vmem:[#allocation2 + $0x1a4] sm:$0xff] }
 0x3c8   : > { %v4835_v9 = vpop.f32.mrf.mxu1  ;;  %v5060_v38 = vpop.f32.mrf.mxu0  ;;  %5665 = vmatprep.subr.mxu1 %v9186_v36  ;;  %5887 = vmatpush2.msra.mxu0 %v3708_v40  ;;  %v1797_v40 = vld [vmem:[#allocation2 + $0x1a2] sm:$0xff]  ;;  %v2087_v60 = vld [vmem:[#allocation2 + $0x4a] sm:$0xff] }
 0x3c9   : > { %v9266_v20 = vadd.f32 %v5058_v35, %v4834_v56  ;;  %5666 = vmatpush2.msra.mxu1 %v3674_v61  ;;  %5888 = vmatprep.subr.mxu0 %v9186_v36  ;;  %v3704_v49 = vld [vmem:[%s10094_s5 + $0x980] sm:$0xff]  ;;  %v2215_v56 = vld [vmem:[#allocation2 + $0x4c] sm:$0xff] }
 0x3ca   : > { %v4838_v10 = vpop.f32.mrf.mxu1  ;;  %v5063_v51 = vpop.f32.mrf.mxu0  ;;  %5367 = vmatmul.mubr.f32.gmra.mxu1 %v1795_v11  ;;  %5592 = vmatmul.mubr.f32.gmra.mxu0 %v1923_v22  ;;  %v3735_v11 = vld [vmem:[%s10094_s5 + $0xa78] sm:$0xff] }
 0x3cb   : > { %v4839_v16 = vadd.f32 %v4838_v10, %v8927_v63  ;;  %5371 = vmatprep.mubr.f32.mxu1 %v1860_v7  ;;  %5596 = vmatprep.mubr.f32.mxu0 %v9186_v36  ;;  %v2151_v10 = vld [vmem:[#allocation2 + $0x4b] sm:$0xff] }
 0x3cc   : > { %v4840_v34 = vpop.f32.mrf.mxu1  ;;  %v5065_v48 = vpop.f32.mrf.mxu0  ;;  %5667 = vmatprep.subr.mxu1 %v9186_v36  ;;  %5889 = vmatpush2.msra.mxu0 %v3707_v2  ;;  %v2023_v2 = vld [vmem:[#allocation2 + $0x49] sm:$0xff]  ;;  %v2088_v7 = vld [vmem:[#allocation2 + $0x52] sm:$0xff] }
 0x3cd   : > { %v9278_v58 = vadd.f32 %v5063_v51, %v4839_v16  ;;  %5668 = vmatpush2.msra.mxu1 %v3673_v59  ;;  %5890 = vmatprep.subr.mxu0 %v9186_v36  ;;  %v3734_v59 = vld [vmem:[%s10094_s5 + $0xa70] sm:$0xff] }
 0x3ce   : > { %v4843_v63 = vpop.f32.mrf.mxu1  ;;  %v5068_v15 = vpop.f32.mrf.mxu0  ;;  %5372 = vmatmul.mubr.f32.gmra.mxu1 %v1796_v39  ;;  %5597 = vmatmul.mubr.f32.gmra.mxu0 %v1924_v14  ;;  %v2216_v34 = vld [vmem:[#allocation2 + $0x54] sm:$0xff] }
 0x3cf   : > { %v4844_v25 = vadd.f32 %v4843_v63, %v8938_v19  ;;  %5376 = vmatprep.mubr.f32.mxu1 %v1861_v33  ;;  %5601 = vmatprep.mubr.f32.mxu0 %v9186_v36  ;;  %v2152_v63 = vld [vmem:[#allocation2 + $0x53] sm:$0xff] }
 0x3d0   : > { %v4845_v12 = vpop.f32.mrf.mxu1  ;;  %v5070_v13 = vpop.f32.mrf.mxu0  ;;  %5669 = vmatprep.subr.mxu1 %v9186_v36  ;;  %5891 = vmatpush2.msra.mxu0 %v3706_v26  ;;  %v2024_v26 = vld [vmem:[#allocation2 + $0x51] sm:$0xff] }
 0x3d1   : > { %v9293_v55 = vadd.f32 %v5068_v15, %v4844_v25  ;;  %5670 = vmatpush2.msra.mxu1 %v3672_v53  ;;  %5892 = vmatprep.subr.mxu0 %v9186_v36  ;;  %v3767_v15 = vld [vmem:[%s10094_s5 + $0xb78] sm:$0xff]  ;;  %v2089_v53 = vld [vmem:[#allocation2 + $0x62] sm:$0xff] }
 0x3d2   : > { %v4848_v19 = vpop.f32.mrf.mxu1  ;;  %v5073_v35 = vpop.f32.mrf.mxu0  ;;  %5377 = vmatmul.mubr.f32.gmra.mxu1 %v1797_v40  ;;  %5602 = vmatmul.mubr.f32.gmra.mxu0 %v1925_v52  ;;  %v2217_v25 = vld [vmem:[#allocation2 + $0x64] sm:$0xff] }
 0x3d3   : > { %v4849_v61 = vadd.f32 %v4848_v19, %v8949_v29  ;;  %5671 = vmatprep.mubr.f32.mxu1 %v2087_v60  ;;  %5893 = vmatpush2.msra.mxu0 %v3705_v41  ;;  %v3733_v12 = vld [vmem:[%s10094_s5 + $0xa68] sm:$0xff]  ;;  %v3766_v60 = vld [vmem:[%s10094_s5 + $0xb70] sm:$0xff] }
 0x3d4   : > { %5896 = vmatprep.mubr.f32.mxu0 %v2215_v56  ;;  %v4850_v9 = vpop.f32.mrf.mxu1  ;;  %v5075_v38 = vpop.f32.mrf.mxu0  ;;  %5894 = vmatprep.subr.mxu0 %v9186_v36  ;;  %v2025_v19 = vld [vmem:[#allocation2 + $0x61] sm:$0xff]  ;;  %v2218_v56 = vld [vmem:[#allocation2 + $0x6c] sm:$0xff] }
 0x3d5   : > { %v9304_v22 = vadd.f32 %v5073_v35, %v4849_v61  ;;  %5895 = vmatpush2.msra.mxu0 %v3704_v49  ;;  %6057 = vmatprep.subr.mxu1 %v9186_v36  ;;  %v2153_v35 = vld [vmem:[#allocation2 + $0x63] sm:$0xff] }
 0x3d6   : > { %v4853_v29 = vpop.f32.mrf.mxu1  ;;  %v5078_v51 = vpop.f32.mrf.mxu0  ;;  %5672 = vmatmul.mubr.f32.vlgmr.msra.gmra.mxu1 %v2023_v2  ;;  %5897 = vmatmul.mubr.f32.vlgmr.msra.gmra.mxu0 %v2151_v10  ;;  %v2090_v61 = vld [vmem:[#allocation2 + $0x6a] sm:$0xff]  ;;  %v3732_v9 = vld [vmem:[%s10094_s5 + $0xa60] sm:$0xff] }
 0x3d7   : > { %v4854_v16 = vadd.f32 %v4853_v29, %v8956_v44  ;;  %6058 = vmatpush1.msra.mxu1 %v3735_v11  ;;  %5676 = vmatprep.mubr.f32.mxu1 %v2088_v7  ;;  %v2026_v29 = vld [vmem:[#allocation2 + $0x69] sm:$0xff] }
 0x3d8   : > { %5901 = vmatprep.mubr.f32.mxu0 %v2216_v34  ;;  %v4855_v48 = vpop.f32.mrf.mxu1  ;;  %v5080_v39 = vpop.f32.mrf.mxu0  ;;  %6059 = vmatprep.subr.mxu1 %v9186_v36  ;;  %v3765_v7 = vld [vmem:[%s10094_s5 + $0xb68] sm:$0xff]  ;;  %v2219_v34 = vld [vmem:[#allocation2 + $0x7c] sm:$0xff] }
 0x3d9   : > { %v9312_v14 = vadd.f32 %v5078_v51, %v4854_v16  ;;  %6060 = vmatpush1.msra.mxu1 %v3734_v59  ;;  %6282 = vmatprep.subr.mxu0 %v9186_v36  ;;  %v2154_v51 = vld [vmem:[#allocation2 + $0x6b] sm:$0xff]  ;;  %v2091_v16 = vld [vmem:[#allocation2 + $0x7a] sm:$0xff] }
 0x3da   : > { %v4858_v44 = vpop.f32.mrf.mxu1  ;;  %v5083_v33 = vpop.f32.mrf.mxu0  ;;  %5677 = vmatmul.mubr.f32.gmra.mxu1 %v2024_v26  ;;  %5902 = vmatmul.mubr.f32.gmra.mxu0 %v2152_v63  ;;  %v3731_v48 = vld [vmem:[%s10094_s5 + $0xa58] sm:$0xff] }
 0x3db   : > { %v4859_v13 = vadd.f32 %v4858_v44, %v8967_v21  ;;  %5681 = vmatprep.mubr.f32.mxu1 %v2089_v53  ;;  %5906 = vmatprep.mubr.f32.mxu0 %v2217_v25  ;;  %v2027_v44 = vld [vmem:[#allocation2 + $0x79] sm:$0xff] }
 0x3dc   : > { %v4860_v41 = vpop.f32.mrf.mxu1  ;;  %v5085_v40 = vpop.f32.mrf.mxu0  ;;  %6061 = vmatprep.subr.mxu1 %v9186_v36  ;;  %6283 = vmatpush1.msra.mxu0 %v3767_v15  ;;  %v3764_v53 = vld [vmem:[%s10094_s5 + $0xb60] sm:$0xff] }
 0x3dd   : > { %v9323_v52 = vadd.f32 %v5083_v33, %v4859_v13  ;;  %6062 = vmatpush1.msra.mxu1 %v3733_v12  ;;  %6284 = vmatprep.subr.mxu0 %v9186_v36  ;;  %v2155_v33 = vld [vmem:[#allocation2 + $0x7b] sm:$0xff]  ;;  %v2220_v13 = vld [vmem:[#allocation2 + $0x84] sm:$0xff]  ;;  %v3730_v41 = vld [vmem:[%s10094_s5 + $0xa50] sm:$0xff] }
 0x3de   : > { %v4863_v49 = vpop.f32.mrf.mxu1  ;;  %v5088_v21 = vpop.f32.mrf.mxu0  ;;  %5682 = vmatmul.mubr.f32.gmra.mxu1 %v2025_v19  ;;  %5907 = vmatmul.mubr.f32.gmra.mxu0 %v2153_v35  ;;  %v2092_v12 = vld [vmem:[#allocation2 + $0x82] sm:$0xff] }
 0x3df   : > { %v4864_v38 = vadd.f32 %v4863_v49, %v8978_v4  ;;  %5686 = vmatprep.mubr.f32.mxu1 %v2090_v61  ;;  %5911 = vmatprep.mubr.f32.mxu0 %v2218_v56  ;;  %v2028_v49 = vld [vmem:[#allocation2 + $0x81] sm:$0xff]  ;;  %v3763_v61 = vld [vmem:[%s10094_s5 + $0xb58] sm:$0xff] }
 0x3e0   : > { %v4865_v11 = vpop.f32.mrf.mxu1  ;;  %v5090_v2 = vpop.f32.mrf.mxu0  ;;  %6063 = vmatprep.subr.mxu1 %v9186_v36  ;;  %6285 = vmatpush1.msra.mxu0 %v3766_v60 }
 0x3e1   : > { %v9334_v10 = vadd.f32 %v5088_v21, %v4864_v38  ;;  %6064 = vmatpush1.msra.mxu1 %v3732_v9  ;;  %6286 = vmatprep.subr.mxu0 %v9186_v36  ;;  %v2156_v21 = vld [vmem:[#allocation2 + $0x83] sm:$0xff]  ;;  %v2093_v9 = vld [vmem:[#allocation2 + $0x92] sm:$0xff] }
 0x3e2   : > { %v4868_v59 = vpop.f32.mrf.mxu1  ;;  %v5093_v4 = vpop.f32.mrf.mxu0  ;;  %5687 = vmatmul.mubr.f32.gmra.mxu1 %v2026_v29  ;;  %5912 = vmatmul.mubr.f32.gmra.mxu0 %v2154_v51  ;;  %v2221_v38 = vld [vmem:[#allocation2 + $0x94] sm:$0xff]  ;;  %v3729_v11 = vld [vmem:[%s10094_s5 + $0xa48] sm:$0xff] }
 0x3e3   : > { %v4869_v39 = vadd.f32 %v4868_v59, %v8989_v1  ;;  %5691 = vmatprep.mubr.f32.mxu1 %v2091_v16  ;;  %5916 = vmatprep.mubr.f32.mxu0 %v2219_v34  ;;  %v2029_v59 = vld [vmem:[#allocation2 + $0x91] sm:$0xff] }
 0x3e4   : > { %v4870_v26 = vpop.f32.mrf.mxu1  ;;  %v5095_v63 = vpop.f32.mrf.mxu0  ;;  %6065 = vmatprep.subr.mxu1 %v9186_v36  ;;  %6287 = vmatpush1.msra.mxu0 %v3765_v7  ;;  %v3762_v16 = vld [vmem:[%s10094_s5 + $0xb50] sm:$0xff] }
 0x3e5   : > { %v9345_v15 = vadd.f32 %v5093_v4, %v4869_v39  ;;  %6066 = vmatpush1.msra.mxu1 %v3731_v48  ;;  %6288 = vmatprep.subr.mxu0 %v9186_v36  ;;  %v2157_v4 = vld [vmem:[#allocation2 + $0x93] sm:$0xff]  ;;  %v2222_v39 = vld [vmem:[#allocation2 + $0x9c] sm:$0xff] }
 0x3e6   : > { %v4873_v25 = vpop.f32.mrf.mxu1  ;;  %v5098_v1 = vpop.f32.mrf.mxu0  ;;  %5692 = vmatmul.mubr.f32.gmra.mxu1 %v2027_v44  ;;  %5917 = vmatmul.mubr.f32.gmra.mxu0 %v2155_v33  ;;  %v2094_v48 = vld [vmem:[#allocation2 + $0x9a] sm:$0xff] }
 0x3e7   : > { %v4874_v40 = vadd.f32 %v4873_v25, %v9000_v32  ;;  %5696 = vmatprep.mubr.f32.mxu1 %v2092_v12  ;;  %5921 = vmatprep.mubr.f32.mxu0 %v2220_v13  ;;  %v3728_v26 = vld [vmem:[%s10094_s5 + $0xa40] sm:$0xff]  ;;  %v3761_v12 = vld [vmem:[%s10094_s5 + $0xb48] sm:$0xff] }
 0x3e8   : > { %v4875_v19 = vpop.f32.mrf.mxu1  ;;  %v5100_v35 = vpop.f32.mrf.mxu0  ;;  %6067 = vmatprep.subr.mxu1 %v9186_v36  ;;  %6289 = vmatpush1.msra.mxu0 %v3764_v53  ;;  %v2030_v25 = vld [vmem:[#allocation2 + $0x99] sm:$0xff] }
 0x3e9   : > { %v9356_v60 = vadd.f32 %v5098_v1, %v4874_v40  ;;  %6068 = vmatpush1.msra.mxu1 %v3730_v41  ;;  %6290 = vmatprep.subr.mxu0 %v9186_v36  ;;  %v2158_v1 = vld [vmem:[#allocation2 + $0x9b] sm:$0xff]  ;;  %v2095_v41 = vld [vmem:[#allocation2 + $0xaa] sm:$0xff] }
 0x3ea   : > { %v4878_v56 = vpop.f32.mrf.mxu1  ;;  %v5103_v32 = vpop.f32.mrf.mxu0  ;;  %5697 = vmatmul.mubr.f32.gmra.mxu1 %v2028_v49  ;;  %5922 = vmatmul.mubr.f32.gmra.mxu0 %v2156_v21  ;;  %v2223_v40 = vld [vmem:[#allocation2 + $0xac] sm:$0xff]  ;;  %v3727_v19 = vld [vmem:[%s10094_s5 + $0xa38] sm:$0xff] }
 0x3eb   : > { %v4879_v2 = vadd.f32 %v4878_v56, %v9011_v45  ;;  %5701 = vmatprep.mubr.f32.mxu1 %v2093_v9  ;;  %5926 = vmatprep.mubr.f32.mxu0 %v2221_v38  ;;  %v2031_v56 = vld [vmem:[#allocation2 + $0xa9] sm:$0xff]  ;;  %v3760_v9 = vld [vmem:[%s10094_s5 + $0xb40] sm:$0xff] }
 0x3ec   : > { %v4880_v29 = vpop.f32.mrf.mxu1  ;;  %v5105_v51 = vpop.f32.mrf.mxu0  ;;  %6069 = vmatprep.subr.mxu1 %v9186_v36  ;;  %6291 = vmatpush1.msra.mxu0 %v3763_v61 }
 0x3ed   : > { %v9367_v7 = vadd.f32 %v5103_v32, %v4879_v2  ;;  %6070 = vmatpush1.msra.mxu1 %v3729_v11  ;;  %6292 = vmatprep.subr.mxu0 %v9186_v36  ;;  %v2159_v32 = vld [vmem:[#allocation2 + $0xab] sm:$0xff]  ;;  %v2224_v2 = vld [vmem:[#allocation2 + $0xb4] sm:$0xff] }
 0x3ee   : > { %v4883_v34 = vpop.f32.mrf.mxu1  ;;  %v5108_v45 = vpop.f32.mrf.mxu0  ;;  %5702 = vmatmul.mubr.f32.gmra.mxu1 %v2029_v59  ;;  %5927 = vmatmul.mubr.f32.gmra.mxu0 %v2157_v4  ;;  %v2096_v11 = vld [vmem:[#allocation2 + $0xb2] sm:$0xff] }
 0x3ef   : > { %v4884_v63 = vadd.f32 %v4883_v34, %v9022_v57  ;;  %5706 = vmatprep.mubr.f32.mxu1 %v2094_v48  ;;  %5931 = vmatprep.mubr.f32.mxu0 %v2222_v39  ;;  %v3726_v29 = vld [vmem:[%s10094_s5 + $0xa30] sm:$0xff]  ;;  %v3759_v48 = vld [vmem:[%s10094_s5 + $0xb38] sm:$0xff] }
 0x3f0   : > { %v4885_v44 = vpop.f32.mrf.mxu1  ;;  %v5110_v33 = vpop.f32.mrf.mxu0  ;;  %6071 = vmatprep.subr.mxu1 %v9186_v36  ;;  %6293 = vmatpush1.msra.mxu0 %v3762_v16  ;;  %v2032_v34 = vld [vmem:[#allocation2 + $0xb1] sm:$0xff] }
 0x3f1   : > { %v9378_v53 = vadd.f32 %v5108_v45, %v4884_v63  ;;  %6072 = vmatpush1.msra.mxu1 %v3728_v26  ;;  %6294 = vmatprep.subr.mxu0 %v9186_v36  ;;  %v2160_v45 = vld [vmem:[#allocation2 + $0xb3] sm:$0xff]  ;;  %v2097_v26 = vld [vmem:[#allocation2 + $0xc2] sm:$0xff] }
 0x3f2   : > { %v4888_v13 = vpop.f32.mrf.mxu1  ;;  %v5113_v57 = vpop.f32.mrf.mxu0  ;;  %5707 = vmatmul.mubr.f32.gmra.mxu1 %v2030_v25  ;;  %5932 = vmatmul.mubr.f32.gmra.mxu0 %v2158_v1  ;;  %v2225_v63 = vld [vmem:[#allocation2 + $0xc4] sm:$0xff] }
 0x3f3   : > { %v4889_v35 = vadd.f32 %v4888_v13, %v9033_v37  ;;  %5711 = vmatprep.mubr.f32.mxu1 %v2095_v41  ;;  %5936 = vmatprep.mubr.f32.mxu0 %v2223_v40  ;;  %v3725_v44 = vld [vmem:[%s10094_s5 + $0xa28] sm:$0xff]  ;;  %v3758_v41 = vld [vmem:[%s10094_s5 + $0xb30] sm:$0xff] }
 0x3f4   : > { %v4890_v49 = vpop.f32.mrf.mxu1  ;;  %v5115_v21 = vpop.f32.mrf.mxu0  ;;  %6073 = vmatprep.subr.mxu1 %v9186_v36  ;;  %6295 = vmatpush1.msra.mxu0 %v3761_v12  ;;  %v2033_v13 = vld [vmem:[#allocation2 + $0xc1] sm:$0xff] }
 0x3f5   : > { %v9389_v61 = vadd.f32 %v5113_v57, %v4889_v35  ;;  %6074 = vmatpush1.msra.mxu1 %v3727_v19  ;;  %6296 = vmatprep.subr.mxu0 %v9186_v36  ;;  %v2161_v57 = vld [vmem:[#allocation2 + $0xc3] sm:$0xff]  ;;  %v2226_v35 = vld [vmem:[#allocation2 + $0xcc] sm:$0xff] }
 0x3f6   : > { %v4893_v38 = vpop.f32.mrf.mxu1  ;;  %v5118_v37 = vpop.f32.mrf.mxu0  ;;  %5712 = vmatmul.mubr.f32.gmra.mxu1 %v2031_v56  ;;  %5937 = vmatmul.mubr.f32.gmra.mxu0 %v2159_v32  ;;  %v2098_v19 = vld [vmem:[#allocation2 + $0xca] sm:$0xff]  ;;  %v3724_v49 = vld [vmem:[%s10094_s5 + $0xa20] sm:$0xff] }
 0x3f7   : > { %v4894_v51 = vadd.f32 %v4893_v38, %v9044_v17  ;;  %5716 = vmatprep.mubr.f32.mxu1 %v2096_v11  ;;  %5941 = vmatprep.mubr.f32.mxu0 %v2224_v2  ;;  %v2034_v38 = vld [vmem:[#allocation2 + $0xc9] sm:$0xff] }
 0x3f8   : > { %v4895_v59 = vpop.f32.mrf.mxu1  ;;  %v5120_v4 = vpop.f32.mrf.mxu0  ;;  %6075 = vmatprep.subr.mxu1 %v9186_v36  ;;  %6297 = vmatpush1.msra.mxu0 %v3760_v9  ;;  %v3757_v11 = vld [vmem:[%s10094_s5 + $0xb28] sm:$0xff] }
 0x3f9   : > { %v9400_v16 = vadd.f32 %v5118_v37, %v4894_v51  ;;  %6076 = vmatpush1.msra.mxu1 %v3726_v29  ;;  %6298 = vmatprep.subr.mxu0 %v9186_v36  ;;  %v2162_v37 = vld [vmem:[#allocation2 + $0xcb] sm:$0xff]  ;;  %v2099_v29 = vld [vmem:[#allocation2 + $0xda] sm:$0xff] }
 0x3fa   : > { %v4898_v39 = vpop.f32.mrf.mxu1  ;;  %v5123_v17 = vpop.f32.mrf.mxu0  ;;  %5717 = vmatmul.mubr.f32.gmra.mxu1 %v2032_v34  ;;  %5942 = vmatmul.mubr.f32.gmra.mxu0 %v2160_v45  ;;  %v2227_v51 = vld [vmem:[#allocation2 + $0xdc] sm:$0xff] }
 0x3fb   : > { %v4899_v33 = vadd.f32 %v4898_v39, %v9055_v42  ;;  %5721 = vmatprep.mubr.f32.mxu1 %v2097_v26  ;;  %5946 = vmatprep.mubr.f32.mxu0 %v2225_v63  ;;  %v3723_v59 = vld [vmem:[%s10094_s5 + $0xa18] sm:$0xff]  ;;  %v3756_v26 = vld [vmem:[%s10094_s5 + $0xb20] sm:$0xff] }
 0x3fc   : > { %v4900_v25 = vpop.f32.mrf.mxu1  ;;  %v5125_v1 = vpop.f32.mrf.mxu0  ;;  %6077 = vmatprep.subr.mxu1 %v9186_v36  ;;  %6299 = vmatpush1.msra.mxu0 %v3759_v48  ;;  %v2035_v39 = vld [vmem:[#allocation2 + $0xd9] sm:$0xff] }
 0x3fd   : > { %v9411_v12 = vadd.f32 %v5123_v17, %v4899_v33  ;;  %6078 = vmatpush1.msra.mxu1 %v3725_v44  ;;  %6300 = vmatprep.subr.mxu0 %v9186_v36  ;;  %v2163_v17 = vld [vmem:[#allocation2 + $0xdb] sm:$0xff]  ;;  %v2228_v33 = vld [vmem:[#allocation2 + $0xe4] sm:$0xff]  ;;  %v3722_v25 = vld [vmem:[%s10094_s5 + $0xa10] sm:$0xff] }
 0x3fe   : > { %v4903_v40 = vpop.f32.mrf.mxu1  ;;  %v5128_v42 = vpop.f32.mrf.mxu0  ;;  %5722 = vmatmul.mubr.f32.gmra.mxu1 %v2033_v13  ;;  %5947 = vmatmul.mubr.f32.gmra.mxu0 %v2161_v57  ;;  %v2100_v44 = vld [vmem:[#allocation2 + $0xe2] sm:$0xff] }
 0x3ff   : > { %v4904_v21 = vadd.f32 %v4903_v40, %v9066_v43  ;;  %5726 = vmatprep.mubr.f32.mxu1 %v2098_v19  ;;  %5951 = vmatprep.mubr.f32.mxu0 %v2226_v35  ;;  %v2036_v40 = vld [vmem:[#allocation2 + $0xe1] sm:$0xff]  ;;  %v3755_v19 = vld [vmem:[%s10094_s5 + $0xb18] sm:$0xff] }
 0x400   : > { %v4905_v56 = vpop.f32.mrf.mxu1  ;;  %v5130_v32 = vpop.f32.mrf.mxu0  ;;  %6079 = vmatprep.subr.mxu1 %v9186_v36  ;;  %6301 = vmatpush1.msra.mxu0 %v3758_v41 }
 0x401   : > { %v9422_v9 = vadd.f32 %v5128_v42, %v4904_v21  ;;  %6080 = vmatpush1.msra.mxu1 %v3724_v49  ;;  %6302 = vmatprep.subr.mxu0 %v9186_v36  ;;  %v2164_v42 = vld [vmem:[#allocation2 + $0xe3] sm:$0xff]  ;;  %v2101_v49 = vld [vmem:[#allocation2 + $0xf2] sm:$0xff] }
 0x402   : > { %v4908_v2 = vpop.f32.mrf.mxu1  ;;  %v5133_v43 = vpop.f32.mrf.mxu0  ;;  %5727 = vmatmul.mubr.f32.gmra.mxu1 %v2034_v38  ;;  %5952 = vmatmul.mubr.f32.gmra.mxu0 %v2162_v37  ;;  %v2229_v21 = vld [vmem:[#allocation2 + $0xf4] sm:$0xff]  ;;  %v3721_v56 = vld [vmem:[%s10094_s5 + $0xa08] sm:$0xff] }
 0x403   : > { %v4909_v4 = vadd.f32 %v4908_v2, %v9077_v28  ;;  %5731 = vmatprep.mubr.f32.mxu1 %v2099_v29  ;;  %5956 = vmatprep.mubr.f32.mxu0 %v2227_v51  ;;  %v2037_v2 = vld [vmem:[#allocation2 + $0xf1] sm:$0xff] }
 0x404   : > { %v4910_v34 = vpop.f32.mrf.mxu1  ;;  %v5135_v45 = vpop.f32.mrf.mxu0  ;;  %6081 = vmatprep.subr.mxu1 %v9186_v36  ;;  %6303 = vmatpush1.msra.mxu0 %v3757_v11  ;;  %v3754_v29 = vld [vmem:[%s10094_s5 + $0xb10] sm:$0xff] }
 0x405   : > { %v9433_v48 = vadd.f32 %v5133_v43, %v4909_v4  ;;  %6082 = vmatpush1.msra.mxu1 %v3723_v59  ;;  %6304 = vmatprep.subr.mxu0 %v9186_v36  ;;  %v2165_v43 = vld [vmem:[#allocation2 + $0xf3] sm:$0xff]  ;;  %v2230_v4 = vld [vmem:[#allocation2 + $0xfc] sm:$0xff] }
 0x406   : > { %v4913_v63 = vpop.f32.mrf.mxu1  ;;  %v5138_v28 = vpop.f32.mrf.mxu0  ;;  %5732 = vmatmul.mubr.f32.gmra.mxu1 %v2035_v39  ;;  %5957 = vmatmul.mubr.f32.gmra.mxu0 %v2163_v17  ;;  %v2102_v59 = vld [vmem:[#allocation2 + $0xfa] sm:$0xff] }
 0x407   : > { %v4914_v1 = vadd.f32 %v4913_v63, %v9088_v46  ;;  %5736 = vmatprep.mubr.f32.mxu1 %v2100_v44  ;;  %5961 = vmatprep.mubr.f32.mxu0 %v2228_v33  ;;  %v3720_v34 = vld [vmem:[%s10094_s5 + $0xa00] sm:$0xff]  ;;  %v3753_v44 = vld [vmem:[%s10094_s5 + $0xb08] sm:$0xff] }
 0x408   : > { %v4915_v13 = vpop.f32.mrf.mxu1  ;;  %v5140_v57 = vpop.f32.mrf.mxu0  ;;  %6083 = vmatprep.subr.mxu1 %v9186_v36  ;;  %6305 = vmatpush1.msra.mxu0 %v3756_v26  ;;  %v2038_v63 = vld [vmem:[#allocation2 + $0xf9] sm:$0xff] }
 0x409   : > { %v9444_v41 = vadd.f32 %v5138_v28, %v4914_v1  ;;  %6084 = vmatpush1.msra.mxu1 %v3722_v25  ;;  %6306 = vmatprep.subr.mxu0 %v9186_v36  ;;  %v2166_v28 = vld [vmem:[#allocation2 + $0xfb] sm:$0xff]  ;;  %v2103_v25 = vld [vmem:[#allocation2 + $0x10a] sm:$0xff] }
 0x40a   : > { %v4918_v35 = vpop.f32.mrf.mxu1  ;;  %v5143_v46 = vpop.f32.mrf.mxu0  ;;  %5737 = vmatmul.mubr.f32.gmra.mxu1 %v2036_v40  ;;  %5962 = vmatmul.mubr.f32.gmra.mxu0 %v2164_v42  ;;  %v2231_v1 = vld [vmem:[#allocation2 + $0x10c] sm:$0xff]  ;;  %v3751_v13 = vld [vmem:[%s10094_s5 + $0xaf8] sm:$0xff]  ;;  %v9476_v42 = vld [vmem:[#allocation2] sm:$0xff] }
 0x40b   : > { %v4919_v32 = vadd.f32 %v4918_v35, %v9099_v31  ;;  %5741 = vmatprep.mubr.f32.mxu1 %v2101_v49  ;;  %5966 = vmatprep.mubr.f32.mxu0 %v2229_v21  ;;  %v2039_v35 = vld [vmem:[#allocation2 + $0x109] sm:$0xff] }
 0x40c   : > { %v4920_v38 = vpop.f32.mrf.mxu1  ;;  %v5145_v37 = vpop.f32.mrf.mxu0  ;;  %6085 = vmatprep.subr.mxu1 %v9186_v36  ;;  %6307 = vmatpush1.msra.mxu0 %v3755_v19 }
 0x40d   : > { %v9455_v11 = vadd.f32 %v5143_v46, %v4919_v32  ;;  %6086 = vmatpush1.msra.mxu1 %v3721_v56  ;;  %6308 = vmatprep.subr.mxu0 %v9186_v36  ;;  %v2167_v46 = vld [vmem:[#allocation2 + $0x10b] sm:$0xff]  ;;  %v2232_v32 = vld [vmem:[#allocation2 + $0x114] sm:$0xff] }
 0x40e   : > { %v4923_v51 = vpop.f32.mrf.mxu1  ;;  %v5148_v31 = vpop.f32.mrf.mxu0  ;;  %5742 = vmatmul.mubr.f32.gmra.mxu1 %v2037_v2  ;;  %5967 = vmatmul.mubr.f32.gmra.mxu0 %v2165_v43  ;;  %v2104_v56 = vld [vmem:[#allocation2 + $0x112] sm:$0xff] }
 0x40f   : > { %v4924_v45 = vadd.f32 %v4923_v51, %v9110_v50  ;;  %5746 = vmatprep.mubr.f32.mxu1 %v2102_v59  ;;  %5971 = vmatprep.mubr.f32.mxu0 %v2230_v4  ;;  %v3750_v38 = vld [vmem:[%s10094_s5 + $0xaf0] sm:$0xff]  ;;  %v3783_v59 = vld [vmem:[%s10094_s5 + $0xbf8] sm:$0xff] }
 0x410   : > { %v4925_v39 = vpop.f32.mrf.mxu1  ;;  %v5150_v17 = vpop.f32.mrf.mxu0  ;;  %6087 = vmatprep.subr.mxu1 %v9186_v36  ;;  %6309 = vmatpush1.msra.mxu0 %v3754_v29  ;;  %v2040_v51 = vld [vmem:[#allocation2 + $0x111] sm:$0xff] }
 0x411   : > { %v9466_v26 = vadd.f32 %v5148_v31, %v4924_v45  ;;  %6088 = vmatpush1.msra.mxu1 %v3720_v34  ;;  %6310 = vmatprep.subr.mxu0 %v9186_v36  ;;  %v2168_v31 = vld [vmem:[#allocation2 + $0x113] sm:$0xff]  ;;  %v2105_v34 = vld [vmem:[#allocation2 + $0x122] sm:$0xff] }
 0x412   : > { %v4928_v33 = vpop.f32.mrf.mxu1  ;;  %v5153_v50 = vpop.f32.mrf.mxu0  ;;  %5747 = vmatmul.mubr.f32.gmra.mxu1 %v2038_v63  ;;  %5972 = vmatmul.mubr.f32.gmra.mxu0 %v2166_v28  ;;  %v2233_v45 = vld [vmem:[#allocation2 + $0x124] sm:$0xff] }
 0x413   : > { %v4929_v57 = vadd.f32 %v4928_v33, %v9121_v30  ;;  %5751 = vmatprep.mubr.f32.mxu1 %v2103_v25  ;;  %5976 = vmatprep.mubr.f32.mxu0 %v2231_v1  ;;  %v3752_v30 = vld [vmem:[%s10094_s5 + $0xb00] sm:$0xff]  ;;  %v3749_v39 = vld [vmem:[%s10094_s5 + $0xae8] sm:$0xff]  ;;  %v3782_v25 = vld [vmem:[%s10094_s5 + $0xbf0] sm:$0xff] }
 0x414   : > { %v4930_v40 = vpop.f32.mrf.mxu1  ;;  %v5155_v36 = vpop.f32.mrf.mxu0  ;;  %6089 = vmatprep.subr.mxu1 %v9476_v42  ;;  %6311 = vmatpush1.msra.mxu0 %v3753_v44  ;;  %v2041_v33 = vld [vmem:[#allocation2 + $0x121] sm:$0xff] }
 0x415   : > { %v9479_v19 = vadd.f32 %v5153_v50, %v4929_v57  ;;  %6090 = vmatpush2.msra.mxu1 %v3751_v13  ;;  %6312 = vmatprep.subr.mxu0 %v9476_v42  ;;  %v2169_v50 = vld [vmem:[#allocation2 + $0x123] sm:$0xff]  ;;  %v2234_v57 = vld [vmem:[#allocation2 + $0x12c] sm:$0xff] }
 0x416   : > { %v5223_v49 = vpop.f32.mrf.mxu1  ;;  %v5448_v21 = vpop.f32.mrf.mxu0  ;;  %5752 = vmatmul.mubr.f32.gmra.mxu1 %v2039_v35  ;;  %5977 = vmatmul.mubr.f32.gmra.mxu0 %v2167_v46  ;;  %v2106_v13 = vld [vmem:[#allocation2 + $0x12a] sm:$0xff]  ;;  %v3748_v40 = vld [vmem:[%s10094_s5 + $0xae0] sm:$0xff] }
 0x417   : > { %v5224_v37 = vadd.f32 %v5223_v49, %v9132_v47  ;;  %5756 = vmatprep.mubr.f32.mxu1 %v2104_v56  ;;  %5981 = vmatprep.mubr.f32.mxu0 %v2232_v32  ;;  %v2042_v49 = vld [vmem:[#allocation2 + $0x129] sm:$0xff] }
 0x418   : > { %v5225_v2 = vpop.f32.mrf.mxu1  ;;  %v5450_v43 = vpop.f32.mrf.mxu0  ;;  %6091 = vmatprep.subr.mxu1 %v9476_v42  ;;  %6313 = vmatpush1.msra.mxu0 %v3752_v30  ;;  %v3781_v56 = vld [vmem:[%s10094_s5 + $0xbe8] sm:$0xff] }
 0x419   : > { %v9490_v29 = vadd.f32 %v5448_v21, %v5224_v37  ;;  %6092 = vmatpush2.msra.mxu1 %v3750_v38  ;;  %6314 = vmatprep.subr.mxu0 %v9476_v42  ;;  %v2170_v21 = vld [vmem:[#allocation2 + $0x12b] sm:$0xff]  ;;  %v2107_v38 = vld [vmem:[#allocation2 + $0x13a] sm:$0xff] }
 0x41a   : > { %v5228_v4 = vpop.f32.mrf.mxu1  ;;  %v5453_v47 = vpop.f32.mrf.mxu0  ;;  %5757 = vmatmul.mubr.f32.gmra.mxu1 %v2040_v51  ;;  %5982 = vmatmul.mubr.f32.gmra.mxu0 %v2168_v31  ;;  %v2235_v37 = vld [vmem:[#allocation2 + $0x13c] sm:$0xff] }
 0x41b   : > { %v5229_v17 = vadd.f32 %v5228_v4, %v9143_v0  ;;  %5761 = vmatprep.mubr.f32.mxu1 %v2105_v34  ;;  %5986 = vmatprep.mubr.f32.mxu0 %v2233_v45  ;;  %v3747_v2 = vld [vmem:[%s10094_s5 + $0xad8] sm:$0xff]  ;;  %v3780_v34 = vld [vmem:[%s10094_s5 + $0xbe0] sm:$0xff] }
 0x41c   : > { %v5230_v63 = vpop.f32.mrf.mxu1  ;;  %v5455_v28 = vpop.f32.mrf.mxu0  ;;  %6093 = vmatprep.subr.mxu1 %v9476_v42  ;;  %6315 = vmatpush2.msra.mxu0 %v3783_v59  ;;  %v2043_v4 = vld [vmem:[#allocation2 + $0x139] sm:$0xff] }
 0x41d   : > { %v9501_v44 = vadd.f32 %v5453_v47, %v5229_v17  ;;  %6094 = vmatpush2.msra.mxu1 %v3749_v39  ;;  %6316 = vmatprep.subr.mxu0 %v9476_v42  ;;  %v2171_v47 = vld [vmem:[#allocation2 + $0x13b] sm:$0xff]  ;;  %v2236_v17 = vld [vmem:[#allocation2 + $0x144] sm:$0xff]  ;;  %v3746_v63 = vld [vmem:[%s10094_s5 + $0xad0] sm:$0xff] }
 0x41e   : > { %v5233_v1 = vpop.f32.mrf.mxu1  ;;  %v5458_v0 = vpop.f32.mrf.mxu0  ;;  %5762 = vmatmul.mubr.f32.gmra.mxu1 %v2041_v33  ;;  %5987 = vmatmul.mubr.f32.gmra.mxu0 %v2169_v50  ;;  %v2108_v39 = vld [vmem:[#allocation2 + $0x142] sm:$0xff] }
 0x41f   : > { %v5234_v36 = vadd.f32 %v5233_v1, %v9154_v8  ;;  %5766 = vmatprep.mubr.f32.mxu1 %v2106_v13  ;;  %5991 = vmatprep.mubr.f32.mxu0 %v2234_v57  ;;  %v2044_v1 = vld [vmem:[#allocation2 + $0x141] sm:$0xff]  ;;  %v3779_v13 = vld [vmem:[%s10094_s5 + $0xbd8] sm:$0xff] }
 0x420   : > { %v5235_v35 = vpop.f32.mrf.mxu1  ;;  %v5460_v46 = vpop.f32.mrf.mxu0  ;;  %6095 = vmatprep.subr.mxu1 %v9476_v42  ;;  %6317 = vmatpush2.msra.mxu0 %v3782_v25 }
 0x421   : > { %v9512_v30 = vadd.f32 %v5458_v0, %v5234_v36  ;;  %6096 = vmatpush2.msra.mxu1 %v3748_v40  ;;  %6318 = vmatprep.subr.mxu0 %v9476_v42  ;;  %v2172_v0 = vld [vmem:[#allocation2 + $0x143] sm:$0xff]  ;;  %v2109_v40 = vld [vmem:[#allocation2 + $0x152] sm:$0xff] }
 0x422   : > { %v5238_v32 = vpop.f32.mrf.mxu1  ;;  %v5463_v8 = vpop.f32.mrf.mxu0  ;;  %5767 = vmatmul.mubr.f32.gmra.mxu1 %v2042_v49  ;;  %5992 = vmatmul.mubr.f32.gmra.mxu0 %v2170_v21  ;;  %v2237_v36 = vld [vmem:[#allocation2 + $0x154] sm:$0xff]  ;;  %v3745_v35 = vld [vmem:[%s10094_s5 + $0xac8] sm:$0xff] }
 0x423   : > { %v5239_v43 = vadd.f32 %v5238_v32, %v9165_v3  ;;  %5771 = vmatprep.mubr.f32.mxu1 %v2107_v38  ;;  %5996 = vmatprep.mubr.f32.mxu0 %v2235_v37  ;;  %v2045_v32 = vld [vmem:[#allocation2 + $0x151] sm:$0xff] }
 0x424   : > { %v5240_v51 = vpop.f32.mrf.mxu1  ;;  %v5465_v31 = vpop.f32.mrf.mxu0  ;;  %6097 = vmatprep.subr.mxu1 %v9476_v42  ;;  %6319 = vmatpush2.msra.mxu0 %v3781_v56  ;;  %v3778_v38 = vld [vmem:[%s10094_s5 + $0xbd0] sm:$0xff] }
 0x425   : > { %v9523_v59 = vadd.f32 %v5463_v8, %v5239_v43  ;;  %6098 = vmatpush2.msra.mxu1 %v3747_v2  ;;  %6320 = vmatprep.subr.mxu0 %v9476_v42  ;;  %v2173_v8 = vld [vmem:[#allocation2 + $0x153] sm:$0xff]  ;;  %v2238_v43 = vld [vmem:[#allocation2 + $0x15c] sm:$0xff] }
 0x426   : > { %v5243_v45 = vpop.f32.mrf.mxu1  ;;  %v5468_v3 = vpop.f32.mrf.mxu0  ;;  %5772 = vmatmul.mubr.f32.gmra.mxu1 %v2043_v4  ;;  %5997 = vmatmul.mubr.f32.gmra.mxu0 %v2171_v47  ;;  %v2110_v2 = vld [vmem:[#allocation2 + $0x15a] sm:$0xff] }
 0x427   : > { %v5244_v28 = vadd.f32 %v5243_v45, %v9176_v27  ;;  %5776 = vmatprep.mubr.f32.mxu1 %v2108_v39  ;;  %6001 = vmatprep.mubr.f32.mxu0 %v2236_v17  ;;  %v3744_v51 = vld [vmem:[%s10094_s5 + $0xac0] sm:$0xff]  ;;  %v3777_v39 = vld [vmem:[%s10094_s5 + $0xbc8] sm:$0xff] }
 0x428   : > { %v5245_v33 = vpop.f32.mrf.mxu1  ;;  %v5470_v50 = vpop.f32.mrf.mxu0  ;;  %6099 = vmatprep.subr.mxu1 %v9476_v42  ;;  %6321 = vmatpush2.msra.mxu0 %v3780_v34  ;;  %v2046_v45 = vld [vmem:[#allocation2 + $0x159] sm:$0xff] }
 0x429   : > { %v9534_v25 = vadd.f32 %v5468_v3, %v5244_v28  ;;  %6100 = vmatpush2.msra.mxu1 %v3746_v63  ;;  %6322 = vmatprep.subr.mxu0 %v9476_v42  ;;  %v2174_v3 = vld [vmem:[#allocation2 + $0x15b] sm:$0xff]  ;;  %v2111_v63 = vld [vmem:[#allocation2 + $0x16a] sm:$0xff] }
 0x42a   : > { %v5248_v57 = vpop.f32.mrf.mxu1  ;;  %v5473_v27 = vpop.f32.mrf.mxu0  ;;  %5777 = vmatmul.mubr.f32.gmra.mxu1 %v2044_v1  ;;  %6002 = vmatmul.mubr.f32.gmra.mxu0 %v2172_v0  ;;  %v2239_v28 = vld [vmem:[#allocation2 + $0x16c] sm:$0xff]  ;;  %v3743_v33 = vld [vmem:[%s10094_s5 + $0xab8] sm:$0xff] }
 0x42b   : > { %v5249_v46 = vadd.f32 %v5248_v57, %v9189_v54  ;;  %5781 = vmatprep.mubr.f32.mxu1 %v2109_v40  ;;  %6006 = vmatprep.mubr.f32.mxu0 %v2237_v36  ;;  %v2047_v57 = vld [vmem:[#allocation2 + $0x169] sm:$0xff]  ;;  %v3776_v40 = vld [vmem:[%s10094_s5 + $0xbc0] sm:$0xff] }
 0x42c   : > { %v5250_v49 = vpop.f32.mrf.mxu1  ;;  %v5475_v21 = vpop.f32.mrf.mxu0  ;;  %6101 = vmatprep.subr.mxu1 %v9476_v42  ;;  %6323 = vmatpush2.msra.mxu0 %v3779_v13 }
 0x42d   : > { %v9545_v56 = vadd.f32 %v5473_v27, %v5249_v46  ;;  %6102 = vmatpush2.msra.mxu1 %v3745_v35  ;;  %6324 = vmatprep.subr.mxu0 %v9476_v42  ;;  %v2175_v27 = vld [vmem:[#allocation2 + $0x16b] sm:$0xff]  ;;  %v2240_v46 = vld [vmem:[#allocation2 + $0x174] sm:$0xff] }
 0x42e   : > { %v5253_v37 = vpop.f32.mrf.mxu1  ;;  %v5478_v54 = vpop.f32.mrf.mxu0  ;;  %5782 = vmatmul.mubr.f32.gmra.mxu1 %v2045_v32  ;;  %6007 = vmatmul.mubr.f32.gmra.mxu0 %v2173_v8  ;;  %v2112_v35 = vld [vmem:[#allocation2 + $0x172] sm:$0xff] }
 0x42f   : > { %v5254_v31 = vadd.f32 %v5253_v37, %v9200_v18  ;;  %5786 = vmatprep.mubr.f32.mxu1 %v2110_v2  ;;  %6011 = vmatprep.mubr.f32.mxu0 %v2238_v43  ;;  %v3742_v49 = vld [vmem:[%s10094_s5 + $0xab0] sm:$0xff] }
 0x430   : > { %v5255_v4 = vpop.f32.mrf.mxu1  ;;  %v5480_v47 = vpop.f32.mrf.mxu0  ;;  %6103 = vmatprep.subr.mxu1 %v9476_v42  ;;  %6325 = vmatpush2.msra.mxu0 %v3778_v38  ;;  %v9580_v37 = vld [vmem:[#allocation2 + $0x171] sm:$0xff] }
 0x431   : > { %v9556_v34 = vadd.f32 %v5478_v54, %v5254_v31  ;;  %6104 = vmatpush2.msra.mxu1 %v3744_v51  ;;  %6326 = vmatprep.subr.mxu0 %v9476_v42  ;;  %v9582_v54 = vld [vmem:[#allocation2 + $0x173] sm:$0xff]  ;;  %v2113_v51 = vld [vmem:[#allocation2 + $0x182] sm:$0xff] }
 0x432   : > { %v5258_v17 = vpop.f32.mrf.mxu1  ;;  %v5483_v18 = vpop.f32.mrf.mxu0  ;;  %5787 = vmatmul.mubr.f32.gmra.mxu1 %v2046_v45  ;;  %6012 = vmatmul.mubr.f32.gmra.mxu0 %v2174_v3  ;;  %v2241_v31 = vld [vmem:[#allocation2 + $0x184] sm:$0xff] }
 0x433   : > { %v5259_v50 = vadd.f32 %v5258_v17, %v9211_v5  ;;  %5791 = vmatprep.mubr.f32.mxu1 %v2111_v63  ;;  %6016 = vmatprep.mubr.f32.mxu0 %v2239_v28  ;;  %v3741_v4 = vld [vmem:[%s10094_s5 + $0xaa8] sm:$0xff] }
 0x434   : > { %v5260_v1 = vpop.f32.mrf.mxu1  ;;  %v5485_v0 = vpop.f32.mrf.mxu0  ;;  %6105 = vmatprep.subr.mxu1 %v9476_v42  ;;  %6327 = vmatpush2.msra.mxu0 %v3777_v39  ;;  %v9597_v17 = vld [vmem:[#allocation2 + $0x181] sm:$0xff] }
 0x435   : > { %v9567_v13 = vadd.f32 %v5483_v18, %v5259_v50  ;;  %6106 = vmatpush2.msra.mxu1 %v3743_v33  ;;  %6328 = vmatprep.subr.mxu0 %v9476_v42  ;;  %v9599_v18 = vld [vmem:[#allocation2 + $0x183] sm:$0xff]  ;;  %v2242_v50 = vld [vmem:[#allocation2 + $0x18c] sm:$0xff] }
 0x436   : > { %v5263_v36 = vpop.f32.mrf.mxu1  ;;  %v5488_v5 = vpop.f32.mrf.mxu0  ;;  %5792 = vmatmul.mubr.f32.gmra.mxu1 %v2047_v57  ;;  %6017 = vmatmul.mubr.f32.gmra.mxu0 %v2175_v27  ;;  %v2114_v33 = vld [vmem:[#allocation2 + $0x18a] sm:$0xff]  ;;  %v3740_v1 = vld [vmem:[%s10094_s5 + $0xaa0] sm:$0xff] }
 0x437   : > { %v5264_v21 = vadd.f32 %v5263_v36, %v9222_v62  ;;  %5796 = vmatprep.mubr.f32.mxu1 %v2112_v35  ;;  %6021 = vmatprep.mubr.f32.mxu0 %v2240_v46  ;;  %v3775_v62 = vld [vmem:[%s10094_s5 + $0xbb8] sm:$0xff]  ;;  %v9614_v36 = vld [vmem:[#allocation2 + $0x189] sm:$0xff] }
 0x438   : > { %v5265_v32 = vpop.f32.mrf.mxu1  ;;  %v5490_v8 = vpop.f32.mrf.mxu0  ;;  %6107 = vmatprep.subr.mxu1 %v9476_v42  ;;  %6329 = vmatpush2.msra.mxu0 %v3776_v40 }
 0x439   : > { %v9578_v38 = vadd.f32 %v5488_v5, %v5264_v21  ;;  %6108 = vmatpush2.msra.mxu1 %v3742_v49  ;;  %6330 = vmatprep.subr.mxu0 %v9476_v42  ;;  %v9616_v5 = vld [vmem:[#allocation2 + $0x18b] sm:$0xff]  ;;  %v2115_v49 = vld [vmem:[#allocation2 + $0x19a] sm:$0xff] }
 0x43a   : > { %v5268_v2 = vpop.f32.mrf.mxu1  ;;  %v5493_v43 = vpop.f32.mrf.mxu0  ;;  %5797 = vmatmul.mubr.f32.gmra.mxu1 %v9580_v37  ;;  %6022 = vmatmul.mubr.f32.gmra.mxu0 %v9582_v54  ;;  %v2243_v21 = vld [vmem:[#allocation2 + $0x19c] sm:$0xff] }
 0x43b   : > { %v5269_v47 = vadd.f32 %v5268_v2, %v9233_v24  ;;  %5801 = vmatprep.mubr.f32.mxu1 %v2113_v51  ;;  %6026 = vmatprep.mubr.f32.mxu0 %v2241_v31  ;;  %v3774_v24 = vld [vmem:[%s10094_s5 + $0xbb0] sm:$0xff]  ;;  %v3739_v32 = vld [vmem:[%s10094_s5 + $0xa98] sm:$0xff] }
 0x43c   : > { %v5270_v45 = vpop.f32.mrf.mxu1  ;;  %v5495_v3 = vpop.f32.mrf.mxu0  ;;  %6109 = vmatprep.subr.mxu1 %v9476_v42  ;;  %6331 = vmatpush2.msra.mxu0 %v3775_v62  ;;  %v9631_v51 = vld [vmem:[#allocation2 + $0x199] sm:$0xff] }
 0x43d   : > { %v9595_v39 = vadd.f32 %v5493_v43, %v5269_v47  ;;  %6110 = vmatpush2.msra.mxu1 %v3741_v4  ;;  %6332 = vmatprep.subr.mxu0 %v9476_v42  ;;  %v9633_v31 = vld [vmem:[#allocation2 + $0x19b] sm:$0xff]  ;;  %v2244_v3 = vld [vmem:[#allocation2 + $0x1a4] sm:$0xff] }
 0x43e   : > { %v5273_v63 = vpop.f32.mrf.mxu1  ;;  %v5498_v28 = vpop.f32.mrf.mxu0  ;;  %5802 = vmatmul.mubr.f32.gmra.mxu1 %v9597_v17  ;;  %6027 = vmatmul.mubr.f32.gmra.mxu0 %v9599_v18  ;;  %v9641_v45 = vld [vmem:[#allocation2 + $0x1a2] sm:$0xff] }
 0x43f   : > { %v5274_v0 = vadd.f32 %v5273_v63, %v9244_v23  ;;  %5806 = vmatprep.mubr.f32.mxu1 %v2114_v33  ;;  %6031 = vmatprep.mubr.f32.mxu0 %v2242_v50  ;;  %v3773_v23 = vld [vmem:[%s10094_s5 + $0xba8] sm:$0xff]  ;;  %v9649_v50 = vld [vmem:[#allocation2 + $0x1b2] sm:$0xff] }
 0x440   : > { %v5275_v57 = vpop.f32.mrf.mxu1  ;;  %v5500_v27 = vpop.f32.mrf.mxu0  ;;  %6111 = vmatprep.subr.mxu1 %v9476_v42  ;;  %6333 = vmatpush2.msra.mxu0 %v3774_v24  ;;  %v3738_v24 = vld [vmem:[%s10094_s5 + $0xa90] sm:$0xff] }
 0x441   : > { %v9612_v40 = vadd.f32 %v5498_v28, %v5274_v0  ;;  %6112 = vmatpush2.msra.mxu1 %v3740_v1  ;;  %6334 = vmatprep.subr.mxu0 %v9476_v42  ;;  %v2245_v1 = vld [vmem:[#allocation2 + $0x1b4] sm:$0xff]  ;;  %v9653_v57 = vld [vmem:[#allocation2 + $0x1a1] sm:$0xff] }
 0x442   : > { %v5278_v35 = vpop.f32.mrf.mxu1  ;;  %v5503_v46 = vpop.f32.mrf.mxu0  ;;  %5807 = vmatmul.mubr.f32.gmra.mxu1 %v9614_v36  ;;  %6032 = vmatmul.mubr.f32.gmra.mxu0 %v9616_v5  ;;  %v9655_v27 = vld [vmem:[#allocation2 + $0x1a3] sm:$0xff] }
 0x443   : > { %v5279_v8 = vadd.f32 %v5278_v35, %v9255_v6  ;;  %5811 = vmatprep.mubr.f32.mxu1 %v2115_v49  ;;  %6036 = vmatprep.mubr.f32.mxu0 %v2243_v21  ;;  %v3772_v6 = vld [vmem:[%s10094_s5 + $0xba0] sm:$0xff]  ;;  %v9668_v21 = vld [vmem:[#allocation2 + $0x1b1] sm:$0xff] }
 0x444   : > { %v5280_v62 = vpop.f32.mrf.mxu1  ;;  %v5505_v2 = vpop.f32.mrf.mxu0  ;;  %6113 = vmatprep.subr.mxu1 %v9476_v42  ;;  %6335 = vmatpush2.msra.mxu0 %v3773_v23 }
 0x445   : > { %v9629_v43 = vadd.f32 %v5503_v46, %v5279_v8  ;;  %6114 = vmatpush2.msra.mxu1 %v3739_v32  ;;  %6336 = vmatprep.subr.mxu0 %v9476_v42  ;;  %v3737_v46 = vld [vmem:[%s10094_s5 + $0xa88] sm:$0xff]  ;;  %v9670_v32 = vld [vmem:[#allocation2 + $0x1b3] sm:$0xff] }
 0x446   : > { %v5283_v4 = vpop.f32.mrf.mxu1  ;;  %v5508_v47 = vpop.f32.mrf.mxu0  ;;  %5812 = vmatmul.mubr.f32.gmra.mxu1 %v9631_v51  ;;  %6037 = vmatmul.mubr.f32.gmra.mxu0 %v9633_v31  ;;  %v9673_v2 = vld [vmem:[#allocation2 + $0x1ba] sm:$0xff] }
 0x447   : > { %v5284_v63 = vadd.f32 %v5283_v4, %v9266_v20  ;;  %5816 = vmatprep.mubr.f32.mxu1 %v9641_v45  ;;  %6041 = vmatprep.mubr.f32.mxu0 %v2244_v3  ;;  %v3771_v20 = vld [vmem:[%s10094_s5 + $0xb98] sm:$0xff] }
 0x448   : > { %v5285_v28 = vpop.f32.mrf.mxu1  ;;  %v5510_v33 = vpop.f32.mrf.mxu0  ;;  %6115 = vmatprep.subr.mxu1 %v9476_v42  ;;  %6337 = vmatpush2.msra.mxu0 %v3772_v6  ;;  %v2246_v6 = vld [vmem:[#allocation2 + $0x1bc] sm:$0xff] }
 0x449   : > { %v9651_v0 = vadd.f32 %v5508_v47, %v5284_v63  ;;  %6116 = vmatpush2.msra.mxu1 %v3738_v24  ;;  %6338 = vmatprep.subr.mxu0 %v9476_v42  ;;  %v3736_v24 = vld [vmem:[%s10094_s5 + $0xa80] sm:$0xff] }
 0x44a   : > { %v5288_v23 = vpop.f32.mrf.mxu1  ;;  %v5513_v35 = vpop.f32.mrf.mxu0  ;;  %5817 = vmatmul.mubr.f32.gmra.mxu1 %v9653_v57  ;;  %6042 = vmatmul.mubr.f32.gmra.mxu0 %v9655_v27  ;;  %v9688_v28 = vld [vmem:[#allocation2 + $0x1b9] sm:$0xff] }
 0x44b   : > { %v5289_v49 = vadd.f32 %v5288_v23, %v9278_v58  ;;  %5821 = vmatprep.mubr.f32.mxu1 %v9649_v50  ;;  %6046 = vmatprep.mubr.f32.mxu0 %v2245_v1  ;;  %v3770_v58 = vld [vmem:[%s10094_s5 + $0xb90] sm:$0xff]  ;;  %v9690_v33 = vld [vmem:[#allocation2 + $0x1bb] sm:$0xff]  ;;  %v3769_v23 = vld [vmem:[%s10094_s5 + $0xb88] sm:$0xff] }
 0x44c   : > { %v5290_v8 = vpop.f32.mrf.mxu1  ;;  %v5515_v62 = vpop.f32.mrf.mxu0  ;;  %6117 = vmatprep.subr.mxu1 %v9476_v42  ;;  %6339 = vmatpush2.msra.mxu0 %v3771_v20 }
 0x44d   : > { %v9675_v4 = vadd.f32 %v5513_v35, %v5289_v49  ;;  %6118 = vmatpush2.msra.mxu1 %v3737_v46  ;;  %6340 = vmatprep.subr.mxu0 %v9476_v42  ;;  %v2344_v49 = vld [vmem:[#allocation2 + $0x61] sm:$0xff]  ;;  %v3799_v62 = vld [vmem:[%s10094_s5 + $0xc78] sm:$0xff] }
 0x44e   : > { %v5293_v47 = vpop.f32.mrf.mxu1  ;;  %v5518_v3 = vpop.f32.mrf.mxu0  ;;  %5822 = vmatmul.mubr.f32.gmra.mxu1 %v9668_v21  ;;  %6047 = vmatmul.mubr.f32.gmra.mxu0 %v9670_v32  ;;  %v3768_v8 = vld [vmem:[%s10094_s5 + $0xb80] sm:$0xff] }
 0x44f   : > { %v5294_v63 = vadd.f32 %v5293_v47, %v9293_v55  ;;  %5826 = vmatprep.mubr.f32.mxu1 %v9673_v2  ;;  %6051 = vmatprep.mubr.f32.mxu0 %v2246_v6 }
 0x450   : > { %v5295_v1 = vpop.f32.mrf.mxu1  ;;  %v5520_v20 = vpop.f32.mrf.mxu0  ;;  %6119 = vmatprep.subr.mxu1 %v9476_v42  ;;  %6341 = vmatpush2.msra.mxu0 %v3770_v58  ;;  %v2472_v58 = vld [vmem:[#allocation2 + $0x63] sm:$0xff] }
 0x451   : > { %v9696_v35 = vadd.f32 %v5518_v3, %v5294_v63  ;;  %6120 = vmatpush2.msra.mxu1 %v3736_v24  ;;  %6342 = vmatprep.subr.mxu0 %v9476_v42  ;;  %v2280_v63 = vld [vmem:[#allocation2 + $0x60] sm:$0xff]  ;;  %v3798_v20 = vld [vmem:[%s10094_s5 + $0xc70] sm:$0xff] }
 0x452   : > { %v5298_v55 = vpop.f32.mrf.mxu1  ;;  %v5523_v46 = vpop.f32.mrf.mxu0  ;;  %5827 = vmatmul.mubr.f32.gmra.mxu1 %v9688_v28  ;;  %6052 = vmatmul.mubr.f32.gmra.mxu0 %v9690_v33  ;;  %v2408_v1 = vld [vmem:[#allocation2 + $0x62] sm:$0xff] }
 0x453   : > { %10111 = vst [vmem:[#allocation6_spill] sm:$0xff] %v9696_v35  ;;  %v5299_v6 = vadd.f32 %v5298_v55, %v9304_v22  ;;  %6121 = vmatprep.mubr.f32.mxu1 %v2344_v49  ;;  %6343 = vmatpush2.msra.mxu0 %v3769_v23  ;;  %v2345_v23 = vld [vmem:[#allocation2 + $0x69] sm:$0xff] }
 0x454   : > { %6346 = vmatprep.mubr.f32.mxu0 %v2472_v58  ;;  %v5300_v47 = vpop.f32.mrf.mxu1  ;;  %v5525_v3 = vpop.f32.mrf.mxu0  ;;  %6344 = vmatprep.subr.mxu0 %v9476_v42  ;;  %v2473_v42 = vld [vmem:[#allocation2 + $0x6b] sm:$0xff] }
 0x455   : > { %v9709_v24 = vadd.f32 %v5523_v46, %v5299_v6  ;;  %6345 = vmatpush2.msra.mxu0 %v3768_v8  ;;  %7011 = vmatprep.subr.mxu1 %v3799_v62  ;;  %v2281_v6 = vld [vmem:[#allocation2 + $0x68] sm:$0xff] }
 0x456   : > { %v5303_v35 = vpop.f32.mrf.mxu1  ;;  %v5528_v22 = vpop.f32.mrf.mxu0  ;;  %6122 = vmatmul.mubr.f32.vlgmr.msra.gmra.mxu1 %v2280_v63  ;;  %6347 = vmatmul.mubr.f32.vlgmr.msra.gmra.mxu0 %v2408_v1  ;;  %v2409_v58 = vld [vmem:[#allocation2 + $0x6a] sm:$0xff] }
 0x457   : > { %v5304_v55 = vadd.f32 %v5303_v35, %v9312_v14  ;;  %7012 = vmatpush3.msra.mxu1 %v3799_v62  ;;  %6126 = vmatprep.mubr.f32.mxu1 %v2345_v23  ;;  %v3797_v47 = vld [vmem:[%s10094_s5 + $0xc68] sm:$0xff]  ;;  %v2346_v14 = vld [vmem:[#allocation2 + $0x79] sm:$0xff] }
 0x458   : > { %6351 = vmatprep.mubr.f32.mxu0 %v2473_v42  ;;  %v5305_v46 = vpop.f32.mrf.mxu1  ;;  %v5530_v49 = vpop.f32.mrf.mxu0  ;;  %7013 = vmatprep.subr.mxu1 %v3798_v20  ;;  %v2474_v35 = vld [vmem:[#allocation2 + $0x7b] sm:$0xff] }
 0x459   : > { %v9715_v8 = vadd.f32 %v5528_v22, %v5304_v55  ;;  %7014 = vmatpush3.msra.mxu1 %v3798_v20  ;;  %v2282_v20 = vld [vmem:[#allocation2 + $0x78] sm:$0xff]  ;;  %v3796_v42 = vld [vmem:[%s10094_s5 + $0xc60] sm:$0xff] }
 0x45a   : > { %v5308_v3 = vpop.f32.mrf.mxu1  ;;  %v5533_v63 = vpop.f32.mrf.mxu0  ;;  %6127 = vmatmul.mubr.f32.gmra.mxu1 %v2281_v6  ;;  %6352 = vmatmul.mubr.f32.gmra.mxu0 %v2409_v58  ;;  %v2410_v55 = vld [vmem:[#allocation2 + $0x7a] sm:$0xff] }
 0x45b   : > { %v5309_v62 = vadd.f32 %v5308_v3, %v9323_v52  ;;  %6131 = vmatprep.mubr.f32.mxu1 %v2346_v14  ;;  %6356 = vmatprep.mubr.f32.mxu0 %v2474_v35  ;;  %v2347_v6 = vld [vmem:[#allocation2 + $0x81] sm:$0xff] }
 0x45c   : > { %v5310_v1 = vpop.f32.mrf.mxu1  ;;  %v5535_v22 = vpop.f32.mrf.mxu0  ;;  %7015 = vmatprep.subr.mxu1 %v3797_v47  ;;  %v2475_v52 = vld [vmem:[#allocation2 + $0x83] sm:$0xff] }
 0x45d   : > { %v9721_v23 = vadd.f32 %v5533_v63, %v5309_v62  ;;  %7016 = vmatpush3.msra.mxu1 %v3797_v47  ;;  %v2283_v47 = vld [vmem:[#allocation2 + $0x80] sm:$0xff]  ;;  %v3795_v62 = vld [vmem:[%s10094_s5 + $0xc58] sm:$0xff] }
 0x45e   : > { %v5313_v46 = vpop.f32.mrf.mxu1  ;;  %v5538_v49 = vpop.f32.mrf.mxu0  ;;  %6132 = vmatmul.mubr.f32.gmra.mxu1 %v2282_v20  ;;  %6357 = vmatmul.mubr.f32.gmra.mxu0 %v2410_v55  ;;  %v2411_v35 = vld [vmem:[#allocation2 + $0x82] sm:$0xff]  ;;  %v2348_v20 = vld [vmem:[#allocation2 + $0x91] sm:$0xff] }
 0x45f   : > { %v5314_v58 = vadd.f32 %v5313_v46, %v9334_v10  ;;  %6136 = vmatprep.mubr.f32.mxu1 %v2347_v6  ;;  %6361 = vmatprep.mubr.f32.mxu0 %v2475_v52  ;;  %v2476_v10 = vld [vmem:[#allocation2 + $0x93] sm:$0xff] }
 0x460   : > { %v5315_v3 = vpop.f32.mrf.mxu1  ;;  %v5540_v63 = vpop.f32.mrf.mxu0  ;;  %7017 = vmatprep.subr.mxu1 %v3796_v42  ;;  %v2412_v52 = vld [vmem:[#allocation2 + $0x92] sm:$0xff] }
 0x461   : > { %v9727_v14 = vadd.f32 %v5538_v49, %v5314_v58  ;;  %7018 = vmatpush3.msra.mxu1 %v3796_v42  ;;  %v2284_v42 = vld [vmem:[#allocation2 + $0x90] sm:$0xff] }
 0x462   : > { %v5318_v1 = vpop.f32.mrf.mxu1  ;;  %v5543_v22 = vpop.f32.mrf.mxu0  ;;  %6137 = vmatmul.mubr.f32.gmra.mxu1 %v2283_v47  ;;  %6362 = vmatmul.mubr.f32.gmra.mxu0 %v2411_v35  ;;  %v3794_v58 = vld [vmem:[%s10094_s5 + $0xc50] sm:$0xff]  ;;  %v2349_v47 = vld [vmem:[#allocation2 + $0x99] sm:$0xff] }
 0x463   : > { %v5319_v55 = vadd.f32 %v5318_v1, %v9345_v15  ;;  %6141 = vmatprep.mubr.f32.mxu1 %v2348_v20  ;;  %6366 = vmatprep.mubr.f32.mxu0 %v2476_v10  ;;  %v2477_v15 = vld [vmem:[#allocation2 + $0x9b] sm:$0xff] }
 0x464   : > { %v5320_v46 = vpop.f32.mrf.mxu1  ;;  %v5545_v49 = vpop.f32.mrf.mxu0  ;;  %7019 = vmatprep.subr.mxu1 %v3795_v62  ;;  %v2413_v10 = vld [vmem:[#allocation2 + $0x9a] sm:$0xff] }
 0x465   : > { %v9733_v6 = vadd.f32 %v5543_v22, %v5319_v55  ;;  %7020 = vmatpush3.msra.mxu1 %v3795_v62  ;;  %v2285_v62 = vld [vmem:[#allocation2 + $0x98] sm:$0xff]  ;;  %v3793_v55 = vld [vmem:[%s10094_s5 + $0xc48] sm:$0xff] }
 0x466   : > { %v5323_v3 = vpop.f32.mrf.mxu1  ;;  %v5548_v63 = vpop.f32.mrf.mxu0  ;;  %6142 = vmatmul.mubr.f32.gmra.mxu1 %v2284_v42  ;;  %6367 = vmatmul.mubr.f32.gmra.mxu0 %v2412_v52  ;;  %v2350_v42 = vld [vmem:[#allocation2 + $0xa9] sm:$0xff] }
 0x467   : > { %v5324_v35 = vadd.f32 %v5323_v3, %v9356_v60  ;;  %6146 = vmatprep.mubr.f32.mxu1 %v2349_v47  ;;  %6371 = vmatprep.mubr.f32.mxu0 %v2477_v15  ;;  %v2478_v60 = vld [vmem:[#allocation2 + $0xab] sm:$0xff] }
 0x468   : > { %v5325_v1 = vpop.f32.mrf.mxu1  ;;  %v5550_v22 = vpop.f32.mrf.mxu0  ;;  %7021 = vmatprep.subr.mxu1 %v3794_v58  ;;  %v2414_v15 = vld [vmem:[#allocation2 + $0xaa] sm:$0xff] }
 0x469   : > { %v9739_v20 = vadd.f32 %v5548_v63, %v5324_v35  ;;  %7022 = vmatpush3.msra.mxu1 %v3794_v58  ;;  %v2286_v58 = vld [vmem:[#allocation2 + $0xa8] sm:$0xff]  ;;  %v3792_v35 = vld [vmem:[%s10094_s5 + $0xc40] sm:$0xff] }
 0x46a   : > { %v5328_v46 = vpop.f32.mrf.mxu1  ;;  %v5553_v49 = vpop.f32.mrf.mxu0  ;;  %6147 = vmatmul.mubr.f32.gmra.mxu1 %v2285_v62  ;;  %6372 = vmatmul.mubr.f32.gmra.mxu0 %v2413_v10  ;;  %v2351_v62 = vld [vmem:[#allocation2 + $0xb1] sm:$0xff] }
 0x46b   : > { %v5329_v52 = vadd.f32 %v5328_v46, %v9367_v7  ;;  %6151 = vmatprep.mubr.f32.mxu1 %v2350_v42  ;;  %6376 = vmatprep.mubr.f32.mxu0 %v2478_v60  ;;  %v2479_v7 = vld [vmem:[#allocation2 + $0xb3] sm:$0xff] }
 0x46c   : > { %v5330_v3 = vpop.f32.mrf.mxu1  ;;  %v5555_v63 = vpop.f32.mrf.mxu0  ;;  %7023 = vmatprep.subr.mxu1 %v3793_v55  ;;  %v2415_v60 = vld [vmem:[#allocation2 + $0xb2] sm:$0xff] }
 0x46d   : > { %v9745_v47 = vadd.f32 %v5553_v49, %v5329_v52  ;;  %7024 = vmatpush3.msra.mxu1 %v3793_v55  ;;  %v2287_v55 = vld [vmem:[#allocation2 + $0xb0] sm:$0xff]  ;;  %v3791_v52 = vld [vmem:[%s10094_s5 + $0xc38] sm:$0xff] }
 0x46e   : > { %v5333_v1 = vpop.f32.mrf.mxu1  ;;  %v5558_v22 = vpop.f32.mrf.mxu0  ;;  %6152 = vmatmul.mubr.f32.gmra.mxu1 %v2286_v58  ;;  %6377 = vmatmul.mubr.f32.gmra.mxu0 %v2414_v15  ;;  %v2352_v58 = vld [vmem:[#allocation2 + $0xc1] sm:$0xff] }
 0x46f   : > { %v5334_v10 = vadd.f32 %v5333_v1, %v9378_v53  ;;  %6156 = vmatprep.mubr.f32.mxu1 %v2351_v62  ;;  %6381 = vmatprep.mubr.f32.mxu0 %v2479_v7  ;;  %v2480_v53 = vld [vmem:[#allocation2 + $0xc3] sm:$0xff] }
 0x470   : > { %v5335_v46 = vpop.f32.mrf.mxu1  ;;  %v5560_v49 = vpop.f32.mrf.mxu0  ;;  %7025 = vmatprep.subr.mxu1 %v3792_v35  ;;  %v2416_v7 = vld [vmem:[#allocation2 + $0xc2] sm:$0xff] }
 0x471   : > { %v9751_v42 = vadd.f32 %v5558_v22, %v5334_v10  ;;  %7026 = vmatpush3.msra.mxu1 %v3792_v35  ;;  %v2288_v35 = vld [vmem:[#allocation2 + $0xc0] sm:$0xff]  ;;  %v3790_v10 = vld [vmem:[%s10094_s5 + $0xc30] sm:$0xff] }
 0x472   : > { %v5338_v3 = vpop.f32.mrf.mxu1  ;;  %v5563_v63 = vpop.f32.mrf.mxu0  ;;  %6157 = vmatmul.mubr.f32.gmra.mxu1 %v2287_v55  ;;  %6382 = vmatmul.mubr.f32.gmra.mxu0 %v2415_v60  ;;  %v2353_v55 = vld [vmem:[#allocation2 + $0xc9] sm:$0xff] }
 0x473   : > { %v5339_v15 = vadd.f32 %v5338_v3, %v9389_v61  ;;  %6161 = vmatprep.mubr.f32.mxu1 %v2352_v58  ;;  %6386 = vmatprep.mubr.f32.mxu0 %v2480_v53  ;;  %v2481_v61 = vld [vmem:[#allocation2 + $0xcb] sm:$0xff] }
 0x474   : > { %v5340_v1 = vpop.f32.mrf.mxu1  ;;  %v5565_v22 = vpop.f32.mrf.mxu0  ;;  %7027 = vmatprep.subr.mxu1 %v3791_v52  ;;  %v2417_v53 = vld [vmem:[#allocation2 + $0xca] sm:$0xff] }
 0x475   : > { %v9757_v62 = vadd.f32 %v5563_v63, %v5339_v15  ;;  %7028 = vmatpush3.msra.mxu1 %v3791_v52  ;;  %v2289_v52 = vld [vmem:[#allocation2 + $0xc8] sm:$0xff] }
 0x476   : > { %v5343_v46 = vpop.f32.mrf.mxu1  ;;  %v5568_v49 = vpop.f32.mrf.mxu0  ;;  %6162 = vmatmul.mubr.f32.gmra.mxu1 %v2288_v35  ;;  %6387 = vmatmul.mubr.f32.gmra.mxu0 %v2416_v7  ;;  %v3789_v15 = vld [vmem:[%s10094_s5 + $0xc28] sm:$0xff]  ;;  %v2354_v35 = vld [vmem:[#allocation2 + $0xd9] sm:$0xff] }
 0x477   : > { %v5344_v60 = vadd.f32 %v5343_v46, %v9400_v16  ;;  %6166 = vmatprep.mubr.f32.mxu1 %v2353_v55  ;;  %6391 = vmatprep.mubr.f32.mxu0 %v2481_v61  ;;  %v2482_v16 = vld [vmem:[#allocation2 + $0xdb] sm:$0xff] }
 0x478   : > { %v5345_v3 = vpop.f32.mrf.mxu1  ;;  %v5570_v63 = vpop.f32.mrf.mxu0  ;;  %7029 = vmatprep.subr.mxu1 %v3790_v10  ;;  %v2418_v61 = vld [vmem:[#allocation2 + $0xda] sm:$0xff] }
 0x479   : > { %v9763_v58 = vadd.f32 %v5568_v49, %v5344_v60  ;;  %7030 = vmatpush3.msra.mxu1 %v3790_v10  ;;  %v2290_v10 = vld [vmem:[#allocation2 + $0xd8] sm:$0xff]  ;;  %v3788_v60 = vld [vmem:[%s10094_s5 + $0xc20] sm:$0xff] }
 0x47a   : > { %v5348_v1 = vpop.f32.mrf.mxu1  ;;  %v5573_v22 = vpop.f32.mrf.mxu0  ;;  %6167 = vmatmul.mubr.f32.gmra.mxu1 %v2289_v52  ;;  %6392 = vmatmul.mubr.f32.gmra.mxu0 %v2417_v53  ;;  %v2355_v52 = vld [vmem:[#allocation2 + $0xe1] sm:$0xff] }
 0x47b   : > { %v5349_v7 = vadd.f32 %v5348_v1, %v9411_v12  ;;  %6171 = vmatprep.mubr.f32.mxu1 %v2354_v35  ;;  %6396 = vmatprep.mubr.f32.mxu0 %v2482_v16  ;;  %v2483_v12 = vld [vmem:[#allocation2 + $0xe3] sm:$0xff] }
 0x47c   : > { %v5350_v46 = vpop.f32.mrf.mxu1  ;;  %v5575_v49 = vpop.f32.mrf.mxu0  ;;  %7031 = vmatprep.subr.mxu1 %v3789_v15  ;;  %v2419_v16 = vld [vmem:[#allocation2 + $0xe2] sm:$0xff] }
 0x47d   : > { %v9769_v55 = vadd.f32 %v5573_v22, %v5349_v7  ;;  %7032 = vmatpush3.msra.mxu1 %v3789_v15  ;;  %v2291_v15 = vld [vmem:[#allocation2 + $0xe0] sm:$0xff]  ;;  %v3787_v7 = vld [vmem:[%s10094_s5 + $0xc18] sm:$0xff] }
 0x47e   : > { %v5353_v3 = vpop.f32.mrf.mxu1  ;;  %v5578_v63 = vpop.f32.mrf.mxu0  ;;  %6172 = vmatmul.mubr.f32.gmra.mxu1 %v2290_v10  ;;  %6397 = vmatmul.mubr.f32.gmra.mxu0 %v2418_v61  ;;  %v2356_v10 = vld [vmem:[#allocation2 + $0xf1] sm:$0xff] }
 0x47f   : > { %v5354_v53 = vadd.f32 %v5353_v3, %v9422_v9  ;;  %6176 = vmatprep.mubr.f32.mxu1 %v2355_v52  ;;  %6401 = vmatprep.mubr.f32.mxu0 %v2483_v12  ;;  %v2484_v9 = vld [vmem:[#allocation2 + $0xf3] sm:$0xff] }
 0x480   : > { %v5355_v1 = vpop.f32.mrf.mxu1  ;;  %v5580_v22 = vpop.f32.mrf.mxu0  ;;  %7033 = vmatprep.subr.mxu1 %v3788_v60  ;;  %v2420_v12 = vld [vmem:[#allocation2 + $0xf2] sm:$0xff] }
 0x481   : > { %v9775_v35 = vadd.f32 %v5578_v63, %v5354_v53  ;;  %7034 = vmatpush3.msra.mxu1 %v3788_v60  ;;  %v2292_v60 = vld [vmem:[#allocation2 + $0xf0] sm:$0xff] }
 0x482   : > { %v5358_v46 = vpop.f32.mrf.mxu1  ;;  %v5583_v49 = vpop.f32.mrf.mxu0  ;;  %6177 = vmatmul.mubr.f32.gmra.mxu1 %v2291_v15  ;;  %6402 = vmatmul.mubr.f32.gmra.mxu0 %v2419_v16  ;;  %v3786_v53 = vld [vmem:[%s10094_s5 + $0xc10] sm:$0xff]  ;;  %v2357_v15 = vld [vmem:[#allocation2 + $0xf9] sm:$0xff] }
 0x483   : > { %v5359_v61 = vadd.f32 %v5358_v46, %v9433_v48  ;;  %6181 = vmatprep.mubr.f32.mxu1 %v2356_v10  ;;  %6406 = vmatprep.mubr.f32.mxu0 %v2484_v9  ;;  %v2485_v48 = vld [vmem:[#allocation2 + $0xfb] sm:$0xff] }
 0x484   : > { %v5360_v3 = vpop.f32.mrf.mxu1  ;;  %v5585_v63 = vpop.f32.mrf.mxu0  ;;  %7035 = vmatprep.subr.mxu1 %v3787_v7  ;;  %v2421_v9 = vld [vmem:[#allocation2 + $0xfa] sm:$0xff] }
 0x485   : > { %v9781_v52 = vadd.f32 %v5583_v49, %v5359_v61  ;;  %7036 = vmatpush3.msra.mxu1 %v3787_v7  ;;  %v2293_v7 = vld [vmem:[#allocation2 + $0xf8] sm:$0xff]  ;;  %v3785_v61 = vld [vmem:[%s10094_s5 + $0xc08] sm:$0xff] }
 0x486   : > { %v5363_v1 = vpop.f32.mrf.mxu1  ;;  %v5588_v22 = vpop.f32.mrf.mxu0  ;;  %6182 = vmatmul.mubr.f32.gmra.mxu1 %v2292_v60  ;;  %6407 = vmatmul.mubr.f32.gmra.mxu0 %v2420_v12  ;;  %v2358_v60 = vld [vmem:[#allocation2 + $0x109] sm:$0xff] }
 0x487   : > { %v5364_v16 = vadd.f32 %v5363_v1, %v9444_v41  ;;  %6186 = vmatprep.mubr.f32.mxu1 %v2357_v15  ;;  %6411 = vmatprep.mubr.f32.mxu0 %v2485_v48  ;;  %v2486_v41 = vld [vmem:[#allocation2 + $0x10b] sm:$0xff] }
 0x488   : > { %v5365_v46 = vpop.f32.mrf.mxu1  ;;  %v5590_v49 = vpop.f32.mrf.mxu0  ;;  %7037 = vmatprep.subr.mxu1 %v3786_v53  ;;  %v2422_v48 = vld [vmem:[#allocation2 + $0x10a] sm:$0xff] }
 0x489   : > { %v9787_v10 = vadd.f32 %v5588_v22, %v5364_v16  ;;  %7038 = vmatpush3.msra.mxu1 %v3786_v53  ;;  %v2294_v53 = vld [vmem:[#allocation2 + $0x108] sm:$0xff]  ;;  %v3784_v16 = vld [vmem:[%s10094_s5 + $0xc00] sm:$0xff] }
 0x48a   : > { %v5368_v3 = vpop.f32.mrf.mxu1  ;;  %v5593_v63 = vpop.f32.mrf.mxu0  ;;  %6187 = vmatmul.mubr.f32.gmra.mxu1 %v2293_v7  ;;  %6412 = vmatmul.mubr.f32.gmra.mxu0 %v2421_v9  ;;  %v2359_v7 = vld [vmem:[#allocation2 + $0x111] sm:$0xff] }
 0x48b   : > { %v5369_v12 = vadd.f32 %v5368_v3, %v9455_v11  ;;  %6191 = vmatprep.mubr.f32.mxu1 %v2358_v60  ;;  %6416 = vmatprep.mubr.f32.mxu0 %v2486_v41  ;;  %v2487_v11 = vld [vmem:[#allocation2 + $0x113] sm:$0xff] }
 0x48c   : > { %v5370_v1 = vpop.f32.mrf.mxu1  ;;  %v5595_v22 = vpop.f32.mrf.mxu0  ;;  %7039 = vmatprep.subr.mxu1 %v3785_v61  ;;  %v2423_v41 = vld [vmem:[#allocation2 + $0x112] sm:$0xff] }
 0x48d   : > { %v9793_v15 = vadd.f32 %v5593_v63, %v5369_v12  ;;  %7040 = vmatpush3.msra.mxu1 %v3785_v61  ;;  %v2295_v61 = vld [vmem:[#allocation2 + $0x110] sm:$0xff]  ;;  %v2360_v22 = vld [vmem:[#allocation2 + $0x121] sm:$0xff] }
 0x48e   : > { %v5373_v46 = vpop.f32.mrf.mxu1  ;;  %v5598_v49 = vpop.f32.mrf.mxu0  ;;  %6192 = vmatmul.mubr.f32.gmra.mxu1 %v2294_v53  ;;  %6417 = vmatmul.mubr.f32.gmra.mxu0 %v2422_v48  ;;  %v2488_v53 = vld [vmem:[#allocation2 + $0x123] sm:$0xff] }
 0x48f   : > { %v5374_v9 = vadd.f32 %v5373_v46, %v9466_v26  ;;  %6196 = vmatprep.mubr.f32.mxu1 %v2359_v7  ;;  %6421 = vmatprep.mubr.f32.mxu0 %v2487_v11  ;;  %v2296_v11 = vld [vmem:[#allocation2 + $0x120] sm:$0xff] }
 0x490   : > { %v5375_v3 = vpop.f32.mrf.mxu1  ;;  %v5600_v63 = vpop.f32.mrf.mxu0  ;;  %7041 = vmatprep.subr.mxu1 %v3784_v16 }
 0x491   : > { %v9799_v60 = vadd.f32 %v5598_v49, %v5374_v9  ;;  %7042 = vmatpush3.msra.mxu1 %v3784_v16  ;;  %v2424_v49 = vld [vmem:[#allocation2 + $0x122] sm:$0xff]  ;;  %v2489_v63 = vld [vmem:[#allocation2 + $0x12b] sm:$0xff] }
 0x492   : > { %v5378_v12 = vpop.f32.mrf.mxu1  ;;  %v5603_v1 = vpop.f32.mrf.mxu0  ;;  %6197 = vmatmul.mubr.f32.gmra.mxu1 %v2295_v61  ;;  %6422 = vmatmul.mubr.f32.gmra.mxu0 %v2423_v41  ;;  %v2361_v16 = vld [vmem:[#allocation2 + $0x129] sm:$0xff] }
 0x493   : > { %v5379_v48 = vadd.f32 %v5378_v12, %v9479_v19  ;;  %6201 = vmatprep.mubr.f32.mxu1 %v2360_v22  ;;  %6426 = vmatprep.mubr.f32.mxu0 %v2488_v53  ;;  %v2297_v22 = vld [vmem:[#allocation2 + $0x128] sm:$0xff] }
 0x494   : > { %v5380_v26 = vpop.f32.mrf.mxu1  ;;  %v5605_v46 = vpop.f32.mrf.mxu0  ;;  %v2425_v53 = vld [vmem:[#allocation2 + $0x12a] sm:$0xff] }
 0x495   : > { %v9802_v7 = vadd.f32 %v5603_v1, %v5379_v48  ;;  %v2362_v26 = vld [vmem:[#allocation2 + $0x139] sm:$0xff] }
 0x496   : > { %v5673_v9 = vpop.f32.mrf.mxu1  ;;  %v5898_v3 = vpop.f32.mrf.mxu0  ;;  %6202 = vmatmul.mubr.f32.gmra.mxu1 %v2296_v11  ;;  %6427 = vmatmul.mubr.f32.gmra.mxu0 %v2424_v49  ;;  %v2490_v46 = vld [vmem:[#allocation2 + $0x13b] sm:$0xff] }
 0x497   : > { %v5674_v61 = vadd.f32 %v5673_v9, %v9490_v29  ;;  %6206 = vmatprep.mubr.f32.mxu1 %v2361_v16  ;;  %6431 = vmatprep.mubr.f32.mxu0 %v2489_v63  ;;  %v2298_v16 = vld [vmem:[#allocation2 + $0x138] sm:$0xff] }
 0x498   : > { %v5675_v41 = vpop.f32.mrf.mxu1  ;;  %v5900_v19 = vpop.f32.mrf.mxu0  ;;  %v2426_v63 = vld [vmem:[#allocation2 + $0x13a] sm:$0xff] }
 0x499   : > { %v9805_v12 = vadd.f32 %v5898_v3, %v5674_v61  ;;  %v2363_v41 = vld [vmem:[#allocation2 + $0x141] sm:$0xff] }
 0x49a   : > { %v5678_v1 = vpop.f32.mrf.mxu1  ;;  %v5903_v48 = vpop.f32.mrf.mxu0  ;;  %6207 = vmatmul.mubr.f32.gmra.mxu1 %v2297_v22  ;;  %6432 = vmatmul.mubr.f32.gmra.mxu0 %v2425_v53  ;;  %v2491_v19 = vld [vmem:[#allocation2 + $0x143] sm:$0xff] }
 0x49b   : > { %v5679_v11 = vadd.f32 %v5678_v1, %v9501_v44  ;;  %6211 = vmatprep.mubr.f32.mxu1 %v2362_v26  ;;  %6436 = vmatprep.mubr.f32.mxu0 %v2490_v46  ;;  %v2299_v26 = vld [vmem:[#allocation2 + $0x140] sm:$0xff] }
 0x49c   : > { %v5680_v49 = vpop.f32.mrf.mxu1  ;;  %v5905_v29 = vpop.f32.mrf.mxu0  ;;  %v2427_v46 = vld [vmem:[#allocation2 + $0x142] sm:$0xff] }
 0x49d   : > { %v9808_v9 = vadd.f32 %v5903_v48, %v5679_v11  ;;  %v2364_v49 = vld [vmem:[#allocation2 + $0x151] sm:$0xff] }
 0x49e   : > { %v5683_v3 = vpop.f32.mrf.mxu1  ;;  %v5908_v61 = vpop.f32.mrf.mxu0  ;;  %6212 = vmatmul.mubr.f32.gmra.mxu1 %v2298_v16  ;;  %6437 = vmatmul.mubr.f32.gmra.mxu0 %v2426_v63  ;;  %v2492_v29 = vld [vmem:[#allocation2 + $0x153] sm:$0xff] }
 0x49f   : > { %v5684_v22 = vadd.f32 %v5683_v3, %v9512_v30  ;;  %6216 = vmatprep.mubr.f32.mxu1 %v2363_v41  ;;  %6441 = vmatprep.mubr.f32.mxu0 %v2491_v19  ;;  %v2300_v41 = vld [vmem:[#allocation2 + $0x150] sm:$0xff] }
 0x4a0   : > { %v5685_v53 = vpop.f32.mrf.mxu1  ;;  %v5910_v44 = vpop.f32.mrf.mxu0  ;;  %v2428_v19 = vld [vmem:[#allocation2 + $0x152] sm:$0xff] }
 0x4a1   : > { %v9811_v1 = vadd.f32 %v5908_v61, %v5684_v22  ;;  %v2365_v53 = vld [vmem:[#allocation2 + $0x159] sm:$0xff] }
 0x4a2   : > { %v5688_v48 = vpop.f32.mrf.mxu1  ;;  %v5913_v11 = vpop.f32.mrf.mxu0  ;;  %6217 = vmatmul.mubr.f32.gmra.mxu1 %v2299_v26  ;;  %6442 = vmatmul.mubr.f32.gmra.mxu0 %v2427_v46  ;;  %v2493_v44 = vld [vmem:[#allocation2 + $0x15b] sm:$0xff] }
 0x4a3   : > { %v5689_v16 = vadd.f32 %v5688_v48, %v9523_v59  ;;  %6221 = vmatprep.mubr.f32.mxu1 %v2364_v49  ;;  %6446 = vmatprep.mubr.f32.mxu0 %v2492_v29  ;;  %v2301_v49 = vld [vmem:[#allocation2 + $0x158] sm:$0xff] }
 0x4a4   : > { %v5690_v63 = vpop.f32.mrf.mxu1  ;;  %v5915_v30 = vpop.f32.mrf.mxu0  ;;  %v2429_v29 = vld [vmem:[#allocation2 + $0x15a] sm:$0xff] }
 0x4a5   : > { %v9814_v3 = vadd.f32 %v5913_v11, %v5689_v16  ;;  %v2366_v63 = vld [vmem:[#allocation2 + $0x169] sm:$0xff] }
 0x4a6   : > { %v5693_v61 = vpop.f32.mrf.mxu1  ;;  %v5918_v22 = vpop.f32.mrf.mxu0  ;;  %6222 = vmatmul.mubr.f32.gmra.mxu1 %v2300_v41  ;;  %6447 = vmatmul.mubr.f32.gmra.mxu0 %v2428_v19  ;;  %v2494_v30 = vld [vmem:[#allocation2 + $0x16b] sm:$0xff] }
 0x4a7   : > { %v5694_v26 = vadd.f32 %v5693_v61, %v9534_v25  ;;  %6226 = vmatprep.mubr.f32.mxu1 %v2365_v53  ;;  %6451 = vmatprep.mubr.f32.mxu0 %v2493_v44  ;;  %v2302_v53 = vld [vmem:[#allocation2 + $0x168] sm:$0xff] }
 0x4a8   : > { %v5695_v46 = vpop.f32.mrf.mxu1  ;;  %v5920_v59 = vpop.f32.mrf.mxu0  ;;  %v2430_v44 = vld [vmem:[#allocation2 + $0x16a] sm:$0xff] }
 0x4a9   : > { %v9817_v48 = vadd.f32 %v5918_v22, %v5694_v26 }
 0x4aa   : > { %v5698_v11 = vpop.f32.mrf.mxu1  ;;  %v5923_v16 = vpop.f32.mrf.mxu0  ;;  %6227 = vmatmul.mubr.f32.gmra.mxu1 %v2301_v49  ;;  %6452 = vmatmul.mubr.f32.gmra.mxu0 %v2429_v29  ;;  %v2303_v29 = vld [vmem:[#allocation2 + $0x170] sm:$0xff] }
 0x4ab   : > { %v5699_v41 = vadd.f32 %v5698_v11, %v9545_v56  ;;  %6231 = vmatprep.mubr.f32.mxu1 %v2366_v63  ;;  %6456 = vmatprep.mubr.f32.mxu0 %v2494_v30  ;;  %v2431_v11 = vld [vmem:[#allocation2 + $0x172] sm:$0xff] }
 0x4ac   : > { %v5700_v19 = vpop.f32.mrf.mxu1  ;;  %v5925_v25 = vpop.f32.mrf.mxu0 }
 0x4ad   : > { %v9820_v61 = vadd.f32 %v5923_v16, %v5699_v41  ;;  %v2432_v19 = vld [vmem:[#allocation2 + $0x182] sm:$0xff] }
 0x4ae   : > { %v5703_v22 = vpop.f32.mrf.mxu1  ;;  %v5928_v26 = vpop.f32.mrf.mxu0  ;;  %6232 = vmatmul.mubr.f32.gmra.mxu1 %v2302_v53  ;;  %6457 = vmatmul.mubr.f32.gmra.mxu0 %v2430_v44 }
 0x4af   : > { %v5704_v46 = vadd.f32 %v5703_v22, %v9556_v34  ;;  %6236 = vmatprep.mubr.f32.mxu1 %v9580_v37  ;;  %6461 = vmatprep.mubr.f32.mxu0 %v9582_v54  ;;  %v2304_v54 = vld [vmem:[#allocation2 + $0x180] sm:$0xff] }
 0x4b0   : > { %v5705_v59 = vpop.f32.mrf.mxu1  ;;  %v5930_v56 = vpop.f32.mrf.mxu0 }
 0x4b1   : > { %v9825_v49 = vadd.f32 %v5928_v26, %v5704_v46  ;;  %v2433_v26 = vld [vmem:[#allocation2 + $0x18a] sm:$0xff] }
 0x4b2   : > { %v5708_v16 = vpop.f32.mrf.mxu1  ;;  %v5933_v63 = vpop.f32.mrf.mxu0  ;;  %6237 = vmatmul.mubr.f32.gmra.mxu1 %v2303_v29  ;;  %6462 = vmatmul.mubr.f32.gmra.mxu0 %v2431_v11  ;;  %v2434_v11 = vld [vmem:[#allocation2 + $0x19a] sm:$0xff] }
 0x4b3   : > { %v5709_v30 = vadd.f32 %v5708_v16, %v9567_v13  ;;  %6241 = vmatprep.mubr.f32.mxu1 %v9597_v17  ;;  %6466 = vmatprep.mubr.f32.mxu0 %v9599_v18  ;;  %v2305_v18 = vld [vmem:[#allocation2 + $0x188] sm:$0xff] }
 0x4b4   : > { %v5710_v34 = vpop.f32.mrf.mxu1  ;;  %v5935_v37 = vpop.f32.mrf.mxu0 }
 0x4b5   : > { %v9830_v41 = vadd.f32 %v5933_v63, %v5709_v30 }
 0x4b6   : > { %v5713_v25 = vpop.f32.mrf.mxu1  ;;  %v5938_v53 = vpop.f32.mrf.mxu0  ;;  %6242 = vmatmul.mubr.f32.gmra.mxu1 %v2304_v54  ;;  %6467 = vmatmul.mubr.f32.gmra.mxu0 %v2432_v19 }
 0x4b7   : > { %v5714_v44 = vadd.f32 %v5713_v25, %v9578_v38  ;;  %6246 = vmatprep.mubr.f32.mxu1 %v9614_v36  ;;  %6471 = vmatprep.mubr.f32.mxu0 %v9616_v5  ;;  %v2306_v5 = vld [vmem:[#allocation2 + $0x198] sm:$0xff] }
 0x4b8   : > { %v5715_v13 = vpop.f32.mrf.mxu1  ;;  %v5940_v17 = vpop.f32.mrf.mxu0 }
 0x4b9   : > { %v9835_v22 = vadd.f32 %v5938_v53, %v5714_v44  ;;  %v7107_v44 = vld [vmem:[#allocation2] sm:$0xff] }
 0x4ba   : > { %v5718_v46 = vpop.f32.mrf.mxu1  ;;  %v5943_v59 = vpop.f32.mrf.mxu0  ;;  %6247 = vmatmul.mubr.f32.gmra.mxu1 %v2305_v18  ;;  %6472 = vmatmul.mubr.f32.gmra.mxu0 %v2433_v26 }
 0x4bb   : > { %v5719_v56 = vadd.f32 %v5718_v46, %v9595_v39  ;;  %6251 = vmatprep.mubr.f32.mxu1 %v9631_v51  ;;  %6476 = vmatprep.mubr.f32.mxu0 %v9633_v31  ;;  %v2307_v31 = vld [vmem:[#allocation2 + $0x1a0] sm:$0xff] }
 0x4bc   : > { %v5720_v38 = vpop.f32.mrf.mxu1  ;;  %v5945_v36 = vpop.f32.mrf.mxu0 }
 0x4bd   : > { %v9840_v29 = vadd.f32 %v5943_v59, %v5719_v56  ;;  %v2375_v59 = vld [vmem:[#allocation2 + $0x1d1] sm:$0xff] }
 0x4be   : > { %v5723_v16 = vpop.f32.mrf.mxu1  ;;  %v5948_v63 = vpop.f32.mrf.mxu0  ;;  %6252 = vmatmul.mubr.f32.gmra.mxu1 %v2306_v5  ;;  %6477 = vmatmul.mubr.f32.gmra.mxu0 %v2434_v11  ;;  %v10112_v5 = vld [vmem:[#allocation6_spill] sm:$0xff] }
 0x4bf   : > { %v5724_v30 = vadd.f32 %v5723_v16, %v9612_v40  ;;  %6256 = vmatprep.mubr.f32.mxu1 %v9653_v57  ;;  %6481 = vmatprep.mubr.f32.mxu0 %v9655_v27 }
 0x4c0   : > { %v5725_v39 = vpop.f32.mrf.mxu1  ;;  %v5950_v51 = vpop.f32.mrf.mxu0 }
 0x4c1   : > { %v9845_v34 = vadd.f32 %v5948_v63, %v5724_v30  ;;  %v2536_v51 = vld [vmem:[#allocation2 + $0x64] sm:$0xff] }
 0x4c2   : > { %v5728_v37 = vpop.f32.mrf.mxu1  ;;  %v5953_v54 = vpop.f32.mrf.mxu0  ;;  %6257 = vmatmul.mubr.f32.gmra.mxu1 %v2307_v31  ;;  %6482 = vmatmul.mubr.f32.gmra.mxu0 %v9641_v45 }
 0x4c3   : > { %v5729_v19 = vadd.f32 %v5728_v37, %v9629_v43  ;;  %6261 = vmatprep.mubr.f32.mxu1 %v9668_v21  ;;  %6486 = vmatprep.mubr.f32.mxu0 %v9670_v32  ;;  %v2374_v21 = vld [vmem:[#allocation2 + $0x1c9] sm:$0xff] }
 0x4c4   : > { %v5730_v40 = vpop.f32.mrf.mxu1  ;;  %v5955_v57 = vpop.f32.mrf.mxu0  ;;  %v2502_v32 = vld [vmem:[#allocation2 + $0x1cb] sm:$0xff] }
 0x4c5   : > { %v9851_v25 = vadd.f32 %v5953_v54, %v5729_v19  ;;  %v2537_v40 = vld [vmem:[#allocation2 + $0x6c] sm:$0xff] }
 0x4c6   : > { %v5733_v27 = vpop.f32.mrf.mxu1  ;;  %v5958_v53 = vpop.f32.mrf.mxu0  ;;  %6262 = vmatmul.mubr.f32.gmra.mxu1 %v7107_v44  ;;  %6487 = vmatmul.mubr.f32.gmra.mxu0 %v9649_v50  ;;  %v2438_v50 = vld [vmem:[#allocation2 + $0x1ca] sm:$0xff] }
 0x4c7   : > { %v5734_v13 = vadd.f32 %v5733_v27, %v9651_v0  ;;  %6266 = vmatprep.mubr.f32.mxu1 %v9688_v28  ;;  %6491 = vmatprep.mubr.f32.mxu0 %v9690_v33  ;;  %v2503_v33 = vld [vmem:[#allocation2 + $0x1d3] sm:$0xff] }
 0x4c8   : > { %v5735_v43 = vpop.f32.mrf.mxu1  ;;  %v5960_v45 = vpop.f32.mrf.mxu0 }
 0x4c9   : > { %v9857_v17 = vadd.f32 %v5958_v53, %v5734_v13  ;;  %v2538_v53 = vld [vmem:[#allocation2 + $0x7c] sm:$0xff] }
 0x4ca   : > { %v5738_v18 = vpop.f32.mrf.mxu1  ;;  %v5963_v26 = vpop.f32.mrf.mxu0  ;;  %6267 = vmatmul.mubr.f32.gmra.mxu1 %v7107_v44  ;;  %6492 = vmatmul.mubr.f32.gmra.mxu0 %v9673_v2  ;;  %v2439_v2 = vld [vmem:[#allocation2 + $0x1d2] sm:$0xff] }
 0x4cb   : > { %v5739_v46 = vadd.f32 %v5738_v18, %v9675_v4  ;;  %6271 = vmatprep.mubr.f32.mxu1 %v2374_v21  ;;  %6496 = vmatprep.mubr.f32.mxu0 %v2502_v32  ;;  %v2539_v21 = vld [vmem:[#allocation2 + $0x84] sm:$0xff]  ;;  %v2540_v18 = vld [vmem:[#allocation2 + $0x94] sm:$0xff] }
 0x4cc   : > { %v5740_v0 = vpop.f32.mrf.mxu1  ;;  %v5965_v28 = vpop.f32.mrf.mxu0 }
 0x4cd   : > { %v9861_v56 = vadd.f32 %v5963_v26, %v5739_v46  ;;  %v2541_v28 = vld [vmem:[#allocation2 + $0x9c] sm:$0xff] }
 0x4ce   : > { %v5743_v38 = vpop.f32.mrf.mxu1  ;;  %v5968_v36 = vpop.f32.mrf.mxu0  ;;  %6272 = vmatmul.mubr.f32.gmra.mxu1 %v7107_v44  ;;  %6497 = vmatmul.mubr.f32.gmra.mxu0 %v2438_v50 }
 0x4cf   : > { %v5744_v11 = vadd.f32 %v5743_v38, %v10112_v5  ;;  %6276 = vmatprep.mubr.f32.mxu1 %v2375_v59  ;;  %6501 = vmatprep.mubr.f32.mxu0 %v2503_v33  ;;  %v2542_v33 = vld [vmem:[#allocation2 + $0xac] sm:$0xff] }
 0x4d0   : > { %v5745_v16 = vpop.f32.mrf.mxu1  ;;  %v5970_v4 = vpop.f32.mrf.mxu0 }
 0x4d1   : > { %v9864_v63 = vadd.f32 %v5968_v36, %v5744_v11  ;;  %v2544_v4 = vld [vmem:[#allocation2 + $0xc4] sm:$0xff] }
 0x4d2   : > { %v5748_v30 = vpop.f32.mrf.mxu1  ;;  %v5973_v39 = vpop.f32.mrf.mxu0  ;;  %6277 = vmatmul.mubr.f32.gmra.mxu1 %v7107_v44  ;;  %6502 = vmatmul.mubr.f32.gmra.mxu0 %v2439_v2  ;;  %v2543_v2 = vld [vmem:[#allocation2 + $0xb4] sm:$0xff] }
 0x4d3   : > { %v5749_v31 = vadd.f32 %v5748_v30, %v9709_v24  ;;  %7043 = vmatprep.mubr.f32.mxu1 %v2536_v51 }
 0x4d4   : > { %v5750_v37 = vpop.f32.mrf.mxu1  ;;  %v5975_v54 = vpop.f32.mrf.mxu0 }
 0x4d5   : > { %v9867_v19 = vadd.f32 %v5973_v39, %v5749_v31  ;;  %v2545_v37 = vld [vmem:[#allocation2 + $0xcc] sm:$0xff] }
 0x4d6   : > { %v5753_v57 = vpop.f32.mrf.mxu1  ;;  %v5978_v27 = vpop.f32.mrf.mxu0  ;;  %7044 = vmatmul.mubr.f32.vlgmr.msra.gmra.mxu1 %v2537_v40  ;;  %v2546_v40 = vld [vmem:[#allocation2 + $0xdc] sm:$0xff] }
 0x4d7   : > { %v5754_v13 = vadd.f32 %v5753_v57, %v9715_v8  ;;  %7046 = vmatprep.mubr.f32.mxu1 %v2538_v53 }
 0x4d8   : > { %v5755_v43 = vpop.f32.mrf.mxu1  ;;  %v5980_v45 = vpop.f32.mrf.mxu0 }
 0x4d9   : > { %v9870_v44 = vadd.f32 %v5978_v27, %v5754_v13  ;;  %v2547_v43 = vld [vmem:[#allocation2 + $0xe4] sm:$0xff] }
 0x4da   : > { %v5758_v32 = vpop.f32.mrf.mxu1  ;;  %v5983_v24 = vpop.f32.mrf.mxu0  ;;  %7047 = vmatmul.mubr.f32.gmra.mxu1 %v2539_v21  ;;  %v2548_v21 = vld [vmem:[#allocation2 + $0xf4] sm:$0xff] }
 0x4db   : > { %v5759_v26 = vadd.f32 %v5758_v32, %v9721_v23  ;;  %7049 = vmatprep.mubr.f32.mxu1 %v2540_v18 }
 0x4dc   : > { %v5760_v46 = vpop.f32.mrf.mxu1  ;;  %v5985_v50 = vpop.f32.mrf.mxu0 }
 0x4dd   : > { %v9873_v0 = vadd.f32 %v5983_v24, %v5759_v26  ;;  %v2549_v46 = vld [vmem:[#allocation2 + $0xfc] sm:$0xff] }
 0x4de   : > { %v5763_v59 = vpop.f32.mrf.mxu1  ;;  %v5988_v8 = vpop.f32.mrf.mxu0  ;;  %7050 = vmatmul.mubr.f32.gmra.mxu1 %v2541_v28  ;;  %v2550_v28 = vld [vmem:[#allocation2 + $0x10c] sm:$0xff] }
 0x4df   : > { %v5764_v38 = vadd.f32 %v5763_v59, %v9727_v14  ;;  %7052 = vmatprep.mubr.f32.mxu1 %v2542_v33 }
 0x4e0   : > { %v5765_v36 = vpop.f32.mrf.mxu1  ;;  %v5990_v5 = vpop.f32.mrf.mxu0 }
 0x4e1   : > { %v9876_v11 = vadd.f32 %v5988_v8, %v5764_v38  ;;  %v2551_v36 = vld [vmem:[#allocation2 + $0x114] sm:$0xff] }
 0x4e2   : > { %v5768_v16 = vpop.f32.mrf.mxu1  ;;  %v5993_v23 = vpop.f32.mrf.mxu0  ;;  %7053 = vmatmul.mubr.f32.gmra.mxu1 %v2543_v2  ;;  %v2552_v2 = vld [vmem:[#allocation2 + $0x124] sm:$0xff] }
 0x4e3   : > { %v5769_v30 = vadd.f32 %v5768_v16, %v9733_v6  ;;  %7055 = vmatprep.mubr.f32.mxu1 %v2544_v4 }
 0x4e4   : > { %v5770_v39 = vpop.f32.mrf.mxu1  ;;  %v5995_v51 = vpop.f32.mrf.mxu0 }
 0x4e5   : > { %v9879_v31 = vadd.f32 %v5993_v23, %v5769_v30  ;;  %v2553_v39 = vld [vmem:[#allocation2 + $0x12c] sm:$0xff] }
 0x4e6   : > { %v5773_v54 = vpop.f32.mrf.mxu1  ;;  %v5998_v14 = vpop.f32.mrf.mxu0  ;;  %7056 = vmatmul.mubr.f32.gmra.mxu1 %v2545_v37  ;;  %v2554_v37 = vld [vmem:[#allocation2 + $0x13c] sm:$0xff] }
 0x4e7   : > { %v5774_v57 = vadd.f32 %v5773_v54, %v9739_v20  ;;  %7058 = vmatprep.mubr.f32.mxu1 %v2546_v40 }
 0x4e8   : > { %v5775_v27 = vpop.f32.mrf.mxu1  ;;  %v6000_v53 = vpop.f32.mrf.mxu0 }
 0x4e9   : > { %v9882_v13 = vadd.f32 %v5998_v14, %v5774_v57  ;;  %v2555_v27 = vld [vmem:[#allocation2 + $0x144] sm:$0xff] }
 0x4ea   : > { %v5778_v45 = vpop.f32.mrf.mxu1  ;;  %v6003_v6 = vpop.f32.mrf.mxu0  ;;  %7059 = vmatmul.mubr.f32.gmra.mxu1 %v2547_v43  ;;  %v2556_v43 = vld [vmem:[#allocation2 + $0x154] sm:$0xff] }
 0x4eb   : > { %v5779_v32 = vadd.f32 %v5778_v45, %v9745_v47  ;;  %7061 = vmatprep.mubr.f32.mxu1 %v2548_v21 }
 0x4ec   : > { %v5780_v24 = vpop.f32.mrf.mxu1  ;;  %v6005_v18 = vpop.f32.mrf.mxu0 }
 0x4ed   : > { %v9885_v26 = vadd.f32 %v6003_v6, %v5779_v32  ;;  %v2557_v24 = vld [vmem:[#allocation2 + $0x15c] sm:$0xff] }
 0x4ee   : > { %v5783_v50 = vpop.f32.mrf.mxu1  ;;  %v6008_v20 = vpop.f32.mrf.mxu0  ;;  %7062 = vmatmul.mubr.f32.gmra.mxu1 %v2549_v46  ;;  %v2558_v46 = vld [vmem:[#allocation2 + $0x16c] sm:$0xff] }
 0x4ef   : > { %v5784_v59 = vadd.f32 %v5783_v50, %v9751_v42  ;;  %7064 = vmatprep.mubr.f32.mxu1 %v2550_v28 }
 0x4f0   : > { %v5785_v8 = vpop.f32.mrf.mxu1  ;;  %v6010_v33 = vpop.f32.mrf.mxu0 }
 0x4f1   : > { %v9888_v38 = vadd.f32 %v6008_v20, %v5784_v59  ;;  %v2559_v8 = vld [vmem:[#allocation2 + $0x174] sm:$0xff] }
 0x4f2   : > { %v5788_v5 = vpop.f32.mrf.mxu1  ;;  %v6013_v47 = vpop.f32.mrf.mxu0  ;;  %7065 = vmatmul.mubr.f32.gmra.mxu1 %v2551_v36  ;;  %v2560_v36 = vld [vmem:[#allocation2 + $0x184] sm:$0xff] }
 0x4f3   : > { %v5789_v16 = vadd.f32 %v5788_v5, %v9757_v62  ;;  %7067 = vmatprep.mubr.f32.mxu1 %v2552_v2 }
 0x4f4   : > { %v5790_v23 = vpop.f32.mrf.mxu1  ;;  %v6015_v4 = vpop.f32.mrf.mxu0 }
 0x4f5   : > { %v9891_v30 = vadd.f32 %v6013_v47, %v5789_v16  ;;  %v2561_v23 = vld [vmem:[#allocation2 + $0x18c] sm:$0xff] }
 0x4f6   : > { %v5793_v51 = vpop.f32.mrf.mxu1  ;;  %v6018_v42 = vpop.f32.mrf.mxu0  ;;  %7068 = vmatmul.mubr.f32.gmra.mxu1 %v2553_v39  ;;  %v2562_v39 = vld [vmem:[#allocation2 + $0x19c] sm:$0xff] }
 0x4f7   : > { %v5794_v54 = vadd.f32 %v5793_v51, %v9763_v58  ;;  %7070 = vmatprep.mubr.f32.mxu1 %v2554_v37 }
 0x4f8   : > { %v5795_v14 = vpop.f32.mrf.mxu1  ;;  %v6020_v40 = vpop.f32.mrf.mxu0 }
 0x4f9   : > { %v9894_v57 = vadd.f32 %v6018_v42, %v5794_v54  ;;  %v2564_v54 = vld [vmem:[#allocation2 + $0x1b4] sm:$0xff]  ;;  %v2563_v40 = vld [vmem:[#allocation2 + $0x1a4] sm:$0xff] }
 0x4fa   : > { %v5798_v53 = vpop.f32.mrf.mxu1  ;;  %v6023_v62 = vpop.f32.mrf.mxu0  ;;  %7071 = vmatmul.mubr.f32.gmra.mxu1 %v2555_v27 }
 0x4fb   : > { %v5799_v45 = vadd.f32 %v5798_v53, %v9769_v55  ;;  %7073 = vmatprep.mubr.f32.mxu1 %v2556_v43 }
 0x4fc   : > { %v5800_v6 = vpop.f32.mrf.mxu1  ;;  %v6025_v21 = vpop.f32.mrf.mxu0 }
 0x4fd   : > { %v9897_v32 = vadd.f32 %v6023_v62, %v5799_v45  ;;  %v2565_v62 = vld [vmem:[#allocation2 + $0x1bc] sm:$0xff]  ;;  %v2566_v6 = vld [vmem:[#allocation2 + $0x1cc] sm:$0xff] }
 0x4fe   : > { %v5803_v18 = vpop.f32.mrf.mxu1  ;;  %v6028_v58 = vpop.f32.mrf.mxu0  ;;  %7074 = vmatmul.mubr.f32.gmra.mxu1 %v2557_v24 }
 0x4ff   : > { %v5804_v50 = vadd.f32 %v5803_v18, %v9775_v35  ;;  %7076 = vmatprep.mubr.f32.mxu1 %v2558_v46 }
 0x500   : > { %v5805_v20 = vpop.f32.mrf.mxu1  ;;  %v6030_v28 = vpop.f32.mrf.mxu0 }
 0x501   : > { %v9900_v59 = vadd.f32 %v6028_v58, %v5804_v50  ;;  %v2567_v58 = vld [vmem:[#allocation2 + $0x1d4] sm:$0xff] }
 0x502   : > { %v5808_v33 = vpop.f32.mrf.mxu1  ;;  %v6033_v55 = vpop.f32.mrf.mxu0  ;;  %7077 = vmatmul.mubr.f32.gmra.mxu1 %v2559_v8 }
 0x503   : > { %v5809_v5 = vadd.f32 %v5808_v33, %v9781_v52  ;;  %7079 = vmatprep.mubr.f32.mxu1 %v2560_v36 }
 0x504   : > { %v5810_v47 = vpop.f32.mrf.mxu1  ;;  %v6035_v2 = vpop.f32.mrf.mxu0 }
 0x505   : > { %v9903_v16 = vadd.f32 %v6033_v55, %v5809_v5 }
 0x506   : > { %v5813_v4 = vpop.f32.mrf.mxu1  ;;  %v6038_v35 = vpop.f32.mrf.mxu0  ;;  %7080 = vmatmul.mubr.f32.gmra.mxu1 %v2561_v23 }
 0x507   : > { %v5814_v51 = vadd.f32 %v5813_v4, %v9787_v10  ;;  %7082 = vmatprep.mubr.f32.mxu1 %v2562_v39 }
 0x508   : > { %v5815_v42 = vpop.f32.mrf.mxu1  ;;  %v6040_v37 = vpop.f32.mrf.mxu0 }
 0x509   : > { %v9906_v14 = vadd.f32 %v6038_v35, %v5814_v51 }
 0x50a   : > { %v5818_v52 = vpop.f32.mrf.mxu1  ;;  %v6043_v27 = vpop.f32.mrf.mxu0  ;;  %7083 = vmatmul.mubr.f32.gmra.mxu1 %v2563_v40 }
 0x50b   : > { %v5819_v53 = vadd.f32 %v5818_v52, %v9793_v15  ;;  %7085 = vmatprep.mubr.f32.mxu1 %v2564_v54 }
 0x50c   : > { %v5820_v43 = vpop.f32.mrf.mxu1  ;;  %v6045_v45 = vpop.f32.mrf.mxu0 }
 0x50d   : > { %v9909_v21 = vadd.f32 %v6043_v27, %v5819_v53 }
 0x50e   : > { %v5823_v10 = vpop.f32.mrf.mxu1  ;;  %v6048_v24 = vpop.f32.mrf.mxu0  ;;  %7086 = vmatmul.mubr.f32.gmra.mxu1 %v2565_v62 }
 0x50f   : > { %v5824_v18 = vadd.f32 %v5823_v10, %v9799_v60  ;;  %7088 = vmatprep.mubr.f32.mxu1 %v2566_v6 }
 0x510   : > { %v5825_v46 = vpop.f32.mrf.mxu1  ;;  %v6050_v50 = vpop.f32.mrf.mxu0 }
 0x511   : > { %v9912_v20 = vadd.f32 %v6048_v24, %v5824_v18 }
 0x512   : > { %v5828_v28 = vpop.f32.mrf.mxu1  ;;  %v6053_v15 = vpop.f32.mrf.mxu0  ;;  %7089 = vmatmul.mubr.f32.gmra.mxu1 %v2567_v58 }
 0x513   : > { %v5829_v8 = vadd.f32 %v5828_v28, %v9802_v7 }
 0x514   : > { %v5830_v33 = vpop.f32.mrf.mxu1  ;;  %v6055_v55 = vpop.f32.mrf.mxu0 }
 0x515   : > { %v9915_v36 = vadd.f32 %v6053_v15, %v5829_v8 }
 0x516   : > { %v6123_v5 = vpop.f32.mrf.mxu1  ;;  %v6348_v47 = vpop.f32.mrf.mxu0 }
 0x517   : > { %v6124_v2 = vadd.f32 %v6123_v5, %v9805_v12 }
 0x518   : > { %v6125_v60 = vpop.f32.mrf.mxu1  ;;  %v6350_v23 = vpop.f32.mrf.mxu0 }
 0x519   : > { %v9918_v4 = vadd.f32 %v6348_v47, %v6124_v2 }
 0x51a   : > { %v6128_v35 = vpop.f32.mrf.mxu1  ;;  %v6353_v39 = vpop.f32.mrf.mxu0 }
 0x51b   : > { %v6129_v51 = vadd.f32 %v6128_v35, %v9808_v9 }
 0x51c   : > { %v6130_v42 = vpop.f32.mrf.mxu1  ;;  %v6355_v37 = vpop.f32.mrf.mxu0 }
 0x51d   : > { %v9921_v54 = vadd.f32 %v6353_v39, %v6129_v51 }
 0x51e   : > { %v6133_v7 = vpop.f32.mrf.mxu1  ;;  %v6358_v40 = vpop.f32.mrf.mxu0 }
 0x51f   : > { %v6134_v52 = vadd.f32 %v6133_v7, %v9811_v1 }
 0x520   : > { %v6135_v27 = vpop.f32.mrf.mxu1  ;;  %v6360_v53 = vpop.f32.mrf.mxu0 }
 0x521   : > { %v9924_v62 = vadd.f32 %v6358_v40, %v6134_v52 }
 0x522   : > { %v6138_v12 = vpop.f32.mrf.mxu1  ;;  %v6363_v43 = vpop.f32.mrf.mxu0 }
 0x523   : > { %v6139_v45 = vadd.f32 %v6138_v12, %v9814_v3 }
 0x524   : > { %v6140_v6 = vpop.f32.mrf.mxu1  ;;  %v6365_v10 = vpop.f32.mrf.mxu0 }
 0x525   : > { %v9927_v24 = vadd.f32 %v6363_v43, %v6139_v45 }
 0x526   : > { %v6143_v9 = vpop.f32.mrf.mxu1  ;;  %v6368_v18 = vpop.f32.mrf.mxu0 }
 0x527   : > { %v6144_v58 = vadd.f32 %v6143_v9, %v9817_v48 }
 0x528   : > { %v6145_v46 = vpop.f32.mrf.mxu1  ;;  %v6370_v50 = vpop.f32.mrf.mxu0 }
 0x529   : > { %v9930_v28 = vadd.f32 %v6368_v18, %v6144_v58 }
 0x52a   : > { %v6148_v1 = vpop.f32.mrf.mxu1  ;;  %v6373_v15 = vpop.f32.mrf.mxu0 }
 0x52b   : > { %v6149_v8 = vadd.f32 %v6148_v1, %v9820_v61 }
 0x52c   : > { %v6150_v33 = vpop.f32.mrf.mxu1  ;;  %v6375_v55 = vpop.f32.mrf.mxu0 }
 0x52d   : > { %v9933_v5 = vadd.f32 %v6373_v15, %v6149_v8 }
 0x52e   : > { %v6153_v3 = vpop.f32.mrf.mxu1  ;;  %v6378_v47 = vpop.f32.mrf.mxu0 }
 0x52f   : > { %v6154_v2 = vadd.f32 %v6153_v3, %v9825_v49 }
 0x530   : > { %v6155_v60 = vpop.f32.mrf.mxu1  ;;  %v6380_v23 = vpop.f32.mrf.mxu0 }
 0x531   : > { %v9936_v35 = vadd.f32 %v6378_v47, %v6154_v2 }
 0x532   : > { %v6158_v48 = vpop.f32.mrf.mxu1  ;;  %v6383_v39 = vpop.f32.mrf.mxu0 }
 0x533   : > { %v6159_v51 = vadd.f32 %v6158_v48, %v9830_v41 }
 0x534   : > { %v6160_v42 = vpop.f32.mrf.mxu1  ;;  %v6385_v37 = vpop.f32.mrf.mxu0 }
 0x535   : > { %v9939_v7 = vadd.f32 %v6383_v39, %v6159_v51 }
 0x536   : > { %v6163_v61 = vpop.f32.mrf.mxu1  ;;  %v6388_v40 = vpop.f32.mrf.mxu0 }
 0x537   : > { %v6164_v52 = vadd.f32 %v6163_v61, %v9835_v22 }
 0x538   : > { %v6165_v27 = vpop.f32.mrf.mxu1  ;;  %v6390_v53 = vpop.f32.mrf.mxu0 }
 0x539   : > { %v9942_v12 = vadd.f32 %v6388_v40, %v6164_v52 }
 0x53a   : > { %v6168_v49 = vpop.f32.mrf.mxu1  ;;  %v6393_v43 = vpop.f32.mrf.mxu0 }
 0x53b   : > { %v6169_v45 = vadd.f32 %v6168_v49, %v9840_v29 }
 0x53c   : > { %v6170_v6 = vpop.f32.mrf.mxu1  ;;  %v6395_v10 = vpop.f32.mrf.mxu0 }
 0x53d   : > { %v9945_v9 = vadd.f32 %v6393_v43, %v6169_v45 }
 0x53e   : > { %v6173_v41 = vpop.f32.mrf.mxu1  ;;  %v6398_v18 = vpop.f32.mrf.mxu0 }
 0x53f   : > { %v6174_v58 = vadd.f32 %v6173_v41, %v9845_v34 }
 0x540   : > { %v6175_v46 = vpop.f32.mrf.mxu1  ;;  %v6400_v50 = vpop.f32.mrf.mxu0 }
 0x541   : > { %v9948_v1 = vadd.f32 %v6398_v18, %v6174_v58 }
 0x542   : > { %v6178_v22 = vpop.f32.mrf.mxu1  ;;  %v6403_v15 = vpop.f32.mrf.mxu0 }
 0x543   : > { %v6179_v8 = vadd.f32 %v6178_v22, %v9851_v25 }
 0x544   : > { %v6180_v33 = vpop.f32.mrf.mxu1  ;;  %v6405_v55 = vpop.f32.mrf.mxu0 }
 0x545   : > { %v9951_v3 = vadd.f32 %v6403_v15, %v6179_v8 }
 0x546   : > { %v6183_v29 = vpop.f32.mrf.mxu1  ;;  %v6408_v47 = vpop.f32.mrf.mxu0 }
 0x547   : > { %v6184_v2 = vadd.f32 %v6183_v29, %v9857_v17 }
 0x548   : > { %v6185_v60 = vpop.f32.mrf.mxu1  ;;  %v6410_v23 = vpop.f32.mrf.mxu0 }
 0x549   : > { %v9954_v48 = vadd.f32 %v6408_v47, %v6184_v2 }
 0x54a   : > { %v6188_v34 = vpop.f32.mrf.mxu1  ;;  %v6413_v39 = vpop.f32.mrf.mxu0 }
 0x54b   : > { %v6189_v51 = vadd.f32 %v6188_v34, %v9861_v56 }
 0x54c   : > { %v6190_v42 = vpop.f32.mrf.mxu1  ;;  %v6415_v37 = vpop.f32.mrf.mxu0 }
 0x54d   : > { %v9957_v61 = vadd.f32 %v6413_v39, %v6189_v51 }
 0x54e   : > { %v6193_v25 = vpop.f32.mrf.mxu1  ;;  %v6418_v40 = vpop.f32.mrf.mxu0 }
 0x54f   : > { %v6194_v52 = vadd.f32 %v6193_v25, %v9864_v63 }
 0x550   : > { %v6195_v27 = vpop.f32.mrf.mxu1  ;;  %v6420_v53 = vpop.f32.mrf.mxu0 }
 0x551   : > { %v9960_v49 = vadd.f32 %v6418_v40, %v6194_v52 }
 0x552   : > { %v6198_v17 = vpop.f32.mrf.mxu1  ;;  %v6423_v43 = vpop.f32.mrf.mxu0 }
 0x553   : > { %v6199_v45 = vadd.f32 %v6198_v17, %v9867_v19 }
 0x554   : > { %v6200_v6 = vpop.f32.mrf.mxu1  ;;  %v6425_v10 = vpop.f32.mrf.mxu0 }
 0x555   : > { %v9963_v41 = vadd.f32 %v6423_v43, %v6199_v45 }
 0x556   : > { %v6203_v56 = vpop.f32.mrf.mxu1  ;;  %v6428_v18 = vpop.f32.mrf.mxu0 }
 0x557   : > { %v6204_v58 = vadd.f32 %v6203_v56, %v9870_v44 }
 0x558   : > { %v6205_v46 = vpop.f32.mrf.mxu1  ;;  %v6430_v50 = vpop.f32.mrf.mxu0 }
 0x559   : > { %v9966_v22 = vadd.f32 %v6428_v18, %v6204_v58 }
 0x55a   : > { %v6208_v63 = vpop.f32.mrf.mxu1  ;;  %v6433_v15 = vpop.f32.mrf.mxu0 }
 0x55b   : > { %v6209_v8 = vadd.f32 %v6208_v63, %v9873_v0 }
 0x55c   : > { %v6210_v33 = vpop.f32.mrf.mxu1  ;;  %v6435_v55 = vpop.f32.mrf.mxu0 }
 0x55d   : > { %v9969_v29 = vadd.f32 %v6433_v15, %v6209_v8 }
 0x55e   : > { %v6213_v19 = vpop.f32.mrf.mxu1  ;;  %v6438_v47 = vpop.f32.mrf.mxu0 }
 0x55f   : > { %v6214_v2 = vadd.f32 %v6213_v19, %v9876_v11 }
 0x560   : > { %v6215_v60 = vpop.f32.mrf.mxu1  ;;  %v6440_v23 = vpop.f32.mrf.mxu0 }
 0x561   : > { %v9972_v34 = vadd.f32 %v6438_v47, %v6214_v2 }
 0x562   : > { %v6218_v44 = vpop.f32.mrf.mxu1  ;;  %v6443_v39 = vpop.f32.mrf.mxu0 }
 0x563   : > { %v6219_v51 = vadd.f32 %v6218_v44, %v9879_v31 }
 0x564   : > { %v6220_v42 = vpop.f32.mrf.mxu1  ;;  %v6445_v37 = vpop.f32.mrf.mxu0 }
 0x565   : > { %v9975_v25 = vadd.f32 %v6443_v39, %v6219_v51 }
 0x566   : > { %v6223_v0 = vpop.f32.mrf.mxu1  ;;  %v6448_v40 = vpop.f32.mrf.mxu0 }
 0x567   : > { %v6224_v52 = vadd.f32 %v6223_v0, %v9882_v13 }
 0x568   : > { %v6225_v27 = vpop.f32.mrf.mxu1  ;;  %v6450_v53 = vpop.f32.mrf.mxu0 }
 0x569   : > { %v9978_v17 = vadd.f32 %v6448_v40, %v6224_v52 }
 0x56a   : > { %v6228_v11 = vpop.f32.mrf.mxu1  ;;  %v6453_v43 = vpop.f32.mrf.mxu0 }
 0x56b   : > { %v6229_v45 = vadd.f32 %v6228_v11, %v9885_v26 }
 0x56c   : > { %v6230_v6 = vpop.f32.mrf.mxu1  ;;  %v6455_v10 = vpop.f32.mrf.mxu0 }
 0x56d   : > { %v9981_v56 = vadd.f32 %v6453_v43, %v6229_v45 }
 0x56e   : > { %v6233_v31 = vpop.f32.mrf.mxu1  ;;  %v6458_v18 = vpop.f32.mrf.mxu0 }
 0x56f   : > { %v6234_v58 = vadd.f32 %v6233_v31, %v9888_v38 }
 0x570   : > { %v6235_v46 = vpop.f32.mrf.mxu1  ;;  %v6460_v50 = vpop.f32.mrf.mxu0 }
 0x571   : > { %v9984_v63 = vadd.f32 %v6458_v18, %v6234_v58 }
 0x572   : > { %v6238_v13 = vpop.f32.mrf.mxu1  ;;  %v6463_v15 = vpop.f32.mrf.mxu0 }
 0x573   : > { %v6239_v8 = vadd.f32 %v6238_v13, %v9891_v30 }
 0x574   : > { %v6240_v33 = vpop.f32.mrf.mxu1  ;;  %v6465_v55 = vpop.f32.mrf.mxu0 }
 0x575   : > { %v9987_v19 = vadd.f32 %v6463_v15, %v6239_v8 }
 0x576   : > { %v6243_v26 = vpop.f32.mrf.mxu1  ;;  %v6468_v47 = vpop.f32.mrf.mxu0 }
 0x577   : > { %v6244_v2 = vadd.f32 %v6243_v26, %v9894_v57 }
 0x578   : > { %v6245_v60 = vpop.f32.mrf.mxu1  ;;  %v6470_v23 = vpop.f32.mrf.mxu0 }
 0x579   : > { %v9990_v44 = vadd.f32 %v6468_v47, %v6244_v2 }
 0x57a   : > { %v6248_v38 = vpop.f32.mrf.mxu1  ;;  %v6473_v39 = vpop.f32.mrf.mxu0 }
 0x57b   : > { %v6249_v51 = vadd.f32 %v6248_v38, %v9897_v32 }
 0x57c   : > { %v6250_v42 = vpop.f32.mrf.mxu1  ;;  %v6475_v37 = vpop.f32.mrf.mxu0 }
 0x57d   : > { %v9993_v0 = vadd.f32 %v6473_v39, %v6249_v51 }
 0x57e   : > { %v6253_v30 = vpop.f32.mrf.mxu1  ;;  %v6478_v40 = vpop.f32.mrf.mxu0 }
 0x57f   : > { %v6254_v52 = vadd.f32 %v6253_v30, %v9900_v59 }
 0x580   : > { %v6255_v27 = vpop.f32.mrf.mxu1  ;;  %v6480_v53 = vpop.f32.mrf.mxu0 }
 0x581   : > { %v9996_v11 = vadd.f32 %v6478_v40, %v6254_v52 }
 0x582   : > { %v6258_v57 = vpop.f32.mrf.mxu1  ;;  %v6483_v43 = vpop.f32.mrf.mxu0 }
 0x583   : > { %v6259_v45 = vadd.f32 %v6258_v57, %v9903_v16 }
 0x584   : > { %v6260_v6 = vpop.f32.mrf.mxu1  ;;  %v6485_v10 = vpop.f32.mrf.mxu0 }
 0x585   : > { %v9999_v31 = vadd.f32 %v6483_v43, %v6259_v45 }
 0x586   : > { %v6263_v32 = vpop.f32.mrf.mxu1  ;;  %v6488_v18 = vpop.f32.mrf.mxu0 }
 0x587   : > { %v6264_v58 = vadd.f32 %v6263_v32, %v9906_v14 }
 0x588   : > { %v6265_v46 = vpop.f32.mrf.mxu1  ;;  %v6490_v50 = vpop.f32.mrf.mxu0 }
 0x589   : > { %v10002_v59 = vadd.f32 %v6488_v18, %v6264_v58 }
 0x58a   : > { %v6268_v13 = vpop.f32.mrf.mxu1  ;;  %v6493_v15 = vpop.f32.mrf.mxu0 }
 0x58b   : > { %v6269_v8 = vadd.f32 %v6268_v13, %v9909_v21 }
 0x58c   : > { %v6270_v33 = vpop.f32.mrf.mxu1  ;;  %v6495_v55 = vpop.f32.mrf.mxu0 }
 0x58d   : > { %v10005_v16 = vadd.f32 %v6493_v15, %v6269_v8 }
 0x58e   : > { %v6273_v26 = vpop.f32.mrf.mxu1  ;;  %v6498_v47 = vpop.f32.mrf.mxu0 }
 0x58f   : > { %v6274_v2 = vadd.f32 %v6273_v26, %v9912_v20 }
 0x590   : > { %v6275_v60 = vpop.f32.mrf.mxu1  ;;  %v6500_v23 = vpop.f32.mrf.mxu0 }
 0x591   : > { %v10008_v14 = vadd.f32 %v6498_v47, %v6274_v2 }
 0x592   : > { %v10010_v38 = vpop.f32.mrf.mxu1  ;;  %v10012_v39 = vpop.f32.mrf.mxu0 }
 0x594   : > { %v6280_v51 = vpop.f32.mrf.mxu1  ;;  %v6505_v42 = vpop.f32.mrf.mxu0 }
 0x596   : > { %v7045_v21 = vpop.f32.mrf.mxu1 }
 0x597   : > { %v6579_v20 = vadd.f32 %v7045_v21, %v9921_v54 }
 0x598   : > { %v6573_v37 = vpop.f32.mrf.mxu1 }
 0x599   : > { %6733 = vst [vmem:[%s10018_s15 + $0x8] sm:$0xff] %v6579_v20  ;;  %v6574_v30 = vadd.f32 %v6573_v37, %v9918_v4  ;;  %v6279_v37 = vadd.f32 %v10010_v38, %v9915_v36 }
 0x59a   : > { %v7048_v40 = vpop.f32.mrf.mxu1 }
 0x59b   : > { %6732 = vst [vmem:[%s10018_s15] sm:$0xff] %v6574_v30  ;;  %v6589_v52 = vadd.f32 %v7048_v40, %v9927_v24 }
 0x59c   : > { %v6583_v27 = vpop.f32.mrf.mxu1 }
 0x59d   : > { %6735 = vst [vmem:[%s10018_s15 + $0x18] sm:$0xff] %v6589_v52  ;;  %v6584_v53 = vadd.f32 %v6583_v27, %v9924_v62 }
 0x59e   : > { %v7051_v57 = vpop.f32.mrf.mxu1 }
 0x59f   : > { %6734 = vst [vmem:[%s10018_s15 + $0x10] sm:$0xff] %v6584_v53  ;;  %v6599_v54 = vadd.f32 %v7051_v57, %v9933_v5 }
 0x5a0   : > { %v6593_v43 = vpop.f32.mrf.mxu1 }
 0x5a1   : > { %6737 = vst [vmem:[%s10018_s15 + $0x28] sm:$0xff] %v6599_v54  ;;  %v6594_v4 = vadd.f32 %v6593_v43, %v9930_v28 }
 0x5a2   : > { %v7054_v45 = vpop.f32.mrf.mxu1 }
 0x5a3   : > { %6736 = vst [vmem:[%s10018_s15 + $0x20] sm:$0xff] %v6594_v4  ;;  %v6609_v24 = vadd.f32 %v7054_v45, %v9939_v7 }
 0x5a4   : > { %v6603_v6 = vpop.f32.mrf.mxu1 }
 0x5a5   : > { %6739 = vst [vmem:[%s10018_s15 + $0x38] sm:$0xff] %v6609_v24  ;;  %v6604_v62 = vadd.f32 %v6603_v6, %v9936_v35 }
 0x5a6   : > { %v7057_v10 = vpop.f32.mrf.mxu1 }
 0x5a7   : > { %6738 = vst [vmem:[%s10018_s15 + $0x30] sm:$0xff] %v6604_v62  ;;  %v6619_v5 = vadd.f32 %v7057_v10, %v9945_v9 }
 0x5a8   : > { %v6613_v32 = vpop.f32.mrf.mxu1 }
 0x5a9   : > { %6741 = vst [vmem:[%s10018_s15 + $0x48] sm:$0xff] %v6619_v5  ;;  %v6614_v28 = vadd.f32 %v6613_v32, %v9942_v12 }
 0x5aa   : > { %v7060_v18 = vpop.f32.mrf.mxu1 }
 0x5ab   : > { %6740 = vst [vmem:[%s10018_s15 + $0x40] sm:$0xff] %v6614_v28  ;;  %v6629_v7 = vadd.f32 %v7060_v18, %v9951_v3 }
 0x5ac   : > { %v6623_v58 = vpop.f32.mrf.mxu1 }
 0x5ad   : > { %6743 = vst [vmem:[%s10018_s15 + $0x58] sm:$0xff] %v6629_v7  ;;  %v6624_v35 = vadd.f32 %v6623_v58, %v9948_v1 }
 0x5ae   : > { %v7063_v46 = vpop.f32.mrf.mxu1 }
 0x5af   : > { %6742 = vst [vmem:[%s10018_s15 + $0x50] sm:$0xff] %v6624_v35  ;;  %v6639_v9 = vadd.f32 %v7063_v46, %v9957_v61 }
 0x5b0   : > { %v6633_v50 = vpop.f32.mrf.mxu1 }
 0x5b1   : > { %6745 = vst [vmem:[%s10018_s15 + $0x68] sm:$0xff] %v6639_v9  ;;  %v6634_v12 = vadd.f32 %v6633_v50, %v9954_v48 }
 0x5b2   : > { %v7066_v13 = vpop.f32.mrf.mxu1 }
 0x5b3   : > { %6744 = vst [vmem:[%s10018_s15 + $0x60] sm:$0xff] %v6634_v12  ;;  %v6649_v3 = vadd.f32 %v7066_v13, %v9963_v41 }
 0x5b4   : > { %v6643_v15 = vpop.f32.mrf.mxu1 }
 0x5b5   : > { %6747 = vst [vmem:[%s10018_s15 + $0x78] sm:$0xff] %v6649_v3  ;;  %v6644_v1 = vadd.f32 %v6643_v15, %v9960_v49 }
 0x5b6   : > { %v7069_v8 = vpop.f32.mrf.mxu1 }
 0x5b7   : > { %6746 = vst [vmem:[%s10018_s15 + $0x70] sm:$0xff] %v6644_v1  ;;  %v6659_v61 = vadd.f32 %v7069_v8, %v9969_v29 }
 0x5b8   : > { %v6653_v33 = vpop.f32.mrf.mxu1 }
 0x5b9   : > { %6749 = vst [vmem:[%s10018_s15 + $0x88] sm:$0xff] %v6659_v61  ;;  %v6654_v48 = vadd.f32 %v6653_v33, %v9966_v22 }
 0x5ba   : > { %v7072_v55 = vpop.f32.mrf.mxu1 }
 0x5bb   : > { %6748 = vst [vmem:[%s10018_s15 + $0x80] sm:$0xff] %v6654_v48  ;;  %v6669_v41 = vadd.f32 %v7072_v55, %v9975_v25 }
 0x5bc   : > { %v6663_v26 = vpop.f32.mrf.mxu1 }
 0x5bd   : > { %6751 = vst [vmem:[%s10018_s15 + $0x98] sm:$0xff] %v6669_v41  ;;  %v6664_v49 = vadd.f32 %v6663_v26, %v9972_v34 }
 0x5be   : > { %v7075_v47 = vpop.f32.mrf.mxu1 }
 0x5bf   : > { %6750 = vst [vmem:[%s10018_s15 + $0x90] sm:$0xff] %v6664_v49  ;;  %v6679_v29 = vadd.f32 %v7075_v47, %v9981_v56 }
 0x5c0   : > { %v6673_v2 = vpop.f32.mrf.mxu1 }
 0x5c1   : > { %6753 = vst [vmem:[%s10018_s15 + $0xa8] sm:$0xff] %v6679_v29  ;;  %v6674_v22 = vadd.f32 %v6673_v2, %v9978_v17 }
 0x5c2   : > { %v7078_v60 = vpop.f32.mrf.mxu1 }
 0x5c3   : > { %6752 = vst [vmem:[%s10018_s15 + $0xa0] sm:$0xff] %v6674_v22  ;;  %v6689_v25 = vadd.f32 %v7078_v60, %v9987_v19 }
 0x5c4   : > { %v6683_v23 = vpop.f32.mrf.mxu1 }
 0x5c5   : > { %6755 = vst [vmem:[%s10018_s15 + $0xb8] sm:$0xff] %v6689_v25  ;;  %v6684_v34 = vadd.f32 %v6683_v23, %v9984_v63 }
 0x5c6   : > { %v7081_v51 = vpop.f32.mrf.mxu1 }
 0x5c7   : > { %6754 = vst [vmem:[%s10018_s15 + $0xb0] sm:$0xff] %v6684_v34  ;;  %v6699_v42 = vadd.f32 %v7081_v51, %v9993_v0 }
 0x5c8   : > { %v6693_v56 = vpop.f32.mrf.mxu1 }
 0x5c9   : > { %6757 = vst [vmem:[%s10018_s15 + $0xc8] sm:$0xff] %v6699_v42  ;;  %v6694_v21 = vadd.f32 %v6693_v56, %v9990_v44  ;;  %v6504_v44 = vadd.f32 %v10012_v39, %v6279_v37 }
 0x5ca   : > { %v7084_v17 = vpop.f32.mrf.mxu1 }
 0x5cb   : > { %6756 = vst [vmem:[%s10018_s15 + $0xc0] sm:$0xff] %v6694_v21  ;;  %v6709_v20 = vadd.f32 %v7084_v17, %v9999_v31 }
 0x5cc   : > { %v6703_v19 = vpop.f32.mrf.mxu1 }
 0x5cd   : > { %6759 = vst [vmem:[%s10018_s15 + $0xd8] sm:$0xff] %v6709_v20  ;;  %v6704_v63 = vadd.f32 %v6703_v19, %v9996_v11 }
 0x5ce   : > { %v7087_v0 = vpop.f32.mrf.mxu1 }
 0x5cf   : > { %6758 = vst [vmem:[%s10018_s15 + $0xd0] sm:$0xff] %v6704_v63  ;;  %v6719_v30 = vadd.f32 %v7087_v0, %v10005_v16 }
 0x5d0   : > { %v6713_v40 = vpop.f32.mrf.mxu1 }
 0x5d1   : > { %6761 = vst [vmem:[%s10018_s15 + $0xe8] sm:$0xff] %v6719_v30  ;;  %v6714_v52 = vadd.f32 %v6713_v40, %v10002_v59 }
 0x5d2   : > { %v7090_v31 = vpop.f32.mrf.mxu1 }
 0x5d3   : > { %6760 = vst [vmem:[%s10018_s15 + $0xe0] sm:$0xff] %v6714_v52  ;;  %v6729_v27 = vadd.f32 %v7090_v31, %v6504_v44 }
 0x5d4   : > { %v6723_v53 = vpop.f32.mrf.mxu1 }
 0x5d5   : > { %6763 = vst [vmem:[%s10018_s15 + $0xf8] sm:$0xff] %v6729_v27  ;;  %v6724_v36 = vadd.f32 %v6723_v53, %v10008_v14 }
 0x5d7   : > { %6762 = vst [vmem:[%s10018_s15 + $0xf0] sm:$0xff] %v6724_v36 }
 0x5d8 PF: > { %s17_s24 = sadd.s32 1, %s7114_s24  }
 0x5d9   : > { %p14_p4 = scmp.ge.s32.totalorder %s17_s24, 4  }
 0x5db   :  { %16 = sbr.rel (!%p14_p4) target bundleno = 1 (0x1), region = 83 }

</bundles_post_ra>
